<compile_context>
chip_gen: v5e
topology: v5e:2x2
jax: 0.10.0
libtpu: 0.0.40
codegen_flags: <defaults>
</compile_context>

<pallas_src>
import numpy as np
import jax
import jax.numpy as jnp
from jax.experimental import pallas as pl
from jax.experimental.pallas import tpu as pltpu  # noqa: F401  (TPU backend)

B = 2
IN_CH = 3
DIM = 8             # base channel count
STYLE_DIM = 8
MLP_DIM = 32
IMG = 16
FEAT = DIM * 2      # channels after the single downsample
OUT_LANES = 128     # lane-padded width of the final conv output
EPS = 1e-5


# ---------------------------------------------------------------------------
# In-kernel helpers (operate on VMEM-resident values, matmul + elementwise only)
# ---------------------------------------------------------------------------

def _conv(h, a_ref, l_ref, bias_row, kh):
    """Conv as sum over vertical taps:  sum_i L_i @ (h @ A_i) + bias."""
    acc = None
    for i in range(kh):                                   # static unrolled loop
        t = jnp.dot(h, a_ref[i], preferred_element_type=jnp.float32)
        t = jnp.dot(l_ref[i], t, preferred_element_type=jnp.float32)
        acc = t if acc is None else acc + t
    return acc + bias_row


def _instance_norm(h, r, rt, g, gt, n, gamma=None, beta=None, relu=False, residual=None):
    """InstanceNorm2d / AdaIN on (B*H, W*C) layout. Stats per (batch, channel) over spatial.

    r/rt: (B, B*H)/(B*H, B) per-batch row sum/broadcast; g/gt: (W*C, C)/(C, W*C) per-channel
    lane sum/broadcast. Biased variance, matching nn.InstanceNorm2d / MUNIT AdaIN.
    """
    sums = jnp.dot(r, h, preferred_element_type=jnp.float32)                      # (B, W*C)
    mean_bc = jnp.dot(sums, g, preferred_element_type=jnp.float32) * (1.0 / n)    # (B, C)
    mean_full = jnp.dot(jnp.dot(rt, mean_bc, preferred_element_type=jnp.float32),
                        gt, preferred_element_type=jnp.float32)                   # (B*H, W*C)
    d = h - mean_full
    var_bc = jnp.dot(jnp.dot(r, d * d, preferred_element_type=jnp.float32),
                     g, preferred_element_type=jnp.float32) * (1.0 / n)           # (B, C)
    scale_bc = jax.lax.rsqrt(var_bc + EPS)
    if gamma is not None:
        scale_bc = gamma * scale_bc
    y = d * jnp.dot(jnp.dot(rt, scale_bc, preferred_element_type=jnp.float32),
                    gt, preferred_element_type=jnp.float32)
    if beta is not None:
        y = y + jnp.dot(jnp.dot(rt, beta, preferred_element_type=jnp.float32),
                        gt, preferred_element_type=jnp.float32)
    if residual is not None:
        y = y + residual
    if relu:
        y = jnp.maximum(y, 0.0)
    return y


def _layer_norm_relu(h, r, rt, gamma_row, beta_row, n):
    """MUNIT LayerNorm: per-sample stats over (C,H,W), unbiased std, (std+eps) divide,
    per-channel affine, fused ReLU.  h is (B*H, W*C) with W*C == 128 exactly."""
    ones = jnp.ones((h.shape[1], h.shape[1]), jnp.float32)   # lane all-reduce / broadcast
    row_sums = jnp.dot(r, h, preferred_element_type=jnp.float32)                  # (B, W*C)
    mean_full = jnp.dot(rt, jnp.dot(row_sums, ones, preferred_element_type=jnp.float32),
                        preferred_element_type=jnp.float32) * (1.0 / n)           # (B*H, W*C)
    d = h - mean_full
    sq_sums = jnp.dot(r, d * d, preferred_element_type=jnp.float32)
    ss_full = jnp.dot(rt, jnp.dot(sq_sums, ones, preferred_element_type=jnp.float32),
                      preferred_element_type=jnp.float32)
    std_full = jnp.sqrt(ss_full * (1.0 / (n - 1.0)))
    y = d / (std_full + EPS)
    y = y * gamma_row + beta_row
    return jnp.maximum(y, 0.0)


# ---------------------------------------------------------------------------
# The single fused kernel: content encoder -> MLP -> decoder -> tanh
# ---------------------------------------------------------------------------

def _munit_kernel(*refs):
    (x_ref, s_ref,
     a1, l1, a2, l2, a3, l3, a4, l4, a5, l5, a6, l6, a7, l7, a8, l8,
     bias_ref,
     w1t, b1, w2t, b2, w3t, b3,
     lng, lnb,
     g168, gt168, g816, gt816,
     r16, rt16, r8, rt8,
     out_ref) = refs

    G168, GT168 = g168[...], gt168[...]
    G816, GT816 = g816[...], gt816[...]
    R16, RT16 = r16[...], rt16[...]
    R8, RT8 = r8[...], rt8[...]

    # ----- content encoder: conv7(reflect) + IN + ReLU -----------------------
    h = _conv(x_ref[...], a1, l1, bias_ref[0], 7)                                # (32, 128)
    h = _instance_norm(h, R16, RT16, G168, GT168, float(IMG * IMG), relu=True)
    # stride-2 conv4 (zero pad) + IN + ReLU
    h = _conv(h, a2, l2, bias_ref[1], 4)                                         # (16, 128)
    h = _instance_norm(h, R8, RT8, G816, GT816, 64.0, relu=True)
    # residual block (norm = "in")
    res = h
    h = _conv(h, a3, l3, bias_ref[2], 3)
    h = _instance_norm(h, R8, RT8, G816, GT816, 64.0, relu=True)
    h = _conv(h, a4, l4, bias_ref[3], 3)
    h = _instance_norm(h, R8, RT8, G816, GT816, 64.0, residual=res)              # c_code
    # TODO(synk): MUNIT's style-encoder branch is discarded by ModelWrapper
    # ("c_code_1, _ = encoder(x)"); its dead compute is omitted.

    # ----- MLP predicting AdaIN params (Linear-ReLU-Linear-ReLU-Linear) ------
    m = jnp.maximum(jnp.dot(s_ref[...], w1t[...],
                            preferred_element_type=jnp.float32) + b1[...], 0.0)
    m = jnp.maximum(jnp.dot(m, w2t[...],
                            preferred_element_type=jnp.float32) + b2[...], 0.0)
    adain = jnp.dot(m, w3t[...], preferred_element_type=jnp.float32) + b3[...]   # (B, 4*FEAT)
    beta1 = adain[:, 0:FEAT]
    gamma1 = adain[:, FEAT:2 * FEAT]
    beta2 = adain[:, 2 * FEAT:3 * FEAT]
    gamma2 = adain[:, 3 * FEAT:4 * FEAT]

    # ----- decoder: AdaIN residual block --------------------------------------
    res = h
    h = _conv(h, a5, l5, bias_ref[4], 3)
    h = _instance_norm(h, R8, RT8, G816, GT816, 64.0, gamma=gamma1, beta=beta1, relu=True)
    h = _conv(h, a6, l6, bias_ref[5], 3)
    h = _instance_norm(h, R8, RT8, G816, GT816, 64.0, gamma=gamma2, beta=beta2, residual=res)
    # nearest-2x upsample + conv5 (zero pad)  [both folded into A7 / L7]  + LayerNorm + ReLU
    h = _conv(h, a7, l7, bias_ref[6], 5)                                         # (32, 128)
    h = _layer_norm_relu(h, R16, RT16, lng[...], lnb[...], float(DIM * IMG * IMG))
    # reflection-pad conv7 + tanh (output lane-padded to 128 for an unmasked store)
    h = _conv(h, a8, l8, bias_ref[7], 7)                                         # (32, 128)
    out_ref[...] = jnp.tanh(h)


# ---------------------------------------------------------------------------
# Weight preprocessing (host/XLA, one-time, off the hot path)
# ---------------------------------------------------------------------------

def _build_L(kh, stride, pad, h_in, h_out, mode):
    """Vertical tap row-selection matrices (folds vertical pad/stride/reflect/upsample)."""
    L = np.zeros((kh, B * h_out, B * h_in), np.float32)
    for i in range(kh):
        for yo in range(h_out):
            if mode == "up":                       # nearest-2x upsample, then zero pad
                r = yo + i - pad
                if not (0 <= r < 2 * h_in):
                    continue
                yi = r // 2
            else:
                r = stride * yo + i - pad
                if 0 <= r < h_in:
                    yi = r
                elif mode == "reflect":
                    yi = -r if r < 0 else 2 * h_in - 2 - r
                else:                              # zero pad: term contributes nothing
                    continue
            for b in range(B):
                L[i, b * h_out + yo, b * h_in + yi] = 1.0
    return L


def _build_S(kw, stride, pad, w_in, w_out, mode):
    """Horizontal tap selection tensor S[xin, xout, j] (folds horizontal pad/stride/upsample)."""
    S = np.zeros((w_in, w_out, kw), np.float32)
    for j in range(kw):
        for xo in range(w_out):
            if mode == "up":
                c = xo + j - pad
                if not (0 <= c < 2 * w_in):
                    continue
                xi = c // 2
            else:
                c = stride * xo + j - pad
                if 0 <= c < w_in:
                    xi = c
                elif mode == "reflect":
                    xi = -c if c < 0 else 2 * w_in - 2 - c
                else:
                    continue
            S[xi, xo, j] = 1.0
    return S


def _conv_pack(w, bias, stride, pad, hw_in, mode, pad_cols_to=None):
    """Build (A, L, bias_row) so that conv(x) == sum_i L_i @ (x2d @ A_i) + bias_row."""
    co, ci, kh, kw = w.shape
    hin_eff = 2 * hw_in if mode == "up" else hw_in
    hw_out = (hin_eff + 2 * pad - kh) // stride + 1
    S = jnp.asarray(_build_S(kw, stride, pad, hw_in, hw_out, mode))
    L = jnp.asarray(_build_L(kh, stride, pad, hw_in, hw_out, mode))
    # A[i, xin*Ci+ci, xout*Co+co] = sum_j S[xin,xout,j] * w[co,ci,i,j]
    A = jnp.einsum("xoj,dcij->ixcod", S, w.astype(jnp.float32))
    A = A.reshape(kh, hw_in * ci, hw_out * co)
    brow = jnp.tile(bias.astype(jnp.float32), hw_out).reshape(1, hw_out * co)
    if pad_cols_to is not None and hw_out * co < pad_cols_to:
        extra = pad_cols_to - hw_out * co
        A = jnp.pad(A, ((0, 0), (0, 0), (0, extra)))
        brow = jnp.pad(brow, ((0, 0), (0, extra)))
    return A.astype(jnp.float32), L, brow.astype(jnp.float32)


def _build_G(w, c):
    """Per-channel lane grouping matrix: G[x*c + ch, ch] = 1."""
    G = np.zeros((w * c, c), np.float32)
    for x in range(w):
        for ch in range(c):
            G[x * c + ch, ch] = 1.0
    return G


def _build_R(h):
    """Per-batch row summing matrix: R[b, b*h : (b+1)*h] = 1."""
    R = np.zeros((B, B * h), np.float32)
    for b in range(B):
        R[b, b * h:(b + 1) * h] = 1.0
    return R


def prepare_params(p):
    """One-time preprocessing of the PyTorch-layout weights into the kernel's operand tuple."""
    specs = [
        # (weight, bias, stride, pad, spatial_in, mode, pad_cols_to)
        (p["ce_conv1_w"], p["ce_conv1_b"], 1, 3, IMG, "reflect", None),
        (p["ce_conv2_w"], p["ce_conv2_b"], 2, 1, IMG, "zero", None),
        (p["ce_res1_w"], p["ce_res1_b"], 1, 1, IMG // 2, "reflect", None),
        (p["ce_res2_w"], p["ce_res2_b"], 1, 1, IMG // 2, "reflect", None),
        (p["dec_res1_w"], p["dec_res1_b"], 1, 1, IMG // 2, "reflect", None),
        (p["dec_res2_w"], p["dec_res2_b"], 1, 1, IMG // 2, "reflect", None),
        (p["dec_up_w"], p["dec_up_b"], 1, 2, IMG // 2, "up", None),
        (p["dec_out_w"], p["dec_out_b"], 1, 3, IMG, "reflect", OUT_LANES),
    ]
    al = []
    brows = []
    for w, bias, stride, pad, hw_in, mode, pad_to in specs:
        A, L, brow = _conv_pack(w, bias, stride, pad, hw_in, mode, pad_to)
        al += [A, L]
        brows.append(brow)
    bias_all = jnp.stack(brows, axis=0)                      # (8, 1, 128)

    g168 = _build_G(IMG, DIM)            # (128, 8)   for W=16, C=8 activations
    g816 = _build_G(IMG // 2, FEAT)      # (128, 16)  for W=8,  C=16 activations
    r16 = _build_R(IMG)                  # (2, 32)
    r8 = _build_R(IMG // 2)              # (2, 16)

    return tuple(al) + (
        bias_all,
        p["mlp_w1"].T.astype(jnp.float32), p["mlp_b1"].reshape(1, -1).astype(jnp.float32),
        p["mlp_w2"].T.astype(jnp.float32), p["mlp_b2"].reshape(1, -1).astype(jnp.float32),
        p["mlp_w3"].T.astype(jnp.float32), p["mlp_b3"].reshape(1, -1).astype(jnp.float32),
        jnp.tile(p["dec_ln_gamma"], IMG).reshape(1, IMG * DIM).astype(jnp.float32),
        jnp.tile(p["dec_ln_beta"], IMG).reshape(1, IMG * DIM).astype(jnp.float32),
        jnp.asarray(g168), jnp.asarray(g168.T),
        jnp.asarray(g816), jnp.asarray(g816.T),
        jnp.asarray(r16), jnp.asarray(r16.T),
        jnp.asarray(r8), jnp.asarray(r8.T),
    )


# ---------------------------------------------------------------------------
# Forward wrapper: layout-in, single fused pallas_call, layout-out
# ---------------------------------------------------------------------------

@jax.jit
def fused_forward(prep, x, s_code):
    # NCHW -> (B*H, W*C) lane-dense layout
    x2d = jnp.transpose(x, (0, 2, 3, 1)).reshape(B * IMG, IMG * IN_CH).astype(jnp.float32)
    s2d = s_code.reshape(B, STYLE_DIM).astype(jnp.float32)
    out2d = pl.pallas_call(
        _munit_kernel,
        out_shape=jax.ShapeDtypeStruct((B * IMG, OUT_LANES), jnp.float32),
    )(x2d, s2d, *prep)
    out = out2d[:, :IMG * IN_CH].reshape(B, IMG, IMG, IN_CH)
    return jnp.transpose(out, (0, 3, 1, 2))


def model_wrapper_forward(params, x, s_code):
    """Matches PyTorch ModelWrapper.forward(x, s_code)."""
    return fused_forward(prepare_params(params), x, s_code)


# ---------------------------------------------------------------------------
# Deterministic parameter init (synthetic weights, same scheme as the reference)
# ---------------------------------------------------------------------------

def init_params(key):
    keys = jax.random.split(key, 12)

    def conv(k, cout, cin, kh, kw):
        kw_, kb_ = jax.random.split(k)
        return (0.05 * jax.random.normal(kw_, (cout, cin, kh, kw), jnp.float32),
                0.01 * jax.random.normal(kb_, (cout,), jnp.float32))

    def linear(k, cout, cin):
        kw_, kb_ = jax.random.split(k)
        return (0.05 * jax.random.normal(kw_, (cout, cin), jnp.float32),
                0.01 * jax.random.normal(kb_, (cout,), jnp.float32))

    p = {}
    p["ce_conv1_w"], p["ce_conv1_b"] = conv(keys[0], DIM, IN_CH, 7, 7)
    p["ce_conv2_w"], p["ce_conv2_b"] = conv(keys[1], DIM * 2, DIM, 4, 4)
    p["ce_res1_w"], p["ce_res1_b"] = conv(keys[2], DIM * 2, DIM * 2, 3, 3)
    p["ce_res2_w"], p["ce_res2_b"] = conv(keys[3], DIM * 2, DIM * 2, 3, 3)
    p["mlp_w1"], p["mlp_b1"] = linear(keys[4], MLP_DIM, STYLE_DIM)
    p["mlp_w2"], p["mlp_b2"] = linear(keys[5], MLP_DIM, MLP_DIM)
    p["mlp_w3"], p["mlp_b3"] = linear(keys[6], 4 * DIM * 2, MLP_DIM)   # 2 AdaIN layers * 2*feat
    p["dec_res1_w"], p["dec_res1_b"] = conv(keys[7], DIM * 2, DIM * 2, 3, 3)
    p["dec_res2_w"], p["dec_res2_b"] = conv(keys[8], DIM * 2, DIM * 2, 3, 3)
    p["dec_up_w"], p["dec_up_b"] = conv(keys[9], DIM, DIM * 2, 5, 5)
    p["dec_ln_gamma"] = jax.random.uniform(keys[10], (DIM,), jnp.float32)   # torch .uniform_()
    p["dec_ln_beta"] = jnp.zeros((DIM,), jnp.float32)
    p["dec_out_w"], p["dec_out_b"] = conv(keys[11], IN_CH, DIM, 7, 7)
    return p


if __name__ == "__main__":
    key = jax.random.PRNGKey(0)
    kx, ks, kp = jax.random.split(key, 3)
    x = jax.random.normal(kx, (B, IN_CH, IMG, IMG), jnp.float32)
    s_code = jax.random.normal(ks, (B, STYLE_DIM, 1, 1), jnp.float32)
    params = init_params(kp)

    prep = prepare_params(params)          # one-time weight preprocessing (off the hot path)
    out = fused_forward(prep, x, s_code)   # single fused Pallas kernel
    out = jax.block_until_ready(out)

    assert out.shape == (B, IN_CH, IMG, IMG), out.shape
    assert out.dtype == jnp.float32
    assert bool(jnp.all(jnp.isfinite(out)))
    assert bool(jnp.all(jnp.abs(out) <= 1.0))   # tanh output range
    print("KERNEL_OK")
</pallas_src>

<mosaic_0001>
module attributes {stable_mosaic.version = 11 : i64} {
  func.func @_munit_kernel(%arg0: memref<32x48xf32, #tpu.memory_space<vmem>>, %arg1: memref<2x8xf32, #tpu.memory_space<vmem>>, %arg2: memref<7x48x128xf32, #tpu.memory_space<vmem>>, %arg3: memref<7x32x32xf32, #tpu.memory_space<vmem>>, %arg4: memref<4x128x128xf32, #tpu.memory_space<vmem>>, %arg5: memref<4x16x32xf32, #tpu.memory_space<vmem>>, %arg6: memref<3x128x128xf32, #tpu.memory_space<vmem>>, %arg7: memref<3x16x16xf32, #tpu.memory_space<vmem>>, %arg8: memref<3x128x128xf32, #tpu.memory_space<vmem>>, %arg9: memref<3x16x16xf32, #tpu.memory_space<vmem>>, %arg10: memref<3x128x128xf32, #tpu.memory_space<vmem>>, %arg11: memref<3x16x16xf32, #tpu.memory_space<vmem>>, %arg12: memref<3x128x128xf32, #tpu.memory_space<vmem>>, %arg13: memref<3x16x16xf32, #tpu.memory_space<vmem>>, %arg14: memref<5x128x128xf32, #tpu.memory_space<vmem>>, %arg15: memref<5x32x16xf32, #tpu.memory_space<vmem>>, %arg16: memref<7x128x128xf32, #tpu.memory_space<vmem>>, %arg17: memref<7x32x32xf32, #tpu.memory_space<vmem>>, %arg18: memref<8x1x128xf32, #tpu.memory_space<vmem>>, %arg19: memref<8x32xf32, #tpu.memory_space<vmem>>, %arg20: memref<1x32xf32, #tpu.memory_space<vmem>>, %arg21: memref<32x32xf32, #tpu.memory_space<vmem>>, %arg22: memref<1x32xf32, #tpu.memory_space<vmem>>, %arg23: memref<32x64xf32, #tpu.memory_space<vmem>>, %arg24: memref<1x64xf32, #tpu.memory_space<vmem>>, %arg25: memref<1x128xf32, #tpu.memory_space<vmem>>, %arg26: memref<1x128xf32, #tpu.memory_space<vmem>>, %arg27: memref<128x8xf32, #tpu.memory_space<vmem>>, %arg28: memref<8x128xf32, #tpu.memory_space<vmem>>, %arg29: memref<128x16xf32, #tpu.memory_space<vmem>>, %arg30: memref<16x128xf32, #tpu.memory_space<vmem>>, %arg31: memref<2x32xf32, #tpu.memory_space<vmem>>, %arg32: memref<32x2xf32, #tpu.memory_space<vmem>>, %arg33: memref<2x16xf32, #tpu.memory_space<vmem>>, %arg34: memref<16x2xf32, #tpu.memory_space<vmem>>, %arg35: memref<32x128xf32, #tpu.memory_space<vmem>>) attributes {dimension_semantics = [], scalar_prefetch = 0 : i64, scratch_operands = 0 : i64, tpu.core_type = #tpu.core_type<tc>} {
    %c0 = arith.constant 0 : index
    %c0_0 = arith.constant 0 : index
    %0 = vector.load %arg27[%c0, %c0_0] : memref<128x8xf32, #tpu.memory_space<vmem>>, vector<128x8xf32>
    %c0_1 = arith.constant 0 : index
    %c0_2 = arith.constant 0 : index
    %1 = vector.load %arg28[%c0_1, %c0_2] : memref<8x128xf32, #tpu.memory_space<vmem>>, vector<8x128xf32>
    %c0_3 = arith.constant 0 : index
    %c0_4 = arith.constant 0 : index
    %2 = vector.load %arg29[%c0_3, %c0_4] : memref<128x16xf32, #tpu.memory_space<vmem>>, vector<128x16xf32>
    %c0_5 = arith.constant 0 : index
    %c0_6 = arith.constant 0 : index
    %3 = vector.load %arg30[%c0_5, %c0_6] : memref<16x128xf32, #tpu.memory_space<vmem>>, vector<16x128xf32>
    %c0_7 = arith.constant 0 : index
    %c0_8 = arith.constant 0 : index
    %4 = vector.load %arg31[%c0_7, %c0_8] : memref<2x32xf32, #tpu.memory_space<vmem>>, vector<2x32xf32>
    %c0_9 = arith.constant 0 : index
    %c0_10 = arith.constant 0 : index
    %5 = vector.load %arg32[%c0_9, %c0_10] : memref<32x2xf32, #tpu.memory_space<vmem>>, vector<32x2xf32>
    %c0_11 = arith.constant 0 : index
    %c0_12 = arith.constant 0 : index
    %6 = vector.load %arg33[%c0_11, %c0_12] : memref<2x16xf32, #tpu.memory_space<vmem>>, vector<2x16xf32>
    %c0_13 = arith.constant 0 : index
    %c0_14 = arith.constant 0 : index
    %7 = vector.load %arg34[%c0_13, %c0_14] : memref<16x2xf32, #tpu.memory_space<vmem>>, vector<16x2xf32>
    %c0_15 = arith.constant 0 : index
    %c0_16 = arith.constant 0 : index
    %8 = vector.load %arg0[%c0_15, %c0_16] : memref<32x48xf32, #tpu.memory_space<vmem>>, vector<32x48xf32>
    %c0_17 = arith.constant 0 : index
    %c0_18 = arith.constant 0 : index
    %c0_19 = arith.constant 0 : index
    %9 = vector.load %arg18[%c0_17, %c0_18, %c0_19] : memref<8x1x128xf32, #tpu.memory_space<vmem>>, vector<1x1x128xf32>
    %10 = vector.shape_cast %9 : vector<1x1x128xf32> to vector<1x128xf32>
    %c0_20 = arith.constant 0 : index
    %c0_21 = arith.constant 0 : index
    %c0_22 = arith.constant 0 : index
    %11 = vector.load %arg2[%c0_20, %c0_21, %c0_22] : memref<7x48x128xf32, #tpu.memory_space<vmem>>, vector<1x48x128xf32>
    %12 = vector.shape_cast %11 : vector<1x48x128xf32> to vector<48x128xf32>
    %cst = arith.constant dense<0.000000e+00> : vector<32x128xf32>
    %13 = tpu.matmul %8, %12, %cst {dimension_numbers = #tpu.dot_dimension_numbers<[1], [0], [0], [1], [0, 0, 1, 1], [], []>} : vector<32x48xf32>, vector<48x128xf32>, vector<32x128xf32> -> vector<32x128xf32>
    %c0_23 = arith.constant 0 : index
    %c0_24 = arith.constant 0 : index
    %c0_25 = arith.constant 0 : index
    %14 = vector.load %arg3[%c0_23, %c0_24, %c0_25] : memref<7x32x32xf32, #tpu.memory_space<vmem>>, vector<1x32x32xf32>
    %15 = vector.shape_cast %14 : vector<1x32x32xf32> to vector<32x32xf32>
    %cst_26 = arith.constant dense<0.000000e+00> : vector<32x128xf32>
    %16 = tpu.matmul %15, %13, %cst_26 {dimension_numbers = #tpu.dot_dimension_numbers<[1], [0], [0], [1], [0, 0, 1, 1], [], []>} : vector<32x32xf32>, vector<32x128xf32>, vector<32x128xf32> -> vector<32x128xf32>
    %c1 = arith.constant 1 : index
    %c0_27 = arith.constant 0 : index
    %c0_28 = arith.constant 0 : index
    %17 = vector.load %arg2[%c1, %c0_27, %c0_28] : memref<7x48x128xf32, #tpu.memory_space<vmem>>, vector<1x48x128xf32>
    %18 = vector.shape_cast %17 : vector<1x48x128xf32> to vector<48x128xf32>
    %cst_29 = arith.constant dense<0.000000e+00> : vector<32x128xf32>
    %19 = tpu.matmul %8, %18, %cst_29 {dimension_numbers = #tpu.dot_dimension_numbers<[1], [0], [0], [1], [0, 0, 1, 1], [], []>} : vector<32x48xf32>, vector<48x128xf32>, vector<32x128xf32> -> vector<32x128xf32>
    %c1_30 = arith.constant 1 : index
    %c0_31 = arith.constant 0 : index
    %c0_32 = arith.constant 0 : index
    %20 = vector.load %arg3[%c1_30, %c0_31, %c0_32] : memref<7x32x32xf32, #tpu.memory_space<vmem>>, vector<1x32x32xf32>
    %21 = vector.shape_cast %20 : vector<1x32x32xf32> to vector<32x32xf32>
    %cst_33 = arith.constant dense<0.000000e+00> : vector<32x128xf32>
    %22 = tpu.matmul %21, %19, %cst_33 {dimension_numbers = #tpu.dot_dimension_numbers<[1], [0], [0], [1], [0, 0, 1, 1], [], []>} : vector<32x32xf32>, vector<32x128xf32>, vector<32x128xf32> -> vector<32x128xf32>
    %23 = arith.addf %16, %22 : vector<32x128xf32>
    %c2 = arith.constant 2 : index
    %c0_34 = arith.constant 0 : index
    %c0_35 = arith.constant 0 : index
    %24 = vector.load %arg2[%c2, %c0_34, %c0_35] : memref<7x48x128xf32, #tpu.memory_space<vmem>>, vector<1x48x128xf32>
    %25 = vector.shape_cast %24 : vector<1x48x128xf32> to vector<48x128xf32>
    %cst_36 = arith.constant dense<0.000000e+00> : vector<32x128xf32>
    %26 = tpu.matmul %8, %25, %cst_36 {dimension_numbers = #tpu.dot_dimension_numbers<[1], [0], [0], [1], [0, 0, 1, 1], [], []>} : vector<32x48xf32>, vector<48x128xf32>, vector<32x128xf32> -> vector<32x128xf32>
    %c2_37 = arith.constant 2 : index
    %c0_38 = arith.constant 0 : index
    %c0_39 = arith.constant 0 : index
    %27 = vector.load %arg3[%c2_37, %c0_38, %c0_39] : memref<7x32x32xf32, #tpu.memory_space<vmem>>, vector<1x32x32xf32>
    %28 = vector.shape_cast %27 : vector<1x32x32xf32> to vector<32x32xf32>
    %cst_40 = arith.constant dense<0.000000e+00> : vector<32x128xf32>
    %29 = tpu.matmul %28, %26, %cst_40 {dimension_numbers = #tpu.dot_dimension_numbers<[1], [0], [0], [1], [0, 0, 1, 1], [], []>} : vector<32x32xf32>, vector<32x128xf32>, vector<32x128xf32> -> vector<32x128xf32>
    %30 = arith.addf %23, %29 : vector<32x128xf32>
    %c3 = arith.constant 3 : index
    %c0_41 = arith.constant 0 : index
    %c0_42 = arith.constant 0 : index
    %31 = vector.load %arg2[%c3, %c0_41, %c0_42] : memref<7x48x128xf32, #tpu.memory_space<vmem>>, vector<1x48x128xf32>
    %32 = vector.shape_cast %31 : vector<1x48x128xf32> to vector<48x128xf32>
    %cst_43 = arith.constant dense<0.000000e+00> : vector<32x128xf32>
    %33 = tpu.matmul %8, %32, %cst_43 {dimension_numbers = #tpu.dot_dimension_numbers<[1], [0], [0], [1], [0, 0, 1, 1], [], []>} : vector<32x48xf32>, vector<48x128xf32>, vector<32x128xf32> -> vector<32x128xf32>
    %c3_44 = arith.constant 3 : index
    %c0_45 = arith.constant 0 : index
    %c0_46 = arith.constant 0 : index
    %34 = vector.load %arg3[%c3_44, %c0_45, %c0_46] : memref<7x32x32xf32, #tpu.memory_space<vmem>>, vector<1x32x32xf32>
    %35 = vector.shape_cast %34 : vector<1x32x32xf32> to vector<32x32xf32>
    %cst_47 = arith.constant dense<0.000000e+00> : vector<32x128xf32>
    %36 = tpu.matmul %35, %33, %cst_47 {dimension_numbers = #tpu.dot_dimension_numbers<[1], [0], [0], [1], [0, 0, 1, 1], [], []>} : vector<32x32xf32>, vector<32x128xf32>, vector<32x128xf32> -> vector<32x128xf32>
    %37 = arith.addf %30, %36 : vector<32x128xf32>
    %c4 = arith.constant 4 : index
    %c0_48 = arith.constant 0 : index
    %c0_49 = arith.constant 0 : index
    %38 = vector.load %arg2[%c4, %c0_48, %c0_49] : memref<7x48x128xf32, #tpu.memory_space<vmem>>, vector<1x48x128xf32>
    %39 = vector.shape_cast %38 : vector<1x48x128xf32> to vector<48x128xf32>
    %cst_50 = arith.constant dense<0.000000e+00> : vector<32x128xf32>
    %40 = tpu.matmul %8, %39, %cst_50 {dimension_numbers = #tpu.dot_dimension_numbers<[1], [0], [0], [1], [0, 0, 1, 1], [], []>} : vector<32x48xf32>, vector<48x128xf32>, vector<32x128xf32> -> vector<32x128xf32>
    %c4_51 = arith.constant 4 : index
    %c0_52 = arith.constant 0 : index
    %c0_53 = arith.constant 0 : index
    %41 = vector.load %arg3[%c4_51, %c0_52, %c0_53] : memref<7x32x32xf32, #tpu.memory_space<vmem>>, vector<1x32x32xf32>
    %42 = vector.shape_cast %41 : vector<1x32x32xf32> to vector<32x32xf32>
    %cst_54 = arith.constant dense<0.000000e+00> : vector<32x128xf32>
    %43 = tpu.matmul %42, %40, %cst_54 {dimension_numbers = #tpu.dot_dimension_numbers<[1], [0], [0], [1], [0, 0, 1, 1], [], []>} : vector<32x32xf32>, vector<32x128xf32>, vector<32x128xf32> -> vector<32x128xf32>
    %44 = arith.addf %37, %43 : vector<32x128xf32>
    %c5 = arith.constant 5 : index
    %c0_55 = arith.constant 0 : index
    %c0_56 = arith.constant 0 : index
    %45 = vector.load %arg2[%c5, %c0_55, %c0_56] : memref<7x48x128xf32, #tpu.memory_space<vmem>>, vector<1x48x128xf32>
    %46 = vector.shape_cast %45 : vector<1x48x128xf32> to vector<48x128xf32>
    %cst_57 = arith.constant dense<0.000000e+00> : vector<32x128xf32>
    %47 = tpu.matmul %8, %46, %cst_57 {dimension_numbers = #tpu.dot_dimension_numbers<[1], [0], [0], [1], [0, 0, 1, 1], [], []>} : vector<32x48xf32>, vector<48x128xf32>, vector<32x128xf32> -> vector<32x128xf32>
    %c5_58 = arith.constant 5 : index
    %c0_59 = arith.constant 0 : index
    %c0_60 = arith.constant 0 : index
    %48 = vector.load %arg3[%c5_58, %c0_59, %c0_60] : memref<7x32x32xf32, #tpu.memory_space<vmem>>, vector<1x32x32xf32>
    %49 = vector.shape_cast %48 : vector<1x32x32xf32> to vector<32x32xf32>
    %cst_61 = arith.constant dense<0.000000e+00> : vector<32x128xf32>
    %50 = tpu.matmul %49, %47, %cst_61 {dimension_numbers = #tpu.dot_dimension_numbers<[1], [0], [0], [1], [0, 0, 1, 1], [], []>} : vector<32x32xf32>, vector<32x128xf32>, vector<32x128xf32> -> vector<32x128xf32>
    %51 = arith.addf %44, %50 : vector<32x128xf32>
    %c6 = arith.constant 6 : index
    %c0_62 = arith.constant 0 : index
    %c0_63 = arith.constant 0 : index
    %52 = vector.load %arg2[%c6, %c0_62, %c0_63] : memref<7x48x128xf32, #tpu.memory_space<vmem>>, vector<1x48x128xf32>
    %53 = vector.shape_cast %52 : vector<1x48x128xf32> to vector<48x128xf32>
    %cst_64 = arith.constant dense<0.000000e+00> : vector<32x128xf32>
    %54 = tpu.matmul %8, %53, %cst_64 {dimension_numbers = #tpu.dot_dimension_numbers<[1], [0], [0], [1], [0, 0, 1, 1], [], []>} : vector<32x48xf32>, vector<48x128xf32>, vector<32x128xf32> -> vector<32x128xf32>
    %c6_65 = arith.constant 6 : index
    %c0_66 = arith.constant 0 : index
    %c0_67 = arith.constant 0 : index
    %55 = vector.load %arg3[%c6_65, %c0_66, %c0_67] : memref<7x32x32xf32, #tpu.memory_space<vmem>>, vector<1x32x32xf32>
    %56 = vector.shape_cast %55 : vector<1x32x32xf32> to vector<32x32xf32>
    %cst_68 = arith.constant dense<0.000000e+00> : vector<32x128xf32>
    %57 = tpu.matmul %56, %54, %cst_68 {dimension_numbers = #tpu.dot_dimension_numbers<[1], [0], [0], [1], [0, 0, 1, 1], [], []>} : vector<32x32xf32>, vector<32x128xf32>, vector<32x128xf32> -> vector<32x128xf32>
    %58 = arith.addf %51, %57 : vector<32x128xf32>
    %59 = vector.broadcast %10 : vector<1x128xf32> to vector<32x128xf32>
    %60 = arith.addf %58, %59 : vector<32x128xf32>
    %cst_69 = arith.constant dense<0.000000e+00> : vector<2x128xf32>
    %61 = tpu.matmul %4, %60, %cst_69 {dimension_numbers = #tpu.dot_dimension_numbers<[1], [0], [0], [1], [0, 0, 1, 1], [], []>} : vector<2x32xf32>, vector<32x128xf32>, vector<2x128xf32> -> vector<2x128xf32>
    %cst_70 = arith.constant dense<0.000000e+00> : vector<2x8xf32>
    %62 = tpu.matmul %61, %0, %cst_70 {dimension_numbers = #tpu.dot_dimension_numbers<[1], [0], [0], [1], [0, 0, 1, 1], [], []>} : vector<2x128xf32>, vector<128x8xf32>, vector<2x8xf32> -> vector<2x8xf32>
    %cst_71 = arith.constant 3.906250e-03 : f32
    %63 = vector.broadcast %cst_71 : f32 to vector<2x8xf32>
    %64 = arith.mulf %62, %63 : vector<2x8xf32>
    %cst_72 = arith.constant dense<0.000000e+00> : vector<32x8xf32>
    %65 = tpu.matmul %5, %64, %cst_72 {dimension_numbers = #tpu.dot_dimension_numbers<[1], [0], [0], [1], [0, 0, 1, 1], [], []>} : vector<32x2xf32>, vector<2x8xf32>, vector<32x8xf32> -> vector<32x8xf32>
    %cst_73 = arith.constant dense<0.000000e+00> : vector<32x128xf32>
    %66 = tpu.matmul %65, %1, %cst_73 {dimension_numbers = #tpu.dot_dimension_numbers<[1], [0], [0], [1], [0, 0, 1, 1], [], []>} : vector<32x8xf32>, vector<8x128xf32>, vector<32x128xf32> -> vector<32x128xf32>
    %67 = arith.subf %60, %66 : vector<32x128xf32>
    %68 = arith.mulf %67, %67 : vector<32x128xf32>
    %cst_74 = arith.constant dense<0.000000e+00> : vector<2x128xf32>
    %69 = tpu.matmul %4, %68, %cst_74 {dimension_numbers = #tpu.dot_dimension_numbers<[1], [0], [0], [1], [0, 0, 1, 1], [], []>} : vector<2x32xf32>, vector<32x128xf32>, vector<2x128xf32> -> vector<2x128xf32>
    %cst_75 = arith.constant dense<0.000000e+00> : vector<2x8xf32>
    %70 = tpu.matmul %69, %0, %cst_75 {dimension_numbers = #tpu.dot_dimension_numbers<[1], [0], [0], [1], [0, 0, 1, 1], [], []>} : vector<2x128xf32>, vector<128x8xf32>, vector<2x8xf32> -> vector<2x8xf32>
    %cst_76 = arith.constant 3.906250e-03 : f32
    %71 = vector.broadcast %cst_76 : f32 to vector<2x8xf32>
    %72 = arith.mulf %70, %71 : vector<2x8xf32>
    %cst_77 = arith.constant 9.99999974E-6 : f32
    %73 = vector.broadcast %cst_77 : f32 to vector<2x8xf32>
    %74 = arith.addf %72, %73 : vector<2x8xf32>
    %75 = math.rsqrt %74 : vector<2x8xf32>
    %cst_78 = arith.constant dense<0.000000e+00> : vector<32x8xf32>
    %76 = tpu.matmul %5, %75, %cst_78 {dimension_numbers = #tpu.dot_dimension_numbers<[1], [0], [0], [1], [0, 0, 1, 1], [], []>} : vector<32x2xf32>, vector<2x8xf32>, vector<32x8xf32> -> vector<32x8xf32>
    %cst_79 = arith.constant dense<0.000000e+00> : vector<32x128xf32>
    %77 = tpu.matmul %76, %1, %cst_79 {dimension_numbers = #tpu.dot_dimension_numbers<[1], [0], [0], [1], [0, 0, 1, 1], [], []>} : vector<32x8xf32>, vector<8x128xf32>, vector<32x128xf32> -> vector<32x128xf32>
    %78 = arith.mulf %67, %77 : vector<32x128xf32>
    %cst_80 = arith.constant 0.000000e+00 : f32
    %79 = vector.broadcast %cst_80 : f32 to vector<32x128xf32>
    %80 = arith.maximumf %78, %79 : vector<32x128xf32>
    %c1_81 = arith.constant 1 : index
    %c0_82 = arith.constant 0 : index
    %c0_83 = arith.constant 0 : index
    %81 = vector.load %arg18[%c1_81, %c0_82, %c0_83] : memref<8x1x128xf32, #tpu.memory_space<vmem>>, vector<1x1x128xf32>
    %82 = vector.shape_cast %81 : vector<1x1x128xf32> to vector<1x128xf32>
    %c0_84 = arith.constant 0 : index
    %c0_85 = arith.constant 0 : index
    %c0_86 = arith.constant 0 : index
    %83 = vector.load %arg4[%c0_84, %c0_85, %c0_86] : memref<4x128x128xf32, #tpu.memory_space<vmem>>, vector<1x128x128xf32>
    %84 = vector.shape_cast %83 : vector<1x128x128xf32> to vector<128x128xf32>
    %cst_87 = arith.constant dense<0.000000e+00> : vector<32x128xf32>
    %85 = tpu.matmul %80, %84, %cst_87 {dimension_numbers = #tpu.dot_dimension_numbers<[1], [0], [0], [1], [0, 0, 1, 1], [], []>} : vector<32x128xf32>, vector<128x128xf32>, vector<32x128xf32> -> vector<32x128xf32>
    %c0_88 = arith.constant 0 : index
    %c0_89 = arith.constant 0 : index
    %c0_90 = arith.constant 0 : index
    %86 = vector.load %arg5[%c0_88, %c0_89, %c0_90] : memref<4x16x32xf32, #tpu.memory_space<vmem>>, vector<1x16x32xf32>
    %87 = vector.shape_cast %86 : vector<1x16x32xf32> to vector<16x32xf32>
    %cst_91 = arith.constant dense<0.000000e+00> : vector<16x128xf32>
    %88 = tpu.matmul %87, %85, %cst_91 {dimension_numbers = #tpu.dot_dimension_numbers<[1], [0], [0], [1], [0, 0, 1, 1], [], []>} : vector<16x32xf32>, vector<32x128xf32>, vector<16x128xf32> -> vector<16x128xf32>
    %c1_92 = arith.constant 1 : index
    %c0_93 = arith.constant 0 : index
    %c0_94 = arith.constant 0 : index
    %89 = vector.load %arg4[%c1_92, %c0_93, %c0_94] : memref<4x128x128xf32, #tpu.memory_space<vmem>>, vector<1x128x128xf32>
    %90 = vector.shape_cast %89 : vector<1x128x128xf32> to vector<128x128xf32>
    %cst_95 = arith.constant dense<0.000000e+00> : vector<32x128xf32>
    %91 = tpu.matmul %80, %90, %cst_95 {dimension_numbers = #tpu.dot_dimension_numbers<[1], [0], [0], [1], [0, 0, 1, 1], [], []>} : vector<32x128xf32>, vector<128x128xf32>, vector<32x128xf32> -> vector<32x128xf32>
    %c1_96 = arith.constant 1 : index
    %c0_97 = arith.constant 0 : index
    %c0_98 = arith.constant 0 : index
    %92 = vector.load %arg5[%c1_96, %c0_97, %c0_98] : memref<4x16x32xf32, #tpu.memory_space<vmem>>, vector<1x16x32xf32>
    %93 = vector.shape_cast %92 : vector<1x16x32xf32> to vector<16x32xf32>
    %cst_99 = arith.constant dense<0.000000e+00> : vector<16x128xf32>
    %94 = tpu.matmul %93, %91, %cst_99 {dimension_numbers = #tpu.dot_dimension_numbers<[1], [0], [0], [1], [0, 0, 1, 1], [], []>} : vector<16x32xf32>, vector<32x128xf32>, vector<16x128xf32> -> vector<16x128xf32>
    %95 = arith.addf %88, %94 : vector<16x128xf32>
    %c2_100 = arith.constant 2 : index
    %c0_101 = arith.constant 0 : index
    %c0_102 = arith.constant 0 : index
    %96 = vector.load %arg4[%c2_100, %c0_101, %c0_102] : memref<4x128x128xf32, #tpu.memory_space<vmem>>, vector<1x128x128xf32>
    %97 = vector.shape_cast %96 : vector<1x128x128xf32> to vector<128x128xf32>
    %cst_103 = arith.constant dense<0.000000e+00> : vector<32x128xf32>
    %98 = tpu.matmul %80, %97, %cst_103 {dimension_numbers = #tpu.dot_dimension_numbers<[1], [0], [0], [1], [0, 0, 1, 1], [], []>} : vector<32x128xf32>, vector<128x128xf32>, vector<32x128xf32> -> vector<32x128xf32>
    %c2_104 = arith.constant 2 : index
    %c0_105 = arith.constant 0 : index
    %c0_106 = arith.constant 0 : index
    %99 = vector.load %arg5[%c2_104, %c0_105, %c0_106] : memref<4x16x32xf32, #tpu.memory_space<vmem>>, vector<1x16x32xf32>
    %100 = vector.shape_cast %99 : vector<1x16x32xf32> to vector<16x32xf32>
    %cst_107 = arith.constant dense<0.000000e+00> : vector<16x128xf32>
    %101 = tpu.matmul %100, %98, %cst_107 {dimension_numbers = #tpu.dot_dimension_numbers<[1], [0], [0], [1], [0, 0, 1, 1], [], []>} : vector<16x32xf32>, vector<32x128xf32>, vector<16x128xf32> -> vector<16x128xf32>
    %102 = arith.addf %95, %101 : vector<16x128xf32>
    %c3_108 = arith.constant 3 : index
    %c0_109 = arith.constant 0 : index
    %c0_110 = arith.constant 0 : index
    %103 = vector.load %arg4[%c3_108, %c0_109, %c0_110] : memref<4x128x128xf32, #tpu.memory_space<vmem>>, vector<1x128x128xf32>
    %104 = vector.shape_cast %103 : vector<1x128x128xf32> to vector<128x128xf32>
    %cst_111 = arith.constant dense<0.000000e+00> : vector<32x128xf32>
    %105 = tpu.matmul %80, %104, %cst_111 {dimension_numbers = #tpu.dot_dimension_numbers<[1], [0], [0], [1], [0, 0, 1, 1], [], []>} : vector<32x128xf32>, vector<128x128xf32>, vector<32x128xf32> -> vector<32x128xf32>
    %c3_112 = arith.constant 3 : index
    %c0_113 = arith.constant 0 : index
    %c0_114 = arith.constant 0 : index
    %106 = vector.load %arg5[%c3_112, %c0_113, %c0_114] : memref<4x16x32xf32, #tpu.memory_space<vmem>>, vector<1x16x32xf32>
    %107 = vector.shape_cast %106 : vector<1x16x32xf32> to vector<16x32xf32>
    %cst_115 = arith.constant dense<0.000000e+00> : vector<16x128xf32>
    %108 = tpu.matmul %107, %105, %cst_115 {dimension_numbers = #tpu.dot_dimension_numbers<[1], [0], [0], [1], [0, 0, 1, 1], [], []>} : vector<16x32xf32>, vector<32x128xf32>, vector<16x128xf32> -> vector<16x128xf32>
    %109 = arith.addf %102, %108 : vector<16x128xf32>
    %110 = vector.broadcast %82 : vector<1x128xf32> to vector<16x128xf32>
    %111 = arith.addf %109, %110 : vector<16x128xf32>
    %cst_116 = arith.constant dense<0.000000e+00> : vector<2x128xf32>
    %112 = tpu.matmul %6, %111, %cst_116 {dimension_numbers = #tpu.dot_dimension_numbers<[1], [0], [0], [1], [0, 0, 1, 1], [], []>} : vector<2x16xf32>, vector<16x128xf32>, vector<2x128xf32> -> vector<2x128xf32>
    %cst_117 = arith.constant dense<0.000000e+00> : vector<2x16xf32>
    %113 = tpu.matmul %112, %2, %cst_117 {dimension_numbers = #tpu.dot_dimension_numbers<[1], [0], [0], [1], [0, 0, 1, 1], [], []>} : vector<2x128xf32>, vector<128x16xf32>, vector<2x16xf32> -> vector<2x16xf32>
    %cst_118 = arith.constant 1.562500e-02 : f32
    %114 = vector.broadcast %cst_118 : f32 to vector<2x16xf32>
    %115 = arith.mulf %113, %114 : vector<2x16xf32>
    %cst_119 = arith.constant dense<0.000000e+00> : vector<16x16xf32>
    %116 = tpu.matmul %7, %115, %cst_119 {dimension_numbers = #tpu.dot_dimension_numbers<[1], [0], [0], [1], [0, 0, 1, 1], [], []>} : vector<16x2xf32>, vector<2x16xf32>, vector<16x16xf32> -> vector<16x16xf32>
    %cst_120 = arith.constant dense<0.000000e+00> : vector<16x128xf32>
    %117 = tpu.matmul %116, %3, %cst_120 {dimension_numbers = #tpu.dot_dimension_numbers<[1], [0], [0], [1], [0, 0, 1, 1], [], []>} : vector<16x16xf32>, vector<16x128xf32>, vector<16x128xf32> -> vector<16x128xf32>
    %118 = arith.subf %111, %117 : vector<16x128xf32>
    %119 = arith.mulf %118, %118 : vector<16x128xf32>
    %cst_121 = arith.constant dense<0.000000e+00> : vector<2x128xf32>
    %120 = tpu.matmul %6, %119, %cst_121 {dimension_numbers = #tpu.dot_dimension_numbers<[1], [0], [0], [1], [0, 0, 1, 1], [], []>} : vector<2x16xf32>, vector<16x128xf32>, vector<2x128xf32> -> vector<2x128xf32>
    %cst_122 = arith.constant dense<0.000000e+00> : vector<2x16xf32>
    %121 = tpu.matmul %120, %2, %cst_122 {dimension_numbers = #tpu.dot_dimension_numbers<[1], [0], [0], [1], [0, 0, 1, 1], [], []>} : vector<2x128xf32>, vector<128x16xf32>, vector<2x16xf32> -> vector<2x16xf32>
    %cst_123 = arith.constant 1.562500e-02 : f32
    %122 = vector.broadcast %cst_123 : f32 to vector<2x16xf32>
    %123 = arith.mulf %121, %122 : vector<2x16xf32>
    %cst_124 = arith.constant 9.99999974E-6 : f32
    %124 = vector.broadcast %cst_124 : f32 to vector<2x16xf32>
    %125 = arith.addf %123, %124 : vector<2x16xf32>
    %126 = math.rsqrt %125 : vector<2x16xf32>
    %cst_125 = arith.constant dense<0.000000e+00> : vector<16x16xf32>
    %127 = tpu.matmul %7, %126, %cst_125 {dimension_numbers = #tpu.dot_dimension_numbers<[1], [0], [0], [1], [0, 0, 1, 1], [], []>} : vector<16x2xf32>, vector<2x16xf32>, vector<16x16xf32> -> vector<16x16xf32>
    %cst_126 = arith.constant dense<0.000000e+00> : vector<16x128xf32>
    %128 = tpu.matmul %127, %3, %cst_126 {dimension_numbers = #tpu.dot_dimension_numbers<[1], [0], [0], [1], [0, 0, 1, 1], [], []>} : vector<16x16xf32>, vector<16x128xf32>, vector<16x128xf32> -> vector<16x128xf32>
    %129 = arith.mulf %118, %128 : vector<16x128xf32>
    %cst_127 = arith.constant 0.000000e+00 : f32
    %130 = vector.broadcast %cst_127 : f32 to vector<16x128xf32>
    %131 = arith.maximumf %129, %130 : vector<16x128xf32>
    %c2_128 = arith.constant 2 : index
    %c0_129 = arith.constant 0 : index
    %c0_130 = arith.constant 0 : index
    %132 = vector.load %arg18[%c2_128, %c0_129, %c0_130] : memref<8x1x128xf32, #tpu.memory_space<vmem>>, vector<1x1x128xf32>
    %133 = vector.shape_cast %132 : vector<1x1x128xf32> to vector<1x128xf32>
    %c0_131 = arith.constant 0 : index
    %c0_132 = arith.constant 0 : index
    %c0_133 = arith.constant 0 : index
    %134 = vector.load %arg6[%c0_131, %c0_132, %c0_133] : memref<3x128x128xf32, #tpu.memory_space<vmem>>, vector<1x128x128xf32>
    %135 = vector.shape_cast %134 : vector<1x128x128xf32> to vector<128x128xf32>
    %cst_134 = arith.constant dense<0.000000e+00> : vector<16x128xf32>
    %136 = tpu.matmul %131, %135, %cst_134 {dimension_numbers = #tpu.dot_dimension_numbers<[1], [0], [0], [1], [0, 0, 1, 1], [], []>} : vector<16x128xf32>, vector<128x128xf32>, vector<16x128xf32> -> vector<16x128xf32>
    %c0_135 = arith.constant 0 : index
    %c0_136 = arith.constant 0 : index
    %c0_137 = arith.constant 0 : index
    %137 = vector.load %arg7[%c0_135, %c0_136, %c0_137] : memref<3x16x16xf32, #tpu.memory_space<vmem>>, vector<1x16x16xf32>
    %138 = vector.shape_cast %137 : vector<1x16x16xf32> to vector<16x16xf32>
    %cst_138 = arith.constant dense<0.000000e+00> : vector<16x128xf32>
    %139 = tpu.matmul %138, %136, %cst_138 {dimension_numbers = #tpu.dot_dimension_numbers<[1], [0], [0], [1], [0, 0, 1, 1], [], []>} : vector<16x16xf32>, vector<16x128xf32>, vector<16x128xf32> -> vector<16x128xf32>
    %c1_139 = arith.constant 1 : index
    %c0_140 = arith.constant 0 : index
    %c0_141 = arith.constant 0 : index
    %140 = vector.load %arg6[%c1_139, %c0_140, %c0_141] : memref<3x128x128xf32, #tpu.memory_space<vmem>>, vector<1x128x128xf32>
    %141 = vector.shape_cast %140 : vector<1x128x128xf32> to vector<128x128xf32>
    %cst_142 = arith.constant dense<0.000000e+00> : vector<16x128xf32>
    %142 = tpu.matmul %131, %141, %cst_142 {dimension_numbers = #tpu.dot_dimension_numbers<[1], [0], [0], [1], [0, 0, 1, 1], [], []>} : vector<16x128xf32>, vector<128x128xf32>, vector<16x128xf32> -> vector<16x128xf32>
    %c1_143 = arith.constant 1 : index
    %c0_144 = arith.constant 0 : index
    %c0_145 = arith.constant 0 : index
    %143 = vector.load %arg7[%c1_143, %c0_144, %c0_145] : memref<3x16x16xf32, #tpu.memory_space<vmem>>, vector<1x16x16xf32>
    %144 = vector.shape_cast %143 : vector<1x16x16xf32> to vector<16x16xf32>
    %cst_146 = arith.constant dense<0.000000e+00> : vector<16x128xf32>
    %145 = tpu.matmul %144, %142, %cst_146 {dimension_numbers = #tpu.dot_dimension_numbers<[1], [0], [0], [1], [0, 0, 1, 1], [], []>} : vector<16x16xf32>, vector<16x128xf32>, vector<16x128xf32> -> vector<16x128xf32>
    %146 = arith.addf %139, %145 : vector<16x128xf32>
    %c2_147 = arith.constant 2 : index
    %c0_148 = arith.constant 0 : index
    %c0_149 = arith.constant 0 : index
    %147 = vector.load %arg6[%c2_147, %c0_148, %c0_149] : memref<3x128x128xf32, #tpu.memory_space<vmem>>, vector<1x128x128xf32>
    %148 = vector.shape_cast %147 : vector<1x128x128xf32> to vector<128x128xf32>
    %cst_150 = arith.constant dense<0.000000e+00> : vector<16x128xf32>
    %149 = tpu.matmul %131, %148, %cst_150 {dimension_numbers = #tpu.dot_dimension_numbers<[1], [0], [0], [1], [0, 0, 1, 1], [], []>} : vector<16x128xf32>, vector<128x128xf32>, vector<16x128xf32> -> vector<16x128xf32>
    %c2_151 = arith.constant 2 : index
    %c0_152 = arith.constant 0 : index
    %c0_153 = arith.constant 0 : index
    %150 = vector.load %arg7[%c2_151, %c0_152, %c0_153] : memref<3x16x16xf32, #tpu.memory_space<vmem>>, vector<1x16x16xf32>
    %151 = vector.shape_cast %150 : vector<1x16x16xf32> to vector<16x16xf32>
    %cst_154 = arith.constant dense<0.000000e+00> : vector<16x128xf32>
    %152 = tpu.matmul %151, %149, %cst_154 {dimension_numbers = #tpu.dot_dimension_numbers<[1], [0], [0], [1], [0, 0, 1, 1], [], []>} : vector<16x16xf32>, vector<16x128xf32>, vector<16x128xf32> -> vector<16x128xf32>
    %153 = arith.addf %146, %152 : vector<16x128xf32>
    %154 = vector.broadcast %133 : vector<1x128xf32> to vector<16x128xf32>
    %155 = arith.addf %153, %154 : vector<16x128xf32>
    %cst_155 = arith.constant dense<0.000000e+00> : vector<2x128xf32>
    %156 = tpu.matmul %6, %155, %cst_155 {dimension_numbers = #tpu.dot_dimension_numbers<[1], [0], [0], [1], [0, 0, 1, 1], [], []>} : vector<2x16xf32>, vector<16x128xf32>, vector<2x128xf32> -> vector<2x128xf32>
    %cst_156 = arith.constant dense<0.000000e+00> : vector<2x16xf32>
    %157 = tpu.matmul %156, %2, %cst_156 {dimension_numbers = #tpu.dot_dimension_numbers<[1], [0], [0], [1], [0, 0, 1, 1], [], []>} : vector<2x128xf32>, vector<128x16xf32>, vector<2x16xf32> -> vector<2x16xf32>
    %cst_157 = arith.constant 1.562500e-02 : f32
    %158 = vector.broadcast %cst_157 : f32 to vector<2x16xf32>
    %159 = arith.mulf %157, %158 : vector<2x16xf32>
    %cst_158 = arith.constant dense<0.000000e+00> : vector<16x16xf32>
    %160 = tpu.matmul %7, %159, %cst_158 {dimension_numbers = #tpu.dot_dimension_numbers<[1], [0], [0], [1], [0, 0, 1, 1], [], []>} : vector<16x2xf32>, vector<2x16xf32>, vector<16x16xf32> -> vector<16x16xf32>
    %cst_159 = arith.constant dense<0.000000e+00> : vector<16x128xf32>
    %161 = tpu.matmul %160, %3, %cst_159 {dimension_numbers = #tpu.dot_dimension_numbers<[1], [0], [0], [1], [0, 0, 1, 1], [], []>} : vector<16x16xf32>, vector<16x128xf32>, vector<16x128xf32> -> vector<16x128xf32>
    %162 = arith.subf %155, %161 : vector<16x128xf32>
    %163 = arith.mulf %162, %162 : vector<16x128xf32>
    %cst_160 = arith.constant dense<0.000000e+00> : vector<2x128xf32>
    %164 = tpu.matmul %6, %163, %cst_160 {dimension_numbers = #tpu.dot_dimension_numbers<[1], [0], [0], [1], [0, 0, 1, 1], [], []>} : vector<2x16xf32>, vector<16x128xf32>, vector<2x128xf32> -> vector<2x128xf32>
    %cst_161 = arith.constant dense<0.000000e+00> : vector<2x16xf32>
    %165 = tpu.matmul %164, %2, %cst_161 {dimension_numbers = #tpu.dot_dimension_numbers<[1], [0], [0], [1], [0, 0, 1, 1], [], []>} : vector<2x128xf32>, vector<128x16xf32>, vector<2x16xf32> -> vector<2x16xf32>
    %cst_162 = arith.constant 1.562500e-02 : f32
    %166 = vector.broadcast %cst_162 : f32 to vector<2x16xf32>
    %167 = arith.mulf %165, %166 : vector<2x16xf32>
    %cst_163 = arith.constant 9.99999974E-6 : f32
    %168 = vector.broadcast %cst_163 : f32 to vector<2x16xf32>
    %169 = arith.addf %167, %168 : vector<2x16xf32>
    %170 = math.rsqrt %169 : vector<2x16xf32>
    %cst_164 = arith.constant dense<0.000000e+00> : vector<16x16xf32>
    %171 = tpu.matmul %7, %170, %cst_164 {dimension_numbers = #tpu.dot_dimension_numbers<[1], [0], [0], [1], [0, 0, 1, 1], [], []>} : vector<16x2xf32>, vector<2x16xf32>, vector<16x16xf32> -> vector<16x16xf32>
    %cst_165 = arith.constant dense<0.000000e+00> : vector<16x128xf32>
    %172 = tpu.matmul %171, %3, %cst_165 {dimension_numbers = #tpu.dot_dimension_numbers<[1], [0], [0], [1], [0, 0, 1, 1], [], []>} : vector<16x16xf32>, vector<16x128xf32>, vector<16x128xf32> -> vector<16x128xf32>
    %173 = arith.mulf %162, %172 : vector<16x128xf32>
    %cst_166 = arith.constant 0.000000e+00 : f32
    %174 = vector.broadcast %cst_166 : f32 to vector<16x128xf32>
    %175 = arith.maximumf %173, %174 : vector<16x128xf32>
    %c3_167 = arith.constant 3 : index
    %c0_168 = arith.constant 0 : index
    %c0_169 = arith.constant 0 : index
    %176 = vector.load %arg18[%c3_167, %c0_168, %c0_169] : memref<8x1x128xf32, #tpu.memory_space<vmem>>, vector<1x1x128xf32>
    %177 = vector.shape_cast %176 : vector<1x1x128xf32> to vector<1x128xf32>
    %c0_170 = arith.constant 0 : index
    %c0_171 = arith.constant 0 : index
    %c0_172 = arith.constant 0 : index
    %178 = vector.load %arg8[%c0_170, %c0_171, %c0_172] : memref<3x128x128xf32, #tpu.memory_space<vmem>>, vector<1x128x128xf32>
    %179 = vector.shape_cast %178 : vector<1x128x128xf32> to vector<128x128xf32>
    %cst_173 = arith.constant dense<0.000000e+00> : vector<16x128xf32>
    %180 = tpu.matmul %175, %179, %cst_173 {dimension_numbers = #tpu.dot_dimension_numbers<[1], [0], [0], [1], [0, 0, 1, 1], [], []>} : vector<16x128xf32>, vector<128x128xf32>, vector<16x128xf32> -> vector<16x128xf32>
    %c0_174 = arith.constant 0 : index
    %c0_175 = arith.constant 0 : index
    %c0_176 = arith.constant 0 : index
    %181 = vector.load %arg9[%c0_174, %c0_175, %c0_176] : memref<3x16x16xf32, #tpu.memory_space<vmem>>, vector<1x16x16xf32>
    %182 = vector.shape_cast %181 : vector<1x16x16xf32> to vector<16x16xf32>
    %cst_177 = arith.constant dense<0.000000e+00> : vector<16x128xf32>
    %183 = tpu.matmul %182, %180, %cst_177 {dimension_numbers = #tpu.dot_dimension_numbers<[1], [0], [0], [1], [0, 0, 1, 1], [], []>} : vector<16x16xf32>, vector<16x128xf32>, vector<16x128xf32> -> vector<16x128xf32>
    %c1_178 = arith.constant 1 : index
    %c0_179 = arith.constant 0 : index
    %c0_180 = arith.constant 0 : index
    %184 = vector.load %arg8[%c1_178, %c0_179, %c0_180] : memref<3x128x128xf32, #tpu.memory_space<vmem>>, vector<1x128x128xf32>
    %185 = vector.shape_cast %184 : vector<1x128x128xf32> to vector<128x128xf32>
    %cst_181 = arith.constant dense<0.000000e+00> : vector<16x128xf32>
    %186 = tpu.matmul %175, %185, %cst_181 {dimension_numbers = #tpu.dot_dimension_numbers<[1], [0], [0], [1], [0, 0, 1, 1], [], []>} : vector<16x128xf32>, vector<128x128xf32>, vector<16x128xf32> -> vector<16x128xf32>
    %c1_182 = arith.constant 1 : index
    %c0_183 = arith.constant 0 : index
    %c0_184 = arith.constant 0 : index
    %187 = vector.load %arg9[%c1_182, %c0_183, %c0_184] : memref<3x16x16xf32, #tpu.memory_space<vmem>>, vector<1x16x16xf32>
    %188 = vector.shape_cast %187 : vector<1x16x16xf32> to vector<16x16xf32>
    %cst_185 = arith.constant dense<0.000000e+00> : vector<16x128xf32>
    %189 = tpu.matmul %188, %186, %cst_185 {dimension_numbers = #tpu.dot_dimension_numbers<[1], [0], [0], [1], [0, 0, 1, 1], [], []>} : vector<16x16xf32>, vector<16x128xf32>, vector<16x128xf32> -> vector<16x128xf32>
    %190 = arith.addf %183, %189 : vector<16x128xf32>
    %c2_186 = arith.constant 2 : index
    %c0_187 = arith.constant 0 : index
    %c0_188 = arith.constant 0 : index
    %191 = vector.load %arg8[%c2_186, %c0_187, %c0_188] : memref<3x128x128xf32, #tpu.memory_space<vmem>>, vector<1x128x128xf32>
    %192 = vector.shape_cast %191 : vector<1x128x128xf32> to vector<128x128xf32>
    %cst_189 = arith.constant dense<0.000000e+00> : vector<16x128xf32>
    %193 = tpu.matmul %175, %192, %cst_189 {dimension_numbers = #tpu.dot_dimension_numbers<[1], [0], [0], [1], [0, 0, 1, 1], [], []>} : vector<16x128xf32>, vector<128x128xf32>, vector<16x128xf32> -> vector<16x128xf32>
    %c2_190 = arith.constant 2 : index
    %c0_191 = arith.constant 0 : index
    %c0_192 = arith.constant 0 : index
    %194 = vector.load %arg9[%c2_190, %c0_191, %c0_192] : memref<3x16x16xf32, #tpu.memory_space<vmem>>, vector<1x16x16xf32>
    %195 = vector.shape_cast %194 : vector<1x16x16xf32> to vector<16x16xf32>
    %cst_193 = arith.constant dense<0.000000e+00> : vector<16x128xf32>
    %196 = tpu.matmul %195, %193, %cst_193 {dimension_numbers = #tpu.dot_dimension_numbers<[1], [0], [0], [1], [0, 0, 1, 1], [], []>} : vector<16x16xf32>, vector<16x128xf32>, vector<16x128xf32> -> vector<16x128xf32>
    %197 = arith.addf %190, %196 : vector<16x128xf32>
    %198 = vector.broadcast %177 : vector<1x128xf32> to vector<16x128xf32>
    %199 = arith.addf %197, %198 : vector<16x128xf32>
    %cst_194 = arith.constant dense<0.000000e+00> : vector<2x128xf32>
    %200 = tpu.matmul %6, %199, %cst_194 {dimension_numbers = #tpu.dot_dimension_numbers<[1], [0], [0], [1], [0, 0, 1, 1], [], []>} : vector<2x16xf32>, vector<16x128xf32>, vector<2x128xf32> -> vector<2x128xf32>
    %cst_195 = arith.constant dense<0.000000e+00> : vector<2x16xf32>
    %201 = tpu.matmul %200, %2, %cst_195 {dimension_numbers = #tpu.dot_dimension_numbers<[1], [0], [0], [1], [0, 0, 1, 1], [], []>} : vector<2x128xf32>, vector<128x16xf32>, vector<2x16xf32> -> vector<2x16xf32>
    %cst_196 = arith.constant 1.562500e-02 : f32
    %202 = vector.broadcast %cst_196 : f32 to vector<2x16xf32>
    %203 = arith.mulf %201, %202 : vector<2x16xf32>
    %cst_197 = arith.constant dense<0.000000e+00> : vector<16x16xf32>
    %204 = tpu.matmul %7, %203, %cst_197 {dimension_numbers = #tpu.dot_dimension_numbers<[1], [0], [0], [1], [0, 0, 1, 1], [], []>} : vector<16x2xf32>, vector<2x16xf32>, vector<16x16xf32> -> vector<16x16xf32>
    %cst_198 = arith.constant dense<0.000000e+00> : vector<16x128xf32>
    %205 = tpu.matmul %204, %3, %cst_198 {dimension_numbers = #tpu.dot_dimension_numbers<[1], [0], [0], [1], [0, 0, 1, 1], [], []>} : vector<16x16xf32>, vector<16x128xf32>, vector<16x128xf32> -> vector<16x128xf32>
    %206 = arith.subf %199, %205 : vector<16x128xf32>
    %207 = arith.mulf %206, %206 : vector<16x128xf32>
    %cst_199 = arith.constant dense<0.000000e+00> : vector<2x128xf32>
    %208 = tpu.matmul %6, %207, %cst_199 {dimension_numbers = #tpu.dot_dimension_numbers<[1], [0], [0], [1], [0, 0, 1, 1], [], []>} : vector<2x16xf32>, vector<16x128xf32>, vector<2x128xf32> -> vector<2x128xf32>
    %cst_200 = arith.constant dense<0.000000e+00> : vector<2x16xf32>
    %209 = tpu.matmul %208, %2, %cst_200 {dimension_numbers = #tpu.dot_dimension_numbers<[1], [0], [0], [1], [0, 0, 1, 1], [], []>} : vector<2x128xf32>, vector<128x16xf32>, vector<2x16xf32> -> vector<2x16xf32>
    %cst_201 = arith.constant 1.562500e-02 : f32
    %210 = vector.broadcast %cst_201 : f32 to vector<2x16xf32>
    %211 = arith.mulf %209, %210 : vector<2x16xf32>
    %cst_202 = arith.constant 9.99999974E-6 : f32
    %212 = vector.broadcast %cst_202 : f32 to vector<2x16xf32>
    %213 = arith.addf %211, %212 : vector<2x16xf32>
    %214 = math.rsqrt %213 : vector<2x16xf32>
    %cst_203 = arith.constant dense<0.000000e+00> : vector<16x16xf32>
    %215 = tpu.matmul %7, %214, %cst_203 {dimension_numbers = #tpu.dot_dimension_numbers<[1], [0], [0], [1], [0, 0, 1, 1], [], []>} : vector<16x2xf32>, vector<2x16xf32>, vector<16x16xf32> -> vector<16x16xf32>
    %cst_204 = arith.constant dense<0.000000e+00> : vector<16x128xf32>
    %216 = tpu.matmul %215, %3, %cst_204 {dimension_numbers = #tpu.dot_dimension_numbers<[1], [0], [0], [1], [0, 0, 1, 1], [], []>} : vector<16x16xf32>, vector<16x128xf32>, vector<16x128xf32> -> vector<16x128xf32>
    %217 = arith.mulf %206, %216 : vector<16x128xf32>
    %218 = arith.addf %217, %131 : vector<16x128xf32>
    %c0_205 = arith.constant 0 : index
    %c0_206 = arith.constant 0 : index
    %219 = vector.load %arg1[%c0_205, %c0_206] : memref<2x8xf32, #tpu.memory_space<vmem>>, vector<2x8xf32>
    %c0_207 = arith.constant 0 : index
    %c0_208 = arith.constant 0 : index
    %220 = vector.load %arg19[%c0_207, %c0_208] : memref<8x32xf32, #tpu.memory_space<vmem>>, vector<8x32xf32>
    %cst_209 = arith.constant dense<0.000000e+00> : vector<2x32xf32>
    %221 = tpu.matmul %219, %220, %cst_209 {dimension_numbers = #tpu.dot_dimension_numbers<[1], [0], [0], [1], [0, 0, 1, 1], [], []>} : vector<2x8xf32>, vector<8x32xf32>, vector<2x32xf32> -> vector<2x32xf32>
    %c0_210 = arith.constant 0 : index
    %c0_211 = arith.constant 0 : index
    %222 = vector.load %arg20[%c0_210, %c0_211] : memref<1x32xf32, #tpu.memory_space<vmem>>, vector<1x32xf32>
    %223 = vector.broadcast %222 : vector<1x32xf32> to vector<2x32xf32>
    %224 = arith.addf %221, %223 : vector<2x32xf32>
    %cst_212 = arith.constant 0.000000e+00 : f32
    %225 = vector.broadcast %cst_212 : f32 to vector<2x32xf32>
    %226 = arith.maximumf %224, %225 : vector<2x32xf32>
    %c0_213 = arith.constant 0 : index
    %c0_214 = arith.constant 0 : index
    %227 = vector.load %arg21[%c0_213, %c0_214] : memref<32x32xf32, #tpu.memory_space<vmem>>, vector<32x32xf32>
    %cst_215 = arith.constant dense<0.000000e+00> : vector<2x32xf32>
    %228 = tpu.matmul %226, %227, %cst_215 {dimension_numbers = #tpu.dot_dimension_numbers<[1], [0], [0], [1], [0, 0, 1, 1], [], []>} : vector<2x32xf32>, vector<32x32xf32>, vector<2x32xf32> -> vector<2x32xf32>
    %c0_216 = arith.constant 0 : index
    %c0_217 = arith.constant 0 : index
    %229 = vector.load %arg22[%c0_216, %c0_217] : memref<1x32xf32, #tpu.memory_space<vmem>>, vector<1x32xf32>
    %230 = vector.broadcast %229 : vector<1x32xf32> to vector<2x32xf32>
    %231 = arith.addf %228, %230 : vector<2x32xf32>
    %cst_218 = arith.constant 0.000000e+00 : f32
    %232 = vector.broadcast %cst_218 : f32 to vector<2x32xf32>
    %233 = arith.maximumf %231, %232 : vector<2x32xf32>
    %c0_219 = arith.constant 0 : index
    %c0_220 = arith.constant 0 : index
    %234 = vector.load %arg23[%c0_219, %c0_220] : memref<32x64xf32, #tpu.memory_space<vmem>>, vector<32x64xf32>
    %cst_221 = arith.constant dense<0.000000e+00> : vector<2x64xf32>
    %235 = tpu.matmul %233, %234, %cst_221 {dimension_numbers = #tpu.dot_dimension_numbers<[1], [0], [0], [1], [0, 0, 1, 1], [], []>} : vector<2x32xf32>, vector<32x64xf32>, vector<2x64xf32> -> vector<2x64xf32>
    %c0_222 = arith.constant 0 : index
    %c0_223 = arith.constant 0 : index
    %236 = vector.load %arg24[%c0_222, %c0_223] : memref<1x64xf32, #tpu.memory_space<vmem>>, vector<1x64xf32>
    %237 = vector.broadcast %236 : vector<1x64xf32> to vector<2x64xf32>
    %238 = arith.addf %235, %237 : vector<2x64xf32>
    %239 = vector.extract_strided_slice %238 {offsets = [0, 0], sizes = [2, 16], strides = [1, 1]} : vector<2x64xf32> to vector<2x16xf32>
    %240 = vector.extract_strided_slice %238 {offsets = [0, 16], sizes = [2, 16], strides = [1, 1]} : vector<2x64xf32> to vector<2x16xf32>
    %241 = vector.extract_strided_slice %238 {offsets = [0, 32], sizes = [2, 16], strides = [1, 1]} : vector<2x64xf32> to vector<2x16xf32>
    %242 = vector.extract_strided_slice %238 {offsets = [0, 48], sizes = [2, 16], strides = [1, 1]} : vector<2x64xf32> to vector<2x16xf32>
    %c4_224 = arith.constant 4 : index
    %c0_225 = arith.constant 0 : index
    %c0_226 = arith.constant 0 : index
    %243 = vector.load %arg18[%c4_224, %c0_225, %c0_226] : memref<8x1x128xf32, #tpu.memory_space<vmem>>, vector<1x1x128xf32>
    %244 = vector.shape_cast %243 : vector<1x1x128xf32> to vector<1x128xf32>
    %c0_227 = arith.constant 0 : index
    %c0_228 = arith.constant 0 : index
    %c0_229 = arith.constant 0 : index
    %245 = vector.load %arg10[%c0_227, %c0_228, %c0_229] : memref<3x128x128xf32, #tpu.memory_space<vmem>>, vector<1x128x128xf32>
    %246 = vector.shape_cast %245 : vector<1x128x128xf32> to vector<128x128xf32>
    %cst_230 = arith.constant dense<0.000000e+00> : vector<16x128xf32>
    %247 = tpu.matmul %218, %246, %cst_230 {dimension_numbers = #tpu.dot_dimension_numbers<[1], [0], [0], [1], [0, 0, 1, 1], [], []>} : vector<16x128xf32>, vector<128x128xf32>, vector<16x128xf32> -> vector<16x128xf32>
    %c0_231 = arith.constant 0 : index
    %c0_232 = arith.constant 0 : index
    %c0_233 = arith.constant 0 : index
    %248 = vector.load %arg11[%c0_231, %c0_232, %c0_233] : memref<3x16x16xf32, #tpu.memory_space<vmem>>, vector<1x16x16xf32>
    %249 = vector.shape_cast %248 : vector<1x16x16xf32> to vector<16x16xf32>
    %cst_234 = arith.constant dense<0.000000e+00> : vector<16x128xf32>
    %250 = tpu.matmul %249, %247, %cst_234 {dimension_numbers = #tpu.dot_dimension_numbers<[1], [0], [0], [1], [0, 0, 1, 1], [], []>} : vector<16x16xf32>, vector<16x128xf32>, vector<16x128xf32> -> vector<16x128xf32>
    %c1_235 = arith.constant 1 : index
    %c0_236 = arith.constant 0 : index
    %c0_237 = arith.constant 0 : index
    %251 = vector.load %arg10[%c1_235, %c0_236, %c0_237] : memref<3x128x128xf32, #tpu.memory_space<vmem>>, vector<1x128x128xf32>
    %252 = vector.shape_cast %251 : vector<1x128x128xf32> to vector<128x128xf32>
    %cst_238 = arith.constant dense<0.000000e+00> : vector<16x128xf32>
    %253 = tpu.matmul %218, %252, %cst_238 {dimension_numbers = #tpu.dot_dimension_numbers<[1], [0], [0], [1], [0, 0, 1, 1], [], []>} : vector<16x128xf32>, vector<128x128xf32>, vector<16x128xf32> -> vector<16x128xf32>
    %c1_239 = arith.constant 1 : index
    %c0_240 = arith.constant 0 : index
    %c0_241 = arith.constant 0 : index
    %254 = vector.load %arg11[%c1_239, %c0_240, %c0_241] : memref<3x16x16xf32, #tpu.memory_space<vmem>>, vector<1x16x16xf32>
    %255 = vector.shape_cast %254 : vector<1x16x16xf32> to vector<16x16xf32>
    %cst_242 = arith.constant dense<0.000000e+00> : vector<16x128xf32>
    %256 = tpu.matmul %255, %253, %cst_242 {dimension_numbers = #tpu.dot_dimension_numbers<[1], [0], [0], [1], [0, 0, 1, 1], [], []>} : vector<16x16xf32>, vector<16x128xf32>, vector<16x128xf32> -> vector<16x128xf32>
    %257 = arith.addf %250, %256 : vector<16x128xf32>
    %c2_243 = arith.constant 2 : index
    %c0_244 = arith.constant 0 : index
    %c0_245 = arith.constant 0 : index
    %258 = vector.load %arg10[%c2_243, %c0_244, %c0_245] : memref<3x128x128xf32, #tpu.memory_space<vmem>>, vector<1x128x128xf32>
    %259 = vector.shape_cast %258 : vector<1x128x128xf32> to vector<128x128xf32>
    %cst_246 = arith.constant dense<0.000000e+00> : vector<16x128xf32>
    %260 = tpu.matmul %218, %259, %cst_246 {dimension_numbers = #tpu.dot_dimension_numbers<[1], [0], [0], [1], [0, 0, 1, 1], [], []>} : vector<16x128xf32>, vector<128x128xf32>, vector<16x128xf32> -> vector<16x128xf32>
    %c2_247 = arith.constant 2 : index
    %c0_248 = arith.constant 0 : index
    %c0_249 = arith.constant 0 : index
    %261 = vector.load %arg11[%c2_247, %c0_248, %c0_249] : memref<3x16x16xf32, #tpu.memory_space<vmem>>, vector<1x16x16xf32>
    %262 = vector.shape_cast %261 : vector<1x16x16xf32> to vector<16x16xf32>
    %cst_250 = arith.constant dense<0.000000e+00> : vector<16x128xf32>
    %263 = tpu.matmul %262, %260, %cst_250 {dimension_numbers = #tpu.dot_dimension_numbers<[1], [0], [0], [1], [0, 0, 1, 1], [], []>} : vector<16x16xf32>, vector<16x128xf32>, vector<16x128xf32> -> vector<16x128xf32>
    %264 = arith.addf %257, %263 : vector<16x128xf32>
    %265 = vector.broadcast %244 : vector<1x128xf32> to vector<16x128xf32>
    %266 = arith.addf %264, %265 : vector<16x128xf32>
    %cst_251 = arith.constant dense<0.000000e+00> : vector<2x128xf32>
    %267 = tpu.matmul %6, %266, %cst_251 {dimension_numbers = #tpu.dot_dimension_numbers<[1], [0], [0], [1], [0, 0, 1, 1], [], []>} : vector<2x16xf32>, vector<16x128xf32>, vector<2x128xf32> -> vector<2x128xf32>
    %cst_252 = arith.constant dense<0.000000e+00> : vector<2x16xf32>
    %268 = tpu.matmul %267, %2, %cst_252 {dimension_numbers = #tpu.dot_dimension_numbers<[1], [0], [0], [1], [0, 0, 1, 1], [], []>} : vector<2x128xf32>, vector<128x16xf32>, vector<2x16xf32> -> vector<2x16xf32>
    %cst_253 = arith.constant 1.562500e-02 : f32
    %269 = vector.broadcast %cst_253 : f32 to vector<2x16xf32>
    %270 = arith.mulf %268, %269 : vector<2x16xf32>
    %cst_254 = arith.constant dense<0.000000e+00> : vector<16x16xf32>
    %271 = tpu.matmul %7, %270, %cst_254 {dimension_numbers = #tpu.dot_dimension_numbers<[1], [0], [0], [1], [0, 0, 1, 1], [], []>} : vector<16x2xf32>, vector<2x16xf32>, vector<16x16xf32> -> vector<16x16xf32>
    %cst_255 = arith.constant dense<0.000000e+00> : vector<16x128xf32>
    %272 = tpu.matmul %271, %3, %cst_255 {dimension_numbers = #tpu.dot_dimension_numbers<[1], [0], [0], [1], [0, 0, 1, 1], [], []>} : vector<16x16xf32>, vector<16x128xf32>, vector<16x128xf32> -> vector<16x128xf32>
    %273 = arith.subf %266, %272 : vector<16x128xf32>
    %274 = arith.mulf %273, %273 : vector<16x128xf32>
    %cst_256 = arith.constant dense<0.000000e+00> : vector<2x128xf32>
    %275 = tpu.matmul %6, %274, %cst_256 {dimension_numbers = #tpu.dot_dimension_numbers<[1], [0], [0], [1], [0, 0, 1, 1], [], []>} : vector<2x16xf32>, vector<16x128xf32>, vector<2x128xf32> -> vector<2x128xf32>
    %cst_257 = arith.constant dense<0.000000e+00> : vector<2x16xf32>
    %276 = tpu.matmul %275, %2, %cst_257 {dimension_numbers = #tpu.dot_dimension_numbers<[1], [0], [0], [1], [0, 0, 1, 1], [], []>} : vector<2x128xf32>, vector<128x16xf32>, vector<2x16xf32> -> vector<2x16xf32>
    %cst_258 = arith.constant 1.562500e-02 : f32
    %277 = vector.broadcast %cst_258 : f32 to vector<2x16xf32>
    %278 = arith.mulf %276, %277 : vector<2x16xf32>
    %cst_259 = arith.constant 9.99999974E-6 : f32
    %279 = vector.broadcast %cst_259 : f32 to vector<2x16xf32>
    %280 = arith.addf %278, %279 : vector<2x16xf32>
    %281 = math.rsqrt %280 : vector<2x16xf32>
    %282 = arith.mulf %240, %281 : vector<2x16xf32>
    %cst_260 = arith.constant dense<0.000000e+00> : vector<16x16xf32>
    %283 = tpu.matmul %7, %282, %cst_260 {dimension_numbers = #tpu.dot_dimension_numbers<[1], [0], [0], [1], [0, 0, 1, 1], [], []>} : vector<16x2xf32>, vector<2x16xf32>, vector<16x16xf32> -> vector<16x16xf32>
    %cst_261 = arith.constant dense<0.000000e+00> : vector<16x128xf32>
    %284 = tpu.matmul %283, %3, %cst_261 {dimension_numbers = #tpu.dot_dimension_numbers<[1], [0], [0], [1], [0, 0, 1, 1], [], []>} : vector<16x16xf32>, vector<16x128xf32>, vector<16x128xf32> -> vector<16x128xf32>
    %285 = arith.mulf %273, %284 : vector<16x128xf32>
    %cst_262 = arith.constant dense<0.000000e+00> : vector<16x16xf32>
    %286 = tpu.matmul %7, %239, %cst_262 {dimension_numbers = #tpu.dot_dimension_numbers<[1], [0], [0], [1], [0, 0, 1, 1], [], []>} : vector<16x2xf32>, vector<2x16xf32>, vector<16x16xf32> -> vector<16x16xf32>
    %cst_263 = arith.constant dense<0.000000e+00> : vector<16x128xf32>
    %287 = tpu.matmul %286, %3, %cst_263 {dimension_numbers = #tpu.dot_dimension_numbers<[1], [0], [0], [1], [0, 0, 1, 1], [], []>} : vector<16x16xf32>, vector<16x128xf32>, vector<16x128xf32> -> vector<16x128xf32>
    %288 = arith.addf %285, %287 : vector<16x128xf32>
    %cst_264 = arith.constant 0.000000e+00 : f32
    %289 = vector.broadcast %cst_264 : f32 to vector<16x128xf32>
    %290 = arith.maximumf %288, %289 : vector<16x128xf32>
    %c5_265 = arith.constant 5 : index
    %c0_266 = arith.constant 0 : index
    %c0_267 = arith.constant 0 : index
    %291 = vector.load %arg18[%c5_265, %c0_266, %c0_267] : memref<8x1x128xf32, #tpu.memory_space<vmem>>, vector<1x1x128xf32>
    %292 = vector.shape_cast %291 : vector<1x1x128xf32> to vector<1x128xf32>
    %c0_268 = arith.constant 0 : index
    %c0_269 = arith.constant 0 : index
    %c0_270 = arith.constant 0 : index
    %293 = vector.load %arg12[%c0_268, %c0_269, %c0_270] : memref<3x128x128xf32, #tpu.memory_space<vmem>>, vector<1x128x128xf32>
    %294 = vector.shape_cast %293 : vector<1x128x128xf32> to vector<128x128xf32>
    %cst_271 = arith.constant dense<0.000000e+00> : vector<16x128xf32>
    %295 = tpu.matmul %290, %294, %cst_271 {dimension_numbers = #tpu.dot_dimension_numbers<[1], [0], [0], [1], [0, 0, 1, 1], [], []>} : vector<16x128xf32>, vector<128x128xf32>, vector<16x128xf32> -> vector<16x128xf32>
    %c0_272 = arith.constant 0 : index
    %c0_273 = arith.constant 0 : index
    %c0_274 = arith.constant 0 : index
    %296 = vector.load %arg13[%c0_272, %c0_273, %c0_274] : memref<3x16x16xf32, #tpu.memory_space<vmem>>, vector<1x16x16xf32>
    %297 = vector.shape_cast %296 : vector<1x16x16xf32> to vector<16x16xf32>
    %cst_275 = arith.constant dense<0.000000e+00> : vector<16x128xf32>
    %298 = tpu.matmul %297, %295, %cst_275 {dimension_numbers = #tpu.dot_dimension_numbers<[1], [0], [0], [1], [0, 0, 1, 1], [], []>} : vector<16x16xf32>, vector<16x128xf32>, vector<16x128xf32> -> vector<16x128xf32>
    %c1_276 = arith.constant 1 : index
    %c0_277 = arith.constant 0 : index
    %c0_278 = arith.constant 0 : index
    %299 = vector.load %arg12[%c1_276, %c0_277, %c0_278] : memref<3x128x128xf32, #tpu.memory_space<vmem>>, vector<1x128x128xf32>
    %300 = vector.shape_cast %299 : vector<1x128x128xf32> to vector<128x128xf32>
    %cst_279 = arith.constant dense<0.000000e+00> : vector<16x128xf32>
    %301 = tpu.matmul %290, %300, %cst_279 {dimension_numbers = #tpu.dot_dimension_numbers<[1], [0], [0], [1], [0, 0, 1, 1], [], []>} : vector<16x128xf32>, vector<128x128xf32>, vector<16x128xf32> -> vector<16x128xf32>
    %c1_280 = arith.constant 1 : index
    %c0_281 = arith.constant 0 : index
    %c0_282 = arith.constant 0 : index
    %302 = vector.load %arg13[%c1_280, %c0_281, %c0_282] : memref<3x16x16xf32, #tpu.memory_space<vmem>>, vector<1x16x16xf32>
    %303 = vector.shape_cast %302 : vector<1x16x16xf32> to vector<16x16xf32>
    %cst_283 = arith.constant dense<0.000000e+00> : vector<16x128xf32>
    %304 = tpu.matmul %303, %301, %cst_283 {dimension_numbers = #tpu.dot_dimension_numbers<[1], [0], [0], [1], [0, 0, 1, 1], [], []>} : vector<16x16xf32>, vector<16x128xf32>, vector<16x128xf32> -> vector<16x128xf32>
    %305 = arith.addf %298, %304 : vector<16x128xf32>
    %c2_284 = arith.constant 2 : index
    %c0_285 = arith.constant 0 : index
    %c0_286 = arith.constant 0 : index
    %306 = vector.load %arg12[%c2_284, %c0_285, %c0_286] : memref<3x128x128xf32, #tpu.memory_space<vmem>>, vector<1x128x128xf32>
    %307 = vector.shape_cast %306 : vector<1x128x128xf32> to vector<128x128xf32>
    %cst_287 = arith.constant dense<0.000000e+00> : vector<16x128xf32>
    %308 = tpu.matmul %290, %307, %cst_287 {dimension_numbers = #tpu.dot_dimension_numbers<[1], [0], [0], [1], [0, 0, 1, 1], [], []>} : vector<16x128xf32>, vector<128x128xf32>, vector<16x128xf32> -> vector<16x128xf32>
    %c2_288 = arith.constant 2 : index
    %c0_289 = arith.constant 0 : index
    %c0_290 = arith.constant 0 : index
    %309 = vector.load %arg13[%c2_288, %c0_289, %c0_290] : memref<3x16x16xf32, #tpu.memory_space<vmem>>, vector<1x16x16xf32>
    %310 = vector.shape_cast %309 : vector<1x16x16xf32> to vector<16x16xf32>
    %cst_291 = arith.constant dense<0.000000e+00> : vector<16x128xf32>
    %311 = tpu.matmul %310, %308, %cst_291 {dimension_numbers = #tpu.dot_dimension_numbers<[1], [0], [0], [1], [0, 0, 1, 1], [], []>} : vector<16x16xf32>, vector<16x128xf32>, vector<16x128xf32> -> vector<16x128xf32>
    %312 = arith.addf %305, %311 : vector<16x128xf32>
    %313 = vector.broadcast %292 : vector<1x128xf32> to vector<16x128xf32>
    %314 = arith.addf %312, %313 : vector<16x128xf32>
    %cst_292 = arith.constant dense<0.000000e+00> : vector<2x128xf32>
    %315 = tpu.matmul %6, %314, %cst_292 {dimension_numbers = #tpu.dot_dimension_numbers<[1], [0], [0], [1], [0, 0, 1, 1], [], []>} : vector<2x16xf32>, vector<16x128xf32>, vector<2x128xf32> -> vector<2x128xf32>
    %cst_293 = arith.constant dense<0.000000e+00> : vector<2x16xf32>
    %316 = tpu.matmul %315, %2, %cst_293 {dimension_numbers = #tpu.dot_dimension_numbers<[1], [0], [0], [1], [0, 0, 1, 1], [], []>} : vector<2x128xf32>, vector<128x16xf32>, vector<2x16xf32> -> vector<2x16xf32>
    %cst_294 = arith.constant 1.562500e-02 : f32
    %317 = vector.broadcast %cst_294 : f32 to vector<2x16xf32>
    %318 = arith.mulf %316, %317 : vector<2x16xf32>
    %cst_295 = arith.constant dense<0.000000e+00> : vector<16x16xf32>
    %319 = tpu.matmul %7, %318, %cst_295 {dimension_numbers = #tpu.dot_dimension_numbers<[1], [0], [0], [1], [0, 0, 1, 1], [], []>} : vector<16x2xf32>, vector<2x16xf32>, vector<16x16xf32> -> vector<16x16xf32>
    %cst_296 = arith.constant dense<0.000000e+00> : vector<16x128xf32>
    %320 = tpu.matmul %319, %3, %cst_296 {dimension_numbers = #tpu.dot_dimension_numbers<[1], [0], [0], [1], [0, 0, 1, 1], [], []>} : vector<16x16xf32>, vector<16x128xf32>, vector<16x128xf32> -> vector<16x128xf32>
    %321 = arith.subf %314, %320 : vector<16x128xf32>
    %322 = arith.mulf %321, %321 : vector<16x128xf32>
    %cst_297 = arith.constant dense<0.000000e+00> : vector<2x128xf32>
    %323 = tpu.matmul %6, %322, %cst_297 {dimension_numbers = #tpu.dot_dimension_numbers<[1], [0], [0], [1], [0, 0, 1, 1], [], []>} : vector<2x16xf32>, vector<16x128xf32>, vector<2x128xf32> -> vector<2x128xf32>
    %cst_298 = arith.constant dense<0.000000e+00> : vector<2x16xf32>
    %324 = tpu.matmul %323, %2, %cst_298 {dimension_numbers = #tpu.dot_dimension_numbers<[1], [0], [0], [1], [0, 0, 1, 1], [], []>} : vector<2x128xf32>, vector<128x16xf32>, vector<2x16xf32> -> vector<2x16xf32>
    %cst_299 = arith.constant 1.562500e-02 : f32
    %325 = vector.broadcast %cst_299 : f32 to vector<2x16xf32>
    %326 = arith.mulf %324, %325 : vector<2x16xf32>
    %cst_300 = arith.constant 9.99999974E-6 : f32
    %327 = vector.broadcast %cst_300 : f32 to vector<2x16xf32>
    %328 = arith.addf %326, %327 : vector<2x16xf32>
    %329 = math.rsqrt %328 : vector<2x16xf32>
    %330 = arith.mulf %242, %329 : vector<2x16xf32>
    %cst_301 = arith.constant dense<0.000000e+00> : vector<16x16xf32>
    %331 = tpu.matmul %7, %330, %cst_301 {dimension_numbers = #tpu.dot_dimension_numbers<[1], [0], [0], [1], [0, 0, 1, 1], [], []>} : vector<16x2xf32>, vector<2x16xf32>, vector<16x16xf32> -> vector<16x16xf32>
    %cst_302 = arith.constant dense<0.000000e+00> : vector<16x128xf32>
    %332 = tpu.matmul %331, %3, %cst_302 {dimension_numbers = #tpu.dot_dimension_numbers<[1], [0], [0], [1], [0, 0, 1, 1], [], []>} : vector<16x16xf32>, vector<16x128xf32>, vector<16x128xf32> -> vector<16x128xf32>
    %333 = arith.mulf %321, %332 : vector<16x128xf32>
    %cst_303 = arith.constant dense<0.000000e+00> : vector<16x16xf32>
    %334 = tpu.matmul %7, %241, %cst_303 {dimension_numbers = #tpu.dot_dimension_numbers<[1], [0], [0], [1], [0, 0, 1, 1], [], []>} : vector<16x2xf32>, vector<2x16xf32>, vector<16x16xf32> -> vector<16x16xf32>
    %cst_304 = arith.constant dense<0.000000e+00> : vector<16x128xf32>
    %335 = tpu.matmul %334, %3, %cst_304 {dimension_numbers = #tpu.dot_dimension_numbers<[1], [0], [0], [1], [0, 0, 1, 1], [], []>} : vector<16x16xf32>, vector<16x128xf32>, vector<16x128xf32> -> vector<16x128xf32>
    %336 = arith.addf %333, %335 : vector<16x128xf32>
    %337 = arith.addf %336, %218 : vector<16x128xf32>
    %c6_305 = arith.constant 6 : index
    %c0_306 = arith.constant 0 : index
    %c0_307 = arith.constant 0 : index
    %338 = vector.load %arg18[%c6_305, %c0_306, %c0_307] : memref<8x1x128xf32, #tpu.memory_space<vmem>>, vector<1x1x128xf32>
    %339 = vector.shape_cast %338 : vector<1x1x128xf32> to vector<1x128xf32>
    %c0_308 = arith.constant 0 : index
    %c0_309 = arith.constant 0 : index
    %c0_310 = arith.constant 0 : index
    %340 = vector.load %arg14[%c0_308, %c0_309, %c0_310] : memref<5x128x128xf32, #tpu.memory_space<vmem>>, vector<1x128x128xf32>
    %341 = vector.shape_cast %340 : vector<1x128x128xf32> to vector<128x128xf32>
    %cst_311 = arith.constant dense<0.000000e+00> : vector<16x128xf32>
    %342 = tpu.matmul %337, %341, %cst_311 {dimension_numbers = #tpu.dot_dimension_numbers<[1], [0], [0], [1], [0, 0, 1, 1], [], []>} : vector<16x128xf32>, vector<128x128xf32>, vector<16x128xf32> -> vector<16x128xf32>
    %c0_312 = arith.constant 0 : index
    %c0_313 = arith.constant 0 : index
    %c0_314 = arith.constant 0 : index
    %343 = vector.load %arg15[%c0_312, %c0_313, %c0_314] : memref<5x32x16xf32, #tpu.memory_space<vmem>>, vector<1x32x16xf32>
    %344 = vector.shape_cast %343 : vector<1x32x16xf32> to vector<32x16xf32>
    %cst_315 = arith.constant dense<0.000000e+00> : vector<32x128xf32>
    %345 = tpu.matmul %344, %342, %cst_315 {dimension_numbers = #tpu.dot_dimension_numbers<[1], [0], [0], [1], [0, 0, 1, 1], [], []>} : vector<32x16xf32>, vector<16x128xf32>, vector<32x128xf32> -> vector<32x128xf32>
    %c1_316 = arith.constant 1 : index
    %c0_317 = arith.constant 0 : index
    %c0_318 = arith.constant 0 : index
    %346 = vector.load %arg14[%c1_316, %c0_317, %c0_318] : memref<5x128x128xf32, #tpu.memory_space<vmem>>, vector<1x128x128xf32>
    %347 = vector.shape_cast %346 : vector<1x128x128xf32> to vector<128x128xf32>
    %cst_319 = arith.constant dense<0.000000e+00> : vector<16x128xf32>
    %348 = tpu.matmul %337, %347, %cst_319 {dimension_numbers = #tpu.dot_dimension_numbers<[1], [0], [0], [1], [0, 0, 1, 1], [], []>} : vector<16x128xf32>, vector<128x128xf32>, vector<16x128xf32> -> vector<16x128xf32>
    %c1_320 = arith.constant 1 : index
    %c0_321 = arith.constant 0 : index
    %c0_322 = arith.constant 0 : index
    %349 = vector.load %arg15[%c1_320, %c0_321, %c0_322] : memref<5x32x16xf32, #tpu.memory_space<vmem>>, vector<1x32x16xf32>
    %350 = vector.shape_cast %349 : vector<1x32x16xf32> to vector<32x16xf32>
    %cst_323 = arith.constant dense<0.000000e+00> : vector<32x128xf32>
    %351 = tpu.matmul %350, %348, %cst_323 {dimension_numbers = #tpu.dot_dimension_numbers<[1], [0], [0], [1], [0, 0, 1, 1], [], []>} : vector<32x16xf32>, vector<16x128xf32>, vector<32x128xf32> -> vector<32x128xf32>
    %352 = arith.addf %345, %351 : vector<32x128xf32>
    %c2_324 = arith.constant 2 : index
    %c0_325 = arith.constant 0 : index
    %c0_326 = arith.constant 0 : index
    %353 = vector.load %arg14[%c2_324, %c0_325, %c0_326] : memref<5x128x128xf32, #tpu.memory_space<vmem>>, vector<1x128x128xf32>
    %354 = vector.shape_cast %353 : vector<1x128x128xf32> to vector<128x128xf32>
    %cst_327 = arith.constant dense<0.000000e+00> : vector<16x128xf32>
    %355 = tpu.matmul %337, %354, %cst_327 {dimension_numbers = #tpu.dot_dimension_numbers<[1], [0], [0], [1], [0, 0, 1, 1], [], []>} : vector<16x128xf32>, vector<128x128xf32>, vector<16x128xf32> -> vector<16x128xf32>
    %c2_328 = arith.constant 2 : index
    %c0_329 = arith.constant 0 : index
    %c0_330 = arith.constant 0 : index
    %356 = vector.load %arg15[%c2_328, %c0_329, %c0_330] : memref<5x32x16xf32, #tpu.memory_space<vmem>>, vector<1x32x16xf32>
    %357 = vector.shape_cast %356 : vector<1x32x16xf32> to vector<32x16xf32>
    %cst_331 = arith.constant dense<0.000000e+00> : vector<32x128xf32>
    %358 = tpu.matmul %357, %355, %cst_331 {dimension_numbers = #tpu.dot_dimension_numbers<[1], [0], [0], [1], [0, 0, 1, 1], [], []>} : vector<32x16xf32>, vector<16x128xf32>, vector<32x128xf32> -> vector<32x128xf32>
    %359 = arith.addf %352, %358 : vector<32x128xf32>
    %c3_332 = arith.constant 3 : index
    %c0_333 = arith.constant 0 : index
    %c0_334 = arith.constant 0 : index
    %360 = vector.load %arg14[%c3_332, %c0_333, %c0_334] : memref<5x128x128xf32, #tpu.memory_space<vmem>>, vector<1x128x128xf32>
    %361 = vector.shape_cast %360 : vector<1x128x128xf32> to vector<128x128xf32>
    %cst_335 = arith.constant dense<0.000000e+00> : vector<16x128xf32>
    %362 = tpu.matmul %337, %361, %cst_335 {dimension_numbers = #tpu.dot_dimension_numbers<[1], [0], [0], [1], [0, 0, 1, 1], [], []>} : vector<16x128xf32>, vector<128x128xf32>, vector<16x128xf32> -> vector<16x128xf32>
    %c3_336 = arith.constant 3 : index
    %c0_337 = arith.constant 0 : index
    %c0_338 = arith.constant 0 : index
    %363 = vector.load %arg15[%c3_336, %c0_337, %c0_338] : memref<5x32x16xf32, #tpu.memory_space<vmem>>, vector<1x32x16xf32>
    %364 = vector.shape_cast %363 : vector<1x32x16xf32> to vector<32x16xf32>
    %cst_339 = arith.constant dense<0.000000e+00> : vector<32x128xf32>
    %365 = tpu.matmul %364, %362, %cst_339 {dimension_numbers = #tpu.dot_dimension_numbers<[1], [0], [0], [1], [0, 0, 1, 1], [], []>} : vector<32x16xf32>, vector<16x128xf32>, vector<32x128xf32> -> vector<32x128xf32>
    %366 = arith.addf %359, %365 : vector<32x128xf32>
    %c4_340 = arith.constant 4 : index
    %c0_341 = arith.constant 0 : index
    %c0_342 = arith.constant 0 : index
    %367 = vector.load %arg14[%c4_340, %c0_341, %c0_342] : memref<5x128x128xf32, #tpu.memory_space<vmem>>, vector<1x128x128xf32>
    %368 = vector.shape_cast %367 : vector<1x128x128xf32> to vector<128x128xf32>
    %cst_343 = arith.constant dense<0.000000e+00> : vector<16x128xf32>
    %369 = tpu.matmul %337, %368, %cst_343 {dimension_numbers = #tpu.dot_dimension_numbers<[1], [0], [0], [1], [0, 0, 1, 1], [], []>} : vector<16x128xf32>, vector<128x128xf32>, vector<16x128xf32> -> vector<16x128xf32>
    %c4_344 = arith.constant 4 : index
    %c0_345 = arith.constant 0 : index
    %c0_346 = arith.constant 0 : index
    %370 = vector.load %arg15[%c4_344, %c0_345, %c0_346] : memref<5x32x16xf32, #tpu.memory_space<vmem>>, vector<1x32x16xf32>
    %371 = vector.shape_cast %370 : vector<1x32x16xf32> to vector<32x16xf32>
    %cst_347 = arith.constant dense<0.000000e+00> : vector<32x128xf32>
    %372 = tpu.matmul %371, %369, %cst_347 {dimension_numbers = #tpu.dot_dimension_numbers<[1], [0], [0], [1], [0, 0, 1, 1], [], []>} : vector<32x16xf32>, vector<16x128xf32>, vector<32x128xf32> -> vector<32x128xf32>
    %373 = arith.addf %366, %372 : vector<32x128xf32>
    %374 = vector.broadcast %339 : vector<1x128xf32> to vector<32x128xf32>
    %375 = arith.addf %373, %374 : vector<32x128xf32>
    %c0_348 = arith.constant 0 : index
    %c0_349 = arith.constant 0 : index
    %376 = vector.load %arg25[%c0_348, %c0_349] : memref<1x128xf32, #tpu.memory_space<vmem>>, vector<1x128xf32>
    %c0_350 = arith.constant 0 : index
    %c0_351 = arith.constant 0 : index
    %377 = vector.load %arg26[%c0_350, %c0_351] : memref<1x128xf32, #tpu.memory_space<vmem>>, vector<1x128xf32>
    %cst_352 = arith.constant 1.000000e+00 : f32
    %378 = vector.broadcast %cst_352 : f32 to vector<128x128xf32>
    %cst_353 = arith.constant dense<0.000000e+00> : vector<2x128xf32>
    %379 = tpu.matmul %4, %375, %cst_353 {dimension_numbers = #tpu.dot_dimension_numbers<[1], [0], [0], [1], [0, 0, 1, 1], [], []>} : vector<2x32xf32>, vector<32x128xf32>, vector<2x128xf32> -> vector<2x128xf32>
    %cst_354 = arith.constant dense<0.000000e+00> : vector<2x128xf32>
    %380 = tpu.matmul %379, %378, %cst_354 {dimension_numbers = #tpu.dot_dimension_numbers<[1], [0], [0], [1], [0, 0, 1, 1], [], []>} : vector<2x128xf32>, vector<128x128xf32>, vector<2x128xf32> -> vector<2x128xf32>
    %cst_355 = arith.constant dense<0.000000e+00> : vector<32x128xf32>
    %381 = tpu.matmul %5, %380, %cst_355 {dimension_numbers = #tpu.dot_dimension_numbers<[1], [0], [0], [1], [0, 0, 1, 1], [], []>} : vector<32x2xf32>, vector<2x128xf32>, vector<32x128xf32> -> vector<32x128xf32>
    %cst_356 = arith.constant 4.8828125E-4 : f32
    %382 = vector.broadcast %cst_356 : f32 to vector<32x128xf32>
    %383 = arith.mulf %381, %382 : vector<32x128xf32>
    %384 = arith.subf %375, %383 : vector<32x128xf32>
    %385 = arith.mulf %384, %384 : vector<32x128xf32>
    %cst_357 = arith.constant dense<0.000000e+00> : vector<2x128xf32>
    %386 = tpu.matmul %4, %385, %cst_357 {dimension_numbers = #tpu.dot_dimension_numbers<[1], [0], [0], [1], [0, 0, 1, 1], [], []>} : vector<2x32xf32>, vector<32x128xf32>, vector<2x128xf32> -> vector<2x128xf32>
    %cst_358 = arith.constant dense<0.000000e+00> : vector<2x128xf32>
    %387 = tpu.matmul %386, %378, %cst_358 {dimension_numbers = #tpu.dot_dimension_numbers<[1], [0], [0], [1], [0, 0, 1, 1], [], []>} : vector<2x128xf32>, vector<128x128xf32>, vector<2x128xf32> -> vector<2x128xf32>
    %cst_359 = arith.constant dense<0.000000e+00> : vector<32x128xf32>
    %388 = tpu.matmul %5, %387, %cst_359 {dimension_numbers = #tpu.dot_dimension_numbers<[1], [0], [0], [1], [0, 0, 1, 1], [], []>} : vector<32x2xf32>, vector<2x128xf32>, vector<32x128xf32> -> vector<32x128xf32>
    %cst_360 = arith.constant 4.88519785E-4 : f32
    %389 = vector.broadcast %cst_360 : f32 to vector<32x128xf32>
    %390 = arith.mulf %388, %389 : vector<32x128xf32>
    %391 = math.sqrt %390 : vector<32x128xf32>
    %cst_361 = arith.constant 9.99999974E-6 : f32
    %392 = vector.broadcast %cst_361 : f32 to vector<32x128xf32>
    %393 = arith.addf %391, %392 : vector<32x128xf32>
    %394 = arith.divf %384, %393 : vector<32x128xf32>
    %395 = vector.broadcast %376 : vector<1x128xf32> to vector<32x128xf32>
    %396 = arith.mulf %394, %395 : vector<32x128xf32>
    %397 = vector.broadcast %377 : vector<1x128xf32> to vector<32x128xf32>
    %398 = arith.addf %396, %397 : vector<32x128xf32>
    %cst_362 = arith.constant 0.000000e+00 : f32
    %399 = vector.broadcast %cst_362 : f32 to vector<32x128xf32>
    %400 = arith.maximumf %398, %399 : vector<32x128xf32>
    %c7 = arith.constant 7 : index
    %c0_363 = arith.constant 0 : index
    %c0_364 = arith.constant 0 : index
    %401 = vector.load %arg18[%c7, %c0_363, %c0_364] : memref<8x1x128xf32, #tpu.memory_space<vmem>>, vector<1x1x128xf32>
    %402 = vector.shape_cast %401 : vector<1x1x128xf32> to vector<1x128xf32>
    %c0_365 = arith.constant 0 : index
    %c0_366 = arith.constant 0 : index
    %c0_367 = arith.constant 0 : index
    %403 = vector.load %arg16[%c0_365, %c0_366, %c0_367] : memref<7x128x128xf32, #tpu.memory_space<vmem>>, vector<1x128x128xf32>
    %404 = vector.shape_cast %403 : vector<1x128x128xf32> to vector<128x128xf32>
    %cst_368 = arith.constant dense<0.000000e+00> : vector<32x128xf32>
    %405 = tpu.matmul %400, %404, %cst_368 {dimension_numbers = #tpu.dot_dimension_numbers<[1], [0], [0], [1], [0, 0, 1, 1], [], []>} : vector<32x128xf32>, vector<128x128xf32>, vector<32x128xf32> -> vector<32x128xf32>
    %c0_369 = arith.constant 0 : index
    %c0_370 = arith.constant 0 : index
    %c0_371 = arith.constant 0 : index
    %406 = vector.load %arg17[%c0_369, %c0_370, %c0_371] : memref<7x32x32xf32, #tpu.memory_space<vmem>>, vector<1x32x32xf32>
    %407 = vector.shape_cast %406 : vector<1x32x32xf32> to vector<32x32xf32>
    %cst_372 = arith.constant dense<0.000000e+00> : vector<32x128xf32>
    %408 = tpu.matmul %407, %405, %cst_372 {dimension_numbers = #tpu.dot_dimension_numbers<[1], [0], [0], [1], [0, 0, 1, 1], [], []>} : vector<32x32xf32>, vector<32x128xf32>, vector<32x128xf32> -> vector<32x128xf32>
    %c1_373 = arith.constant 1 : index
    %c0_374 = arith.constant 0 : index
    %c0_375 = arith.constant 0 : index
    %409 = vector.load %arg16[%c1_373, %c0_374, %c0_375] : memref<7x128x128xf32, #tpu.memory_space<vmem>>, vector<1x128x128xf32>
    %410 = vector.shape_cast %409 : vector<1x128x128xf32> to vector<128x128xf32>
    %cst_376 = arith.constant dense<0.000000e+00> : vector<32x128xf32>
    %411 = tpu.matmul %400, %410, %cst_376 {dimension_numbers = #tpu.dot_dimension_numbers<[1], [0], [0], [1], [0, 0, 1, 1], [], []>} : vector<32x128xf32>, vector<128x128xf32>, vector<32x128xf32> -> vector<32x128xf32>
    %c1_377 = arith.constant 1 : index
    %c0_378 = arith.constant 0 : index
    %c0_379 = arith.constant 0 : index
    %412 = vector.load %arg17[%c1_377, %c0_378, %c0_379] : memref<7x32x32xf32, #tpu.memory_space<vmem>>, vector<1x32x32xf32>
    %413 = vector.shape_cast %412 : vector<1x32x32xf32> to vector<32x32xf32>
    %cst_380 = arith.constant dense<0.000000e+00> : vector<32x128xf32>
    %414 = tpu.matmul %413, %411, %cst_380 {dimension_numbers = #tpu.dot_dimension_numbers<[1], [0], [0], [1], [0, 0, 1, 1], [], []>} : vector<32x32xf32>, vector<32x128xf32>, vector<32x128xf32> -> vector<32x128xf32>
    %415 = arith.addf %408, %414 : vector<32x128xf32>
    %c2_381 = arith.constant 2 : index
    %c0_382 = arith.constant 0 : index
    %c0_383 = arith.constant 0 : index
    %416 = vector.load %arg16[%c2_381, %c0_382, %c0_383] : memref<7x128x128xf32, #tpu.memory_space<vmem>>, vector<1x128x128xf32>
    %417 = vector.shape_cast %416 : vector<1x128x128xf32> to vector<128x128xf32>
    %cst_384 = arith.constant dense<0.000000e+00> : vector<32x128xf32>
    %418 = tpu.matmul %400, %417, %cst_384 {dimension_numbers = #tpu.dot_dimension_numbers<[1], [0], [0], [1], [0, 0, 1, 1], [], []>} : vector<32x128xf32>, vector<128x128xf32>, vector<32x128xf32> -> vector<32x128xf32>
    %c2_385 = arith.constant 2 : index
    %c0_386 = arith.constant 0 : index
    %c0_387 = arith.constant 0 : index
    %419 = vector.load %arg17[%c2_385, %c0_386, %c0_387] : memref<7x32x32xf32, #tpu.memory_space<vmem>>, vector<1x32x32xf32>
    %420 = vector.shape_cast %419 : vector<1x32x32xf32> to vector<32x32xf32>
    %cst_388 = arith.constant dense<0.000000e+00> : vector<32x128xf32>
    %421 = tpu.matmul %420, %418, %cst_388 {dimension_numbers = #tpu.dot_dimension_numbers<[1], [0], [0], [1], [0, 0, 1, 1], [], []>} : vector<32x32xf32>, vector<32x128xf32>, vector<32x128xf32> -> vector<32x128xf32>
    %422 = arith.addf %415, %421 : vector<32x128xf32>
    %c3_389 = arith.constant 3 : index
    %c0_390 = arith.constant 0 : index
    %c0_391 = arith.constant 0 : index
    %423 = vector.load %arg16[%c3_389, %c0_390, %c0_391] : memref<7x128x128xf32, #tpu.memory_space<vmem>>, vector<1x128x128xf32>
    %424 = vector.shape_cast %423 : vector<1x128x128xf32> to vector<128x128xf32>
    %cst_392 = arith.constant dense<0.000000e+00> : vector<32x128xf32>
    %425 = tpu.matmul %400, %424, %cst_392 {dimension_numbers = #tpu.dot_dimension_numbers<[1], [0], [0], [1], [0, 0, 1, 1], [], []>} : vector<32x128xf32>, vector<128x128xf32>, vector<32x128xf32> -> vector<32x128xf32>
    %c3_393 = arith.constant 3 : index
    %c0_394 = arith.constant 0 : index
    %c0_395 = arith.constant 0 : index
    %426 = vector.load %arg17[%c3_393, %c0_394, %c0_395] : memref<7x32x32xf32, #tpu.memory_space<vmem>>, vector<1x32x32xf32>
    %427 = vector.shape_cast %426 : vector<1x32x32xf32> to vector<32x32xf32>
    %cst_396 = arith.constant dense<0.000000e+00> : vector<32x128xf32>
    %428 = tpu.matmul %427, %425, %cst_396 {dimension_numbers = #tpu.dot_dimension_numbers<[1], [0], [0], [1], [0, 0, 1, 1], [], []>} : vector<32x32xf32>, vector<32x128xf32>, vector<32x128xf32> -> vector<32x128xf32>
    %429 = arith.addf %422, %428 : vector<32x128xf32>
    %c4_397 = arith.constant 4 : index
    %c0_398 = arith.constant 0 : index
    %c0_399 = arith.constant 0 : index
    %430 = vector.load %arg16[%c4_397, %c0_398, %c0_399] : memref<7x128x128xf32, #tpu.memory_space<vmem>>, vector<1x128x128xf32>
    %431 = vector.shape_cast %430 : vector<1x128x128xf32> to vector<128x128xf32>
    %cst_400 = arith.constant dense<0.000000e+00> : vector<32x128xf32>
    %432 = tpu.matmul %400, %431, %cst_400 {dimension_numbers = #tpu.dot_dimension_numbers<[1], [0], [0], [1], [0, 0, 1, 1], [], []>} : vector<32x128xf32>, vector<128x128xf32>, vector<32x128xf32> -> vector<32x128xf32>
    %c4_401 = arith.constant 4 : index
    %c0_402 = arith.constant 0 : index
    %c0_403 = arith.constant 0 : index
    %433 = vector.load %arg17[%c4_401, %c0_402, %c0_403] : memref<7x32x32xf32, #tpu.memory_space<vmem>>, vector<1x32x32xf32>
    %434 = vector.shape_cast %433 : vector<1x32x32xf32> to vector<32x32xf32>
    %cst_404 = arith.constant dense<0.000000e+00> : vector<32x128xf32>
    %435 = tpu.matmul %434, %432, %cst_404 {dimension_numbers = #tpu.dot_dimension_numbers<[1], [0], [0], [1], [0, 0, 1, 1], [], []>} : vector<32x32xf32>, vector<32x128xf32>, vector<32x128xf32> -> vector<32x128xf32>
    %436 = arith.addf %429, %435 : vector<32x128xf32>
    %c5_405 = arith.constant 5 : index
    %c0_406 = arith.constant 0 : index
    %c0_407 = arith.constant 0 : index
    %437 = vector.load %arg16[%c5_405, %c0_406, %c0_407] : memref<7x128x128xf32, #tpu.memory_space<vmem>>, vector<1x128x128xf32>
    %438 = vector.shape_cast %437 : vector<1x128x128xf32> to vector<128x128xf32>
    %cst_408 = arith.constant dense<0.000000e+00> : vector<32x128xf32>
    %439 = tpu.matmul %400, %438, %cst_408 {dimension_numbers = #tpu.dot_dimension_numbers<[1], [0], [0], [1], [0, 0, 1, 1], [], []>} : vector<32x128xf32>, vector<128x128xf32>, vector<32x128xf32> -> vector<32x128xf32>
    %c5_409 = arith.constant 5 : index
    %c0_410 = arith.constant 0 : index
    %c0_411 = arith.constant 0 : index
    %440 = vector.load %arg17[%c5_409, %c0_410, %c0_411] : memref<7x32x32xf32, #tpu.memory_space<vmem>>, vector<1x32x32xf32>
    %441 = vector.shape_cast %440 : vector<1x32x32xf32> to vector<32x32xf32>
    %cst_412 = arith.constant dense<0.000000e+00> : vector<32x128xf32>
    %442 = tpu.matmul %441, %439, %cst_412 {dimension_numbers = #tpu.dot_dimension_numbers<[1], [0], [0], [1], [0, 0, 1, 1], [], []>} : vector<32x32xf32>, vector<32x128xf32>, vector<32x128xf32> -> vector<32x128xf32>
    %443 = arith.addf %436, %442 : vector<32x128xf32>
    %c6_413 = arith.constant 6 : index
    %c0_414 = arith.constant 0 : index
    %c0_415 = arith.constant 0 : index
    %444 = vector.load %arg16[%c6_413, %c0_414, %c0_415] : memref<7x128x128xf32, #tpu.memory_space<vmem>>, vector<1x128x128xf32>
    %445 = vector.shape_cast %444 : vector<1x128x128xf32> to vector<128x128xf32>
    %cst_416 = arith.constant dense<0.000000e+00> : vector<32x128xf32>
    %446 = tpu.matmul %400, %445, %cst_416 {dimension_numbers = #tpu.dot_dimension_numbers<[1], [0], [0], [1], [0, 0, 1, 1], [], []>} : vector<32x128xf32>, vector<128x128xf32>, vector<32x128xf32> -> vector<32x128xf32>
    %c6_417 = arith.constant 6 : index
    %c0_418 = arith.constant 0 : index
    %c0_419 = arith.constant 0 : index
    %447 = vector.load %arg17[%c6_417, %c0_418, %c0_419] : memref<7x32x32xf32, #tpu.memory_space<vmem>>, vector<1x32x32xf32>
    %448 = vector.shape_cast %447 : vector<1x32x32xf32> to vector<32x32xf32>
    %cst_420 = arith.constant dense<0.000000e+00> : vector<32x128xf32>
    %449 = tpu.matmul %448, %446, %cst_420 {dimension_numbers = #tpu.dot_dimension_numbers<[1], [0], [0], [1], [0, 0, 1, 1], [], []>} : vector<32x32xf32>, vector<32x128xf32>, vector<32x128xf32> -> vector<32x128xf32>
    %450 = arith.addf %443, %449 : vector<32x128xf32>
    %451 = vector.broadcast %402 : vector<1x128xf32> to vector<32x128xf32>
    %452 = arith.addf %450, %451 : vector<32x128xf32>
    %453 = math.tanh %452 : vector<32x128xf32>
    %c0_421 = arith.constant 0 : index
    %c0_422 = arith.constant 0 : index
    %454 = vector.load %arg35[%c0_421, %c0_422] : memref<32x128xf32, #tpu.memory_space<vmem>>, vector<32x128xf32>
    tpu.vector_store %arg35[%c0_421, %c0_422], %453 {strides = array<i32>} : memref<32x128xf32, #tpu.memory_space<vmem>>, vector<32x128xf32>,
    return
  }
}

</mosaic_0001>

<bundles_post_ra>
// kernel: fused_forward.1
= control target key start
LH: loop header
LB: loop body
LE: loop exit
PB: predicated region body
PF: predicated region fallthrough
CT: control target
= control target key end

     0   :  { %s6122_s6 = smov 1   ;;  %s6123_s10 = smov 2   ;;  %s7587_s0 = inlined_call_operand.smem [shape: u32[36], index: -1, kind: input, shape index: {}] }
   0x1   :  { %s6188_s5 = sld [smem:[%s7587_s0]]   ;;  %s6124_s14 = smov 3  }
   0x2   :  { %s6193_s9 = sld [smem:[%s7587_s0 + %s6122_s6]]   ;;  %s6125_s18 = smov 4  }
   0x3   :  { %s6198_s13 = sld [smem:[%s7587_s0 + %s6123_s10]]   ;;  %s6126_s22 = smov 5  }
   0x4   :  { %s6203_s17 = sld [smem:[%s7587_s0 + %s6124_s14]]   ;;  %s6127_s26 = smov 6  }
   0x5   :  { %s6208_s21 = sld [smem:[%s7587_s0 + %s6125_s18]]   ;;  %s6128_s30 = smov 7  }
   0x6   :  { %s6213_s25 = sld [smem:[%s7587_s0 + %s6126_s22]]   ;;  %s6129_s4 = smov 8  }
   0x7   :  { %7603 = sst [smem:[#allocation33_spill]] %s6188_s5  ;;  %s6130_s10 = smov 9  }
   0x8   :  { %7604 = sst [smem:[#allocation34_spill]] %s6193_s9  ;;  %s6131_s15 = smov 10  }
   0x9   :  { %s6218_s29 = sld [smem:[%s7587_s0 + %s6127_s26]]   ;;  %s6132_s20 = smov 11  }
   0xa   :  { %7605 = sst [smem:[#allocation35_spill]] %s6203_s17  ;;  %s6133_s26 = smov 12  }
   0xb   :  { %s6223_s3 = sld [smem:[%s7587_s0 + %s6128_s30]]   ;;  %s6134_s1 = smov 13  }
   0xc   :  { %7606 = sst [smem:[#allocation36_spill]] %s6213_s25  ;;  %s6135_s7 = smov 14  }
   0xd   :  { %s6228_s8 = sld [smem:[%s7587_s0 + %s6129_s4]]   ;;  %s6137_s22 = smov 16  }
   0xe   :  { %s6233_s14 = sld [smem:[%s7587_s0 + %s6130_s10]]   ;;  %s6138_s28 = smov 17  }
   0xf   :  { %7607 = sst [smem:[#allocation37_spill]] %s6218_s29 }
  0x10   :  { %s6238_s19 = sld [smem:[%s7587_s0 + %s6131_s15]]   ;;  %s6136_s15 = smov 15  }
  0x11   :  { %7608 = sst [smem:[#allocation38_spill]] %s6223_s3 }
  0x12   :  { %s6243_s24 = sld [smem:[%s7587_s0 + %s6132_s20]]  }
  0x13   :  { %s6248_s30 = sld [smem:[%s7587_s0 + %s6133_s26]]  }
  0x14   :  { %7609 = sst [smem:[#allocation39_spill]] %s6233_s14 }
  0x15   :  { %s6253_s6 = sld [smem:[%s7587_s0 + %s6134_s1]]  }
  0x16   :  { %s6258_s12 = sld [smem:[%s7587_s0 + %s6135_s7]]   ;;  %s6139_s7 = smov 18  }
  0x17   :  { %s6263_s20 = sld [smem:[%s7587_s0 + %s6136_s15]]   ;;  %s6140_s15 = smov 19  }
  0x18   :  { %7610 = sst [smem:[#allocation40_spill]] %s6243_s24 }
  0x19   :  { %s6268_s27 = sld [smem:[%s7587_s0 + %s6137_s22]]   ;;  %s6141_s22 = smov 20  }
  0x1a   :  { %s6273_s4 = sld [smem:[%s7587_s0 + %s6138_s28]]   ;;  %s6142_s28 = smov 21  }
  0x1b   :  { %7611 = sst [smem:[#allocation41_spill]] %s6253_s6 }
  0x1c   :  { %s6278_s6 = sld [smem:[%s7587_s0 + %s6139_s7]]   ;;  %s6143_s7 = smov 22  }
  0x1d   :  { %7612 = sst [smem:[#allocation42_spill]] %s6263_s20 }
  0x1e   :  { %s6283_s20 = sld [smem:[%s7587_s0 + %s6140_s15]]   ;;  %s6144_s15 = smov 23  }
  0x1f   :  { %s6288_s24 = sld [smem:[%s7587_s0 + %s6141_s22]]   ;;  %s6145_s22 = smov 24  }
  0x20   :  { %s6293_s9 = sld [smem:[%s7587_s0 + %s6142_s28]]   ;;  %s6146_s28 = smov 25  }
  0x21   :  { %s6298_s14 = sld [smem:[%s7587_s0 + %s6143_s7]]   ;;  %s6147_s7 = smov 26  }
  0x22   :  { %7613 = sst [smem:[#allocation43_spill]] %s6278_s6 }
  0x23   :  { %s6303_s3 = sld [smem:[%s7587_s0 + %s6144_s15]]   ;;  %s6148_s15 = smov 27  }
  0x24   :  { %s6308_s29 = sld [smem:[%s7587_s0 + %s6145_s22]]   ;;  %s6149_s22 = smov 28  }
  0x25   :  { %s6313_s25 = sld [smem:[%s7587_s0 + %s6146_s28]]   ;;  %s6150_s28 = smov 29  }
  0x26   :  { %s6323_s6 = sld [smem:[%s7587_s0 + %s6148_s15]]   ;;  %s6152_s15 = smov 31  }
  0x27   :  { %7614 = sst [smem:[#allocation44_spill]] %s6298_s14 }
  0x28   :  { %s6318_s14 = sld [smem:[%s7587_s0 + %s6147_s7]]   ;;  %s6151_s7 = smov 30  }
  0x29   :  { %s6328_s17 = sld [smem:[%s7587_s0 + %s6149_s22]]   ;;  %s6153_s22 = smov 32  }
  0x2a   :  { %s6333_s5 = sld [smem:[%s7587_s0 + %s6150_s28]]   ;;  %s6154_s28 = smov 33  }
  0x2c   :  { %7616 = sst [smem:[#allocation46_spill]] %s6323_s6 }
  0x2d   :  { %s6343_s6 = sld [smem:[%s7587_s0 + %s6152_s15]]   ;;  %s6156_s15 = smov 35  }
  0x2e   :  { %7615 = sst [smem:[#allocation45_spill]] %s6318_s14 }
  0x2f   :  { %7617 = sst [smem:[#allocation47_spill]] %s6328_s17 }
  0x30   :  { %7618 = sst [smem:[#allocation48_spill]] %s6333_s5 }
  0x31   :  { %s6338_s14 = sld [smem:[%s7587_s0 + %s6151_s7]]   ;;  %s6155_s7 = smov 34  }
  0x32   :  { %s6348_s17 = sld [smem:[%s7587_s0 + %s6153_s22]]  }
  0x33   :  { %7620 = sst [smem:[#allocation50_spill]] %s6343_s6 }
  0x34   :  { %s6353_s5 = sld [smem:[%s7587_s0 + %s6154_s28]]  }
  0x35   :  { %s6363_s6 = sld [smem:[%s7587_s0 + %s6156_s15]]  }
  0x37   :  { %7619 = sst [smem:[#allocation49_spill]] %s6338_s14 }
  0x38   :  { %s6358_s14 = sld [smem:[%s7587_s0 + %s6155_s7]]  }
  0x39   :  { %76 = vsyncpa [#allocation3], 0 }
  0x3a   :  { %77 = vsyncpa [#allocation5], 0 }
  0x3b   :  { %78 = vsyncpa [#allocation8], 0 }
  0x3c   :  { %79 = vsyncpa [#allocation11], 0 }
  0x3d   :  { %80 = vsyncpa [#allocation14], 0 }
  0x3e   :  { %81 = vsyncpa [#allocation17], 0 }
  0x3f   :  { %82 = vsyncpa [#allocation20], 0 }
  0x40   :  { %83 = vsyncpa [#allocation23], 0  ;;  %s107_s22 = sshll.u32 %s6208_s21, 4  ;;  %s6157_s23 = smov [#allocation4]   ;;  %s108_s22 = int_to_ptr.hbm [resolvable:$true] %s107_s22 }
  0x41   :  { %s109_s26 = sshll.u32 %s6157_s23, 4  ;;  %s141_s28 = sshll.u32 %s6238_s19, 4  ;;  %s110_s26 = int_to_ptr.vmem [resolvable:$true] %s109_s26  ;;  %s142_s28 = int_to_ptr.hbm [resolvable:$true] %s141_s28 }
  0x42   :  { %s5746_s0 = sshra.s32 %s108_s22, 4  ;;  %s5750_s2 = scalar_lea.hbm %s6208_s21, 512  ;;  %s5747_s0 = int_to_ptr.hbm [resolvable:$true] %s5746_s0 }
  0x43   :  { %s5748_s1 = scalar_lea.hbm %s5747_s0, 512  ;;  %p5751_p1 = scmp.lt.s32.totalorder %s5747_s0, %s6208_s21 }
  0x44   :  { %p5749_p0 = scmp.ne.s32.totalorder %s5747_s0, %s5748_s1  ;;  %p5752_p2 = scmp.lt.s32.totalorder %s5750_s2, %s5748_s1 }
  0x46   :  { %p5753_p3 = por %p5752_p2, %p5751_p1 }
  0x48   :  { %p5754_p4 = pnand %p5753_p3, %p5749_p0 }
  0x4a   :  { %5757 = shalt.err (!%p5754_p4)
}
  0x4b   :  { %s6158_s7 = smov 128   ;;  %s6159_s10 = smov 8  }
  0x4c   :  { %115 = dma.hbm_to_vmem [thread:$0]  %s108_s22, 8192, %s110_s26, [#allocation5], %s6158_s7, %s6158_s7, %s6159_s10  }
  0x4d   :  { %s6160_s11 = smov [#allocation7]   ;;  %s171_s16 = sshll.u32 %s6258_s12, 4  ;;  %s6373_s16 = int_to_ptr.hbm [resolvable:$true] %s171_s16 }
  0x4e   :  { %s143_s15 = sshll.u32 %s6160_s11, 4  ;;  %s5770_s21 = sshra.s32 %s142_s28, 4  ;;  %s144_s15 = int_to_ptr.vmem [resolvable:$true] %s143_s15  ;;  %s5771_s21 = int_to_ptr.hbm [resolvable:$true] %s5770_s21 }
  0x4f   :  { %s5772_s18 = scalar_lea.hbm %s5771_s21, 384  ;;  %s5774_s23 = scalar_lea.hbm %s6238_s19, 384 }
  0x50   :  { %p5773_p5 = scmp.ne.s32.totalorder %s5771_s21, %s5772_s18  ;;  %p5775_p6 = scmp.lt.s32.totalorder %s5771_s21, %s6238_s19 }
  0x51   :  { %p5776_p7 = scmp.lt.s32.totalorder %s5774_s23, %s5772_s18 }
  0x53   :  { %p5777_p8 = por %p5776_p7, %p5775_p6 }
  0x55   :  { %p5778_p9 = pnand %p5777_p8, %p5773_p5 }
  0x57   :  { %5781 = shalt.err (!%p5778_p9)
}
  0x58   :  { %149 = dma.hbm_to_vmem [thread:$0]  %s142_s28, 6144, %s144_s15, [#allocation8], %s6158_s7, %s6158_s7, %s6159_s10  }
  0x59   :  { %s199_s22 = sshll.u32 %s6273_s4, 4  ;;  %s6161_s26 = smov [#allocation10]   ;;  %s6381_s22 = int_to_ptr.hbm [resolvable:$true] %s199_s22 }
  0x5a   :  { %s173_s0 = sshll.u32 %s6161_s26, 4  ;;  %s5794_s1 = sshra.s32 %s6373_s16, 4  ;;  %s174_s0 = int_to_ptr.vmem [resolvable:$true] %s173_s0  ;;  %s5795_s1 = int_to_ptr.hbm [resolvable:$true] %s5794_s1 }
  0x5b   :  { %s5796_s19 = scalar_lea.hbm %s5795_s1, 640  ;;  %s5798_s2 = scalar_lea.hbm %s6258_s12, 640 }
  0x5c   :  { %p5797_p10 = scmp.ne.s32.totalorder %s5795_s1, %s5796_s19  ;;  %p5799_p11 = scmp.lt.s32.totalorder %s5795_s1, %s6258_s12 }
  0x5d   :  { %p5800_p12 = scmp.lt.s32.totalorder %s5798_s2, %s5796_s19 }
  0x5f   :  { %p5801_p13 = por %p5800_p12, %p5799_p11 }
  0x61   :  { %p5802_p0 = pnand %p5801_p13, %p5797_p10 }
  0x63   :  { %5805 = shalt.err (!%p5802_p0)
}
  0x64   :  { %179 = dma.hbm_to_vmem [thread:$0]  %s6373_s16, 10240, %s174_s0, [#allocation11], %s6158_s7, %s6158_s7, %s6159_s10  }
  0x65   :  { %s6162_s28 = smov [#allocation13]   ;;  %s226_s15 = sshll.u32 %s6288_s24, 4  ;;  %s227_s15 = int_to_ptr.hbm [resolvable:$true] %s226_s15 }
  0x66   :  { %s201_s11 = sshll.u32 %s6162_s28, 4  ;;  %s5818_s21 = sshra.s32 %s6381_s22, 4  ;;  %s202_s11 = int_to_ptr.vmem [resolvable:$true] %s201_s11  ;;  %s5819_s21 = int_to_ptr.hbm [resolvable:$true] %s5818_s21 }
  0x67   :  { %s5820_s12 = scalar_lea.hbm %s5819_s21, 224  ;;  %s5822_s18 = scalar_lea.hbm %s6273_s4, 224 }
  0x68   :  { %p5821_p1 = scmp.ne.s32.totalorder %s5819_s21, %s5820_s12  ;;  %p5823_p2 = scmp.lt.s32.totalorder %s5819_s21, %s6273_s4 }
  0x69   :  { %p5824_p3 = scmp.lt.s32.totalorder %s5822_s18, %s5820_s12 }
  0x6b   :  { %p5825_p4 = por %p5824_p3, %p5823_p2 }
  0x6d   :  { %p5826_p5 = pnand %p5825_p4, %p5821_p1 }
  0x6f   :  { %5829 = shalt.err (!%p5826_p5)
}
  0x70   :  { %207 = dma.hbm_to_vmem [thread:$0]  %s6381_s22, 3584, %s202_s11, [#allocation14], %s6158_s7, %s6158_s7, %s6159_s10  }
  0x71   :  { %s251_s16 = sshll.u32 %s6303_s3, 4  ;;  %s6163_s23 = smov [#allocation16]   ;;  %s6399_s16 = int_to_ptr.hbm [resolvable:$true] %s251_s16 }
  0x72   :  { %s228_s26 = sshll.u32 %s6163_s23, 4  ;;  %s5842_s0 = sshra.s32 %s227_s15, 4  ;;  %s229_s26 = int_to_ptr.vmem [resolvable:$true] %s228_s26  ;;  %s5843_s0 = int_to_ptr.hbm [resolvable:$true] %s5842_s0 }
  0x73   :  { %s5844_s4 = scalar_lea.hbm %s5843_s0, 1  ;;  %s5846_s1 = scalar_lea.hbm %s6288_s24, 1 }
  0x74   :  { %p5845_p6 = scmp.ne.s32.totalorder %s5843_s0, %s5844_s4  ;;  %p5847_p7 = scmp.lt.s32.totalorder %s5843_s0, %s6288_s24 }
  0x75   :  { %p5848_p8 = scmp.lt.s32.totalorder %s5846_s1, %s5844_s4 }
  0x77   :  { %p5849_p9 = por %p5848_p8, %p5847_p7 }
  0x79   :  { %p5850_p10 = pnand %p5849_p9, %p5845_p6 }
  0x7b   :  { %5853 = shalt.err (!%p5850_p10)
}
  0x7c   :  { %231 = dma.hbm_to_vmem [thread:$0]  %s227_s15, 16, %s229_s26, [#allocation17]  }
  0x7d   :  { %s6164_s22 = smov [#allocation19]   ;;  %s276_s2 = sshll.u32 %s6313_s25, 4  ;;  %s277_s2 = int_to_ptr.hbm [resolvable:$true] %s276_s2 }
  0x7e   :  { %s253_s19 = sshll.u32 %s6164_s22, 4  ;;  %s5866_s28 = sshra.s32 %s6399_s16, 4  ;;  %s254_s19 = int_to_ptr.vmem [resolvable:$true] %s253_s19  ;;  %s5867_s28 = int_to_ptr.hbm [resolvable:$true] %s5866_s28 }
  0x7f   :  { %s5868_s11 = scalar_lea.hbm %s5867_s28, 32  ;;  %s5870_s21 = scalar_lea.hbm %s6303_s3, 32 }
  0x80   :  { %p5869_p11 = scmp.ne.s32.totalorder %s5867_s28, %s5868_s11  ;;  %p5871_p12 = scmp.lt.s32.totalorder %s5867_s28, %s6303_s3 }
  0x81   :  { %p5872_p13 = scmp.lt.s32.totalorder %s5870_s21, %s5868_s11 }
  0x83   :  { %p5873_p0 = por %p5872_p13, %p5871_p12 }
  0x85   :  { %p5874_p1 = pnand %p5873_p0, %p5869_p11 }
  0x87   :  { %5877 = shalt.err (!%p5874_p1)
}
  0x88   :  { %259 = dma.hbm_to_vmem [thread:$0]  %s6399_s16, 512, %s254_s19, [#allocation20], %s6158_s7, %s6158_s7, %s6159_s10  }
  0x89   :  { %s92_s24 = sshll.u32 %s6198_s13, 4  ;;  %s6165_s15 = smov [#allocation22]   ;;  %s6412_s24 = int_to_ptr.hbm [resolvable:$true] %s92_s24 }
  0x8a   :  { %s278_s12 = sshll.u32 %s6165_s15, 4  ;;  %s5890_s18 = sshra.s32 %s277_s2, 4  ;;  %s279_s12 = int_to_ptr.vmem [resolvable:$true] %s278_s12  ;;  %s5891_s18 = int_to_ptr.hbm [resolvable:$true] %s5890_s18 }
  0x8b   :  { %s5892_s3 = scalar_lea.hbm %s5891_s18, 1  ;;  %s5894_s23 = scalar_lea.hbm %s6313_s25, 1 }
  0x8c   :  { %p5893_p2 = scmp.ne.s32.totalorder %s5891_s18, %s5892_s3  ;;  %p5895_p3 = scmp.lt.s32.totalorder %s5891_s18, %s6313_s25 }
  0x8d   :  { %p5896_p4 = scmp.lt.s32.totalorder %s5894_s23, %s5892_s3 }
  0x8f   :  { %p5897_p5 = por %p5896_p4, %p5895_p3 }
  0x91   :  { %p5898_p6 = pnand %p5897_p5, %p5893_p2 }
  0x93   :  { %5901 = shalt.err (!%p5898_p6)
}
  0x94   :  { %281 = dma.hbm_to_vmem [thread:$0]  %s277_s2, 16, %s279_s12, [#allocation23]  }
  0x95   :  { %s6166_s16 = smov [#allocation2]   ;;  %s126_s0 = sshll.u32 %s6228_s8, 4  ;;  %s6417_s0 = int_to_ptr.hbm [resolvable:$true] %s126_s0 }
  0x96   :  { %s94_s26 = sshll.u32 %s6166_s16, 4  ;;  %s5914_s4 = sshra.s32 %s6412_s24, 4  ;;  %s95_s26 = int_to_ptr.vmem [resolvable:$true] %s94_s26  ;;  %s5915_s4 = int_to_ptr.hbm [resolvable:$true] %s5914_s4 }
  0x97   :  { %s5916_s1 = scalar_lea.hbm %s5915_s4, 336  ;;  %s5918_s25 = scalar_lea.hbm %s6198_s13, 336 }
  0x98   :  { %p5917_p7 = scmp.ne.s32.totalorder %s5915_s4, %s5916_s1  ;;  %p5919_p8 = scmp.lt.s32.totalorder %s5915_s4, %s6198_s13 }
  0x99   :  { %p5920_p9 = scmp.lt.s32.totalorder %s5918_s25, %s5916_s1 }
  0x9b   :  { %p5921_p10 = por %p5920_p9, %p5919_p8 }
  0x9d   :  { %p5922_p11 = pnand %p5921_p10, %p5917_p7 }
  0x9f   :  { %5925 = shalt.err (!%p5922_p11)
}
  0xa0   :  { %100 = dma.hbm_to_vmem [thread:$0]  %s6412_s24, 5376, %s95_s26, [#allocation3], %s6158_s7, %s6158_s7, %s6159_s10  }
  0xa1   :  { %s156_s22 = sshll.u32 %s6248_s30, 4  ;;  %s6167_s19 = smov [#allocation6]   ;;  %s6427_s22 = int_to_ptr.hbm [resolvable:$true] %s156_s22 }
  0xa2   :  { %s128_s2 = sshll.u32 %s6167_s19, 4  ;;  %s5938_s13 = sshra.s32 %s6417_s0, 4  ;;  %s129_s2 = int_to_ptr.vmem [resolvable:$true] %s128_s2  ;;  %s5939_s13 = int_to_ptr.hbm [resolvable:$true] %s5938_s13 }
  0xa3   :  { %s5940_s28 = scalar_lea.hbm %s5939_s13, 384  ;;  %s5942_s11 = scalar_lea.hbm %s6228_s8, 384 }
  0xa4   :  { %p5941_p12 = scmp.ne.s32.totalorder %s5939_s13, %s5940_s28  ;;  %p5943_p13 = scmp.lt.s32.totalorder %s5939_s13, %s6228_s8 }
  0xa5   :  { %p5944_p0 = scmp.lt.s32.totalorder %s5942_s11, %s5940_s28 }
  0xa7   :  { %p5945_p1 = por %p5944_p0, %p5943_p13 }
  0xa9   :  { %p5946_p2 = pnand %p5945_p1, %p5941_p12 }
  0xab   :  { %5949 = shalt.err (!%p5946_p2)
}
  0xac   :  { %134 = dma.hbm_to_vmem [thread:$0]  %s6417_s0, 6144, %s129_s2, [#allocation5], %s6158_s7, %s6158_s7, %s6159_s10  }
  0xad   :  { %s6168_s21 = smov [#allocation9]   ;;  %s186_s15 = sshll.u32 %s6268_s27, 4  ;;  %s6437_s15 = int_to_ptr.hbm [resolvable:$true] %s186_s15 }
  0xae   :  { %s158_s24 = sshll.u32 %s6168_s21, 4  ;;  %s5962_s8 = sshra.s32 %s6427_s22, 4  ;;  %s159_s24 = int_to_ptr.vmem [resolvable:$true] %s158_s24  ;;  %s5963_s8 = int_to_ptr.hbm [resolvable:$true] %s5962_s8 }
  0xaf   :  { %s5964_s12 = scalar_lea.hbm %s5963_s8, 384  ;;  %s5966_s18 = scalar_lea.hbm %s6248_s30, 384 }
  0xb0   :  { %p5965_p3 = scmp.ne.s32.totalorder %s5963_s8, %s5964_s12  ;;  %p5967_p4 = scmp.lt.s32.totalorder %s5963_s8, %s6248_s30 }
  0xb1   :  { %p5968_p5 = scmp.lt.s32.totalorder %s5966_s18, %s5964_s12 }
  0xb3   :  { %p5969_p6 = por %p5968_p5, %p5967_p4 }
  0xb5   :  { %p5970_p7 = pnand %p5969_p6, %p5965_p3 }
  0xb7   :  { %5973 = shalt.err (!%p5970_p7)
}
  0xb8   :  { %164 = dma.hbm_to_vmem [thread:$0]  %s6427_s22, 6144, %s159_s24, [#allocation8], %s6158_s7, %s6158_s7, %s6159_s10  }
  0xb9   :  { %s215_s3 = sshll.u32 %s6283_s20, 4  ;;  %s6169_s23 = smov [#allocation12]   ;;  %s216_s3 = int_to_ptr.hbm [resolvable:$true] %s215_s3 }
  0xba   :  { %s188_s16 = sshll.u32 %s6169_s23, 4  ;;  %s5986_s26 = sshra.s32 %s6437_s15, 4  ;;  %s189_s16 = int_to_ptr.vmem [resolvable:$true] %s188_s16  ;;  %s5987_s26 = int_to_ptr.hbm [resolvable:$true] %s5986_s26 }
  0xbb   :  { %s5988_s30 = scalar_lea.hbm %s5987_s26, 896  ;;  %s5990_s0 = scalar_lea.hbm %s6268_s27, 896 }
  0xbc   :  { %p5989_p8 = scmp.ne.s32.totalorder %s5987_s26, %s5988_s30  ;;  %p5991_p9 = scmp.lt.s32.totalorder %s5987_s26, %s6268_s27 }
  0xbd   :  { %p5992_p10 = scmp.lt.s32.totalorder %s5990_s0, %s5988_s30 }
  0xbf   :  { %p5993_p11 = por %p5992_p10, %p5991_p9 }
  0xc1   :  { %p5994_p12 = pnand %p5993_p11, %p5989_p8 }
  0xc3   :  { %5997 = shalt.err (!%p5994_p12)
}
  0xc4   :  { %194 = dma.hbm_to_vmem [thread:$0]  %s6437_s15, 14336, %s189_s16, [#allocation11], %s6158_s7, %s6158_s7, %s6159_s10  }
  0xc5   :  { %s6170_s4 = smov [#allocation15]   ;;  %s236_s25 = sshll.u32 %s6293_s9, 4  ;;  %s6455_s25 = int_to_ptr.hbm [resolvable:$true] %s236_s25 }
  0xc6   :  { %s217_s1 = sshll.u32 %s6170_s4, 4  ;;  %s6010_s22 = sshra.s32 %s216_s3, 4  ;;  %s218_s1 = int_to_ptr.vmem [resolvable:$true] %s217_s1  ;;  %s6011_s22 = int_to_ptr.hbm [resolvable:$true] %s6010_s22 }
  0xc7   :  { %s6012_s27 = scalar_lea.hbm %s6011_s22, 8  ;;  %s6014_s19 = scalar_lea.hbm %s6283_s20, 8 }
  0xc8   :  { %p6013_p13 = scmp.ne.s32.totalorder %s6011_s22, %s6012_s27  ;;  %p6015_p0 = scmp.lt.s32.totalorder %s6011_s22, %s6283_s20 }
  0xc9   :  { %p6016_p1 = scmp.lt.s32.totalorder %s6014_s19, %s6012_s27 }
  0xcb   :  { %p6017_p2 = por %p6016_p1, %p6015_p0 }
  0xcd   :  { %p6018_p3 = pnand %p6017_p2, %p6013_p13 }
  0xcf   :  { %6021 = shalt.err (!%p6018_p3)
}
  0xd0   :  { %220 = dma.hbm_to_vmem [thread:$0]  %s216_s3, 128, %s218_s1, [#allocation14]  }
  0xd1   :  { %s265_s2 = sshll.u32 %s6308_s29, 4  ;;  %s6171_s13 = smov [#allocation18]   ;;  %s266_s2 = int_to_ptr.hbm [resolvable:$true] %s265_s2 }
  0xd2   :  { %s238_s28 = sshll.u32 %s6171_s13, 4  ;;  %s6034_s11 = sshra.s32 %s6455_s25, 4  ;;  %s239_s28 = int_to_ptr.vmem [resolvable:$true] %s238_s28  ;;  %s6035_s11 = int_to_ptr.hbm [resolvable:$true] %s6034_s11 }
  0xd3   :  { %s6036_s21 = scalar_lea.hbm %s6035_s11, 32  ;;  %s6038_s24 = scalar_lea.hbm %s6293_s9, 32 }
  0xd4   :  { %p6037_p4 = scmp.ne.s32.totalorder %s6035_s11, %s6036_s21  ;;  %p6039_p5 = scmp.lt.s32.totalorder %s6035_s11, %s6293_s9 }
  0xd5   :  { %p6040_p6 = scmp.lt.s32.totalorder %s6038_s24, %s6036_s21 }
  0xd7   :  { %p6041_p7 = por %p6040_p6, %p6039_p5 }
  0xd9   :  { %p6042_p8 = pnand %p6041_p7, %p6037_p4 }
  0xdb   :  { %6045 = shalt.err (!%p6042_p8)
}
  0xdc   :  { %s7621_s20 = sld [smem:[#allocation45_spill]]  ;;  %s6172_s15 = smov [#allocation21]  }
  0xdd   :  { %244 = dma.hbm_to_vmem [thread:$0]  %s6455_s25, 512, %s239_s28, [#allocation17], %s6158_s7, %s6158_s7, %s6159_s10  }
  0xde   :  { %s267_s8 = sshll.u32 %s6172_s15, 4  ;;  %s6058_s18 = sshra.s32 %s266_s2, 4  ;;  %s268_s8 = int_to_ptr.vmem [resolvable:$true] %s267_s8  ;;  %s6059_s18 = int_to_ptr.hbm [resolvable:$true] %s6058_s18 }
  0xdf   :  { %s6060_s3 = scalar_lea.hbm %s6059_s18, 1  ;;  %s6062_s9 = scalar_lea.hbm %s6308_s29, 1 }
  0xe0   :  { %p6061_p9 = scmp.ne.s32.totalorder %s6059_s18, %s6060_s3  ;;  %p6063_p10 = scmp.lt.s32.totalorder %s6059_s18, %s6308_s29 }
  0xe1   :  { %p6064_p11 = scmp.lt.s32.totalorder %s6062_s9, %s6060_s3 }
  0xe2   :  { %s287_s12 = sshll.u32 %s7621_s20, 4  ;;  %s288_s12 = int_to_ptr.hbm [resolvable:$true] %s287_s12 }
  0xe3   :  { %p6065_p12 = por %p6064_p11, %p6063_p10 }
  0xe5   :  { %p6066_p13 = pnand %p6065_p12, %p6061_p9 }
  0xe7   :  { %6069 = shalt.err (!%p6066_p13)
}
  0xe8   :  { %270 = dma.hbm_to_vmem [thread:$0]  %s266_s2, 16, %s268_s8, [#allocation20]  }
  0xe9   :  { %s6173_s23 = smov [#allocation24]   ;;  %s6082_s10 = sshra.s32 %s288_s12, 4  ;;  %s6083_s10 = int_to_ptr.hbm [resolvable:$true] %s6082_s10 }
  0xea   :  { %s289_s7 = sshll.u32 %s6173_s23, 4  ;;  %s6084_s16 = scalar_lea.hbm %s6083_s10, 1  ;;  %s290_s7 = int_to_ptr.vmem [resolvable:$true] %s289_s7 }
  0xeb   :  { %p6085_p0 = scmp.ne.s32.totalorder %s6083_s10, %s6084_s16  ;;  %s6086_s26 = scalar_lea.hbm %s7621_s20, 1 }
  0xec   :  { %p6087_p1 = scmp.lt.s32.totalorder %s6083_s10, %s7621_s20  ;;  %p6088_p2 = scmp.lt.s32.totalorder %s6086_s26, %s6084_s16 }
  0xee   :  { %p6089_p3 = por %p6088_p2, %p6087_p1 }
  0xf0   :  { %p6090_p4 = pnand %p6089_p3, %p6085_p0 }
  0xf2   :  { %6093 = shalt.err (!%p6090_p4)
}
  0xf3   :  { %292 = dma.hbm_to_vmem [thread:$0]  %s288_s12, 16, %s290_s7, [#allocation23]  }
  0xf4   :  { %6106 = dma.done.wait [#allocation3], 5376  }
  0xf5   :  { %6107 = vsyncadd [#allocation3], 4294961920 }
  0xf6   :  { %6108 = dma.done.wait [#allocation5], 14336  }
  0xf7   :  { %6109 = vsyncadd [#allocation5], 4294952960 }
  0xf8   :  { %6110 = dma.done.wait [#allocation8], 12288  }
  0xf9   :  { %6111 = vsyncadd [#allocation8], 4294955008 }
  0xfa   :  { %6112 = dma.done.wait [#allocation11], 24576  }
  0xfb   :  { %6113 = vsyncadd [#allocation11], 4294942720 }
  0xfc   :  { %6114 = dma.done.wait [#allocation14], 3712  }
  0xfd   :  { %6115 = vsyncadd [#allocation14], 4294963584 }
  0xfe   :  { %6116 = dma.done.wait [#allocation17], 528  }
  0xff   :  { %6117 = vsyncadd [#allocation17], 4294966768 }
 0x100   :  { %6118 = dma.done.wait [#allocation20], 528  }
 0x101   :  { %6119 = vsyncadd [#allocation20], 4294966768 }
 0x102   :  { %6120 = dma.done.wait [#allocation23], 32  }
 0x103   :  { %6121 = vsyncadd [#allocation23], 4294967264  ;;  %v422_v0 = vld [vmem:[#allocation2 + $0x28] sm:$0xff]  ;;  %v475_v1 = vld [vmem:[#allocation2 + $0x58] sm:$0xff]  ;;  %s7622_s29 = sld [smem:[#allocation33_spill]]  ;;  %vm423_vm0 = vcmask 392192  }
 0x104   :  { %v421_v2 = vld [vmem:[#allocation2 + $0x20] sm:$0xff]  ;;  %446 = vmatpush.msra.mxu0 %v422_v0  ;;  %486 = vmatpush.msra.mxu1 %v475_v1  ;;  %v474_v3 = vld [vmem:[#allocation2 + $0x50] sm:$0xff]  ;;  %v420_v4 = vld [vmem:[#allocation2 + $0x18] sm:$0xff]  ;;  %s7623_s30 = sld [smem:[#allocation35_spill]]  ;;  %vm510_vm1 = vcmask 261120   ;;  %vm1087_vm2 = vcmask 1041408  }
 0x105   :  { %v473_v5 = vld [vmem:[#allocation2 + $0x48] sm:$0xff]  ;;  %v419_v6 = vld [vmem:[#allocation2 + $0x10] sm:$0xff]  ;;  %v472_v7 = vld [vmem:[#allocation2 + $0x40] sm:$0xff]  ;;  %s7624_s0 = sld [smem:[#allocation46_spill]]  ;;  %vm1074_vm3 = vcmask 15360   ;;  %vm1120_vm4 = vcmask 64512  }
 0x106   :  { %447 = vmatpush.msra.mxu0 %v421_v2  ;;  %487 = vmatpush.msra.mxu1 %v474_v3  ;;  %v418_v8 = vld [vmem:[#allocation2 + $0x8] sm:$0xff]  ;;  %v471_v9 = vld [vmem:[#allocation2 + $0x38] sm:$0xff]  ;;  %v417_v10 = vld [vmem:[#allocation2] sm:$0xff]  ;;  %s7625_s4 = sld [smem:[#allocation43_spill]]  ;;  %vm1624_vm8 = vcmask 130048   ;;  %s6174_s20 = smov 96  }
 0x107   :  { %v470_v11 = vld [vmem:[#allocation2 + $0x30] sm:$0xff]  ;;  %v599_v26 = vld [vmem:[#allocation2 + $0x88] sm:$0xff]  ;;  %v598_v27 = vld [vmem:[#allocation2 + $0x80] sm:$0xff]  ;;  %s7626_s1 = sld [smem:[#allocation50_spill]]  ;;  %s6176_s15 = smov 112  }
 0x108   :  { %448 = vmatpush.msra.mxu0 %v420_v4  ;;  %488 = vmatpush.msra.mxu1 %v473_v5  ;;  %v685_v28 = vld [vmem:[#allocation2 + $0xb8] sm:$0xff]  ;;  %v684_v29 = vld [vmem:[#allocation2 + $0xb0] sm:$0xff]  ;;  %v683_v31 = vld [vmem:[#allocation2 + $0xa8] sm:$0xff]  ;;  %s7627_s25 = sld [smem:[#allocation47_spill]]  ;;  %s6177_s12 = smov 48  }
 0x109   :  { %v6473_v12 = vld [vmem:[%s7622_s29] sm:$0xff]  ;;  %v6480_v13 = vld [vmem:[%s7622_s29 + $0x8] sm:$0xff]  ;;  %v6487_v14 = vld [vmem:[%s7622_s29 + $0x10] sm:$0xff]  ;;  %s7628_s22 = sld [smem:[#allocation36_spill]]  ;;  %s6178_s18 = smov 80  }
 0x10a   :  { %449 = vmatpush.msra.mxu0 %v419_v6  ;;  %489 = vmatpush.msra.mxu1 %v472_v7  ;;  %v6494_v15 = vld [vmem:[%s7622_s29 + $0x18] sm:$0xff]  ;;  %v5278_v24 = vld [vmem:[%s7623_s30 + $0x20] sm:$0xff]  ;;  %v596_v32 = vld [vmem:[#allocation2 + $0x70] sm:$0xff]  ;;  %s7629_s27 = sld [smem:[#allocation48_spill]] }
 0x10b   :  { %v465_v25 = vld [vmem:[%s7623_s30] sm:$0xff]  ;;  %v597_v30 = vld [vmem:[#allocation2 + $0x78] sm:$0xff]  ;;  %v5279_v34 = vld [vmem:[%s7623_s30 + $0x28] sm:$0xff]  ;;  %s7630_s19 = sld [smem:[#allocation49_spill]] }
 0x10c   :  { %450 = vmatpush.msra.mxu0 %v418_v8  ;;  %490 = vmatpush.msra.mxu1 %v471_v9  ;;  %v682_v33 = vld [vmem:[#allocation2 + $0xa0] sm:$0xff]  ;;  %v466_v35 = vld [vmem:[%s7623_s30 + $0x8] sm:$0xff]  ;;  %v681_v38 = vld [vmem:[#allocation2 + $0x98] sm:$0xff]  ;;  %s7631_s2 = sld [smem:[#allocation37_spill]] }
 0x10d   :  { %v595_v36 = vld [vmem:[#allocation2 + $0x68] sm:$0xff]  ;;  %v594_v37 = vld [vmem:[#allocation2 + $0x60] sm:$0xff]  ;;  %v680_v39 = vld [vmem:[#allocation2 + $0x90] sm:$0xff]  ;;  %s7632_s13 = sld [smem:[#allocation38_spill]] }
 0x10e   :  { %451 = vmatpush.msra.mxu0 %v417_v10  ;;  %491 = vmatpush.msra.mxu1 %v470_v11  ;;  %v5280_v40 = vld [vmem:[%s7623_s30 + $0x30] sm:$0xff]  ;;  %v771_v42 = vld [vmem:[#allocation2 + $0xe8] sm:$0xff]  ;;  %v770_v43 = vld [vmem:[#allocation2 + $0xe0] sm:$0xff]  ;;  %s7633_s28 = sld [smem:[#allocation39_spill]] }
 0x10f   :  { %5270 = vmatmul.msk.f32.vlgmr.msra.gmra.mxu0 %vm423_vm0, %v6473_v12  ;;  %5274 = vmatmul.msk.f32.vlgmr.msra.gmra.mxu1 %vm423_vm0, %v6473_v12  ;;  %v467_v41 = vld [vmem:[%s7623_s30 + $0x10] sm:$0xff]  ;;  %v5281_v44 = vld [vmem:[%s7623_s30 + $0x38] sm:$0xff]  ;;  %v767_v48 = vld [vmem:[#allocation2 + $0xc8] sm:$0xff]  ;;  %s7634_s11 = sld [smem:[#allocation34_spill]] }
 0x110   :  { %696 = vmatpush.msrb.mxu0 %v685_v28  ;;  %v468_v45 = vld [vmem:[%s7623_s30 + $0x18] sm:$0xff]  ;;  %v768_v47 = vld [vmem:[#allocation2 + $0xd0] sm:$0xff]  ;;  %v766_v49 = vld [vmem:[#allocation2 + $0xc0] sm:$0xff]  ;;  %s7635_s21 = sld [smem:[#allocation44_spill]] }
 0x111   :  { %v769_v46 = vld [vmem:[#allocation2 + $0xd8] sm:$0xff]  ;;  %v856_v51 = vld [vmem:[#allocation2 + $0x110] sm:$0xff]  ;;  %v855_v52 = vld [vmem:[#allocation2 + $0x108] sm:$0xff]  ;;  %s7636_s24 = sld [smem:[#allocation40_spill]] }
 0x112   :  { %697 = vmatpush.msrb.mxu0 %v684_v29  ;;  %v857_v50 = vld [vmem:[#allocation2 + $0x118] sm:$0xff]  ;;  %v854_v53 = vld [vmem:[#allocation2 + $0x100] sm:$0xff]  ;;  %v852_v55 = vld [vmem:[#allocation2 + $0xf0] sm:$0xff]  ;;  %s7637_s8 = sld [smem:[#allocation41_spill]] }
 0x113   :  { %v853_v54 = vld [vmem:[#allocation2 + $0xf8] sm:$0xff]  ;;  %v943_v56 = vld [vmem:[#allocation2 + $0x148] sm:$0xff]  ;;  %v942_v57 = vld [vmem:[#allocation2 + $0x140] sm:$0xff] }
 0x114   :  { %698 = vmatpush.msrb.mxu0 %v683_v31  ;;  %v941_v58 = vld [vmem:[#allocation2 + $0x138] sm:$0xff]  ;;  %v940_v59 = vld [vmem:[#allocation2 + $0x130] sm:$0xff]  ;;  %v939_v60 = vld [vmem:[#allocation2 + $0x128] sm:$0xff] }
 0x115   :  { %v938_v61 = vld [vmem:[#allocation2 + $0x120] sm:$0xff]  ;;  %v5307_v11 = vld [vmem:[%s7623_s30 + $0x68] sm:$0xff] }
 0x116   :  { %699 = vmatpush.msrb.mxu0 %v682_v33  ;;  %v5306_v8 = vld [vmem:[%s7623_s30 + $0x60] sm:$0xff] }
 0x117   :  { %5271 = vmatmul.msk.f32.gmra.mxu0 %vm423_vm0, %v6480_v13  ;;  %5275 = vmatmul.msk.f32.gmra.mxu1 %vm423_vm0, %v6480_v13  ;;  %v5318_v29 = vld [vmem:[%s7623_s30 + $0x80] sm:$0xff] }
 0x118   :  { %700 = vmatpush.msrb.mxu0 %v681_v38  ;;  %v5342_v38 = vld [vmem:[%s7623_s30 + $0xc0] sm:$0xff] }
 0x11a   :  { %701 = vmatpush.msrb.mxu0 %v680_v39  ;;  %v5343_v39 = vld [vmem:[%s7623_s30 + $0xc8] sm:$0xff] }
 0x11c   :  { %868 = vmatpush.msra.mxu0 %v857_v50 }
 0x11e   :  { %869 = vmatpush.msra.mxu0 %v856_v51 }
 0x11f   :  { %5272 = vmatmul.msk.f32.gmra.mxu0 %vm423_vm0, %v6487_v14  ;;  %5276 = vmatmul.msk.f32.gmra.mxu1 %vm423_vm0, %v6487_v14 }
 0x120   :  { %870 = vmatpush.msra.mxu0 %v855_v52 }
 0x122   :  { %871 = vmatpush.msra.mxu0 %v854_v53 }
 0x124   :  { %872 = vmatpush.msra.mxu0 %v853_v54 }
 0x126   :  { %873 = vmatpush.msra.mxu0 %v852_v55 }
 0x127   :  { %5273 = vmatmul.msk.f32.gmra.mxu0 %vm423_vm0, %v6494_v15  ;;  %5277 = vmatmul.msk.f32.gmra.mxu1 %vm423_vm0, %v6494_v15 }
 0x12f   :  { %5302 = vmatmul.msk.f32.vlgmr.msrb.gmra.mxu0 %vm423_vm0, %v6473_v12 }
 0x137   :  { %5303 = vmatmul.msk.f32.gmra.mxu0 %vm423_vm0, %v6480_v13 }
 0x13f   :  { %5304 = vmatmul.msk.f32.gmra.mxu0 %vm423_vm0, %v6487_v14 }
 0x147   :  { %5305 = vmatmul.msk.f32.gmra.mxu0 %vm423_vm0, %v6494_v15 }
 0x14f   :  { %5326 = vmatmul.msk.f32.vlgmr.msra.gmra.mxu0 %vm423_vm0, %v6473_v12 }
 0x157   :  { %5327 = vmatmul.msk.f32.gmra.mxu0 %vm423_vm0, %v6480_v13 }
 0x15f   :  { %5328 = vmatmul.msk.f32.gmra.mxu0 %vm423_vm0, %v6487_v14 }
 0x167   :  { %5329 = vmatmul.msk.f32.gmra.mxu0 %vm423_vm0, %v6494_v15 }
 0x18c   :  { %v453_v16 = vpop.f32.mrf.mxu0  ;;  %v493_v17 = vpop.f32.mrf.mxu1 }
 0x194   :  { %v456_v18 = vpop.f32.mrf.mxu0  ;;  %v496_v19 = vpop.f32.mrf.mxu1 }
 0x19c   :  { %v459_v20 = vpop.f32.mrf.mxu0  ;;  %v499_v21 = vpop.f32.mrf.mxu1 }
 0x1a4   :  { %v462_v22 = vpop.f32.mrf.mxu0  ;;  %v502_v23 = vpop.f32.mrf.mxu1 }
 0x1a5   :  { %535 = vmatpush.msra.mxu2 %v502_v23  ;;  %576 = vmatpush.msra.mxu3 %v462_v22  ;;  %v5296_v23 = vld [vmem:[%s7623_s30 + $0x50] sm:$0xff] }
 0x1a7   :  { %536 = vmatpush.msra.mxu2 %v499_v21  ;;  %577 = vmatpush.msra.mxu3 %v459_v20  ;;  %v5295_v20 = vld [vmem:[%s7623_s30 + $0x48] sm:$0xff]  ;;  %v5330_v21 = vld [vmem:[%s7623_s30 + $0xa0] sm:$0xff] }
 0x1a9   :  { %537 = vmatpush.msra.mxu2 %v496_v19  ;;  %578 = vmatpush.msra.mxu3 %v456_v18  ;;  %v5309_v18 = vld [vmem:[%s7623_s30 + $0x78] sm:$0xff] }
 0x1ab   :  { %538 = vmatpush.msra.mxu2 %v493_v17  ;;  %579 = vmatpush.msra.mxu3 %v453_v16  ;;  %v5294_v16 = vld [vmem:[%s7623_s30 + $0x40] sm:$0xff] }
 0x1ac   :  { %5282 = vmatmul.msk.f32.vlgmr.msra.gmra.mxu2 %vm510_vm1, %v5278_v24  ;;  %5286 = vmatmul.msk.f32.vlgmr.msra.gmra.mxu3 %vm510_vm1, %v465_v25  ;;  %v703_v63 = vpop.f32.mrf.mxu0  ;;  %v5331_v24 = vld [vmem:[%s7623_s30 + $0xa8] sm:$0xff] }
 0x1ad   :  { %610 = vmatpush.msrb.mxu2 %v599_v26  ;;  %v5297_v26 = vld [vmem:[%s7623_s30 + $0x58] sm:$0xff] }
 0x1af   :  { %611 = vmatpush.msrb.mxu2 %v598_v27  ;;  %v5332_v27 = vld [vmem:[%s7623_s30 + $0xb0] sm:$0xff] }
 0x1b1   :  { %612 = vmatpush.msrb.mxu2 %v597_v30  ;;  %v5333_v30 = vld [vmem:[%s7623_s30 + $0xb8] sm:$0xff] }
 0x1b3   :  { %613 = vmatpush.msrb.mxu2 %v596_v32  ;;  %v5319_v32 = vld [vmem:[%s7623_s30 + $0x88] sm:$0xff] }
 0x1b4   :  { %5283 = vmatmul.msk.f32.gmra.mxu2 %vm510_vm1, %v5279_v34  ;;  %5287 = vmatmul.msk.f32.gmra.mxu3 %vm510_vm1, %v466_v35  ;;  %v706_v1 = vpop.f32.mrf.mxu0  ;;  %v5320_v34 = vld [vmem:[%s7623_s30 + $0x90] sm:$0xff] }
 0x1b5   :  { %614 = vmatpush.msrb.mxu2 %v595_v36  ;;  %v5321_v36 = vld [vmem:[%s7623_s30 + $0x98] sm:$0xff] }
 0x1b7   :  { %615 = vmatpush.msrb.mxu2 %v594_v37 }
 0x1b9   :  { %782 = vmatpush.msra.mxu2 %v771_v42 }
 0x1bb   :  { %783 = vmatpush.msra.mxu2 %v770_v43 }
 0x1bc   :  { %5284 = vmatmul.msk.f32.gmra.mxu2 %vm510_vm1, %v5280_v40  ;;  %5288 = vmatmul.msk.f32.gmra.mxu3 %vm510_vm1, %v467_v41  ;;  %v709_v3 = vpop.f32.mrf.mxu0  ;;  %v5344_v40 = vld [vmem:[%s7623_s30 + $0xd0] sm:$0xff]  ;;  %v5345_v41 = vld [vmem:[%s7623_s30 + $0xd8] sm:$0xff] }
 0x1bd   :  { %784 = vmatpush.msra.mxu2 %v769_v46 }
 0x1bf   :  { %785 = vmatpush.msra.mxu2 %v768_v47 }
 0x1c1   :  { %786 = vmatpush.msra.mxu2 %v767_v48 }
 0x1c3   :  { %787 = vmatpush.msra.mxu2 %v766_v49 }
 0x1c4   :  { %5285 = vmatmul.msk.f32.gmra.mxu2 %vm510_vm1, %v5281_v44  ;;  %5289 = vmatmul.msk.f32.gmra.mxu3 %vm510_vm1, %v468_v45  ;;  %v712_v5 = vpop.f32.mrf.mxu0 }
 0x1c5   :  { %744 = vmatpush.msrb.mxu1 %v712_v5  ;;  %v381_v5 = vld [vmem:[%s7624_s0 + $0x60] sm:$0xff] }
 0x1c7   :  { %745 = vmatpush.msrb.mxu1 %v709_v3 }
 0x1c9   :  { %746 = vmatpush.msrb.mxu1 %v706_v1  ;;  %v382_v1 = vld [vmem:[%s7624_s0 + $0x68] sm:$0xff] }
 0x1cb   :  { %747 = vmatpush.msrb.mxu1 %v703_v63  ;;  %v383_v63 = vld [vmem:[%s7624_s0 + $0x70] sm:$0xff] }
 0x1cc   :  { %5290 = vmatmul.msk.f32.vlgmr.msrb.gmra.mxu2 %vm423_vm0, %v6473_v12  ;;  %v875_v7 = vpop.f32.mrf.mxu0  ;;  %5310 = vmatmul.msk.f32.vlgmr.msrb.gmra.mxu1 %vm510_vm1, %v5306_v8 }
 0x1cd   :  { %954 = vmatpush.msrb.mxu2 %v943_v56 }
 0x1cf   :  { %955 = vmatpush.msrb.mxu2 %v942_v57 }
 0x1d1   :  { %956 = vmatpush.msrb.mxu2 %v941_v58 }
 0x1d3   :  { %957 = vmatpush.msrb.mxu2 %v940_v59 }
 0x1d4   :  { %5291 = vmatmul.msk.f32.gmra.mxu2 %vm423_vm0, %v6480_v13  ;;  %v878_v10 = vpop.f32.mrf.mxu0  ;;  %5311 = vmatmul.msk.f32.gmra.mxu1 %vm510_vm1, %v5307_v11 }
 0x1d5   :  { %958 = vmatpush.msrb.mxu2 %v939_v60 }
 0x1d7   :  { %959 = vmatpush.msrb.mxu2 %v938_v61  ;;  %v384_v61 = vld [vmem:[%s7624_s0 + $0x78] sm:$0xff] }
 0x1dc   :  { %5292 = vmatmul.msk.f32.gmra.mxu2 %vm423_vm0, %v6487_v14 }
 0x1e4   :  { %5293 = vmatmul.msk.f32.gmra.mxu2 %vm423_vm0, %v6494_v15 }
 0x1ec   :  { %5314 = vmatmul.msk.f32.vlgmr.msra.gmra.mxu2 %vm423_vm0, %v6473_v12 }
 0x1f4   :  { %5315 = vmatmul.msk.f32.gmra.mxu2 %vm423_vm0, %v6480_v13 }
 0x1fc   :  { %5316 = vmatmul.msk.f32.gmra.mxu2 %vm423_vm0, %v6487_v14 }
 0x204   :  { %5317 = vmatmul.msk.f32.gmra.mxu2 %vm423_vm0, %v6494_v15 }
 0x20c   :  { %5338 = vmatmul.msk.f32.vlgmr.msrb.gmra.mxu2 %vm423_vm0, %v6473_v12 }
 0x214   :  { %5339 = vmatmul.msk.f32.gmra.mxu2 %vm423_vm0, %v6480_v13  ;;  %v881_v13 = vpop.f32.mrf.mxu0 }
 0x21c   :  { %5340 = vmatmul.msk.f32.gmra.mxu2 %vm423_vm0, %v6487_v14  ;;  %v5308_v14 = vld [vmem:[%s7623_s30 + $0x70] sm:$0xff]  ;;  %v884_v17 = vpop.f32.mrf.mxu0 }
 0x21d   :  { %5312 = vmatmul.msk.f32.gmra.mxu1 %vm510_vm1, %v5308_v14  ;;  %v378_v14 = vld [vmem:[%s7624_s0 + $0x48] sm:$0xff] }
 0x21e   :  { %916 = vmatpush.msra.mxu1 %v884_v17  ;;  %v377_v17 = vld [vmem:[%s7624_s0 + $0x40] sm:$0xff] }
 0x220   :  { %917 = vmatpush.msra.mxu1 %v881_v13 }
 0x222   :  { %918 = vmatpush.msra.mxu1 %v878_v10  ;;  %v379_v10 = vld [vmem:[%s7624_s0 + $0x50] sm:$0xff] }
 0x224   :  { %5341 = vmatmul.msk.f32.gmra.mxu2 %vm423_vm0, %v6494_v15  ;;  %919 = vmatpush.msra.mxu1 %v875_v7  ;;  %v380_v7 = vld [vmem:[%s7624_s0 + $0x58] sm:$0xff] }
 0x225   :  { %5313 = vmatmul.msk.f32.gmra.mxu1 %vm510_vm1, %v5309_v18 }
 0x226   :  { %1053 = vmatpush.msrb.mxu1 %v384_v61 }
 0x228   :  { %1054 = vmatpush.msrb.mxu1 %v383_v63 }
 0x22a   :  { %1055 = vmatpush.msrb.mxu1 %v382_v1 }
 0x22c   :  { %1056 = vmatpush.msrb.mxu1 %v381_v5 }
 0x22d   :  { %5334 = vmatmul.msk.f32.vlgmr.msra.gmra.mxu1 %vm510_vm1, %v5330_v21 }
 0x22e   :  { %1057 = vmatpush.msrb.mxu1 %v380_v7 }
 0x22f   :  { %v6556_v62 = vpop.f32.mrf.mxu2  ;;  %v581_v42 = vpop.f32.mrf.mxu3 }
 0x230   :  { %1058 = vmatpush.msrb.mxu1 %v379_v10 }
 0x232   :  { %1059 = vmatpush.msrb.mxu1 %v378_v14 }
 0x234   :  { %1060 = vmatpush.msrb.mxu1 %v377_v17 }
 0x235   :  { %5335 = vmatmul.msk.f32.gmra.mxu1 %vm510_vm1, %v5331_v24 }
 0x237   :  { %v6558_v0 = vpop.f32.mrf.mxu2  ;;  %v584_v43 = vpop.f32.mrf.mxu3 }
 0x238   :  { %v585_v11 = vadd.f32 %v584_v43, %v6558_v0  ;;  %v376_v0 = vld [vmem:[%s7624_s0 + $0x38] sm:$0xff]  ;;  %v370_v43 = vld [vmem:[%s7624_s0 + $0x8] sm:$0xff] }
 0x239   :  { %1061 = vmatpush.msrb.mxu1 %v376_v0 }
 0x23d   :  { %5336 = vmatmul.msk.f32.gmra.mxu1 %vm510_vm1, %v5332_v27 }
 0x23f   :  { %v6560_v2 = vpop.f32.mrf.mxu2  ;;  %v587_v44 = vpop.f32.mrf.mxu3 }
 0x240   :  { %v588_v8 = vadd.f32 %v587_v44, %v6560_v2 }
 0x245   :  { %5337 = vmatmul.msk.f32.gmra.mxu1 %vm510_vm1, %v5333_v30 }
 0x247   :  { %v6562_v4 = vpop.f32.mrf.mxu2  ;;  %v590_v45 = vpop.f32.mrf.mxu3 }
 0x249   :  { %v749_v48 = vpop.f32.mrf.mxu1 }
 0x24f   :  { %v617_v6 = vpop.f32.mrf.mxu2 }
 0x251   :  { %v752_v50 = vpop.f32.mrf.mxu1 }
 0x257   :  { %v620_v9 = vpop.f32.mrf.mxu2 }
 0x25f   :  { %v623_v12 = vpop.f32.mrf.mxu2 }
 0x267   :  { %v626_v15 = vpop.f32.mrf.mxu2 }
 0x268   :  { %658 = vmatpush.msrb.mxu3 %v626_v15  ;;  %v582_v15 = vadd.f32 %v581_v42, %v6556_v62 }
 0x26a   :  { %659 = vmatpush.msrb.mxu3 %v623_v12 }
 0x26c   :  { %660 = vmatpush.msrb.mxu3 %v620_v9  ;;  %v591_v9 = vadd.f32 %v590_v45, %v6562_v4 }
 0x26e   :  { %661 = vmatpush.msrb.mxu3 %v617_v6 }
 0x26f   :  { %5298 = vmatmul.msk.f32.vlgmr.msrb.gmra.mxu3 %vm510_vm1, %v5294_v16  ;;  %v789_v19 = vpop.f32.mrf.mxu2 }
 0x277   :  { %5299 = vmatmul.msk.f32.gmra.mxu3 %vm510_vm1, %v5295_v20  ;;  %v792_v22 = vpop.f32.mrf.mxu2 }
 0x27f   :  { %5300 = vmatmul.msk.f32.gmra.mxu3 %vm510_vm1, %v5296_v23  ;;  %v795_v25 = vpop.f32.mrf.mxu2  ;;  %v375_v23 = vld [vmem:[%s7624_s0 + $0x30] sm:$0xff] }
 0x280   :  { %1062 = vmatpush.msrb.mxu1 %v375_v23 }
 0x287   :  { %5301 = vmatmul.msk.f32.gmra.mxu3 %vm510_vm1, %v5297_v26  ;;  %v798_v28 = vpop.f32.mrf.mxu2  ;;  %v374_v26 = vld [vmem:[%s7624_s0 + $0x28] sm:$0xff] }
 0x288   :  { %830 = vmatpush.msra.mxu3 %v798_v28  ;;  %1063 = vmatpush.msrb.mxu1 %v374_v26 }
 0x28a   :  { %831 = vmatpush.msra.mxu3 %v795_v25 }
 0x28c   :  { %832 = vmatpush.msra.mxu3 %v792_v22 }
 0x28e   :  { %833 = vmatpush.msra.mxu3 %v789_v19 }
 0x28f   :  { %5322 = vmatmul.msk.f32.vlgmr.msra.gmra.mxu3 %vm510_vm1, %v5318_v29  ;;  %v961_v31 = vpop.f32.mrf.mxu2 }
 0x297   :  { %5323 = vmatmul.msk.f32.gmra.mxu3 %vm510_vm1, %v5319_v32  ;;  %v964_v33 = vpop.f32.mrf.mxu2 }
 0x29a   :  { %v755_v53 = vpop.f32.mrf.mxu1 }
 0x29f   :  { %5324 = vmatmul.msk.f32.gmra.mxu3 %vm510_vm1, %v5320_v34  ;;  %v967_v35 = vpop.f32.mrf.mxu2 }
 0x2a2   :  { %v758_v55 = vpop.f32.mrf.mxu1 }
 0x2a7   :  { %5325 = vmatmul.msk.f32.gmra.mxu3 %vm510_vm1, %v5321_v36  ;;  %v970_v37 = vpop.f32.mrf.mxu2  ;;  %v372_v36 = vld [vmem:[%s7624_s0 + $0x18] sm:$0xff] }
 0x2a8   :  { %1002 = vmatpush.msrb.mxu3 %v970_v37 }
 0x2aa   :  { %1003 = vmatpush.msrb.mxu3 %v967_v35  ;;  %v6604_v57 = vpop.f32.mrf.mxu1 }
 0x2ac   :  { %1004 = vmatpush.msrb.mxu3 %v964_v33  ;;  %v5670_v33 = vld [vmem:[%s7625_s4] ss:$0 sm:$0xff] }
 0x2ae   :  { %1005 = vmatpush.msrb.mxu3 %v961_v31  ;;  %v373_v31 = vld [vmem:[%s7624_s0 + $0x20] sm:$0xff] }
 0x2af   :  { %5346 = vmatmul.msk.f32.vlgmr.msrb.gmra.mxu3 %vm510_vm1, %v5342_v38  ;;  %1064 = vmatpush.msrb.mxu1 %v373_v31 }
 0x2b0   :  { %1190 = vmatpush.msra.mxu3 %v384_v61 }
 0x2b1   :  { %1065 = vmatpush.msrb.mxu1 %v372_v36 }
 0x2b2   :  { %v924_v59 = vpop.f32.mrf.mxu1  ;;  %1191 = vmatpush.msra.mxu3 %v383_v63 }
 0x2b4   :  { %1192 = vmatpush.msra.mxu3 %v382_v1 }
 0x2b6   :  { %1193 = vmatpush.msra.mxu3 %v381_v5 }
 0x2b7   :  { %5347 = vmatmul.msk.f32.gmra.mxu3 %vm510_vm1, %v5343_v39 }
 0x2b8   :  { %1194 = vmatpush.msra.mxu3 %v380_v7 }
 0x2ba   :  { %v927_v6 = vpop.f32.mrf.mxu1  ;;  %1195 = vmatpush.msra.mxu3 %v379_v10 }
 0x2bc   :  { %1196 = vmatpush.msra.mxu3 %v378_v14 }
 0x2be   :  { %1197 = vmatpush.msra.mxu3 %v377_v17 }
 0x2bf   :  { %5348 = vmatmul.msk.f32.gmra.mxu3 %vm510_vm1, %v5344_v40  ;;  %v371_v40 = vld [vmem:[%s7624_s0 + $0x10] sm:$0xff] }
 0x2c0   :  { %1198 = vmatpush.msra.mxu3 %v376_v0  ;;  %1066 = vmatpush.msrb.mxu1 %v371_v40 }
 0x2c2   :  { %v930_v62 = vpop.f32.mrf.mxu1  ;;  %1199 = vmatpush.msra.mxu3 %v375_v23  ;;  %1067 = vmatpush.msrb.mxu1 %v370_v43  ;;  %v1318_v23 = vld [vmem:[#allocation4 + $0x68] sm:$0xff] }
 0x2c4   :  { %1200 = vmatpush.msra.mxu3 %v374_v26  ;;  %v1365_v26 = vld [vmem:[#allocation4 + $0xe0] sm:$0xff] }
 0x2c6   :  { %1201 = vmatpush.msra.mxu3 %v373_v31  ;;  %v1363_v31 = vld [vmem:[#allocation4 + $0xd0] sm:$0xff] }
 0x2c7   :  { %5349 = vmatmul.msk.f32.gmra.mxu3 %vm510_vm1, %v5345_v41 }
 0x2c8   :  { %1202 = vmatpush.msra.mxu3 %v372_v36  ;;  %v1312_v36 = vld [vmem:[#allocation4 + $0x38] sm:$0xff] }
 0x2ca   :  { %1203 = vmatpush.msra.mxu3 %v371_v40  ;;  %v1359_v40 = vld [vmem:[#allocation4 + $0xb0] sm:$0xff] }
 0x2cc   :  { %1204 = vmatpush.msra.mxu3 %v370_v43  ;;  %v1309_v43 = vld [vmem:[#allocation4 + $0x20] sm:$0xff] }
 0x2f2   :  { %v663_v46 = vpop.f32.mrf.mxu3 }
 0x2f3   :  { %v675_v4 = vadd.f32 %v663_v46, %v582_v15  ;;  %v404_v46 = vld [vmem:[%s7626_s1] sm:$0x3] }
 0x2f5   :  { %v761_v24 = vadd.f32 %v749_v48, %v675_v4 }
 0x2fa   :  { %v666_v47 = vpop.f32.mrf.mxu3 }
 0x2fb   :  { %v676_v16 = vadd.f32 %v666_v47, %v585_v11  ;;  %v369_v47 = vld [vmem:[%s7624_s0] sm:$0xff] }
 0x2fc   :  { %1068 = vmatpush.msrb.mxu1 %v369_v47  ;;  %1205 = vmatpush.msra.mxu3 %v369_v47 }
 0x2fd   :  { %v762_v20 = vadd.f32 %v752_v50, %v676_v16 }
 0x302   :  { %v669_v49 = vpop.f32.mrf.mxu3 }
 0x303   :  { %v677_v12 = vadd.f32 %v669_v49, %v588_v8 }
 0x305   :  { %v763_v18 = vadd.f32 %v755_v53, %v677_v12  ;;  %v407_v53 = vld [vmem:[%s6348_s17 + $0x10] sm:$0xff] }
 0x30a   :  { %v672_v51 = vpop.f32.mrf.mxu3 }
 0x30b   :  { %v678_v13 = vadd.f32 %v672_v51, %v591_v9  ;;  %v405_v51 = vld [vmem:[%s6348_s17] sm:$0xff] }
 0x30d   :  { %v764_v19 = vadd.f32 %v758_v55, %v678_v13  ;;  %v385_v55 = vld [vmem:[%s7627_s25] sm:$0xff] }
 0x30e   :  { %1148 = vmatpush.msra.mxu1 %v385_v55  ;;  %1281 = vmatpush.msrb.mxu3 %v385_v55  ;;  %v1475_v55 = vld [vmem:[#allocation4 + $0x178] sm:$0xff] }
 0x312   :  { %v835_v52 = vpop.f32.mrf.mxu3 }
 0x313   :  { %v847_v27 = vadd.f32 %v835_v52, %v761_v24  ;;  %v406_v52 = vld [vmem:[%s6348_s17 + $0x8] sm:$0xff]  ;;  %v1366_v24 = vld [vmem:[#allocation4 + $0xe8] sm:$0xff] }
 0x315   :  { %v933_v37 = vadd.f32 %v6604_v57, %v847_v27  ;;  %v1316_v27 = vld [vmem:[#allocation4 + $0x58] sm:$0xff] }
 0x31a   :  { %v838_v54 = vpop.f32.mrf.mxu3 }
 0x31b   :  { %v848_v25 = vadd.f32 %v838_v54, %v762_v20  ;;  %v408_v54 = vld [vmem:[%s6348_s17 + $0x18] sm:$0xff]  ;;  %v1320_v20 = vld [vmem:[#allocation4 + $0x78] sm:$0xff] }
 0x31d   :  { %v934_v32 = vadd.f32 %v924_v59, %v848_v25  ;;  %v1317_v25 = vld [vmem:[#allocation4 + $0x60] sm:$0xff] }
 0x322   :  { %v841_v56 = vpop.f32.mrf.mxu3 }
 0x323   :  { %v849_v21 = vadd.f32 %v841_v56, %v763_v18 }
 0x325   :  { %v935_v28 = vadd.f32 %v927_v6, %v849_v21  ;;  %v1368_v21 = vld [vmem:[#allocation4 + $0xf8] sm:$0xff] }
 0x32a   :  { %v844_v58 = vpop.f32.mrf.mxu3 }
 0x32b   :  { %v850_v22 = vadd.f32 %v844_v58, %v764_v19 }
 0x32d   :  { %v936_v29 = vadd.f32 %v930_v62, %v850_v22  ;;  %v1319_v22 = vld [vmem:[#allocation4 + $0x70] sm:$0xff] }
 0x32e   :  { %v1367_v62 = vld [vmem:[#allocation4 + $0xf0] sm:$0xff] }
 0x332   :  { %v6606_v60 = vpop.f32.mrf.mxu3 }
 0x333   :  { %v1019_v41 = vadd.f32 %v6606_v60, %v933_v37  ;;  %v1360_v37 = vld [vmem:[#allocation4 + $0xb8] sm:$0xff] }
 0x335   :  { %v1026_v45 = vadd.f32 %v5670_v33, %v1019_v41  ;;  %v1310_v41 = vld [vmem:[#allocation4 + $0x28] sm:$0xff] }
 0x33a   :  { %v1010_v3 = vpop.f32.mrf.mxu3 }
 0x33b   :  { %v1020_v38 = vadd.f32 %v1010_v3, %v934_v32  ;;  %v1314_v32 = vld [vmem:[#allocation4 + $0x48] sm:$0xff] }
 0x33d   :  { %v1027_v44 = vadd.f32 %v5670_v33, %v1020_v38 }
 0x342   :  { %v1013_v2 = vpop.f32.mrf.mxu3 }
 0x343   :  { %v1021_v34 = vadd.f32 %v1013_v2, %v935_v28  ;;  %v1364_v28 = vld [vmem:[#allocation4 + $0xd8] sm:$0xff] }
 0x345   :  { %v1028_v42 = vadd.f32 %v5670_v33, %v1021_v34  ;;  %v1313_v34 = vld [vmem:[#allocation4 + $0x40] sm:$0xff] }
 0x34a   :  { %v1016_v30 = vpop.f32.mrf.mxu3 }
 0x34b   :  { %v1022_v35 = vadd.f32 %v1016_v30, %v936_v29  ;;  %v1315_v30 = vld [vmem:[#allocation4 + $0x50] sm:$0xff] }
 0x34d   :  { %v1029_v39 = vadd.f32 %v5670_v33, %v1022_v35  ;;  %v1362_v33 = vld [vmem:[#allocation4 + $0xc8] sm:$0xff]  ;;  %v1361_v35 = vld [vmem:[#allocation4 + $0xc0] sm:$0xff] }
 0x34f   :  { %1045 = vmatpush.msrb.mxu0 %v1029_v39 }
 0x351   :  { %1046 = vmatpush.msrb.mxu0 %v1028_v42 }
 0x353   :  { %1047 = vmatpush.msrb.mxu0 %v1027_v44 }
 0x355   :  { %1048 = vmatpush.msrb.mxu0 %v1026_v45 }
 0x356   :  { %5350 = vmatmul.msk.f32.vlgmr.msrb.gmra.mxu0 %vm510_vm1, %v404_v46 }
 0x3d3   :  { %v1050_v48 = vpop.f32.mrf.mxu0 }
 0x3d4   :  { %1069 = vmatmul.f32.vlgmr.msrb.gmra.mxu1 %v1050_v48 }
 0x3d5   :  { %1369 = vmatpush.msrb.mxu1 %v1368_v21 }
 0x3d7   :  { %1370 = vmatpush.msrb.mxu1 %v1367_v62 }
 0x3d9   :  { %1371 = vmatpush.msrb.mxu1 %v1366_v24 }
 0x3db   :  { %1372 = vmatpush.msrb.mxu1 %v1365_v26 }
 0x3dd   :  { %1373 = vmatpush.msrb.mxu1 %v1364_v28  ;;  %v1350_v28 = vld [vmem:[%s7628_s22] sm:$0xff] }
 0x3df   :  { %1374 = vmatpush.msrb.mxu1 %v1363_v31 }
 0x3e1   :  { %1375 = vmatpush.msrb.mxu1 %v1362_v33  ;;  %v1552_v33 = vld [vmem:[#allocation4 + $0x1e0] sm:$0xff] }
 0x3e3   :  { %1376 = vmatpush.msrb.mxu1 %v1361_v35  ;;  %v1351_v35 = vld [vmem:[%s7628_s22 + $0x8] sm:$0xff] }
 0x3e5   :  { %1377 = vmatpush.msrb.mxu1 %v1360_v37  ;;  %v1550_v37 = vld [vmem:[#allocation4 + $0x1d0] sm:$0xff] }
 0x3e7   :  { %1378 = vmatpush.msrb.mxu1 %v1359_v40  ;;  %v1548_v40 = vld [vmem:[#allocation4 + $0x1c0] sm:$0xff] }
 0x451   :  { %v1070_v49 = vpop.f32.mrf.mxu1 }
 0x452   :  { %v1073_v50 = vmul.f32 0.00390625, %v1070_v49  ;;  %v1307_v49 = vld [vmem:[#allocation4 + $0x10] sm:$0xff] }
 0x454   :  { %5351 = vmatpush.msk.msra.mxu0 %vm1087_vm2, %v1073_v50  ;;  %v1355_v50 = vld [vmem:[#allocation4 + $0x90] sm:$0xff] }
 0x455   :  { %5352 = vmatmul.msk.f32.vlgmr.msra.gmra.mxu0 %vm1074_vm3, %v405_v51 }
 0x456   :  { %1321 = vmatpush.msrb.mxu0 %v1320_v20 }
 0x458   :  { %1322 = vmatpush.msrb.mxu0 %v1319_v22 }
 0x45a   :  { %1323 = vmatpush.msrb.mxu0 %v1318_v23 }
 0x45c   :  { %1324 = vmatpush.msrb.mxu0 %v1317_v25 }
 0x45d   :  { %5353 = vmatmul.msk.f32.gmra.mxu0 %vm1074_vm3, %v406_v52 }
 0x45e   :  { %1325 = vmatpush.msrb.mxu0 %v1316_v27  ;;  %v1555_v27 = vld [vmem:[#allocation4 + $0x1f8] sm:$0xff] }
 0x460   :  { %1326 = vmatpush.msrb.mxu0 %v1315_v30  ;;  %v1554_v30 = vld [vmem:[#allocation4 + $0x1f0] sm:$0xff] }
 0x462   :  { %1327 = vmatpush.msrb.mxu0 %v1314_v32  ;;  %v1553_v32 = vld [vmem:[#allocation4 + $0x1e8] sm:$0xff] }
 0x464   :  { %1328 = vmatpush.msrb.mxu0 %v1313_v34  ;;  %v1551_v34 = vld [vmem:[#allocation4 + $0x1d8] sm:$0xff] }
 0x465   :  { %5354 = vmatmul.msk.f32.gmra.mxu0 %vm1074_vm3, %v407_v53 }
 0x466   :  { %1329 = vmatpush.msrb.mxu0 %v1312_v36  ;;  %v5372_v36 = vld [vmem:[%s7628_s22 + $0x18] sm:$0xff] }
 0x46d   :  { %5355 = vmatmul.msk.f32.gmra.mxu0 %vm1074_vm3, %v408_v54 }
 0x4d2   :  { %v1108_v56 = vpop.f32.mrf.mxu0 }
 0x4d3   :  { %5356 = vmatmul.msk.f32.vlgmr.msra.gmra.mxu1 %vm1120_vm4, %v1108_v56  ;;  %v1474_v56 = vld [vmem:[#allocation4 + $0x170] sm:$0xff] }
 0x4da   :  { %v1111_v57 = vpop.f32.mrf.mxu0 }
 0x4db   :  { %5357 = vmatmul.msk.f32.gmra.mxu1 %vm1120_vm4, %v1111_v57  ;;  %v1473_v57 = vld [vmem:[#allocation4 + $0x168] sm:$0xff] }
 0x4e2   :  { %v1114_v58 = vpop.f32.mrf.mxu0 }
 0x4e3   :  { %5358 = vmatmul.msk.f32.gmra.mxu1 %vm1120_vm4, %v1114_v58  ;;  %v1472_v58 = vld [vmem:[#allocation4 + $0x160] sm:$0xff] }
 0x4ea   :  { %v1117_v59 = vpop.f32.mrf.mxu0 }
 0x4eb   :  { %5359 = vmatmul.msk.f32.gmra.mxu1 %vm1120_vm4, %v1117_v59  ;;  %v1471_v59 = vld [vmem:[#allocation4 + $0x158] sm:$0xff] }
 0x550   :  { %v1150_v60 = vpop.f32.mrf.mxu1 }
 0x551   :  { %v6655_v8 = vsub.f32 %v1026_v45, %v1150_v60  ;;  %v1308_v45 = vld [vmem:[#allocation4 + $0x18] sm:$0xff]  ;;  %v1470_v60 = vld [vmem:[#allocation4 + $0x150] sm:$0xff] }
 0x553   :  { %v1166_v11 = vmul.f32 %v6655_v8, %v6655_v8 }
 0x558   :  { %v1153_v61 = vpop.f32.mrf.mxu1 }
 0x559   :  { %v6651_v6 = vsub.f32 %v1027_v44, %v1153_v61  ;;  %v1357_v44 = vld [vmem:[#allocation4 + $0xa0] sm:$0xff]  ;;  %v1469_v61 = vld [vmem:[#allocation4 + $0x148] sm:$0xff] }
 0x55b   :  { %v1167_v10 = vmul.f32 %v6651_v6, %v6651_v6 }
 0x560   :  { %v1156_v63 = vpop.f32.mrf.mxu1 }
 0x561   :  { %v6647_v3 = vsub.f32 %v1028_v42, %v1156_v63  ;;  %v1358_v42 = vld [vmem:[#allocation4 + $0xa8] sm:$0xff]  ;;  %v1468_v63 = vld [vmem:[#allocation4 + $0x140] sm:$0xff] }
 0x562   :  { %1379 = vmatpush.msrb.mxu1 %v1358_v42  ;;  %v1546_v42 = vld [vmem:[#allocation4 + $0x1b0] sm:$0xff] }
 0x563   :  { %v1168_v9 = vmul.f32 %v6647_v3, %v6647_v3 }
 0x564   :  { %1380 = vmatpush.msrb.mxu1 %v1357_v44  ;;  %v1545_v44 = vld [vmem:[#allocation4 + $0x1a8] sm:$0xff] }
 0x568   :  { %v1159_v1 = vpop.f32.mrf.mxu1 }
 0x569   :  { %v6649_v5 = vsub.f32 %v1029_v39, %v1159_v1  ;;  %v1311_v39 = vld [vmem:[#allocation4 + $0x30] sm:$0xff]  ;;  %v1467_v1 = vld [vmem:[#allocation4 + $0x138] sm:$0xff] }
 0x56a   :  { %1330 = vmatpush.msrb.mxu0 %v1311_v39  ;;  %v1549_v39 = vld [vmem:[#allocation4 + $0x1c8] sm:$0xff] }
 0x56b   :  { %v1169_v7 = vmul.f32 %v6649_v5, %v6649_v5 }
 0x56c   :  { %1331 = vmatpush.msrb.mxu0 %v1310_v41  ;;  %v1547_v41 = vld [vmem:[#allocation4 + $0x1b8] sm:$0xff] }
 0x56d   :  { %1182 = vmatpush.msra.mxu2 %v1169_v7  ;;  %v1466_v7 = vld [vmem:[#allocation4 + $0x130] sm:$0xff] }
 0x56e   :  { %1332 = vmatpush.msrb.mxu0 %v1309_v43 }
 0x56f   :  { %1183 = vmatpush.msra.mxu2 %v1168_v9  ;;  %v1465_v9 = vld [vmem:[#allocation4 + $0x128] sm:$0xff] }
 0x570   :  { %1333 = vmatpush.msrb.mxu0 %v1308_v45  ;;  %v1544_v45 = vld [vmem:[#allocation4 + $0x1a0] sm:$0xff] }
 0x571   :  { %1184 = vmatpush.msra.mxu2 %v1167_v10  ;;  %v1464_v10 = vld [vmem:[#allocation4 + $0x120] sm:$0xff] }
 0x572   :  { %1334 = vmatpush.msrb.mxu0 %v1307_v49  ;;  %v1541_v49 = vld [vmem:[#allocation4 + $0x188] sm:$0xff] }
 0x573   :  { %1185 = vmatpush.msra.mxu2 %v1166_v11  ;;  %v1463_v11 = vld [vmem:[#allocation4 + $0x118] sm:$0xff] }
 0x574   :  { %5360 = vmatmul.msk.f32.vlgmr.msra.gmra.mxu2 %vm510_vm1, %v404_v46  ;;  %v1356_v46 = vld [vmem:[#allocation4 + $0x98] sm:$0xff] }
 0x575   :  { %1381 = vmatpush.msrb.mxu1 %v1356_v46  ;;  %v1543_v46 = vld [vmem:[#allocation4 + $0x198] sm:$0xff] }
 0x577   :  { %1382 = vmatpush.msrb.mxu1 %v1355_v50  ;;  %v1540_v50 = vld [vmem:[#allocation4 + $0x180] sm:$0xff] }
 0x5f7   :  { %v1187_v12 = vpop.f32.mrf.mxu2 }
 0x5f8   :  { %1206 = vmatmul.f32.vlgmr.msra.gmra.mxu3 %v1187_v12  ;;  %v1462_v12 = vld [vmem:[#allocation4 + $0x110] sm:$0xff] }
 0x67b   :  { %v1207_v13 = vpop.f32.mrf.mxu3 }
 0x67c   :  { %v1210_v14 = vmul.f32 0.00390625, %v1207_v13  ;;  %v1461_v13 = vld [vmem:[#allocation4 + $0x108] sm:$0xff] }
 0x67e   :  { %v1211_v15 = vadd.f32 1e-05, %v1210_v14 }
 0x680   :  { %5683 = vrsqrt.f32 %v1211_v15  ;;  %vm1218_vm6 = vweird.f32 %v1211_v15 }
 0x686   :  { %v5684_v16 = vpop.eup %5683 }
 0x687   :  { %v1213_v2 = vmul.f32 %v5684_v16, %v1211_v15  ;;  %vm1219_vm5 = vweird.f32 %v5684_v16 }
 0x688   :  { %vm1220_vm7 = vmor %vm1218_vm6, %vm1219_vm5 }
 0x689   :  { %v1214_v17 = vmul.f32 %v5684_v16, %v1213_v2 }
 0x68b   :  { %v1215_v4 = vmul.f32 0.5, %v1214_v17 }
 0x68d   :  { %v1216_v18 = vsub.f32 1.5, %v1215_v4 }
 0x68f   :  { %v1217_v19 = vmul.f32 %v5684_v16, %v1216_v18 }
 0x691   :  { %v1221_v0 = vsel %vm1220_vm7, %v5684_v16, %v1217_v19  ;;  %v1460_v16 = vld [vmem:[#allocation4 + $0x100] sm:$0xff] }
 0x692   :  { %5361 = vmatpush.msk.msrb.mxu2 %vm1087_vm2, %v1221_v0 }
 0x693   :  { %5362 = vmatmul.msk.f32.vlgmr.msrb.gmra.mxu2 %vm1074_vm3, %v405_v51  ;;  %v1306_v51 = vld [vmem:[#allocation4 + $0x8] sm:$0xff] }
 0x694   :  { %1335 = vmatpush.msrb.mxu0 %v1306_v51  ;;  %v5377_v51 = vld [vmem:[%s7628_s22 + $0x20] sm:$0xff] }
 0x69b   :  { %5363 = vmatmul.msk.f32.gmra.mxu2 %vm1074_vm3, %v406_v52  ;;  %v1354_v52 = vld [vmem:[#allocation4 + $0x88] sm:$0xff] }
 0x69c   :  { %1383 = vmatpush.msrb.mxu1 %v1354_v52  ;;  %v5378_v52 = vld [vmem:[%s7628_s22 + $0x28] sm:$0xff] }
 0x6a3   :  { %5364 = vmatmul.msk.f32.gmra.mxu2 %vm1074_vm3, %v407_v53  ;;  %v1305_v53 = vld [vmem:[#allocation4] sm:$0xff] }
 0x6a4   :  { %1336 = vmatpush.msrb.mxu0 %v1305_v53 }
 0x6a6   :  { %1476 = vmatpush.msra.mxu0 %v1475_v55 }
 0x6a8   :  { %1477 = vmatpush.msra.mxu0 %v1474_v56 }
 0x6aa   :  { %1478 = vmatpush.msra.mxu0 %v1473_v57 }
 0x6ab   :  { %5365 = vmatmul.msk.f32.gmra.mxu2 %vm1074_vm3, %v408_v54  ;;  %v1353_v54 = vld [vmem:[#allocation4 + $0x80] sm:$0xff] }
 0x6ac   :  { %1384 = vmatpush.msrb.mxu1 %v1353_v54  ;;  %1479 = vmatpush.msra.mxu0 %v1472_v58 }
 0x6ae   :  { %1480 = vmatpush.msra.mxu0 %v1471_v59  ;;  %v5381_v59 = vld [vmem:[%s7628_s22 + $0x30] sm:$0xff] }
 0x6b0   :  { %1481 = vmatpush.msra.mxu0 %v1470_v60  ;;  %v5382_v60 = vld [vmem:[%s7628_s22 + $0x38] sm:$0xff] }
 0x6b2   :  { %1482 = vmatpush.msra.mxu0 %v1469_v61 }
 0x6b4   :  { %1483 = vmatpush.msra.mxu0 %v1468_v63 }
 0x6b6   :  { %1484 = vmatpush.msra.mxu0 %v1467_v1  ;;  %v6718_v1 = vld [vmem:[%s7629_s27 + $0x78] sm:$0xff] }
 0x6b8   :  { %1485 = vmatpush.msra.mxu0 %v1466_v7  ;;  %v6721_v7 = vld [vmem:[%s7629_s27 + $0x70] sm:$0xff] }
 0x6ba   :  { %1486 = vmatpush.msra.mxu0 %v1465_v9  ;;  %v6725_v9 = vld [vmem:[%s7629_s27 + $0x68] sm:$0xff] }
 0x6bc   :  { %1487 = vmatpush.msra.mxu0 %v1464_v10  ;;  %v6729_v10 = vld [vmem:[%s7629_s27 + $0x60] sm:$0xff] }
 0x6be   :  { %1488 = vmatpush.msra.mxu0 %v1463_v11  ;;  %v6733_v11 = vld [vmem:[%s7629_s27 + $0x58] sm:$0xff] }
 0x6c0   :  { %1489 = vmatpush.msra.mxu0 %v1462_v12  ;;  %v6737_v12 = vld [vmem:[%s7629_s27 + $0x50] sm:$0xff] }
 0x6c2   :  { %1490 = vmatpush.msra.mxu0 %v1461_v13 }
 0x6c4   :  { %1491 = vmatpush.msra.mxu0 %v1460_v16  ;;  %v6749_v16 = vld [vmem:[%s7629_s27 + $0x38] sm:$0xff] }
 0x716   :  { %v1242_v29 = vpop.f32.mrf.mxu2 }
 0x717   :  { %5366 = vmatmul.msk.f32.vlgmr.msrb.gmra.mxu3 %vm1120_vm4, %v1242_v29  ;;  %v5371_v29 = vld [vmem:[%s7628_s22 + $0x10] sm:$0xff] }
 0x71e   :  { %v1245_v38 = vpop.f32.mrf.mxu2 }
 0x71f   :  { %5367 = vmatmul.msk.f32.gmra.mxu3 %vm1120_vm4, %v1245_v38 }
 0x726   :  { %v1248_v47 = vpop.f32.mrf.mxu2 }
 0x727   :  { %5368 = vmatmul.msk.f32.gmra.mxu3 %vm1120_vm4, %v1248_v47  ;;  %v1542_v47 = vld [vmem:[#allocation4 + $0x190] sm:$0xff] }
 0x72e   :  { %v1251_v48 = vpop.f32.mrf.mxu2 }
 0x72f   :  { %5369 = vmatmul.msk.f32.gmra.mxu3 %vm1120_vm4, %v1251_v48 }
 0x79a   :  { %v1283_v14 = vpop.f32.mrf.mxu3 }
 0x79b   :  { %v1295_v15 = vmul.f32 %v1283_v14, %v6655_v8  ;;  %v6741_v14 = vld [vmem:[%s7629_s27 + $0x48] sm:$0xff] }
 0x79d   :  { %v6674_v2 = vmax.f32 %v1295_v15, 0.0  ;;  %v6745_v15 = vld [vmem:[%s7629_s27 + $0x40] sm:$0xff] }
 0x79f   :  { %1337 = vmatmul.f32.vlgmr.msrb.gmra.mxu0 %v6674_v2  ;;  %1385 = vmatmul.f32.vlgmr.msrb.gmra.mxu1 %v6674_v2 }
 0x7a0   :  { %1648 = vmatpush.msrb.mxu0 %v6718_v1 }
 0x7a2   :  { %v1286_v17 = vpop.f32.mrf.mxu3  ;;  %1649 = vmatpush.msrb.mxu0 %v6721_v7 }
 0x7a3   :  { %v1296_v4 = vmul.f32 %v1286_v17, %v6651_v6  ;;  %v6753_v17 = vld [vmem:[%s7629_s27 + $0x30] sm:$0xff] }
 0x7a4   :  { %1650 = vmatpush.msrb.mxu0 %v6725_v9 }
 0x7a5   :  { %v6679_v18 = vmax.f32 %v1296_v4, 0.0  ;;  %v6757_v4 = vld [vmem:[%s7629_s27 + $0x28] sm:$0xff] }
 0x7a6   :  { %1651 = vmatpush.msrb.mxu0 %v6729_v10 }
 0x7a7   :  { %1340 = vmatmul.f32.gmra.mxu0 %v6679_v18  ;;  %1388 = vmatmul.f32.gmra.mxu1 %v6679_v18 }
 0x7a8   :  { %1652 = vmatpush.msrb.mxu0 %v6733_v11 }
 0x7aa   :  { %v1289_v19 = vpop.f32.mrf.mxu3  ;;  %1653 = vmatpush.msrb.mxu0 %v6737_v12 }
 0x7ab   :  { %v1297_v8 = vmul.f32 %v1289_v19, %v6647_v3  ;;  %v6761_v19 = vld [vmem:[%s7629_s27 + $0x20] sm:$0xff] }
 0x7ac   :  { %1654 = vmatpush.msrb.mxu0 %v6741_v14 }
 0x7ad   :  { %v6684_v0 = vmax.f32 %v1297_v8, 0.0 }
 0x7ae   :  { %1655 = vmatpush.msrb.mxu0 %v6745_v15 }
 0x7af   :  { %1343 = vmatmul.f32.gmra.mxu0 %v6684_v0  ;;  %1391 = vmatmul.f32.gmra.mxu1 %v6684_v0 }
 0x7b0   :  { %1656 = vmatpush.msrb.mxu0 %v6749_v16 }
 0x7b2   :  { %v1292_v20 = vpop.f32.mrf.mxu3  ;;  %1657 = vmatpush.msrb.mxu0 %v6753_v17 }
 0x7b3   :  { %v1298_v21 = vmul.f32 %v1292_v20, %v6649_v5  ;;  %v6765_v20 = vld [vmem:[%s7629_s27 + $0x18] sm:$0xff] }
 0x7b4   :  { %1658 = vmatpush.msrb.mxu0 %v6757_v4 }
 0x7b5   :  { %v6689_v22 = vmax.f32 %v1298_v21, 0.0 }
 0x7b6   :  { %1659 = vmatpush.msrb.mxu0 %v6761_v19 }
 0x7b7   :  { %1346 = vmatmul.f32.gmra.mxu0 %v6689_v22  ;;  %1394 = vmatmul.f32.gmra.mxu1 %v6689_v22 }
 0x7b8   :  { %1660 = vmatpush.msrb.mxu0 %v6765_v20 }
 0x7bf   :  { %1492 = vmatmul.f32.vlgmr.msra.gmra.mxu0 %v6674_v2 }
 0x7c7   :  { %1495 = vmatmul.f32.gmra.mxu0 %v6679_v18 }
 0x7cf   :  { %1498 = vmatmul.f32.gmra.mxu0 %v6684_v0 }
 0x7d7   :  { %1501 = vmatmul.f32.gmra.mxu0 %v6689_v22 }
 0x81c   :  { %v1338_v3 = vpop.f32.mrf.mxu0  ;;  %v1386_v6 = vpop.f32.mrf.mxu1 }
 0x824   :  { %v1341_v62 = vpop.f32.mrf.mxu0  ;;  %v1389_v5 = vpop.f32.mrf.mxu1 }
 0x82c   :  { %v1344_v23 = vpop.f32.mrf.mxu0  ;;  %v1392_v24 = vpop.f32.mrf.mxu1 }
 0x834   :  { %v1347_v25 = vpop.f32.mrf.mxu0  ;;  %v1395_v26 = vpop.f32.mrf.mxu1 }
 0x835   :  { %1419 = vmatpush.msra.mxu2 %v1395_v26  ;;  %1448 = vmatpush.msra.mxu1 %v1347_v25 }
 0x837   :  { %1420 = vmatpush.msra.mxu2 %v1392_v24  ;;  %1449 = vmatpush.msra.mxu1 %v1344_v23  ;;  %v6774_v24 = vld [vmem:[%s7629_s27 + $0x8] sm:$0xff] }
 0x839   :  { %1421 = vmatpush.msra.mxu2 %v1389_v5  ;;  %1450 = vmatpush.msra.mxu1 %v1341_v62  ;;  %v5671_v5 = vld [vmem:[%s7625_s4 + $0x1] ss:$0 sm:$0xff] }
 0x83b   :  { %1422 = vmatpush.msra.mxu2 %v1386_v6  ;;  %1451 = vmatpush.msra.mxu1 %v1338_v3  ;;  %v6769_v6 = vld [vmem:[%s7629_s27 + $0x10] sm:$0xff] }
 0x83c   :  { %v1493_v31 = vpop.f32.mrf.mxu0  ;;  %5375 = vmatmul.msk.f32.vlgmr.msra.gmra.mxu1 %vm510_vm1, %v1350_v28  ;;  %5373 = vmatmul.msk.f32.vlgmr.msra.gmra.mxu2 %vm510_vm1, %v5371_v29  ;;  %v6784_v28 = vld [vmem:[%s7629_s27] sm:$0xff] }
 0x83d   :  { %1556 = vmatpush.msrb.mxu2 %v1555_v27  ;;  %1661 = vmatpush.msrb.mxu0 %v6769_v6  ;;  %v6778_v27 = vld [vmem:[%s6353_s5] sm:$0x3] }
 0x83f   :  { %1557 = vmatpush.msrb.mxu2 %v1554_v30  ;;  %1662 = vmatpush.msrb.mxu0 %v6774_v24  ;;  %v6788_v30 = vld [vmem:[%s7630_s19 + $0x8] sm:$0xff] }
 0x841   :  { %1558 = vmatpush.msrb.mxu2 %v1553_v32  ;;  %1663 = vmatpush.msrb.mxu0 %v6784_v28 }
 0x843   :  { %1559 = vmatpush.msrb.mxu2 %v1552_v33  ;;  %v6792_v33 = vld [vmem:[%s6358_s14] sm:$0xff] }
 0x844   :  { %v1496_v38 = vpop.f32.mrf.mxu0  ;;  %5376 = vmatmul.msk.f32.gmra.mxu1 %vm510_vm1, %v1351_v35  ;;  %5374 = vmatmul.msk.f32.gmra.mxu2 %vm510_vm1, %v5372_v36  ;;  %v6819_v35 = vld [vmem:[%s7630_s19] sm:$0xff] }
 0x845   :  { %1560 = vmatpush.msrb.mxu2 %v1551_v34  ;;  %v6800_v34 = vld [vmem:[%s6358_s14 + $0x8] sm:$0xff] }
 0x847   :  { %1561 = vmatpush.msrb.mxu2 %v1550_v37 }
 0x849   :  { %1562 = vmatpush.msrb.mxu2 %v1549_v39 }
 0x84b   :  { %1563 = vmatpush.msrb.mxu2 %v1548_v40 }
 0x84c   :  { %v1499_v43 = vpop.f32.mrf.mxu0 }
 0x84d   :  { %1564 = vmatpush.msrb.mxu2 %v1547_v41 }
 0x84f   :  { %1565 = vmatpush.msrb.mxu2 %v1546_v42 }
 0x851   :  { %1566 = vmatpush.msrb.mxu2 %v1545_v44 }
 0x853   :  { %1567 = vmatpush.msrb.mxu2 %v1544_v45 }
 0x854   :  { %v1502_v48 = vpop.f32.mrf.mxu0 }
 0x855   :  { %1568 = vmatpush.msrb.mxu2 %v1543_v46  ;;  %1526 = vmatpush.msrb.mxu1 %v1502_v48 }
 0x857   :  { %1569 = vmatpush.msrb.mxu2 %v1542_v47  ;;  %1527 = vmatpush.msrb.mxu1 %v1499_v43 }
 0x859   :  { %1570 = vmatpush.msrb.mxu2 %v1541_v49  ;;  %1528 = vmatpush.msrb.mxu1 %v1496_v38 }
 0x85b   :  { %1571 = vmatpush.msrb.mxu2 %v1540_v50  ;;  %1529 = vmatpush.msrb.mxu1 %v1493_v31 }
 0x85c   :  { %1572 = vmatmul.f32.vlgmr.msrb.gmra.mxu2 %v6674_v2  ;;  %5379 = vmatmul.msk.f32.vlgmr.msrb.gmra.mxu1 %vm510_vm1, %v5377_v51 }
 0x864   :  { %1575 = vmatmul.f32.gmra.mxu2 %v6679_v18  ;;  %5380 = vmatmul.msk.f32.gmra.mxu1 %vm510_vm1, %v5378_v52 }
 0x86c   :  { %1578 = vmatmul.f32.gmra.mxu2 %v6684_v0 }
 0x874   :  { %1581 = vmatmul.f32.gmra.mxu2 %v6689_v22 }
 0x8b9   :  { %v1453_v61 = vpop.f32.mrf.mxu1 }
 0x8bf   :  { %v1424_v53 = vpop.f32.mrf.mxu2 }
 0x8c0   :  { %v1454_v8 = vadd.f32 %v1453_v61, %v1424_v53  ;;  %v5411_v61 = vld [vmem:[%s7631_s2 + $0xe8] sm:$0xff] }
 0x8c1   :  { %v1456_v63 = vpop.f32.mrf.mxu1 }
 0x8c7   :  { %v1427_v54 = vpop.f32.mrf.mxu2 }
 0x8c8   :  { %v1457_v0 = vadd.f32 %v1456_v63, %v1427_v54  ;;  %v1858_v63 = vld [vmem:[%s7631_s2 + $0x58] sm:$0xff] }
 0x8d9   :  { %v1531_v13 = vpop.f32.mrf.mxu1 }
 0x8da   :  { %v1537_v21 = vadd.f32 %v1531_v13, %v1454_v8  ;;  %v5410_v13 = vld [vmem:[%s7631_s2 + $0xe0] sm:$0xff]  ;;  %v1856_v8 = vld [vmem:[%s7631_s2 + $0x48] sm:$0xff] }
 0x8df   :  { %v1573_v55 = vpop.f32.mrf.mxu2 }
 0x8e1   :  { %v1534_v18 = vpop.f32.mrf.mxu1 }
 0x8e2   :  { %v1538_v22 = vadd.f32 %v1534_v18, %v1457_v0  ;;  %v5409_v18 = vld [vmem:[%s7631_s2 + $0xd8] sm:$0xff]  ;;  %v5408_v0 = vld [vmem:[%s7631_s2 + $0xd0] sm:$0xff] }
 0x8e7   :  { %v1576_v56 = vpop.f32.mrf.mxu2 }
 0x8ef   :  { %v1579_v57 = vpop.f32.mrf.mxu2 }
 0x8f7   :  { %v1582_v58 = vpop.f32.mrf.mxu2 }
 0x8f8   :  { %1606 = vmatpush.msra.mxu3 %v1582_v58  ;;  %v5413_v58 = vld [vmem:[%s7631_s2 + $0xf8] sm:$0xff] }
 0x8fa   :  { %1607 = vmatpush.msra.mxu3 %v1579_v57  ;;  %v1860_v57 = vld [vmem:[%s7631_s2 + $0x68] sm:$0xff] }
 0x8fc   :  { %1608 = vmatpush.msra.mxu3 %v1576_v56  ;;  %v1861_v56 = vld [vmem:[%s7631_s2 + $0x70] sm:$0xff] }
 0x8fe   :  { %1609 = vmatpush.msra.mxu3 %v1573_v55  ;;  %v1862_v55 = vld [vmem:[%s7631_s2 + $0x78] sm:$0xff] }
 0x8ff   :  { %5383 = vmatmul.msk.f32.vlgmr.msra.gmra.mxu3 %vm510_vm1, %v5381_v59  ;;  %1863 = vmatpush.msra.mxu2 %v1862_v55  ;;  %v5412_v59 = vld [vmem:[%s7631_s2 + $0xf0] sm:$0xff]  ;;  %v5428_v55 = vld [vmem:[%s7631_s2 + $0x140] sm:$0xff] }
 0x900   :  { %1721 = vmatpush.msrb.mxu3 %v6788_v30 }
 0x901   :  { %1864 = vmatpush.msra.mxu2 %v1861_v56  ;;  %v5427_v56 = vld [vmem:[%s7631_s2 + $0x138] sm:$0xff] }
 0x902   :  { %1722 = vmatpush.msrb.mxu3 %v6819_v35 }
 0x903   :  { %1865 = vmatpush.msra.mxu2 %v1860_v57  ;;  %v5426_v57 = vld [vmem:[%s7631_s2 + $0x130] sm:$0xff] }
 0x907   :  { %5384 = vmatmul.msk.f32.gmra.mxu3 %vm510_vm1, %v5382_v60  ;;  %v1859_v60 = vld [vmem:[%s7631_s2 + $0x60] sm:$0xff] }
 0x908   :  { %1866 = vmatpush.msra.mxu2 %v1859_v60  ;;  %v5423_v60 = vld [vmem:[%s7631_s2 + $0x118] sm:$0xff] }
 0x90a   :  { %1867 = vmatpush.msra.mxu2 %v1858_v63  ;;  %v5421_v63 = vld [vmem:[%s7631_s2 + $0x108] sm:$0xff] }
 0x982   :  { %v1611_v2 = vpop.f32.mrf.mxu3 }
 0x983   :  { %v1617_v62 = vadd.f32 %v1611_v2, %v1537_v21  ;;  %v1857_v2 = vld [vmem:[%s7631_s2 + $0x50] sm:$0xff]  ;;  %v1855_v21 = vld [vmem:[%s7631_s2 + $0x40] sm:$0xff] }
 0x984   :  { %1868 = vmatpush.msra.mxu2 %v1857_v2 }
 0x985   :  { %v1622_v26 = vadd.f32 %v5671_v5, %v1617_v62  ;;  %v5406_v62 = vld [vmem:[%s7631_s2 + $0xc0] sm:$0xff] }
 0x986   :  { %1869 = vmatpush.msra.mxu2 %v1856_v8 }
 0x988   :  { %1870 = vmatpush.msra.mxu2 %v1855_v21 }
 0x98a   :  { %v1614_v3 = vpop.f32.mrf.mxu3 }
 0x98b   :  { %v1618_v23 = vadd.f32 %v1614_v3, %v1538_v22  ;;  %v5407_v22 = vld [vmem:[%s7631_s2 + $0xc8] sm:$0xff]  ;;  %v1854_v3 = vld [vmem:[%s7631_s2 + $0x38] sm:$0xff] }
 0x98c   :  { %1871 = vmatpush.msra.mxu2 %v1854_v3 }
 0x98d   :  { %v1623_v25 = vadd.f32 %v5671_v5, %v1618_v23  ;;  %v1853_v5 = vld [vmem:[%s7631_s2 + $0x30] sm:$0xff]  ;;  %v5405_v23 = vld [vmem:[%s7631_s2 + $0xb8] sm:$0xff] }
 0x98e   :  { %1872 = vmatpush.msra.mxu2 %v1853_v5  ;;  %v5414_v5 = vld [vmem:[%s7632_s13 + $0x10] sm:$0xff] }
 0x98f   :  { %1642 = vmatpush.msra.mxu1 %v1623_v25 }
 0x991   :  { %1643 = vmatpush.msra.mxu1 %v1622_v26 }
 0x992   :  { %5385 = vmatmul.msk.f32.vlgmr.msra.gmra.mxu1 %vm1624_vm8, %v6778_v27 }
 0xa0f   :  { %v1645_v29 = vpop.f32.mrf.mxu1 }
 0xa10   :  { %1664 = vmatmul.f32.vlgmr.msrb.gmra.mxu0 %v1645_v29  ;;  %v1851_v29 = vld [vmem:[%s7631_s2 + $0x20] sm:$0xff] }
 0xa8d   :  { %v1665_v31 = vpop.f32.mrf.mxu0 }
 0xa8e   :  { %v1668_v32 = vmul.f32 0.015625, %v1665_v31  ;;  %v5403_v31 = vld [vmem:[%s7631_s2 + $0xa8] sm:$0xff] }
 0xa90   :  { %5386 = vmatpush.msk.msrb.mxu1 %vm1087_vm2, %v1668_v32  ;;  %v1850_v32 = vld [vmem:[%s7631_s2 + $0x18] sm:$0xff] }
 0xa91   :  { %5387 = vmatmul.msk.f32.vlgmr.msrb.gmra.mxu1 %vm1074_vm3, %v6792_v33 }
 0xa92   :  { %1754 = vmatpush.msra.mxu1 %v6718_v1 }
 0xa94   :  { %1755 = vmatpush.msra.mxu1 %v6721_v7 }
 0xa96   :  { %1756 = vmatpush.msra.mxu1 %v6725_v9 }
 0xa98   :  { %1757 = vmatpush.msra.mxu1 %v6729_v10 }
 0xa99   :  { %5388 = vmatmul.msk.f32.gmra.mxu1 %vm1074_vm3, %v6800_v34 }
 0xa9a   :  { %1758 = vmatpush.msra.mxu1 %v6733_v11 }
 0xa9c   :  { %1759 = vmatpush.msra.mxu1 %v6737_v12 }
 0xa9e   :  { %1760 = vmatpush.msra.mxu1 %v6741_v14 }
 0xaa0   :  { %1761 = vmatpush.msra.mxu1 %v6745_v15 }
 0xaa2   :  { %1762 = vmatpush.msra.mxu1 %v6749_v16 }
 0xaa4   :  { %1763 = vmatpush.msra.mxu1 %v6753_v17 }
 0xaa6   :  { %1764 = vmatpush.msra.mxu1 %v6757_v4 }
 0xaa8   :  { %1765 = vmatpush.msra.mxu1 %v6761_v19 }
 0xaaa   :  { %1766 = vmatpush.msra.mxu1 %v6765_v20 }
 0xaac   :  { %1767 = vmatpush.msra.mxu1 %v6769_v6 }
 0xaae   :  { %1768 = vmatpush.msra.mxu1 %v6774_v24 }
 0xab0   :  { %1769 = vmatpush.msra.mxu1 %v6784_v28 }
 0xb0e   :  { %v1695_v36 = vpop.f32.mrf.mxu1 }
 0xb0f   :  { %5389 = vmatmul.msk.f32.vlgmr.msrb.gmra.mxu3 %vm1624_vm8, %v1695_v36  ;;  %v5402_v36 = vld [vmem:[%s7631_s2 + $0xa0] sm:$0xff] }
 0xb16   :  { %v1698_v37 = vpop.f32.mrf.mxu1 }
 0xb17   :  { %5390 = vmatmul.msk.f32.gmra.mxu3 %vm1624_vm8, %v1698_v37 }
 0xb92   :  { %v1724_v38 = vpop.f32.mrf.mxu3 }
 0xb93   :  { %v6824_v40 = vsub.f32 %v1622_v26, %v1724_v38  ;;  %v5404_v26 = vld [vmem:[%s7631_s2 + $0xb0] sm:$0xff] }
 0xb94   :  { %v1849_v38 = vld [vmem:[%s7631_s2 + $0x10] sm:$0xff] }
 0xb95   :  { %v1732_v43 = vmul.f32 %v6824_v40, %v6824_v40 }
 0xb9a   :  { %v1727_v39 = vpop.f32.mrf.mxu3 }
 0xb9b   :  { %v6826_v41 = vsub.f32 %v1623_v25, %v1727_v39  ;;  %v1852_v25 = vld [vmem:[%s7631_s2 + $0x28] sm:$0xff]  ;;  %v5401_v39 = vld [vmem:[%s7631_s2 + $0x98] sm:$0xff] }
 0xb9c   :  { %1873 = vmatpush.msra.mxu2 %v1852_v25 }
 0xb9d   :  { %v1733_v42 = vmul.f32 %v6826_v41, %v6826_v41 }
 0xb9e   :  { %1874 = vmatpush.msra.mxu2 %v1851_v29  ;;  %v1887_v29 = vld [vmem:[%s7632_s13 + $0x8] sm:$0xff] }
 0xb9f   :  { %1748 = vmatpush.msra.mxu0 %v1733_v42  ;;  %v1848_v42 = vld [vmem:[%s7631_s2 + $0x8] sm:$0xff] }
 0xba0   :  { %1875 = vmatpush.msra.mxu2 %v1850_v32  ;;  %v5436_v32 = vld [vmem:[%s7632_s13 + $0x20] sm:$0xff] }
 0xba1   :  { %1749 = vmatpush.msra.mxu0 %v1732_v43  ;;  %v1847_v43 = vld [vmem:[%s7631_s2] sm:$0xff] }
 0xba2   :  { %5391 = vmatmul.msk.f32.vlgmr.msra.gmra.mxu0 %vm1624_vm8, %v6778_v27  ;;  %1876 = vmatpush.msra.mxu2 %v1849_v38 }
 0xba3   :  { %1832 = vmatpush.msrb.mxu0 %v6788_v30 }
 0xba4   :  { %1877 = vmatpush.msra.mxu2 %v1848_v42 }
 0xba5   :  { %1833 = vmatpush.msrb.mxu0 %v6819_v35 }
 0xba6   :  { %1878 = vmatpush.msra.mxu2 %v1847_v43 }
 0xc1f   :  { %v1751_v44 = vpop.f32.mrf.mxu0 }
 0xc20   :  { %1770 = vmatmul.f32.vlgmr.msra.gmra.mxu1 %v1751_v44  ;;  %v5435_v44 = vld [vmem:[%s7631_s2 + $0x178] sm:$0xff] }
 0xc21   :  { %2006 = vmatpush.msrb.mxu2 %v5435_v44 }
 0xc9d   :  { %v1771_v45 = vpop.f32.mrf.mxu1 }
 0xc9e   :  { %v1774_v46 = vmul.f32 0.015625, %v1771_v45 }
 0xca0   :  { %v1775_v47 = vadd.f32 1e-05, %v1774_v46  ;;  %v5434_v46 = vld [vmem:[%s7631_s2 + $0x170] sm:$0xff] }
 0xca1   :  { %2007 = vmatpush.msrb.mxu2 %v5434_v46 }
 0xca2   :  { %5685 = vrsqrt.f32 %v1775_v47  ;;  %vm1782_vm10 = vweird.f32 %v1775_v47 }
 0xca8   :  { %v5686_v48 = vpop.eup %5685 }
 0xca9   :  { %v1777_v49 = vmul.f32 %v5686_v48, %v1775_v47  ;;  %vm1783_vm9 = vweird.f32 %v5686_v48  ;;  %v5433_v47 = vld [vmem:[%s7631_s2 + $0x168] sm:$0xff] }
 0xcaa   :  { %vm1784_vm11 = vmor %vm1782_vm10, %vm1783_vm9  ;;  %2008 = vmatpush.msrb.mxu2 %v5433_v47 }
 0xcab   :  { %v1778_v50 = vmul.f32 %v5686_v48, %v1777_v49  ;;  %v5431_v49 = vld [vmem:[%s7631_s2 + $0x158] sm:$0xff] }
 0xcad   :  { %v1779_v51 = vmul.f32 0.5, %v1778_v50  ;;  %v5400_v50 = vld [vmem:[%s7631_s2 + $0x90] sm:$0xff] }
 0xcaf   :  { %v1780_v52 = vsub.f32 1.5, %v1779_v51  ;;  %v5430_v51 = vld [vmem:[%s7631_s2 + $0x150] sm:$0xff] }
 0xcb1   :  { %v1781_v53 = vmul.f32 %v5686_v48, %v1780_v52  ;;  %v5399_v52 = vld [vmem:[%s7631_s2 + $0x88] sm:$0xff] }
 0xcb3   :  { %v1785_v54 = vsel %vm1784_vm11, %v5686_v48, %v1781_v53  ;;  %v5432_v48 = vld [vmem:[%s7631_s2 + $0x160] sm:$0xff]  ;;  %v5429_v53 = vld [vmem:[%s7631_s2 + $0x148] sm:$0xff] }
 0xcb4   :  { %5392 = vmatpush.msk.msra.mxu3 %vm1087_vm2, %v1785_v54  ;;  %2009 = vmatpush.msrb.mxu2 %v5432_v48  ;;  %v5398_v54 = vld [vmem:[%s7631_s2 + $0x80] sm:$0xff] }
 0xcb5   :  { %5393 = vmatmul.msk.f32.vlgmr.msra.gmra.mxu3 %vm1074_vm3, %v6792_v33  ;;  %v5672_v48 = vld [vmem:[%s7625_s4 + $0x2] ss:$0 sm:$0xff] }
 0xcb6   :  { %1905 = vmatpush.msrb.mxu3 %v5413_v58  ;;  %2010 = vmatpush.msrb.mxu2 %v5431_v49  ;;  %v5425_v58 = vld [vmem:[%s7631_s2 + $0x128] sm:$0xff] }
 0xcb8   :  { %1906 = vmatpush.msrb.mxu3 %v5412_v59  ;;  %2011 = vmatpush.msrb.mxu2 %v5430_v51  ;;  %v5424_v59 = vld [vmem:[%s7631_s2 + $0x120] sm:$0xff] }
 0xcba   :  { %1907 = vmatpush.msrb.mxu3 %v5411_v61  ;;  %2012 = vmatpush.msrb.mxu2 %v5429_v53  ;;  %v5422_v61 = vld [vmem:[%s7631_s2 + $0x110] sm:$0xff] }
 0xcbc   :  { %1908 = vmatpush.msrb.mxu3 %v5410_v13  ;;  %2013 = vmatpush.msrb.mxu2 %v5428_v55  ;;  %v5420_v13 = vld [vmem:[%s7631_s2 + $0x100] sm:$0xff] }
 0xcbd   :  { %5394 = vmatmul.msk.f32.gmra.mxu3 %vm1074_vm3, %v6800_v34 }
 0xcbe   :  { %1909 = vmatpush.msrb.mxu3 %v5409_v18  ;;  %2014 = vmatpush.msrb.mxu2 %v5427_v56 }
 0xcc0   :  { %1910 = vmatpush.msrb.mxu3 %v5408_v0  ;;  %2015 = vmatpush.msrb.mxu2 %v5426_v57 }
 0xcc2   :  { %1911 = vmatpush.msrb.mxu3 %v5407_v22  ;;  %2016 = vmatpush.msrb.mxu2 %v5425_v58 }
 0xcc4   :  { %1912 = vmatpush.msrb.mxu3 %v5406_v62  ;;  %2017 = vmatpush.msrb.mxu2 %v5424_v59 }
 0xcc6   :  { %1913 = vmatpush.msrb.mxu3 %v5405_v23  ;;  %2018 = vmatpush.msrb.mxu2 %v5423_v60  ;;  %v1886_v23 = vld [vmem:[%s7632_s13] sm:$0xff] }
 0xcc8   :  { %1914 = vmatpush.msrb.mxu3 %v5404_v26  ;;  %2019 = vmatpush.msrb.mxu2 %v5422_v61  ;;  %v5415_v26 = vld [vmem:[%s7632_s13 + $0x18] sm:$0xff] }
 0xcca   :  { %1915 = vmatpush.msrb.mxu3 %v5403_v31  ;;  %2020 = vmatpush.msrb.mxu2 %v5421_v63 }
 0xccc   :  { %1916 = vmatpush.msrb.mxu3 %v5402_v36  ;;  %2021 = vmatpush.msrb.mxu2 %v5420_v13  ;;  %v5437_v36 = vld [vmem:[%s7632_s13 + $0x28] sm:$0xff] }
 0xcce   :  { %1917 = vmatpush.msrb.mxu3 %v5401_v39 }
 0xcd0   :  { %1918 = vmatpush.msrb.mxu3 %v5400_v50 }
 0xcd2   :  { %1919 = vmatpush.msrb.mxu3 %v5399_v52 }
 0xcd4   :  { %1920 = vmatpush.msrb.mxu3 %v5398_v54 }
 0xcd6   :  { %2088 = vmatpush.msra.mxu3 %v6718_v1 }
 0xcd8   :  { %2089 = vmatpush.msra.mxu3 %v6721_v7 }
 0xcda   :  { %2090 = vmatpush.msra.mxu3 %v6725_v9 }
 0xcdc   :  { %2091 = vmatpush.msra.mxu3 %v6729_v10 }
 0xcde   :  { %2092 = vmatpush.msra.mxu3 %v6733_v11 }
 0xce0   :  { %2093 = vmatpush.msra.mxu3 %v6737_v12 }
 0xce2   :  { %2094 = vmatpush.msra.mxu3 %v6741_v14 }
 0xce4   :  { %2095 = vmatpush.msra.mxu3 %v6745_v15 }
 0xce6   :  { %2096 = vmatpush.msra.mxu3 %v6749_v16 }
 0xce8   :  { %2097 = vmatpush.msra.mxu3 %v6753_v17 }
 0xcea   :  { %2098 = vmatpush.msra.mxu3 %v6757_v4 }
 0xcec   :  { %2099 = vmatpush.msra.mxu3 %v6761_v19 }
 0xcee   :  { %2100 = vmatpush.msra.mxu3 %v6765_v20 }
 0xcf0   :  { %2101 = vmatpush.msra.mxu3 %v6769_v6 }
 0xcf2   :  { %2102 = vmatpush.msra.mxu3 %v6774_v24 }
 0xcf4   :  { %2103 = vmatpush.msra.mxu3 %v6784_v28 }
 0xd38   :  { %v1806_v37 = vpop.f32.mrf.mxu3 }
 0xd39   :  { %5395 = vmatmul.msk.f32.vlgmr.msrb.gmra.mxu0 %vm1624_vm8, %v1806_v37 }
 0xd40   :  { %v1809_v45 = vpop.f32.mrf.mxu3 }
 0xd41   :  { %5396 = vmatmul.msk.f32.gmra.mxu0 %vm1624_vm8, %v1809_v45 }
 0xdb6   :  { %v1835_v2 = vpop.f32.mrf.mxu0 }
 0xdb7   :  { %v1841_v18 = vmul.f32 %v1835_v2, %v6824_v40 }
 0xdb9   :  { %v6907_v8 = vmax.f32 %v1841_v18, 0.0 }
 0xdbb   :  { %1879 = vmatmul.f32.vlgmr.msra.gmra.mxu2 %v6907_v8  ;;  %1921 = vmatmul.f32.vlgmr.msrb.gmra.mxu3 %v6907_v8 }
 0xdbc   :  { %2188 = vmatpush.msra.mxu2 %v6718_v1 }
 0xdbe   :  { %v1838_v0 = vpop.f32.mrf.mxu0  ;;  %2189 = vmatpush.msra.mxu2 %v6721_v7 }
 0xdbf   :  { %v1842_v21 = vmul.f32 %v1838_v0, %v6826_v41 }
 0xdc0   :  { %2190 = vmatpush.msra.mxu2 %v6725_v9 }
 0xdc1   :  { %v6916_v40 = vmax.f32 %v1842_v21, 0.0 }
 0xdc2   :  { %2191 = vmatpush.msra.mxu2 %v6729_v10 }
 0xdc3   :  { %1882 = vmatmul.f32.gmra.mxu2 %v6916_v40  ;;  %1924 = vmatmul.f32.gmra.mxu3 %v6916_v40 }
 0xdc4   :  { %2192 = vmatpush.msra.mxu2 %v6733_v11 }
 0xdc6   :  { %2193 = vmatpush.msra.mxu2 %v6737_v12 }
 0xdc8   :  { %2194 = vmatpush.msra.mxu2 %v6741_v14 }
 0xdca   :  { %2195 = vmatpush.msra.mxu2 %v6745_v15 }
 0xdcb   :  { %2022 = vmatmul.f32.vlgmr.msrb.gmra.mxu2 %v6907_v8 }
 0xdcc   :  { %2196 = vmatpush.msra.mxu2 %v6749_v16 }
 0xdce   :  { %2197 = vmatpush.msra.mxu2 %v6753_v17 }
 0xdd0   :  { %2198 = vmatpush.msra.mxu2 %v6757_v4 }
 0xdd2   :  { %2199 = vmatpush.msra.mxu2 %v6761_v19 }
 0xdd3   :  { %2025 = vmatmul.f32.gmra.mxu2 %v6916_v40 }
 0xdd4   :  { %2200 = vmatpush.msra.mxu2 %v6765_v20 }
 0xdd6   :  { %2201 = vmatpush.msra.mxu2 %v6769_v6 }
 0xdd8   :  { %2202 = vmatpush.msra.mxu2 %v6774_v24 }
 0xdda   :  { %2203 = vmatpush.msra.mxu2 %v6784_v28 }
 0xe3e   :  { %v1880_v41 = vpop.f32.mrf.mxu2  ;;  %v1922_v22 = vpop.f32.mrf.mxu3 }
 0xe46   :  { %v1883_v3 = vpop.f32.mrf.mxu2  ;;  %v1925_v62 = vpop.f32.mrf.mxu3 }
 0xe47   :  { %1951 = vmatpush.msra.mxu0 %v1925_v62  ;;  %1980 = vmatpush.msrb.mxu1 %v1883_v3 }
 0xe49   :  { %1952 = vmatpush.msra.mxu0 %v1922_v22  ;;  %1981 = vmatpush.msrb.mxu1 %v1880_v41 }
 0xe4a   :  { %5416 = vmatmul.msk.f32.vlgmr.msra.gmra.mxu0 %vm1624_vm8, %v5414_v5  ;;  %5418 = vmatmul.msk.f32.vlgmr.msrb.gmra.mxu1 %vm1624_vm8, %v1886_v23 }
 0xe4e   :  { %v2023_v25 = vpop.f32.mrf.mxu2 }
 0xe52   :  { %5417 = vmatmul.msk.f32.gmra.mxu0 %vm1624_vm8, %v5415_v26  ;;  %5419 = vmatmul.msk.f32.gmra.mxu1 %vm1624_vm8, %v1887_v29  ;;  %v2338_v26 = vld [vmem:[#allocation6 + $0xf8] sm:$0xff]  ;;  %v2295_v29 = vld [vmem:[#allocation6 + $0x70] sm:$0xff] }
 0xe56   :  { %v2026_v31 = vpop.f32.mrf.mxu2 }
 0xe57   :  { %2052 = vmatpush.msrb.mxu0 %v2026_v31  ;;  %v2337_v31 = vld [vmem:[#allocation6 + $0xf0] sm:$0xff] }
 0xe59   :  { %2053 = vmatpush.msrb.mxu0 %v2023_v25  ;;  %v2296_v25 = vld [vmem:[#allocation6 + $0x78] sm:$0xff] }
 0xe5a   :  { %5438 = vmatmul.msk.f32.vlgmr.msrb.gmra.mxu0 %vm1624_vm8, %v5436_v32  ;;  %2297 = vmatpush.msrb.mxu3 %v2296_v25  ;;  %v2294_v32 = vld [vmem:[#allocation6 + $0x68] sm:$0xff]  ;;  %v2320_v25 = vld [vmem:[%s7633_s28] sm:$0xff] }
 0xe5b   :  { %2155 = vmatpush.msra.mxu0 %v6788_v30 }
 0xe5c   :  { %2298 = vmatpush.msrb.mxu3 %v2295_v29  ;;  %v5454_v29 = vld [vmem:[%s7633_s28 + $0x18] sm:$0xff] }
 0xe5d   :  { %2156 = vmatpush.msra.mxu0 %v6819_v35 }
 0xe5e   :  { %2299 = vmatpush.msrb.mxu3 %v2294_v32  ;;  %v2433_v32 = vld [vmem:[#allocation6 + $0x148] sm:$0xff] }
 0xe62   :  { %5439 = vmatmul.msk.f32.gmra.mxu0 %vm1624_vm8, %v5437_v36  ;;  %v2336_v36 = vld [vmem:[#allocation6 + $0xe8] sm:$0xff] }
 0xec7   :  { %v1954_v37 = vpop.f32.mrf.mxu0  ;;  %v1983_v39 = vpop.f32.mrf.mxu1 }
 0xec8   :  { %v1984_v44 = vadd.f32 %v1983_v39, %v1954_v37  ;;  %v2293_v37 = vld [vmem:[#allocation6 + $0x60] sm:$0xff]  ;;  %v2292_v39 = vld [vmem:[#allocation6 + $0x58] sm:$0xff] }
 0xec9   :  { %2300 = vmatpush.msrb.mxu3 %v2293_v37  ;;  %v2321_v37 = vld [vmem:[%s7633_s28 + $0x8] sm:$0xff] }
 0xecb   :  { %2301 = vmatpush.msrb.mxu3 %v2292_v39  ;;  %v2430_v39 = vld [vmem:[#allocation6 + $0x130] sm:$0xff] }
 0xecf   :  { %v1957_v38 = vpop.f32.mrf.mxu0  ;;  %v1986_v43 = vpop.f32.mrf.mxu1 }
 0xed0   :  { %v1987_v45 = vadd.f32 %v1986_v43, %v1957_v38  ;;  %v2335_v38 = vld [vmem:[#allocation6 + $0xe0] sm:$0xff]  ;;  %v2291_v43 = vld [vmem:[#allocation6 + $0x50] sm:$0xff] }
 0xed1   :  { %2302 = vmatpush.msrb.mxu3 %v2291_v43  ;;  %v2428_v43 = vld [vmem:[#allocation6 + $0x120] sm:$0xff] }
 0xed7   :  { %v2055_v42 = vpop.f32.mrf.mxu0 }
 0xed8   :  { %v2061_v47 = vadd.f32 %v2055_v42, %v1984_v44  ;;  %v2334_v42 = vld [vmem:[#allocation6 + $0xd8] sm:$0xff]  ;;  %v2333_v44 = vld [vmem:[#allocation6 + $0xd0] sm:$0xff] }
 0xeda   :  { %v2066_v51 = vadd.f32 %v5672_v48, %v2061_v47  ;;  %v2289_v47 = vld [vmem:[#allocation6 + $0x40] sm:$0xff] }
 0xedf   :  { %v2058_v46 = vpop.f32.mrf.mxu0 }
 0xee0   :  { %v2062_v49 = vadd.f32 %v2058_v46, %v1987_v45  ;;  %v2290_v45 = vld [vmem:[#allocation6 + $0x48] sm:$0xff] }
 0xee1   :  { %v2332_v46 = vld [vmem:[#allocation6 + $0xc8] sm:$0xff]  ;;  %2303 = vmatpush.msrb.mxu3 %v2290_v45  ;;  %v2426_v45 = vld [vmem:[#allocation6 + $0x110] sm:$0xff] }
 0xee2   :  { %v2067_v50 = vadd.f32 %v5672_v48, %v2062_v49  ;;  %v2331_v48 = vld [vmem:[#allocation6 + $0xc0] sm:$0xff]  ;;  %v2288_v49 = vld [vmem:[#allocation6 + $0x38] sm:$0xff] }
 0xee3   :  { %2304 = vmatpush.msrb.mxu3 %v2289_v47  ;;  %v2424_v47 = vld [vmem:[#allocation6 + $0x100] sm:$0xff] }
 0xee4   :  { %2082 = vmatpush.msra.mxu1 %v2067_v50 }
 0xee5   :  { %2305 = vmatpush.msrb.mxu3 %v2288_v49 }
 0xee6   :  { %2083 = vmatpush.msra.mxu1 %v2066_v51 }
 0xee7   :  { %5440 = vmatmul.msk.f32.vlgmr.msra.gmra.mxu1 %vm1624_vm8, %v6778_v27 }
 0xf64   :  { %v2085_v52 = vpop.f32.mrf.mxu1 }
 0xf65   :  { %2104 = vmatmul.f32.vlgmr.msra.gmra.mxu3 %v2085_v52  ;;  %v2329_v52 = vld [vmem:[#allocation6 + $0xb0] sm:$0xff] }
 0xfe8   :  { %v2105_v53 = vpop.f32.mrf.mxu3 }
 0xfe9   :  { %v2108_v54 = vmul.f32 0.015625, %v2105_v53  ;;  %v2286_v53 = vld [vmem:[#allocation6 + $0x28] sm:$0xff] }
 0xfeb   :  { %5441 = vmatpush.msk.msrb.mxu1 %vm1087_vm2, %v2108_v54  ;;  %v2328_v54 = vld [vmem:[#allocation6 + $0xa8] sm:$0xff] }
 0xfec   :  { %5442 = vmatmul.msk.f32.vlgmr.msrb.gmra.mxu1 %vm1074_vm3, %v6792_v33 }
 0xff4   :  { %5443 = vmatmul.msk.f32.gmra.mxu1 %vm1074_vm3, %v6800_v34 }
0x1069   :  { %v2129_v55 = vpop.f32.mrf.mxu1 }
0x106a   :  { %5444 = vmatmul.msk.f32.vlgmr.msra.gmra.mxu0 %vm1624_vm8, %v2129_v55  ;;  %v2285_v55 = vld [vmem:[#allocation6 + $0x20] sm:$0xff] }
0x1071   :  { %v2132_v56 = vpop.f32.mrf.mxu1 }
0x1072   :  { %5445 = vmatmul.msk.f32.gmra.mxu0 %vm1624_vm8, %v2132_v56  ;;  %v2327_v56 = vld [vmem:[#allocation6 + $0xa0] sm:$0xff] }
0x10e7   :  { %v2158_v57 = vpop.f32.mrf.mxu0 }
0x10e8   :  { %v6959_v59 = vsub.f32 %v2066_v51, %v2158_v57  ;;  %v2287_v51 = vld [vmem:[#allocation6 + $0x30] sm:$0xff]  ;;  %v2284_v57 = vld [vmem:[#allocation6 + $0x18] sm:$0xff] }
0x10e9   :  { %2306 = vmatpush.msrb.mxu3 %v2287_v51 }
0x10ea   :  { %v2166_v63 = vmul.f32 %v6959_v59, %v6959_v59 }
0x10eb   :  { %2307 = vmatpush.msrb.mxu3 %v2286_v53  ;;  %v5460_v53 = vld [vmem:[%s7633_s28 + $0x28] sm:$0xff] }
0x10ed   :  { %2308 = vmatpush.msrb.mxu3 %v2285_v55 }
0x10ef   :  { %v2161_v58 = vpop.f32.mrf.mxu0  ;;  %2309 = vmatpush.msrb.mxu3 %v2284_v57 }
0x10f0   :  { %v6961_v60 = vsub.f32 %v2067_v50, %v2161_v58  ;;  %v2330_v50 = vld [vmem:[#allocation6 + $0xb8] sm:$0xff] }
0x10f1   :  { %v2326_v58 = vld [vmem:[#allocation6 + $0x98] sm:$0xff] }
0x10f2   :  { %v2167_v61 = vmul.f32 %v6961_v60, %v6961_v60 }
0x10f4   :  { %2182 = vmatpush.msra.mxu1 %v2167_v61 }
0x10f6   :  { %2183 = vmatpush.msra.mxu1 %v2166_v63 }
0x10f7   :  { %5446 = vmatmul.msk.f32.vlgmr.msra.gmra.mxu1 %vm1624_vm8, %v6778_v27 }
0x10f8   :  { %2266 = vmatpush.msrb.mxu1 %v6788_v30 }
0x10fa   :  { %2267 = vmatpush.msrb.mxu1 %v6819_v35 }
0x1174   :  { %v2185_v13 = vpop.f32.mrf.mxu1 }
0x1175   :  { %2204 = vmatmul.f32.vlgmr.msra.gmra.mxu2 %v2185_v13  ;;  %v2283_v13 = vld [vmem:[#allocation6 + $0x10] sm:$0xff] }
0x1176   :  { %2310 = vmatpush.msrb.mxu3 %v2283_v13  ;;  %v5673_v13 = vld [vmem:[%s7625_s4 + $0x3] ss:$0 sm:$0xff] }
0x11f8   :  { %v2205_v2 = vpop.f32.mrf.mxu2 }
0x11f9   :  { %v2208_v18 = vmul.f32 0.015625, %v2205_v2  ;;  %v2325_v2 = vld [vmem:[#allocation6 + $0x90] sm:$0xff] }
0x11fb   :  { %v2209_v0 = vadd.f32 1e-05, %v2208_v18  ;;  %v2282_v18 = vld [vmem:[#allocation6 + $0x8] sm:$0xff] }
0x11fc   :  { %2311 = vmatpush.msrb.mxu3 %v2282_v18 }
0x11fd   :  { %5687 = vrsqrt.f32 %v2209_v0  ;;  %vm2216_vm13 = vweird.f32 %v2209_v0 }
0x1203   :  { %v5688_v21 = vpop.eup %5687 }
0x1204   :  { %v2211_v41 = vmul.f32 %v5688_v21, %v2209_v0  ;;  %vm2217_vm12 = vweird.f32 %v5688_v21  ;;  %v2324_v0 = vld [vmem:[#allocation6 + $0x88] sm:$0xff] }
0x1205   :  { %vm2218_vm14 = vmor %vm2216_vm13, %vm2217_vm12 }
0x1206   :  { %v2212_v22 = vmul.f32 %v5688_v21, %v2211_v41  ;;  %v2323_v41 = vld [vmem:[#allocation6 + $0x80] sm:$0xff] }
0x1208   :  { %v2213_v3 = vmul.f32 0.5, %v2212_v22  ;;  %v2439_v22 = vld [vmem:[#allocation6 + $0x178] sm:$0xff] }
0x120a   :  { %v2214_v62 = vsub.f32 1.5, %v2213_v3  ;;  %v5453_v3 = vld [vmem:[%s7633_s28 + $0x10] sm:$0xff] }
0x120c   :  { %v2215_v5 = vmul.f32 %v5688_v21, %v2214_v62  ;;  %v2438_v62 = vld [vmem:[#allocation6 + $0x170] sm:$0xff] }
0x120e   :  { %v2219_v23 = vsel %vm2218_vm14, %v5688_v21, %v2215_v5  ;;  %v2281_v21 = vld [vmem:[#allocation6] sm:$0xff]  ;;  %v2437_v5 = vld [vmem:[#allocation6 + $0x168] sm:$0xff] }
0x120f   :  { %5447 = vmatpush.msk.msrb.mxu0 %vm1087_vm2, %v2219_v23  ;;  %2312 = vmatpush.msrb.mxu3 %v2281_v21 }
0x1210   :  { %5448 = vmatmul.msk.f32.vlgmr.msrb.gmra.mxu0 %vm1074_vm3, %v6792_v33 }
0x1211   :  { %2339 = vmatpush.msra.mxu0 %v2338_v26  ;;  %v2435_v26 = vld [vmem:[#allocation6 + $0x158] sm:$0xff] }
0x1213   :  { %2340 = vmatpush.msra.mxu0 %v2337_v31  ;;  %v2434_v31 = vld [vmem:[#allocation6 + $0x150] sm:$0xff] }
0x1215   :  { %2341 = vmatpush.msra.mxu0 %v2336_v36  ;;  %v2432_v36 = vld [vmem:[#allocation6 + $0x140] sm:$0xff] }
0x1217   :  { %2342 = vmatpush.msra.mxu0 %v2335_v38  ;;  %v2431_v38 = vld [vmem:[#allocation6 + $0x138] sm:$0xff] }
0x1218   :  { %5449 = vmatmul.msk.f32.gmra.mxu0 %vm1074_vm3, %v6800_v34 }
0x1219   :  { %2343 = vmatpush.msra.mxu0 %v2334_v42  ;;  %v2429_v42 = vld [vmem:[#allocation6 + $0x128] sm:$0xff] }
0x121b   :  { %2344 = vmatpush.msra.mxu0 %v2333_v44  ;;  %v2427_v44 = vld [vmem:[#allocation6 + $0x118] sm:$0xff] }
0x121d   :  { %2345 = vmatpush.msra.mxu0 %v2332_v46  ;;  %v2425_v46 = vld [vmem:[#allocation6 + $0x108] sm:$0xff] }
0x121f   :  { %2346 = vmatpush.msra.mxu0 %v2331_v48 }
0x1221   :  { %2347 = vmatpush.msra.mxu0 %v2330_v50 }
0x1223   :  { %2348 = vmatpush.msra.mxu0 %v2329_v52  ;;  %v5459_v52 = vld [vmem:[%s7633_s28 + $0x20] sm:$0xff] }
0x1225   :  { %2349 = vmatpush.msra.mxu0 %v2328_v54 }
0x1227   :  { %2350 = vmatpush.msra.mxu0 %v2327_v56 }
0x1229   :  { %2351 = vmatpush.msra.mxu0 %v2326_v58 }
0x122b   :  { %2352 = vmatpush.msra.mxu0 %v2325_v2 }
0x122d   :  { %2353 = vmatpush.msra.mxu0 %v2324_v0 }
0x122f   :  { %2354 = vmatpush.msra.mxu0 %v2323_v41 }
0x1231   :  { %2522 = vmatpush.msrb.mxu0 %v6718_v1 }
0x1233   :  { %2523 = vmatpush.msrb.mxu0 %v6721_v7 }
0x1235   :  { %2524 = vmatpush.msrb.mxu0 %v6725_v9 }
0x1237   :  { %2525 = vmatpush.msrb.mxu0 %v6729_v10 }
0x1239   :  { %2526 = vmatpush.msrb.mxu0 %v6733_v11 }
0x123b   :  { %2527 = vmatpush.msrb.mxu0 %v6737_v12 }
0x123d   :  { %2528 = vmatpush.msrb.mxu0 %v6741_v14 }
0x123f   :  { %2529 = vmatpush.msrb.mxu0 %v6745_v15 }
0x1241   :  { %2530 = vmatpush.msrb.mxu0 %v6749_v16 }
0x1243   :  { %2531 = vmatpush.msrb.mxu0 %v6753_v17 }
0x1245   :  { %2532 = vmatpush.msrb.mxu0 %v6757_v4 }
0x1247   :  { %2533 = vmatpush.msrb.mxu0 %v6761_v19 }
0x1249   :  { %2534 = vmatpush.msrb.mxu0 %v6765_v20 }
0x124b   :  { %2535 = vmatpush.msrb.mxu0 %v6769_v6 }
0x124d   :  { %2536 = vmatpush.msrb.mxu0 %v6774_v24 }
0x124f   :  { %2537 = vmatpush.msrb.mxu0 %v6784_v28 }
0x128d   :  { %v2240_v61 = vpop.f32.mrf.mxu0 }
0x128e   :  { %5450 = vmatmul.msk.f32.vlgmr.msrb.gmra.mxu1 %vm1624_vm8, %v2240_v61 }
0x1295   :  { %v2243_v63 = vpop.f32.mrf.mxu0 }
0x1296   :  { %5451 = vmatmul.msk.f32.gmra.mxu1 %vm1624_vm8, %v2243_v63 }
0x130b   :  { %v2269_v1 = vpop.f32.mrf.mxu1 }
0x130c   :  { %v2275_v7 = vmul.f32 %v2269_v1, %v6959_v59 }
0x130e   :  { %v2277_v9 = vmax.f32 %v2275_v7, 0.0  ;;  %v7019_v7 = vld [vmem:[%s7629_s27 + $0x78] sm:$0xff] }
0x1310   :  { %2313 = vmatmul.f32.vlgmr.msrb.gmra.mxu3 %v2277_v9  ;;  %2355 = vmatmul.f32.vlgmr.msra.gmra.mxu0 %v2277_v9 }
0x1311   :  { %2700 = vmatpush.msra.mxu0 %v6788_v30 }
0x1313   :  { %v2272_v10 = vpop.f32.mrf.mxu1  ;;  %2701 = vmatpush.msra.mxu0 %v6819_v35 }
0x1314   :  { %v2276_v11 = vmul.f32 %v2272_v10, %v6961_v60  ;;  %v2436_v60 = vld [vmem:[#allocation6 + $0x160] sm:$0xff] }
0x1315   :  { %v7041_v10 = vld [vmem:[%s7629_s27 + $0x50] sm:$0xff] }
0x1316   :  { %v2278_v12 = vmax.f32 %v2276_v11, 0.0  ;;  %v7045_v11 = vld [vmem:[%s7629_s27 + $0x48] sm:$0xff] }
0x1318   :  { %2316 = vmatmul.f32.gmra.mxu3 %v2278_v12  ;;  %2358 = vmatmul.f32.gmra.mxu0 %v2278_v12 }
0x138d   :  { %v2356_v14 = vpop.f32.mrf.mxu0 }
0x1393   :  { %v2314_v15 = vpop.f32.mrf.mxu3 }
0x1395   :  { %v2359_v59 = vpop.f32.mrf.mxu0 }
0x1396   :  { %2385 = vmatpush.msra.mxu1 %v2359_v59  ;;  %v2714_v59 = vld [vmem:[#allocation15] sm:$0xff] }
0x1398   :  { %2386 = vmatpush.msra.mxu1 %v2356_v14 }
0x1399   :  { %5455 = vmatmul.msk.f32.vlgmr.msra.gmra.mxu1 %vm1624_vm8, %v5453_v3 }
0x139a   :  { %2440 = vmatpush.msrb.mxu1 %v2439_v22  ;;  %v2713_v22 = vld [vmem:[%s7634_s11] sm:$0x3] }
0x139b   :  { %v2317_v23 = vpop.f32.mrf.mxu3 }
0x139c   :  { %2441 = vmatpush.msrb.mxu1 %v2438_v62  ;;  %2414 = vmatpush.msrb.mxu2 %v2317_v23 }
0x139e   :  { %2442 = vmatpush.msrb.mxu1 %v2437_v5  ;;  %2415 = vmatpush.msrb.mxu2 %v2314_v15 }
0x139f   :  { %5457 = vmatmul.msk.f32.vlgmr.msrb.gmra.mxu2 %vm1624_vm8, %v2320_v25 }
0x13a0   :  { %2443 = vmatpush.msrb.mxu1 %v2436_v60 }
0x13a1   :  { %5456 = vmatmul.msk.f32.gmra.mxu1 %vm1624_vm8, %v5454_v29 }
0x13a2   :  { %2444 = vmatpush.msrb.mxu1 %v2435_v26 }
0x13a4   :  { %2445 = vmatpush.msrb.mxu1 %v2434_v31  ;;  %v7076_v31 = vld [vmem:[%s6358_s14] sm:$0xff] }
0x13a6   :  { %2446 = vmatpush.msrb.mxu1 %v2433_v32  ;;  %v2746_v32 = vld [vmem:[#allocation18 + $0x18] sm:$0xff] }
0x13a7   :  { %5458 = vmatmul.msk.f32.gmra.mxu2 %vm1624_vm8, %v2321_v37  ;;  %v2823_v37 = vld [vmem:[#allocation7 + $0x78] sm:$0xff] }
0x13a8   :  { %2447 = vmatpush.msrb.mxu1 %v2432_v36  ;;  %v2745_v36 = vld [vmem:[#allocation18 + $0x10] sm:$0xff] }
0x13aa   :  { %2448 = vmatpush.msrb.mxu1 %v2431_v38  ;;  %v2744_v38 = vld [vmem:[#allocation18 + $0x8] sm:$0xff] }
0x13ac   :  { %2449 = vmatpush.msrb.mxu1 %v2430_v39  ;;  %v2822_v39 = vld [vmem:[#allocation7 + $0x70] sm:$0xff] }
0x13ae   :  { %2450 = vmatpush.msrb.mxu1 %v2429_v42  ;;  %v2821_v42 = vld [vmem:[#allocation7 + $0x68] sm:$0xff] }
0x13b0   :  { %2451 = vmatpush.msrb.mxu1 %v2428_v43  ;;  %v2743_v43 = vld [vmem:[#allocation18] sm:$0xff] }
0x13b2   :  { %2452 = vmatpush.msrb.mxu1 %v2427_v44  ;;  %v2865_v44 = vld [vmem:[#allocation7 + $0xf8] sm:$0xff] }
0x13b4   :  { %2453 = vmatpush.msrb.mxu1 %v2426_v45  ;;  %v2820_v45 = vld [vmem:[#allocation7 + $0x60] sm:$0xff] }
0x13b6   :  { %2454 = vmatpush.msrb.mxu1 %v2425_v46 }
0x13b8   :  { %2455 = vmatpush.msrb.mxu1 %v2424_v47  ;;  %v2864_v47 = vld [vmem:[#allocation7 + $0xf0] sm:$0xff] }
0x13b9   :  { %2456 = vmatmul.f32.vlgmr.msrb.gmra.mxu1 %v2277_v9  ;;  %v7031_v9 = vld [vmem:[%s7629_s27 + $0x60] sm:$0xff] }
0x13c1   :  { %2459 = vmatmul.f32.gmra.mxu1 %v2278_v12  ;;  %v7049_v12 = vld [vmem:[%s7629_s27 + $0x40] sm:$0xff] }
0x1416   :  { %v2388_v48 = vpop.f32.mrf.mxu1 }
0x141e   :  { %v2391_v49 = vpop.f32.mrf.mxu1 }
0x1422   :  { %v2417_v54 = vpop.f32.mrf.mxu2 }
0x1423   :  { %v2418_v57 = vadd.f32 %v2417_v54, %v2388_v48  ;;  %v2819_v48 = vld [vmem:[#allocation7 + $0x58] sm:$0xff] }
0x142a   :  { %v2420_v55 = vpop.f32.mrf.mxu2 }
0x142b   :  { %v2421_v58 = vadd.f32 %v2420_v55, %v2391_v49  ;;  %v2863_v49 = vld [vmem:[#allocation7 + $0xe8] sm:$0xff]  ;;  %v2861_v55 = vld [vmem:[#allocation7 + $0xd8] sm:$0xff] }
0x1436   :  { %v2457_v50 = vpop.f32.mrf.mxu1 }
0x143e   :  { %v2460_v51 = vpop.f32.mrf.mxu1 }
0x143f   :  { %2486 = vmatpush.msra.mxu2 %v2460_v51 }
0x1441   :  { %2487 = vmatpush.msra.mxu2 %v2457_v50  ;;  %v2818_v50 = vld [vmem:[#allocation7 + $0x50] sm:$0xff] }
0x1442   :  { %5461 = vmatmul.msk.f32.vlgmr.msra.gmra.mxu2 %vm1624_vm8, %v5459_v52  ;;  %v2862_v52 = vld [vmem:[#allocation7 + $0xe0] sm:$0xff] }
0x144a   :  { %5462 = vmatmul.msk.f32.gmra.mxu2 %vm1624_vm8, %v5460_v53  ;;  %v2817_v53 = vld [vmem:[#allocation7 + $0x48] sm:$0xff] }
0x14c5   :  { %v2489_v56 = vpop.f32.mrf.mxu2 }
0x14c6   :  { %v2495_v63 = vadd.f32 %v2489_v56, %v2418_v57  ;;  %v2816_v56 = vld [vmem:[#allocation7 + $0x40] sm:$0xff]  ;;  %v2860_v57 = vld [vmem:[#allocation7 + $0xd0] sm:$0xff] }
0x14c8   :  { %v2500_v0 = vadd.f32 %v5673_v13, %v2495_v63  ;;  %v2814_v63 = vld [vmem:[#allocation7 + $0x30] sm:$0xff] }
0x14cd   :  { %v2492_v61 = vpop.f32.mrf.mxu2 }
0x14ce   :  { %v2496_v2 = vadd.f32 %v2492_v61, %v2421_v58  ;;  %v2815_v58 = vld [vmem:[#allocation7 + $0x38] sm:$0xff]  ;;  %v2859_v61 = vld [vmem:[#allocation7 + $0xc8] sm:$0xff] }
0x14d0   :  { %v2501_v18 = vadd.f32 %v5673_v13, %v2496_v2  ;;  %v2858_v13 = vld [vmem:[#allocation7 + $0xc0] sm:$0xff]  ;;  %v2813_v2 = vld [vmem:[#allocation7 + $0x28] sm:$0xff] }
0x14d2   :  { %2516 = vmatpush.msra.mxu3 %v2501_v18 }
0x14d4   :  { %2517 = vmatpush.msra.mxu3 %v2500_v0 }
0x14d5   :  { %5463 = vmatmul.msk.f32.vlgmr.msra.gmra.mxu3 %vm1624_vm8, %v6778_v27 }
0x14d6   :  { %2589 = vmatpush.msrb.mxu3 %v6788_v30  ;;  %v7023_v30 = vld [vmem:[%s7629_s27 + $0x70] sm:$0xff] }
0x14d8   :  { %2590 = vmatpush.msrb.mxu3 %v6819_v35  ;;  %v7027_v35 = vld [vmem:[%s7629_s27 + $0x68] sm:$0xff] }
0x1558   :  { %v2519_v21 = vpop.f32.mrf.mxu3 }
0x1559   :  { %2538 = vmatmul.f32.vlgmr.msrb.gmra.mxu0 %v2519_v21 }
0x155a   :  { %2824 = vmatpush.msrb.mxu0 %v2823_v37 }
0x155c   :  { %2825 = vmatpush.msrb.mxu0 %v2822_v39 }
0x155e   :  { %2826 = vmatpush.msrb.mxu0 %v2821_v42 }
0x1560   :  { %2827 = vmatpush.msrb.mxu0 %v2820_v45 }
0x1562   :  { %2828 = vmatpush.msrb.mxu0 %v2819_v48  ;;  %v5479_v48 = vld [vmem:[%s7636_s24 + $0x10] sm:$0xff] }
0x1564   :  { %2829 = vmatpush.msrb.mxu0 %v2818_v50  ;;  %v2848_v50 = vld [vmem:[%s7636_s24 + $0x8] sm:$0xff] }
0x1566   :  { %2830 = vmatpush.msrb.mxu0 %v2817_v53  ;;  %v5676_v53 = vld [vmem:[#allocation21] ss:$0 sm:$0xff] }
0x1568   :  { %2831 = vmatpush.msrb.mxu0 %v2816_v56 }
0x156a   :  { %2832 = vmatpush.msrb.mxu0 %v2815_v58  ;;  %v2958_v58 = vld [vmem:[#allocation7 + $0x138] sm:$0xff] }
0x156c   :  { %2833 = vmatpush.msrb.mxu0 %v2814_v63  ;;  %v2956_v63 = vld [vmem:[#allocation7 + $0x128] sm:$0xff] }
0x156e   :  { %2834 = vmatpush.msrb.mxu0 %v2813_v2  ;;  %v2954_v2 = vld [vmem:[#allocation7 + $0x118] sm:$0xff] }
0x15d6   :  { %v2539_v41 = vpop.f32.mrf.mxu0 }
0x15d7   :  { %v2542_v1 = vmul.f32 0.015625, %v2539_v41  ;;  %v2856_v41 = vld [vmem:[#allocation7 + $0xb0] sm:$0xff] }
0x15d9   :  { %5464 = vmatpush.msk.msrb.mxu2 %vm1087_vm2, %v2542_v1  ;;  %v2811_v1 = vld [vmem:[#allocation7 + $0x18] sm:$0xff] }
0x15da   :  { %5465 = vmatmul.msk.f32.vlgmr.msrb.gmra.mxu2 %vm1074_vm3, %v6792_v33  ;;  %v7037_v33 = vld [vmem:[%s7629_s27 + $0x58] sm:$0xff] }
0x15db   :  { %2622 = vmatpush.msra.mxu2 %v7019_v7 }
0x15dd   :  { %2623 = vmatpush.msra.mxu2 %v7023_v30 }
0x15df   :  { %2624 = vmatpush.msra.mxu2 %v7027_v35 }
0x15e1   :  { %2625 = vmatpush.msra.mxu2 %v7031_v9 }
0x15e2   :  { %5466 = vmatmul.msk.f32.gmra.mxu2 %vm1074_vm3, %v6800_v34 }
0x15e3   :  { %2626 = vmatpush.msra.mxu2 %v7037_v33 }
0x15e5   :  { %2627 = vmatpush.msra.mxu2 %v7041_v10 }
0x15e7   :  { %2628 = vmatpush.msra.mxu2 %v7045_v11 }
0x15e9   :  { %2629 = vmatpush.msra.mxu2 %v7049_v12 }
0x15eb   :  { %2630 = vmatpush.msra.mxu2 %v6749_v16 }
0x15ed   :  { %2631 = vmatpush.msra.mxu2 %v6753_v17 }
0x15ef   :  { %2632 = vmatpush.msra.mxu2 %v6757_v4 }
0x15f1   :  { %2633 = vmatpush.msra.mxu2 %v6761_v19 }
0x15f3   :  { %2634 = vmatpush.msra.mxu2 %v6765_v20 }
0x15f5   :  { %2635 = vmatpush.msra.mxu2 %v6769_v6 }
0x15f7   :  { %2636 = vmatpush.msra.mxu2 %v6774_v24 }
0x15f9   :  { %2637 = vmatpush.msra.mxu2 %v6784_v28 }
0x165d   :  { %v2563_v14 = vpop.f32.mrf.mxu2 }
0x165e   :  { %5467 = vmatmul.msk.f32.vlgmr.msrb.gmra.mxu3 %vm1624_vm8, %v2563_v14  ;;  %v2855_v14 = vld [vmem:[#allocation7 + $0xa8] sm:$0xff] }
0x1665   :  { %v2566_v15 = vpop.f32.mrf.mxu2 }
0x1666   :  { %5468 = vmatmul.msk.f32.gmra.mxu3 %vm1624_vm8, %v2566_v15  ;;  %v2854_v15 = vld [vmem:[#allocation7 + $0xa0] sm:$0xff] }
0x16e1   :  { %v2592_v16 = vpop.f32.mrf.mxu3 }
0x16e2   :  { %v7062_v4 = vsub.f32 %v2500_v0, %v2592_v16  ;;  %v2812_v0 = vld [vmem:[#allocation7 + $0x20] sm:$0xff]  ;;  %v2853_v16 = vld [vmem:[#allocation7 + $0x98] sm:$0xff] }
0x16e3   :  { %2835 = vmatpush.msrb.mxu0 %v2812_v0  ;;  %v2952_v0 = vld [vmem:[#allocation7 + $0x108] sm:$0xff] }
0x16e4   :  { %v2600_v6 = vmul.f32 %v7062_v4, %v7062_v4 }
0x16e5   :  { %2836 = vmatpush.msrb.mxu0 %v2811_v1 }
0x16e9   :  { %v2595_v17 = vpop.f32.mrf.mxu3 }
0x16ea   :  { %v7064_v19 = vsub.f32 %v2501_v18, %v2595_v17  ;;  %v2857_v18 = vld [vmem:[#allocation7 + $0xb8] sm:$0xff] }
0x16ec   :  { %v2601_v20 = vmul.f32 %v7064_v19, %v7064_v19 }
0x16ee   :  { %2616 = vmatpush.msra.mxu1 %v2601_v20  ;;  %v2810_v20 = vld [vmem:[#allocation7 + $0x10] sm:$0xff] }
0x16ef   :  { %2837 = vmatpush.msrb.mxu0 %v2810_v20  ;;  %v7133_v20 = vld [vmem:[%s7629_s27 + $0x38] sm:$0xff] }
0x16f0   :  { %2617 = vmatpush.msra.mxu1 %v2600_v6  ;;  %v2852_v6 = vld [vmem:[#allocation7 + $0x90] sm:$0xff] }
0x16f1   :  { %5469 = vmatmul.msk.f32.vlgmr.msra.gmra.mxu1 %vm1624_vm8, %v6778_v27 }
0x16f2   :  { %2737 = vmatpush.msrb.mxu1 %v2714_v59  ;;  %v2808_v59 = vld [vmem:[#allocation7] sm:$0xff] }
0x16f4   :  { %2766 = vmatpush.msra.mxu1 %v2746_v32 }
0x16f6   :  { %2767 = vmatpush.msra.mxu1 %v2745_v36 }
0x16f8   :  { %2768 = vmatpush.msra.mxu1 %v2744_v38 }
0x16f9   :  { %5475 = vmatmul.msk.f32.vlgmr.msrb.gmra.mxu1 %vm1120_vm4, %v2713_v22  ;;  %v2850_v22 = vld [vmem:[#allocation7 + $0x80] sm:$0xff] }
0x16fa   :  { %2769 = vmatpush.msra.mxu1 %v2743_v43 }
0x16fc   :  { %2866 = vmatpush.msrb.mxu1 %v2865_v44 }
0x16fe   :  { %2867 = vmatpush.msrb.mxu1 %v2864_v47  ;;  %v2847_v47 = vld [vmem:[%s7636_s24] sm:$0xff] }
0x1700   :  { %2868 = vmatpush.msrb.mxu1 %v2863_v49  ;;  %v2962_v49 = vld [vmem:[#allocation7 + $0x158] sm:$0xff] }
0x1702   :  { %2869 = vmatpush.msrb.mxu1 %v2862_v52  ;;  %v2961_v52 = vld [vmem:[#allocation7 + $0x150] sm:$0xff] }
0x1704   :  { %2870 = vmatpush.msrb.mxu1 %v2861_v55  ;;  %v2960_v55 = vld [vmem:[#allocation7 + $0x148] sm:$0xff] }
0x1706   :  { %2871 = vmatpush.msrb.mxu1 %v2860_v57  ;;  %v2959_v57 = vld [vmem:[#allocation7 + $0x140] sm:$0xff] }
0x1708   :  { %2872 = vmatpush.msrb.mxu1 %v2859_v61  ;;  %v2957_v61 = vld [vmem:[#allocation7 + $0x130] sm:$0xff] }
0x170a   :  { %2873 = vmatpush.msrb.mxu1 %v2858_v13  ;;  %v2955_v13 = vld [vmem:[#allocation7 + $0x120] sm:$0xff] }
0x170c   :  { %2874 = vmatpush.msrb.mxu1 %v2857_v18  ;;  %v2953_v18 = vld [vmem:[#allocation7 + $0x110] sm:$0xff] }
0x170e   :  { %2875 = vmatpush.msrb.mxu1 %v2856_v41 }
0x1710   :  { %2876 = vmatpush.msrb.mxu1 %v2855_v14 }
0x1712   :  { %2877 = vmatpush.msrb.mxu1 %v2854_v15 }
0x1714   :  { %2878 = vmatpush.msrb.mxu1 %v2853_v16  ;;  %v5485_v16 = vld [vmem:[%s7636_s24 + $0x20] sm:$0xff] }
0x1716   :  { %2879 = vmatpush.msrb.mxu1 %v2852_v6  ;;  %v7137_v6 = vld [vmem:[%s7629_s27 + $0x30] sm:$0xff] }
0x176e   :  { %v2619_v24 = vpop.f32.mrf.mxu1 }
0x176f   :  { %2638 = vmatmul.f32.vlgmr.msra.gmra.mxu2 %v2619_v24  ;;  %v2809_v24 = vld [vmem:[#allocation7 + $0x8] sm:$0xff] }
0x1770   :  { %2838 = vmatpush.msrb.mxu0 %v2809_v24  ;;  %v7141_v24 = vld [vmem:[%s7629_s27 + $0x28] sm:$0xff] }
0x1772   :  { %2839 = vmatpush.msrb.mxu0 %v2808_v59  ;;  %v7149_v59 = vld [vmem:[%s7629_s27 + $0x18] sm:$0xff] }
0x1776   :  { %v2739_v46 = vpop.f32.mrf.mxu1 }
0x17f2   :  { %v2639_v28 = vpop.f32.mrf.mxu2 }
0x17f3   :  { %v2642_v3 = vmul.f32 0.015625, %v2639_v28  ;;  %v2851_v28 = vld [vmem:[#allocation7 + $0x88] sm:$0xff] }
0x17f4   :  { %2880 = vmatpush.msrb.mxu1 %v2851_v28  ;;  %v7145_v28 = vld [vmem:[%s7629_s27 + $0x20] sm:$0xff] }
0x17f5   :  { %v2643_v62 = vadd.f32 1e-05, %v2642_v3  ;;  %v7086_v3 = vld [vmem:[%s7630_s19 + $0x8] sm:$0xff] }
0x17f6   :  { %2881 = vmatpush.msrb.mxu1 %v2850_v22  ;;  %v7153_v22 = vld [vmem:[%s7629_s27 + $0x10] sm:$0xff] }
0x17f7   :  { %5689 = vrsqrt.f32 %v2643_v62  ;;  %vm2650_vm0 = vweird.f32 %v2643_v62 }
0x17fd   :  { %v5690_v5 = vpop.eup %5689 }
0x17fe   :  { %v2645_v23 = vmul.f32 %v5690_v5, %v2643_v62  ;;  %vm2651_vm15 = vweird.f32 %v5690_v5  ;;  %v7090_v62 = vld [vmem:[%s7630_s19] sm:$0xff] }
0x17ff   :  { %vm2652_vm5 = vmor %vm2650_vm0, %vm2651_vm15 }
0x1800   :  { %v2646_v60 = vmul.f32 %v5690_v5, %v2645_v23  ;;  %v2777_v23 = vld [vmem:[#allocation19 + $0x10] sm:$0xff] }
0x1802   :  { %v2647_v25 = vmul.f32 0.5, %v2646_v60  ;;  %v2776_v60 = vld [vmem:[#allocation19 + $0x8] sm:$0xff] }
0x1804   :  { %v2648_v26 = vsub.f32 1.5, %v2647_v25  ;;  %v2775_v25 = vld [vmem:[#allocation19] sm:$0xff] }
0x1806   :  { %v2649_v27 = vmul.f32 %v5690_v5, %v2648_v26  ;;  %v5675_v26 = vld [vmem:[%s7635_s21] ss:$0 sm:$0xff] }
0x1808   :  { %v2653_v29 = vsel %vm2652_vm5, %v5690_v5, %v2649_v27  ;;  %v2778_v5 = vld [vmem:[#allocation19 + $0x18] sm:$0xff] }
0x1809   :  { %5470 = vmatpush.msk.msra.mxu3 %vm1087_vm2, %v2653_v29 }
0x180a   :  { %5471 = vmatmul.msk.f32.vlgmr.msra.gmra.mxu3 %vm1074_vm3, %v7076_v31 }
0x180b   :  { %2798 = vmatpush.msrb.mxu3 %v2778_v5  ;;  %v7157_v5 = vld [vmem:[%s7629_s27 + $0x8] sm:$0xff] }
0x180d   :  { %2799 = vmatpush.msrb.mxu3 %v2777_v23  ;;  %v7161_v23 = vld [vmem:[%s7629_s27] sm:$0xff] }
0x180f   :  { %2800 = vmatpush.msrb.mxu3 %v2776_v60 }
0x1811   :  { %2801 = vmatpush.msrb.mxu3 %v2775_v25 }
0x1812   :  { %5472 = vmatmul.msk.f32.gmra.mxu3 %vm1074_vm3, %v6800_v34  ;;  %v5674_v34 = vld [vmem:[#allocation16] ss:$0 sm:$0xff] }
0x1813   :  { %v2740_v51 = vadd.f32 %v5674_v34, %v2739_v46  ;;  %v2966_v46 = vld [vmem:[#allocation7 + $0x178] sm:$0xff]  ;;  %v2963_v34 = vld [vmem:[#allocation7 + $0x160] sm:$0xff] }
0x1815   :  { %v2742_v54 = vmax.f32 %v2740_v51, 0.0  ;;  %v5480_v51 = vld [vmem:[%s7636_s24 + $0x18] sm:$0xff] }
0x1817   :  { %5476 = vmatmul.msk.f32.vlgmr.msra.gmra.mxu1 %vm510_vm1, %v2742_v54 }
0x1818   :  { %3116 = vmatpush.msra.mxu1 %v7086_v3 }
0x181a   :  { %3117 = vmatpush.msra.mxu1 %v7090_v62 }
0x188d   :  { %v2674_v21 = vpop.f32.mrf.mxu3 }
0x188e   :  { %5473 = vmatmul.msk.f32.vlgmr.msra.gmra.mxu0 %vm1624_vm8, %v2674_v21  ;;  %v2951_v21 = vld [vmem:[#allocation7 + $0x100] sm:$0xff] }
0x1894   :  { %v2771_v27 = vpop.f32.mrf.mxu1 }
0x1895   :  { %v2677_v17 = vpop.f32.mrf.mxu3  ;;  %v2772_v29 = vadd.f32 %v5675_v26, %v2771_v27 }
0x1896   :  { %5474 = vmatmul.msk.f32.gmra.mxu0 %vm1624_vm8, %v2677_v17  ;;  %v5486_v17 = vld [vmem:[%s7636_s24 + $0x28] sm:$0xff] }
0x1897   :  { %v2774_v32 = vmax.f32 %v2772_v29, 0.0 }
0x1899   :  { %5477 = vmatmul.msk.f32.vlgmr.msrb.gmra.mxu3 %vm510_vm1, %v2774_v32 }
0x190b   :  { %v2703_v36 = vpop.f32.mrf.mxu0 }
0x190c   :  { %v2709_v37 = vmul.f32 %v2703_v36, %v7062_v4 }
0x190e   :  { %v7097_v38 = vadd.f32 %v2709_v37, %v6907_v8  ;;  %v5677_v37 = vld [vmem:[%s7625_s4 + $0x4] ss:$0 sm:$0xff] }
0x1910   :  { %2840 = vmatmul.f32.vlgmr.msrb.gmra.mxu0 %v7097_v38  ;;  %2882 = vmatmul.f32.vlgmr.msrb.gmra.mxu1 %v7097_v38 }
0x1913   :  { %v2706_v39 = vpop.f32.mrf.mxu0 }
0x1914   :  { %v2710_v42 = vmul.f32 %v2706_v39, %v7064_v19  ;;  %v2965_v19 = vld [vmem:[#allocation7 + $0x170] sm:$0xff] }
0x1916   :  { %v7103_v43 = vadd.f32 %v2710_v42, %v6916_v40  ;;  %v2964_v40 = vld [vmem:[#allocation7 + $0x168] sm:$0xff] }
0x1918   :  { %2843 = vmatmul.f32.gmra.mxu0 %v7103_v43  ;;  %2885 = vmatmul.f32.gmra.mxu1 %v7103_v43 }
0x191c   :  { %v2803_v54 = vpop.f32.mrf.mxu3 }
0x191d   :  { %v7115_v56 = vadd.f32 %v5676_v53, %v2803_v54 }
0x191f   :  { %3743 = vrot.lane.b32.xlu2 %v7115_v56, %s6174_s20 }
0x198d   :  { %v2841_v4 = vpop.f32.mrf.mxu0  ;;  %v2883_v44 = vpop.f32.mrf.mxu1 }
0x1995   :  { %v2844_v45 = vpop.f32.mrf.mxu0  ;;  %v2886_v8 = vpop.f32.mrf.mxu1 }
0x1996   :  { %2912 = vmatpush.msrb.mxu2 %v2886_v8  ;;  %2941 = vmatpush.msra.mxu3 %v2844_v45  ;;  %v7175_v8 = vld [vmem:[%s6358_s14 + $0x8] sm:$0xff] }
0x1998   :  { %2913 = vmatpush.msrb.mxu2 %v2883_v44  ;;  %2942 = vmatpush.msra.mxu3 %v2841_v4  ;;  %v7168_v44 = vld [vmem:[%s6353_s5] sm:$0x3]  ;;  %s6175_s5 = smov 16  }
0x1999   :  { %5483 = vmatmul.msk.f32.vlgmr.msra.gmra.mxu3 %vm1624_vm8, %v2847_v47  ;;  %5481 = vmatmul.msk.f32.vlgmr.msrb.gmra.mxu2 %vm1624_vm8, %v5479_v48 }
0x199a   :  { %2967 = vmatpush.msra.mxu2 %v2966_v46 }
0x199c   :  { %2968 = vmatpush.msra.mxu2 %v2965_v19 }
0x199e   :  { %2969 = vmatpush.msra.mxu2 %v2964_v40 }
0x19a0   :  { %2970 = vmatpush.msra.mxu2 %v2963_v34 }
0x19a1   :  { %5484 = vmatmul.msk.f32.gmra.mxu3 %vm1624_vm8, %v2848_v50  ;;  %5482 = vmatmul.msk.f32.gmra.mxu2 %vm1624_vm8, %v5480_v51 }
0x19a2   :  { %2971 = vmatpush.msra.mxu2 %v2962_v49 }
0x19a4   :  { %2972 = vmatpush.msra.mxu2 %v2961_v52 }
0x19a6   :  { %2973 = vmatpush.msra.mxu2 %v2960_v55 }
0x19a8   :  { %2974 = vmatpush.msra.mxu2 %v2959_v57 }
0x19aa   :  { %2975 = vmatpush.msra.mxu2 %v2958_v58 }
0x19ac   :  { %2976 = vmatpush.msra.mxu2 %v2957_v61 }
0x19ae   :  { %2977 = vmatpush.msra.mxu2 %v2956_v63 }
0x19b0   :  { %2978 = vmatpush.msra.mxu2 %v2955_v13 }
0x19b2   :  { %2979 = vmatpush.msra.mxu2 %v2954_v2 }
0x19b4   :  { %2980 = vmatpush.msra.mxu2 %v2953_v18 }
0x19b6   :  { %2981 = vmatpush.msra.mxu2 %v2952_v0 }
0x19b8   :  { %2982 = vmatpush.msra.mxu2 %v2951_v21 }
0x19b9   :  { %2983 = vmatmul.f32.vlgmr.msra.gmra.mxu2 %v7097_v38 }
0x19c1   :  { %2986 = vmatmul.f32.gmra.mxu2 %v7103_v43 }
0x1a1c   :  { %v2915_v41 = vpop.f32.mrf.mxu2  ;;  %v2944_v60 = vpop.f32.mrf.mxu3 }
0x1a1d   :  { %v2945_v27 = vadd.f32 %v2944_v60, %v2915_v41  ;;  %v3362_v60 = vld [vmem:[#allocation9 + $0xf0] sm:$0xff] }
0x1a24   :  { %v2918_v1 = vpop.f32.mrf.mxu2  ;;  %v2947_v25 = vpop.f32.mrf.mxu3 }
0x1a25   :  { %v2948_v29 = vadd.f32 %v2947_v25, %v2918_v1  ;;  %v3319_v25 = vld [vmem:[#allocation9 + $0x68] sm:$0xff] }
0x1a3c   :  { %v2984_v14 = vpop.f32.mrf.mxu2 }
0x1a44   :  { %v2987_v15 = vpop.f32.mrf.mxu2 }
0x1a45   :  { %3013 = vmatpush.msrb.mxu3 %v2987_v15  ;;  %v3321_v15 = vld [vmem:[#allocation9 + $0x78] sm:$0xff] }
0x1a47   :  { %3014 = vmatpush.msrb.mxu3 %v2984_v14 }
0x1a48   :  { %5487 = vmatmul.msk.f32.vlgmr.msrb.gmra.mxu3 %vm1624_vm8, %v5485_v16  ;;  %v3363_v16 = vld [vmem:[#allocation9 + $0xf8] sm:$0xff] }
0x1a49   :  { %3049 = vmatpush.msra.mxu3 %v7019_v7 }
0x1a4b   :  { %3050 = vmatpush.msra.mxu3 %v7023_v30 }
0x1a4d   :  { %3051 = vmatpush.msra.mxu3 %v7027_v35 }
0x1a4f   :  { %3052 = vmatpush.msra.mxu3 %v7031_v9 }
0x1a50   :  { %5488 = vmatmul.msk.f32.gmra.mxu3 %vm1624_vm8, %v5486_v17  ;;  %v3320_v17 = vld [vmem:[#allocation9 + $0x70] sm:$0xff] }
0x1a51   :  { %3053 = vmatpush.msra.mxu3 %v7037_v33 }
0x1a53   :  { %3054 = vmatpush.msra.mxu3 %v7041_v10 }
0x1a55   :  { %3055 = vmatpush.msra.mxu3 %v7045_v11 }
0x1a57   :  { %3056 = vmatpush.msra.mxu3 %v7049_v12 }
0x1a59   :  { %3057 = vmatpush.msra.mxu3 %v7133_v20 }
0x1a5b   :  { %3058 = vmatpush.msra.mxu3 %v7137_v6 }
0x1a5d   :  { %3059 = vmatpush.msra.mxu3 %v7141_v24 }
0x1a5f   :  { %3060 = vmatpush.msra.mxu3 %v7145_v28 }
0x1a61   :  { %3061 = vmatpush.msra.mxu3 %v7149_v59 }
0x1a63   :  { %3062 = vmatpush.msra.mxu3 %v7153_v22 }
0x1a65   :  { %3063 = vmatpush.msra.mxu3 %v7157_v5 }
0x1a67   :  { %3064 = vmatpush.msra.mxu3 %v7161_v23 }
0x1a69   :  { %5501 = vmatpush.msk.msrb.mxu3 %vm1087_vm2, %v7115_v56 }
0x1acb   :  { %v3016_v26 = vpop.f32.mrf.mxu3 }
0x1acc   :  { %v3022_v36 = vadd.f32 %v3016_v26, %v2945_v27  ;;  %v3361_v26 = vld [vmem:[#allocation9 + $0xe8] sm:$0xff]  ;;  %v3318_v27 = vld [vmem:[#allocation9 + $0x60] sm:$0xff] }
0x1ace   :  { %v3027_v4 = vadd.f32 %v5677_v37, %v3022_v36  ;;  %v3359_v36 = vld [vmem:[#allocation9 + $0xd8] sm:$0xff] }
0x1ad3   :  { %v3019_v32 = vpop.f32.mrf.mxu3 }
0x1ad4   :  { %v3023_v39 = vadd.f32 %v3019_v32, %v2948_v29  ;;  %v3360_v29 = vld [vmem:[#allocation9 + $0xe0] sm:$0xff]  ;;  %v3317_v32 = vld [vmem:[#allocation9 + $0x58] sm:$0xff] }
0x1ad6   :  { %v3028_v42 = vadd.f32 %v5677_v37, %v3023_v39  ;;  %v3316_v39 = vld [vmem:[#allocation9 + $0x50] sm:$0xff] }
0x1ad8   :  { %3043 = vmatpush.msra.mxu0 %v3028_v42 }
0x1ada   :  { %3044 = vmatpush.msra.mxu0 %v3027_v4 }
0x1adb   :  { %5489 = vmatmul.msk.f32.vlgmr.msra.gmra.mxu0 %vm1624_vm8, %v7168_v44 }
0x1b58   :  { %v3046_v45 = vpop.f32.mrf.mxu0 }
0x1b59   :  { %3065 = vmatmul.f32.vlgmr.msra.gmra.mxu3 %v3046_v45  ;;  %v3357_v45 = vld [vmem:[#allocation9 + $0xc8] sm:$0xff] }
0x1b5a   :  { %3364 = vmatpush.msra.mxu3 %v3363_v16 }
0x1b5c   :  { %3365 = vmatpush.msra.mxu3 %v3362_v60 }
0x1b5e   :  { %3366 = vmatpush.msra.mxu3 %v3361_v26 }
0x1b60   :  { %3367 = vmatpush.msra.mxu3 %v3360_v29 }
0x1b61   :  { %5502 = vmatmul.msk.f32.vlgmr.msrb.gmra.mxu3 %vm1074_vm3, %v7076_v31 }
0x1b62   :  { %3368 = vmatpush.msra.mxu3 %v3359_v36 }
0x1b69   :  { %5503 = vmatmul.msk.f32.gmra.mxu3 %vm1074_vm3, %v7175_v8 }
0x1bdc   :  { %v3066_v46 = vpop.f32.mrf.mxu3 }
0x1bdd   :  { %v3069_v47 = vmul.f32 0.015625, %v3066_v46  ;;  %v3314_v46 = vld [vmem:[#allocation9 + $0x40] sm:$0xff] }
0x1bdf   :  { %5490 = vmatpush.msk.msrb.mxu0 %vm1087_vm2, %v3069_v47  ;;  %v3356_v47 = vld [vmem:[#allocation9 + $0xc0] sm:$0xff] }
0x1be0   :  { %5491 = vmatmul.msk.f32.vlgmr.msrb.gmra.mxu0 %vm1074_vm3, %v7076_v31 }
0x1be1   :  { %3149 = vmatpush.msra.mxu0 %v7019_v7 }
0x1be3   :  { %3150 = vmatpush.msra.mxu0 %v7023_v30 }
0x1be4   :  { %v3265_v14 = vpop.f32.mrf.mxu3 }
0x1be5   :  { %3151 = vmatpush.msra.mxu0 %v7027_v35 }
0x1be7   :  { %3152 = vmatpush.msra.mxu0 %v7031_v9 }
0x1be8   :  { %5492 = vmatmul.msk.f32.gmra.mxu0 %vm1074_vm3, %v7175_v8 }
0x1be9   :  { %3153 = vmatpush.msra.mxu0 %v7037_v33 }
0x1beb   :  { %3154 = vmatpush.msra.mxu0 %v7041_v10 }
0x1bec   :  { %v3268_v37 = vpop.f32.mrf.mxu3 }
0x1bed   :  { %3155 = vmatpush.msra.mxu0 %v7045_v11 }
0x1bef   :  { %3156 = vmatpush.msra.mxu0 %v7049_v12 }
0x1bf1   :  { %3157 = vmatpush.msra.mxu0 %v7133_v20 }
0x1bf3   :  { %3158 = vmatpush.msra.mxu0 %v7137_v6 }
0x1bf5   :  { %3159 = vmatpush.msra.mxu0 %v7141_v24 }
0x1bf7   :  { %3160 = vmatpush.msra.mxu0 %v7145_v28 }
0x1bf9   :  { %3161 = vmatpush.msra.mxu0 %v7149_v59 }
0x1bfb   :  { %3162 = vmatpush.msra.mxu0 %v7153_v22 }
0x1bfd   :  { %3163 = vmatpush.msra.mxu0 %v7157_v5 }
0x1bff   :  { %3164 = vmatpush.msra.mxu0 %v7161_v23 }
0x1c5d   :  { %v3090_v48 = vpop.f32.mrf.mxu0 }
0x1c5e   :  { %5493 = vmatmul.msk.f32.vlgmr.msra.gmra.mxu1 %vm1624_vm8, %v3090_v48  ;;  %v3313_v48 = vld [vmem:[#allocation9 + $0x38] sm:$0xff] }
0x1c65   :  { %v3093_v19 = vpop.f32.mrf.mxu0 }
0x1c66   :  { %5494 = vmatmul.msk.f32.gmra.mxu1 %vm1624_vm8, %v3093_v19  ;;  %v3355_v19 = vld [vmem:[#allocation9 + $0xb8] sm:$0xff] }
0x1cdb   :  { %v3119_v40 = vpop.f32.mrf.mxu1 }
0x1cdc   :  { %v7202_v49 = vsub.f32 %v3027_v4, %v3119_v40  ;;  %v3315_v4 = vld [vmem:[#allocation9 + $0x48] sm:$0xff]  ;;  %v3312_v40 = vld [vmem:[#allocation9 + $0x30] sm:$0xff] }
0x1cde   :  { %v3127_v52 = vmul.f32 %v7202_v49, %v7202_v49 }
0x1ce3   :  { %v3122_v34 = vpop.f32.mrf.mxu1 }
0x1ce4   :  { %v7204_v50 = vsub.f32 %v3028_v42, %v3122_v34  ;;  %v3358_v42 = vld [vmem:[#allocation9 + $0xd0] sm:$0xff] }
0x1ce5   :  { %3369 = vmatpush.msra.mxu3 %v3358_v42  ;;  %v3354_v34 = vld [vmem:[#allocation9 + $0xb0] sm:$0xff]  ;;  %v5507_v42 = vld [vmem:[%s7637_s8 + $0x10] sm:$0xff] }
0x1ce6   :  { %v3128_v51 = vmul.f32 %v7204_v50, %v7204_v50 }
0x1ce7   :  { %3370 = vmatpush.msra.mxu3 %v3357_v45  ;;  %v3461_v45 = vld [vmem:[#allocation9 + $0x160] sm:$0xff] }
0x1ce8   :  { %3143 = vmatpush.msrb.mxu2 %v3128_v51  ;;  %v3311_v51 = vld [vmem:[#allocation9 + $0x28] sm:$0xff] }
0x1ce9   :  { %3371 = vmatpush.msra.mxu3 %v3356_v47  ;;  %v3346_v47 = vld [vmem:[%s7637_s8 + $0x8] sm:$0xff] }
0x1cea   :  { %3144 = vmatpush.msrb.mxu2 %v3127_v52  ;;  %v3353_v52 = vld [vmem:[#allocation9 + $0xa8] sm:$0xff] }
0x1ceb   :  { %5495 = vmatmul.msk.f32.vlgmr.msrb.gmra.mxu2 %vm1624_vm8, %v7168_v44  ;;  %3372 = vmatpush.msra.mxu3 %v3355_v19  ;;  %v3459_v19 = vld [vmem:[#allocation9 + $0x150] sm:$0xff] }
0x1cec   :  { %3234 = vmatpush.msra.mxu2 %v7086_v3 }
0x1ced   :  { %3373 = vmatpush.msra.mxu3 %v3354_v34  ;;  %v3457_v34 = vld [vmem:[#allocation9 + $0x140] sm:$0xff] }
0x1cee   :  { %3235 = vmatpush.msra.mxu2 %v7090_v62 }
0x1cef   :  { %3374 = vmatpush.msra.mxu3 %v3353_v52  ;;  %v3455_v52 = vld [vmem:[#allocation9 + $0x130] sm:$0xff] }
0x1cf0   :  { %3322 = vmatpush.msrb.mxu2 %v3321_v15 }
0x1cf2   :  { %3323 = vmatpush.msrb.mxu2 %v3320_v17 }
0x1cf4   :  { %3324 = vmatpush.msrb.mxu2 %v3319_v25 }
0x1cf6   :  { %3325 = vmatpush.msrb.mxu2 %v3318_v27 }
0x1cf8   :  { %3326 = vmatpush.msrb.mxu2 %v3317_v32 }
0x1cfa   :  { %3327 = vmatpush.msrb.mxu2 %v3316_v39  ;;  %v3345_v39 = vld [vmem:[%s7637_s8] sm:$0xff] }
0x1cfc   :  { %3328 = vmatpush.msrb.mxu2 %v3315_v4  ;;  %v3463_v4 = vld [vmem:[#allocation9 + $0x170] sm:$0xff] }
0x1cfe   :  { %3329 = vmatpush.msrb.mxu2 %v3314_v46  ;;  %v3460_v46 = vld [vmem:[#allocation9 + $0x158] sm:$0xff] }
0x1d00   :  { %3330 = vmatpush.msrb.mxu2 %v3313_v48  ;;  %v5508_v48 = vld [vmem:[%s7637_s8 + $0x18] sm:$0xff] }
0x1d02   :  { %3331 = vmatpush.msrb.mxu2 %v3312_v40  ;;  %v3458_v40 = vld [vmem:[#allocation9 + $0x148] sm:$0xff] }
0x1d04   :  { %3332 = vmatpush.msrb.mxu2 %v3311_v51  ;;  %v3456_v51 = vld [vmem:[#allocation9 + $0x138] sm:$0xff] }
0x1d6e   :  { %v3146_v53 = vpop.f32.mrf.mxu2 }
0x1d6f   :  { %3165 = vmatmul.f32.vlgmr.msra.gmra.mxu0 %v3146_v53  ;;  %v3310_v53 = vld [vmem:[#allocation9 + $0x20] sm:$0xff] }
0x1d70   :  { %3333 = vmatpush.msrb.mxu2 %v3310_v53  ;;  %v3454_v53 = vld [vmem:[#allocation9 + $0x128] sm:$0xff] }
0x1dec   :  { %v3166_v54 = vpop.f32.mrf.mxu0 }
0x1ded   :  { %v3169_v55 = vmul.f32 0.015625, %v3166_v54  ;;  %v3352_v54 = vld [vmem:[#allocation9 + $0xa0] sm:$0xff] }
0x1dee   :  { %3375 = vmatpush.msra.mxu3 %v3352_v54  ;;  %v3453_v54 = vld [vmem:[#allocation9 + $0x120] sm:$0xff] }
0x1def   :  { %v3170_v57 = vadd.f32 1e-05, %v3169_v55 }
0x1df1   :  { %5691 = vrsqrt.f32 %v3170_v57  ;;  %vm3177_vm6 = vweird.f32 %v3170_v57 }
0x1df7   :  { %v5692_v58 = vpop.eup %5691 }
0x1df8   :  { %v3172_v61 = vmul.f32 %v5692_v58, %v3170_v57  ;;  %vm3178_vm4 = vweird.f32 %v5692_v58 }
0x1df9   :  { %vm3179_vm7 = vmor %vm3177_vm6, %vm3178_vm4 }
0x1dfa   :  { %v3173_v63 = vmul.f32 %v5692_v58, %v3172_v61  ;;  %v3351_v61 = vld [vmem:[#allocation9 + $0x98] sm:$0xff] }
0x1dfb   :  { %3376 = vmatpush.msra.mxu3 %v3351_v61  ;;  %v3449_v61 = vld [vmem:[#allocation9 + $0x100] sm:$0xff] }
0x1dfc   :  { %v3174_v13 = vmul.f32 0.5, %v3173_v63  ;;  %v3308_v63 = vld [vmem:[#allocation9 + $0x10] sm:$0xff] }
0x1dfe   :  { %v3175_v2 = vsub.f32 1.5, %v3174_v13  ;;  %v3350_v13 = vld [vmem:[#allocation9 + $0x90] sm:$0xff] }
0x1dff   :  { %3377 = vmatpush.msra.mxu3 %v3350_v13 }
0x1e00   :  { %v3176_v18 = vmul.f32 %v5692_v58, %v3175_v2  ;;  %v3307_v2 = vld [vmem:[#allocation9 + $0x8] sm:$0xff] }
0x1e02   :  { %v3180_v0 = vsel %vm3179_vm7, %v5692_v58, %v3176_v18  ;;  %v3309_v58 = vld [vmem:[#allocation9 + $0x18] sm:$0xff]  ;;  %v3349_v18 = vld [vmem:[#allocation9 + $0x88] sm:$0xff] }
0x1e03   :  { %3182 = vrot.lane.b32.xlu0 %v3180_v0, %s6175_s5  ;;  %3334 = vmatpush.msrb.mxu2 %v3309_v58  ;;  %v3306_v0 = vld [vmem:[#allocation9] sm:$0xff]  ;;  %v3450_v58 = vld [vmem:[#allocation9 + $0x108] sm:$0xff] }
0x1e04   :  { %3378 = vmatpush.msra.mxu3 %v3349_v18 }
0x1e05   :  { %3335 = vmatpush.msrb.mxu2 %v3308_v63 }
0x1e07   :  { %3336 = vmatpush.msrb.mxu2 %v3307_v2 }
0x1e09   :  { %3337 = vmatpush.msrb.mxu2 %v3306_v0  ;;  %v5513_v0 = vld [vmem:[%s7637_s8 + $0x20] sm:$0xff] }
0x1e75   :  { %v3183_v21 = vpop.permute.xlu0 %3182 }
0x1e76   :  { %v3185_v41 = vmul.f32 %v3183_v21, %v7115_v56  ;;  %v3348_v21 = vld [vmem:[#allocation9 + $0x80] sm:$0xff] }
0x1e77   :  { %3379 = vmatpush.msra.mxu3 %v3348_v21  ;;  %v3744_v21 = vpop.permute.xlu2 %3743 }
0x1e78   :  { %3187 = vrot.lane.b32.xlu0 %v3185_v41, %s6176_s15 }
0x1e79   :  { %3547 = vmatpush.msrb.mxu3 %v7019_v7 }
0x1e7b   :  { %3548 = vmatpush.msrb.mxu3 %v7023_v30 }
0x1e7d   :  { %3549 = vmatpush.msrb.mxu3 %v7027_v35 }
0x1e7f   :  { %3550 = vmatpush.msrb.mxu3 %v7031_v9 }
0x1e81   :  { %3551 = vmatpush.msrb.mxu3 %v7037_v33 }
0x1e83   :  { %3552 = vmatpush.msrb.mxu3 %v7041_v10 }
0x1e85   :  { %3553 = vmatpush.msrb.mxu3 %v7045_v11 }
0x1e87   :  { %3554 = vmatpush.msrb.mxu3 %v7049_v12 }
0x1e89   :  { %3555 = vmatpush.msrb.mxu3 %v7133_v20 }
0x1e8b   :  { %3556 = vmatpush.msrb.mxu3 %v7137_v6 }
0x1e8d   :  { %3557 = vmatpush.msrb.mxu3 %v7141_v24 }
0x1e8f   :  { %3558 = vmatpush.msrb.mxu3 %v7145_v28 }
0x1e91   :  { %3559 = vmatpush.msrb.mxu3 %v7149_v59 }
0x1e93   :  { %3560 = vmatpush.msrb.mxu3 %v7153_v22 }
0x1e95   :  { %3561 = vmatpush.msrb.mxu3 %v7157_v5 }
0x1e97   :  { %3562 = vmatpush.msrb.mxu3 %v7161_v23 }
0x1eea   :  { %v3188_v1 = vpop.permute.xlu0 %3187 }
0x1eeb   :  { %5496 = vmatpush.msk.msrb.mxu1 %vm1087_vm2, %v3188_v1 }
0x1eec   :  { %5497 = vmatmul.msk.f32.vlgmr.msrb.gmra.mxu1 %vm1074_vm3, %v7076_v31 }
0x1eed   :  { %3291 = vmatpush.msra.mxu1 %v7086_v3 }
0x1eef   :  { %3292 = vmatpush.msra.mxu1 %v7090_v62 }
0x1ef4   :  { %5498 = vmatmul.msk.f32.gmra.mxu1 %vm1074_vm3, %v7175_v8 }
0x1efc   :  { %5504 = vmatmul.msk.f32.vlgmr.msra.gmra.mxu1 %vm1624_vm8, %v3265_v14 }
0x1f04   :  { %5505 = vmatmul.msk.f32.gmra.mxu1 %vm1624_vm8, %v3268_v37  ;;  %v3464_v37 = vld [vmem:[#allocation9 + $0x178] sm:$0xff] }
0x1f69   :  { %v3208_v55 = vpop.f32.mrf.mxu1 }
0x1f6a   :  { %5499 = vmatmul.msk.f32.vlgmr.msra.gmra.mxu2 %vm1624_vm8, %v3208_v55  ;;  %v3452_v55 = vld [vmem:[#allocation9 + $0x118] sm:$0xff] }
0x1f71   :  { %v3211_v57 = vpop.f32.mrf.mxu1 }
0x1f72   :  { %5500 = vmatmul.msk.f32.gmra.mxu2 %vm1624_vm8, %v3211_v57  ;;  %v3451_v57 = vld [vmem:[#allocation9 + $0x110] sm:$0xff] }
0x1f79   :  { %v3294_v41 = vpop.f32.mrf.mxu1 }
0x1f81   :  { %v3297_v60 = vpop.f32.mrf.mxu1 }
0x1fed   :  { %v3237_v1 = vpop.f32.mrf.mxu2 }
0x1fee   :  { %v3243_v14 = vmul.f32 %v3237_v1, %v7202_v49 }
0x1ff0   :  { %v3300_v15 = vadd.f32 %v3294_v41, %v3243_v14  ;;  %v5514_v41 = vld [vmem:[%s7637_s8 + $0x28] sm:$0xff] }
0x1ff2   :  { %v3302_v16 = vmax.f32 %v3300_v15, 0.0 }
0x1ff4   :  { %3338 = vmatmul.f32.vlgmr.msrb.gmra.mxu2 %v3302_v16  ;;  %3380 = vmatmul.f32.vlgmr.msra.gmra.mxu3 %v3302_v16 }
0x1ff5   :  { %v3240_v17 = vpop.f32.mrf.mxu2 }
0x1ff6   :  { %v3244_v25 = vmul.f32 %v3240_v17, %v7204_v50  ;;  %v3462_v50 = vld [vmem:[#allocation9 + $0x168] sm:$0xff] }
0x1ff8   :  { %v3301_v26 = vadd.f32 %v3297_v60, %v3244_v25 }
0x1ffa   :  { %v3303_v27 = vmax.f32 %v3301_v26, 0.0  ;;  %v5678_v26 = vld [vmem:[%s7625_s4 + $0x5] ss:$0 sm:$0xff] }
0x1ffc   :  { %3341 = vmatmul.f32.gmra.mxu2 %v3303_v27  ;;  %3383 = vmatmul.f32.gmra.mxu3 %v3303_v27 }
0x2077   :  { %v3339_v49 = vpop.f32.mrf.mxu2  ;;  %v3381_v29 = vpop.f32.mrf.mxu3 }
0x207f   :  { %v3342_v32 = vpop.f32.mrf.mxu2  ;;  %v3384_v36 = vpop.f32.mrf.mxu3 }
0x2080   :  { %3410 = vmatpush.msrb.mxu0 %v3384_v36  ;;  %3439 = vmatpush.msrb.mxu1 %v3342_v32 }
0x2082   :  { %3411 = vmatpush.msrb.mxu0 %v3381_v29  ;;  %3440 = vmatpush.msrb.mxu1 %v3339_v49 }
0x2083   :  { %5511 = vmatmul.msk.f32.vlgmr.msrb.gmra.mxu1 %vm1624_vm8, %v3345_v39  ;;  %5509 = vmatmul.msk.f32.vlgmr.msrb.gmra.mxu0 %vm1624_vm8, %v5507_v42 }
0x2084   :  { %3465 = vmatpush.msra.mxu0 %v3464_v37 }
0x2086   :  { %3466 = vmatpush.msra.mxu0 %v3463_v4 }
0x2088   :  { %3467 = vmatpush.msra.mxu0 %v3462_v50 }
0x208a   :  { %3468 = vmatpush.msra.mxu0 %v3461_v45  ;;  %v5740_v45 = vld [vmem:[%s6358_s14] sm:$0xff]  ;;  %s7638_s14 = sld [smem:[#allocation42_spill]] }
0x208b   :  { %5512 = vmatmul.msk.f32.gmra.mxu1 %vm1624_vm8, %v3346_v47  ;;  %5510 = vmatmul.msk.f32.gmra.mxu0 %vm1624_vm8, %v5508_v48  ;;  %v3864_v48 = vld [vmem:[#allocation10 + $0xf8] sm:$0xff] }
0x208c   :  { %3469 = vmatpush.msra.mxu0 %v3460_v46 }
0x208e   :  { %3470 = vmatpush.msra.mxu0 %v3459_v19  ;;  %v3819_v19 = vld [vmem:[#allocation10 + $0x70] sm:$0xff] }
0x2090   :  { %3471 = vmatpush.msra.mxu0 %v3458_v40  ;;  %v3863_v40 = vld [vmem:[#allocation10 + $0xf0] sm:$0xff] }
0x2092   :  { %3472 = vmatpush.msra.mxu0 %v3457_v34  ;;  %v3818_v34 = vld [vmem:[#allocation10 + $0x68] sm:$0xff] }
0x2094   :  { %3473 = vmatpush.msra.mxu0 %v3456_v51  ;;  %v3862_v51 = vld [vmem:[#allocation10 + $0xe8] sm:$0xff] }
0x2096   :  { %3474 = vmatpush.msra.mxu0 %v3455_v52  ;;  %v3860_v52 = vld [vmem:[#allocation10 + $0xd8] sm:$0xff] }
0x2098   :  { %3475 = vmatpush.msra.mxu0 %v3454_v53  ;;  %v3815_v53 = vld [vmem:[#allocation10 + $0x50] sm:$0xff] }
0x209a   :  { %3476 = vmatpush.msra.mxu0 %v3453_v54  ;;  %v3859_v54 = vld [vmem:[#allocation10 + $0xd0] sm:$0xff] }
0x209c   :  { %3477 = vmatpush.msra.mxu0 %v3452_v55  ;;  %v3814_v55 = vld [vmem:[#allocation10 + $0x48] sm:$0xff] }
0x209e   :  { %3478 = vmatpush.msra.mxu0 %v3451_v57  ;;  %v3858_v57 = vld [vmem:[#allocation10 + $0xc8] sm:$0xff] }
0x20a0   :  { %3479 = vmatpush.msra.mxu0 %v3450_v58  ;;  %v3813_v58 = vld [vmem:[#allocation10 + $0x40] sm:$0xff] }
0x20a2   :  { %3480 = vmatpush.msra.mxu0 %v3449_v61  ;;  %v3857_v61 = vld [vmem:[#allocation10 + $0xc0] sm:$0xff] }
0x20a3   :  { %3481 = vmatmul.f32.vlgmr.msra.gmra.mxu0 %v3302_v16 }
0x20ab   :  { %3484 = vmatmul.f32.gmra.mxu0 %v3303_v27 }
0x2100   :  { %v3413_v63 = vpop.f32.mrf.mxu0  ;;  %v3442_v1 = vpop.f32.mrf.mxu1 }
0x2101   :  { %v3443_v16 = vadd.f32 %v3442_v1, %v3413_v63  ;;  %v3812_v63 = vld [vmem:[#allocation10 + $0x38] sm:$0xff]  ;;  %v3853_v1 = vld [vmem:[#allocation10 + $0xa0] sm:$0xff] }
0x2108   :  { %v3416_v13 = vpop.f32.mrf.mxu0  ;;  %v3445_v14 = vpop.f32.mrf.mxu1 }
0x2109   :  { %v3446_v17 = vadd.f32 %v3445_v14, %v3416_v13  ;;  %v3856_v13 = vld [vmem:[#allocation10 + $0xb8] sm:$0xff] }
0x2120   :  { %v3482_v2 = vpop.f32.mrf.mxu0 }
0x2128   :  { %v3485_v18 = vpop.f32.mrf.mxu0 }
0x2129   :  { %3511 = vmatpush.msra.mxu1 %v3485_v18  ;;  %v3855_v18 = vld [vmem:[#allocation10 + $0xb0] sm:$0xff] }
0x212b   :  { %3512 = vmatpush.msra.mxu1 %v3482_v2  ;;  %v3811_v2 = vld [vmem:[#allocation10 + $0x30] sm:$0xff] }
0x212c   :  { %5515 = vmatmul.msk.f32.vlgmr.msra.gmra.mxu1 %vm1624_vm8, %v5513_v0  ;;  %v3810_v0 = vld [vmem:[#allocation10 + $0x28] sm:$0xff] }
0x212d   :  { %3614 = vmatpush.msrb.mxu1 %v7086_v3 }
0x212f   :  { %3615 = vmatpush.msrb.mxu1 %v7090_v62 }
0x2131   :  { %5529 = vmatpush.msk.msra.mxu1 %vm1087_vm2, %v3744_v21  ;;  %v3854_v21 = vld [vmem:[#allocation10 + $0xa8] sm:$0xff] }
0x2134   :  { %5516 = vmatmul.msk.f32.gmra.mxu1 %vm1624_vm8, %v5514_v41  ;;  %v3809_v41 = vld [vmem:[#allocation10 + $0x20] sm:$0xff] }
0x21a9   :  { %v3514_v15 = vpop.f32.mrf.mxu1 }
0x21aa   :  { %v3520_v25 = vadd.f32 %v3514_v15, %v3443_v16  ;;  %v3808_v16 = vld [vmem:[#allocation10 + $0x18] sm:$0xff] }
0x21ac   :  { %v3525_v29 = vadd.f32 %v5678_v26, %v3520_v25  ;;  %v3851_v25 = vld [vmem:[#allocation10 + $0x90] sm:$0xff] }
0x21b1   :  { %v3517_v60 = vpop.f32.mrf.mxu1 }
0x21b2   :  { %v3521_v27 = vadd.f32 %v3517_v60, %v3446_v17  ;;  %v3852_v17 = vld [vmem:[#allocation10 + $0x98] sm:$0xff]  ;;  %v3807_v60 = vld [vmem:[#allocation10 + $0x10] sm:$0xff] }
0x21b4   :  { %v3526_v49 = vadd.f32 %v5678_v26, %v3521_v27  ;;  %v3806_v26 = vld [vmem:[#allocation10 + $0x8] sm:$0xff] }
0x21b5   :  { %v3850_v27 = vld [vmem:[#allocation10 + $0x88] sm:$0xff] }
0x21b6   :  { %3541 = vmatpush.msrb.mxu0 %v3526_v49 }
0x21b8   :  { %3542 = vmatpush.msrb.mxu0 %v3525_v29 }
0x21b9   :  { %5517 = vmatmul.msk.f32.vlgmr.msrb.gmra.mxu0 %vm1624_vm8, %v7168_v44 }
0x2236   :  { %v3544_v32 = vpop.f32.mrf.mxu0 }
0x2237   :  { %3563 = vmatmul.f32.vlgmr.msrb.gmra.mxu3 %v3544_v32 }
0x22ba   :  { %v3564_v36 = vpop.f32.mrf.mxu3 }
0x22bb   :  { %v3567_v37 = vmul.f32 0.015625, %v3564_v36 }
0x22bd   :  { %5518 = vmatpush.msk.msra.mxu2 %vm1087_vm2, %v3567_v37 }
0x22be   :  { %5519 = vmatmul.msk.f32.vlgmr.msra.gmra.mxu2 %vm1074_vm3, %v7076_v31 }
0x22bf   :  { %3647 = vmatpush.msrb.mxu2 %v7019_v7 }
0x22c1   :  { %3648 = vmatpush.msrb.mxu2 %v7023_v30 }
0x22c3   :  { %3649 = vmatpush.msrb.mxu2 %v7027_v35 }
0x22c5   :  { %3650 = vmatpush.msrb.mxu2 %v7031_v9 }
0x22c6   :  { %5520 = vmatmul.msk.f32.gmra.mxu2 %vm1074_vm3, %v7175_v8 }
0x22c7   :  { %3651 = vmatpush.msrb.mxu2 %v7037_v33 }
0x22c9   :  { %3652 = vmatpush.msrb.mxu2 %v7041_v10 }
0x22cb   :  { %3653 = vmatpush.msrb.mxu2 %v7045_v11 }
0x22cd   :  { %3654 = vmatpush.msrb.mxu2 %v7049_v12 }
0x22cf   :  { %3655 = vmatpush.msrb.mxu2 %v7133_v20 }
0x22d1   :  { %3656 = vmatpush.msrb.mxu2 %v7137_v6 }
0x22d3   :  { %3657 = vmatpush.msrb.mxu2 %v7141_v24 }
0x22d5   :  { %3658 = vmatpush.msrb.mxu2 %v7145_v28 }
0x22d7   :  { %3659 = vmatpush.msrb.mxu2 %v7149_v59 }
0x22d9   :  { %3660 = vmatpush.msrb.mxu2 %v7153_v22 }
0x22db   :  { %3661 = vmatpush.msrb.mxu2 %v7157_v5 }
0x22dd   :  { %3662 = vmatpush.msrb.mxu2 %v7161_v23 }
0x2341   :  { %v3588_v7 = vpop.f32.mrf.mxu2 }
0x2342   :  { %5521 = vmatmul.msk.f32.vlgmr.msrb.gmra.mxu1 %vm1624_vm8, %v3588_v7 }
0x2343   :  { %3865 = vmatpush.msrb.mxu1 %v3864_v48  ;;  %v4075_v48 = vld [vmem:[#allocation10 + $0x1c8] sm:$0xff] }
0x2345   :  { %3866 = vmatpush.msrb.mxu1 %v3863_v40  ;;  %v4074_v40 = vld [vmem:[#allocation10 + $0x1c0] sm:$0xff] }
0x2347   :  { %3867 = vmatpush.msrb.mxu1 %v3862_v51  ;;  %v3846_v51 = vld [vmem:[%s7638_s14 + $0x10] sm:$0xff] }
0x2349   :  { %v3591_v30 = vpop.f32.mrf.mxu2 }
0x234a   :  { %5522 = vmatmul.msk.f32.gmra.mxu1 %vm1624_vm8, %v3591_v30 }
0x2352   :  { %5530 = vmatmul.msk.f32.vlgmr.msra.gmra.mxu1 %vm1074_vm3, %v7076_v31 }
0x235a   :  { %5531 = vmatmul.msk.f32.gmra.mxu1 %vm1074_vm3, %v7175_v8 }
0x23bf   :  { %v3617_v35 = vpop.f32.mrf.mxu1 }
0x23c0   :  { %v7289_v33 = vsub.f32 %v3525_v29, %v3617_v35  ;;  %v3849_v29 = vld [vmem:[#allocation10 + $0x80] sm:$0xff] }
0x23c2   :  { %v3625_v12 = vmul.f32 %v7289_v33, %v7289_v33 }
0x23c7   :  { %v3620_v9 = vpop.f32.mrf.mxu1 }
0x23c8   :  { %v7291_v10 = vsub.f32 %v3526_v49, %v3620_v9  ;;  %v3805_v49 = vld [vmem:[#allocation10] sm:$0xff] }
0x23ca   :  { %v3626_v11 = vmul.f32 %v7291_v10, %v7291_v10 }
0x23cc   :  { %3641 = vmatpush.msra.mxu0 %v3626_v11 }
0x23ce   :  { %3642 = vmatpush.msra.mxu0 %v3625_v12 }
0x23cf   :  { %5523 = vmatmul.msk.f32.vlgmr.msra.gmra.mxu0 %vm1624_vm8, %v7168_v44  ;;  %v3764_v46 = vpop.f32.mrf.mxu1 }
0x23d0   :  { %3732 = vmatpush.msrb.mxu0 %v7086_v3 }
0x23d2   :  { %3733 = vmatpush.msrb.mxu0 %v7090_v62 }
0x23d7   :  { %v3767_v47 = vpop.f32.mrf.mxu1 }
0x244c   :  { %v3644_v31 = vpop.f32.mrf.mxu0 }
0x244d   :  { %3663 = vmatmul.f32.vlgmr.msrb.gmra.mxu2 %v3644_v31 }
0x24d0   :  { %v3664_v20 = vpop.f32.mrf.mxu2 }
0x24d1   :  { %v3667_v6 = vmul.f32 0.015625, %v3664_v20 }
0x24d3   :  { %v3668_v24 = vadd.f32 1e-05, %v3667_v6 }
0x24d5   :  { %5693 = vrsqrt.f32 %v3668_v24  ;;  %vm3675_vm10 = vweird.f32 %v3668_v24 }
0x24db   :  { %v5694_v28 = vpop.eup %5693 }
0x24dc   :  { %v3670_v59 = vmul.f32 %v5694_v28, %v3668_v24  ;;  %vm3676_vm9 = vweird.f32 %v5694_v28  ;;  %v5535_v24 = vld [vmem:[%s7638_s14 + $0x20] sm:$0xff] }
0x24dd   :  { %vm3677_vm11 = vmor %vm3675_vm10, %vm3676_vm9 }
0x24de   :  { %v3671_v22 = vmul.f32 %v5694_v28, %v3670_v59  ;;  %v3991_v59 = vld [vmem:[#allocation10 + $0x178] sm:$0xff] }
0x24e0   :  { %v3672_v5 = vmul.f32 0.5, %v3671_v22  ;;  %v4081_v22 = vld [vmem:[#allocation10 + $0x1f8] sm:$0xff] }
0x24e2   :  { %v3673_v23 = vsub.f32 1.5, %v3672_v5  ;;  %v3989_v5 = vld [vmem:[#allocation10 + $0x168] sm:$0xff] }
0x24e4   :  { %v3674_v39 = vmul.f32 %v5694_v28, %v3673_v23  ;;  %v4079_v23 = vld [vmem:[#allocation10 + $0x1e8] sm:$0xff] }
0x24e6   :  { %v3678_v44 = vsel %vm3677_vm11, %v5694_v28, %v3674_v39  ;;  %v3844_v28 = vld [vmem:[%s7638_s14] sm:$0xff]  ;;  %v3988_v39 = vld [vmem:[#allocation10 + $0x160] sm:$0xff] }
0x24e7   :  { %3680 = vrot.lane.b32.xlu1 %v3678_v44, %s6177_s12  ;;  %v4078_v44 = vld [vmem:[#allocation10 + $0x1e0] sm:$0xff] }
0x2559   :  { %v3681_v42 = vpop.permute.xlu1 %3680 }
0x255a   :  { %v3683_v4 = vmul.f32 %v3681_v42, %v7115_v56  ;;  %v3820_v56 = vld [vmem:[#allocation10 + $0x78] sm:$0xff] }
0x255b   :  { %3821 = vmatpush.msra.mxu0 %v3820_v56  ;;  %v5536_v42 = vld [vmem:[%s7638_s14 + $0x28] sm:$0xff]  ;;  %v3985_v56 = vld [vmem:[#allocation10 + $0x148] sm:$0xff] }
0x255c   :  { %3685 = vrot.lane.b32.xlu1 %v3683_v4, %s6178_s18  ;;  %v3845_v4 = vld [vmem:[%s7638_s14 + $0x8] sm:$0xff] }
0x255d   :  { %3822 = vmatpush.msra.mxu0 %v3819_v19  ;;  %v3984_v19 = vld [vmem:[#allocation10 + $0x140] sm:$0xff] }
0x255f   :  { %3823 = vmatpush.msra.mxu0 %v3818_v34  ;;  %v5537_v34 = vld [vmem:[%s7638_s14 + $0x30] sm:$0xff] }
0x25ce   :  { %v3686_v50 = vpop.permute.xlu1 %3685 }
0x25cf   :  { %5524 = vmatpush.msk.msra.mxu3 %vm1087_vm2, %v3686_v50  ;;  %v3987_v50 = vld [vmem:[#allocation10 + $0x158] sm:$0xff] }
0x25d0   :  { %5525 = vmatmul.msk.f32.vlgmr.msra.gmra.mxu3 %vm1074_vm3, %v5740_v45  ;;  %v4077_v45 = vld [vmem:[#allocation10 + $0x1d8] sm:$0xff] }
0x25d1   :  { %3790 = vmatpush.msrb.mxu3 %v7086_v3  ;;  %v3817_v3 = vld [vmem:[#allocation10 + $0x60] sm:$0xff] }
0x25d2   :  { %3824 = vmatpush.msra.mxu0 %v3817_v3  ;;  %v3983_v3 = vld [vmem:[#allocation10 + $0x138] sm:$0xff] }
0x25d3   :  { %3791 = vmatpush.msrb.mxu3 %v7090_v62  ;;  %v3861_v62 = vld [vmem:[#allocation10 + $0xe0] sm:$0xff] }
0x25d4   :  { %3868 = vmatpush.msrb.mxu1 %v3861_v62  ;;  %v4073_v62 = vld [vmem:[#allocation10 + $0x1b8] sm:$0xff] }
0x25d6   :  { %3869 = vmatpush.msrb.mxu1 %v3860_v52  ;;  %v4072_v52 = vld [vmem:[#allocation10 + $0x1b0] sm:$0xff] }
0x25d8   :  { %5526 = vmatmul.msk.f32.gmra.mxu3 %vm1074_vm3, %v7175_v8  ;;  %v3816_v8 = vld [vmem:[#allocation10 + $0x58] sm:$0xff]  ;;  %3870 = vmatpush.msrb.mxu1 %v3859_v54  ;;  %v4071_v54 = vld [vmem:[#allocation10 + $0x1a8] sm:$0xff] }
0x25d9   :  { %3825 = vmatpush.msra.mxu0 %v3816_v8  ;;  %v3982_v8 = vld [vmem:[#allocation10 + $0x130] sm:$0xff] }
0x25da   :  { %3871 = vmatpush.msrb.mxu1 %v3858_v57  ;;  %v4070_v57 = vld [vmem:[#allocation10 + $0x1a0] sm:$0xff] }
0x25db   :  { %3826 = vmatpush.msra.mxu0 %v3815_v53  ;;  %v3981_v53 = vld [vmem:[#allocation10 + $0x128] sm:$0xff] }
0x25dc   :  { %3872 = vmatpush.msrb.mxu1 %v3857_v61  ;;  %v3847_v61 = vld [vmem:[%s7638_s14 + $0x18] sm:$0xff] }
0x25dd   :  { %3827 = vmatpush.msra.mxu0 %v3814_v55  ;;  %v3980_v55 = vld [vmem:[#allocation10 + $0x120] sm:$0xff] }
0x25de   :  { %3873 = vmatpush.msrb.mxu1 %v3856_v13  ;;  %v4069_v13 = vld [vmem:[#allocation10 + $0x198] sm:$0xff] }
0x25df   :  { %3828 = vmatpush.msra.mxu0 %v3813_v58  ;;  %v5538_v58 = vld [vmem:[%s7638_s14 + $0x38] sm:$0xff] }
0x25e0   :  { %5532 = vmatmul.msk.f32.vlgmr.msrb.gmra.mxu3 %vm1624_vm8, %v3764_v46  ;;  %3874 = vmatpush.msrb.mxu1 %v3855_v18  ;;  %v3986_v46 = vld [vmem:[#allocation10 + $0x150] sm:$0xff] }
0x25e1   :  { %3829 = vmatpush.msra.mxu0 %v3812_v63  ;;  %v3979_v63 = vld [vmem:[#allocation10 + $0x118] sm:$0xff]  ;;  %v4068_v18 = vld [vmem:[#allocation10 + $0x190] sm:$0xff] }
0x25e2   :  { %3875 = vmatpush.msrb.mxu1 %v3854_v21  ;;  %v4067_v21 = vld [vmem:[#allocation10 + $0x188] sm:$0xff] }
0x25e3   :  { %3830 = vmatpush.msra.mxu0 %v3811_v2  ;;  %v3978_v2 = vld [vmem:[#allocation10 + $0x110] sm:$0xff] }
0x25e4   :  { %3876 = vmatpush.msrb.mxu1 %v3853_v1  ;;  %v4066_v1 = vld [vmem:[#allocation10 + $0x180] sm:$0xff] }
0x25e5   :  { %3831 = vmatpush.msra.mxu0 %v3810_v0  ;;  %v3977_v0 = vld [vmem:[#allocation10 + $0x108] sm:$0xff] }
0x25e6   :  { %3877 = vmatpush.msrb.mxu1 %v3852_v17 }
0x25e7   :  { %3832 = vmatpush.msra.mxu0 %v3809_v41  ;;  %v3976_v41 = vld [vmem:[#allocation10 + $0x100] sm:$0xff] }
0x25e8   :  { %5533 = vmatmul.msk.f32.gmra.mxu3 %vm1624_vm8, %v3767_v47  ;;  %3878 = vmatpush.msrb.mxu1 %v3851_v25  ;;  %v4076_v47 = vld [vmem:[#allocation10 + $0x1d0] sm:$0xff] }
0x25e9   :  { %3833 = vmatpush.msra.mxu0 %v3808_v16 }
0x25ea   :  { %3879 = vmatpush.msrb.mxu1 %v3850_v27 }
0x25eb   :  { %3834 = vmatpush.msra.mxu0 %v3807_v60 }
0x25ec   :  { %3880 = vmatpush.msrb.mxu1 %v3849_v29 }
0x25ed   :  { %3835 = vmatpush.msra.mxu0 %v3806_v26 }
0x25ef   :  { %3836 = vmatpush.msra.mxu0 %v3805_v49 }
0x2653   :  { %v3706_v14 = vpop.f32.mrf.mxu3 }
0x2654   :  { %5527 = vmatmul.msk.f32.vlgmr.msrb.gmra.mxu0 %vm1624_vm8, %v3706_v14 }
0x265b   :  { %v3709_v15 = vpop.f32.mrf.mxu3 }
0x265c   :  { %5528 = vmatmul.msk.f32.gmra.mxu0 %vm1624_vm8, %v3709_v15 }
0x2663   :  { %v3793_v32 = vpop.f32.mrf.mxu3 }
0x266b   :  { %v3796_v9 = vpop.f32.mrf.mxu3 }
0x26d1   :  { %v3735_v36 = vpop.f32.mrf.mxu0 }
0x26d2   :  { %v3741_v37 = vmul.f32 %v3735_v36, %v7289_v33 }
0x26d4   :  { %v3799_v7 = vadd.f32 %v3793_v32, %v3741_v37 }
0x26d6   :  { %v7315_v30 = vadd.f32 %v3799_v7, %v7097_v38  ;;  %v5547_v7 = vld [vmem:[%s7638_s14 + $0x40] sm:$0xff] }
0x26d8   :  { %3837 = vmatmul.f32.vlgmr.msra.gmra.mxu0 %v7315_v30  ;;  %3881 = vmatmul.f32.vlgmr.msrb.gmra.mxu1 %v7315_v30 }
0x26d9   :  { %v3738_v35 = vpop.f32.mrf.mxu0 }
0x26da   :  { %v3742_v11 = vmul.f32 %v3738_v35, %v7291_v10  ;;  %v4080_v10 = vld [vmem:[#allocation10 + $0x1f0] sm:$0xff] }
0x26db   :  { %v5555_v35 = vld [vmem:[%s7638_s14 + $0x60] sm:$0xff] }
0x26dc   :  { %v3800_v12 = vadd.f32 %v3796_v9, %v3742_v11  ;;  %v4171_v9 = vld [vmem:[#allocation10 + $0x278] sm:$0xff]  ;;  %v4170_v11 = vld [vmem:[#allocation10 + $0x270] sm:$0xff] }
0x26de   :  { %v7321_v31 = vadd.f32 %v3800_v12, %v7103_v43  ;;  %v3990_v43 = vld [vmem:[#allocation10 + $0x170] sm:$0xff]  ;;  %v4169_v12 = vld [vmem:[#allocation10 + $0x268] sm:$0xff] }
0x26e0   :  { %3840 = vmatmul.f32.gmra.mxu0 %v7321_v31  ;;  %3884 = vmatmul.f32.gmra.mxu1 %v7321_v31 }
0x2755   :  { %v3838_v38 = vpop.f32.mrf.mxu0  ;;  %v3882_v33 = vpop.f32.mrf.mxu1 }
0x275d   :  { %v3841_v20 = vpop.f32.mrf.mxu0  ;;  %v3885_v6 = vpop.f32.mrf.mxu1 }
0x275e   :  { %3919 = vmatpush.msra.mxu2 %v3885_v6  ;;  %3960 = vmatpush.msra.mxu3 %v3841_v20  ;;  %v5556_v20 = vld [vmem:[%s7638_s14 + $0x68] sm:$0xff] }
0x275f   :  { %v4167_v6 = vld [vmem:[#allocation10 + $0x258] sm:$0xff] }
0x2760   :  { %3920 = vmatpush.msra.mxu2 %v3882_v33  ;;  %3961 = vmatpush.msra.mxu3 %v3838_v38  ;;  %v4168_v38 = vld [vmem:[#allocation10 + $0x260] sm:$0xff]  ;;  %v5548_v33 = vld [vmem:[%s7638_s14 + $0x48] sm:$0xff] }
0x2761   :  { %5539 = vmatmul.msk.f32.vlgmr.msra.gmra.mxu2 %vm1624_vm8, %v5535_v24  ;;  %5543 = vmatmul.msk.f32.vlgmr.msra.gmra.mxu3 %vm1624_vm8, %v3844_v28  ;;  %v4166_v24 = vld [vmem:[#allocation10 + $0x250] sm:$0xff]  ;;  %v4165_v28 = vld [vmem:[#allocation10 + $0x248] sm:$0xff] }
0x2762   :  { %3992 = vmatpush.msrb.mxu2 %v3991_v59  ;;  %4082 = vmatpush.msrb.mxu3 %v4081_v22  ;;  %v4164_v59 = vld [vmem:[#allocation10 + $0x240] sm:$0xff] }
0x2763   :  { %v5549_v22 = vld [vmem:[%s7638_s14 + $0x50] sm:$0xff] }
0x2764   :  { %3993 = vmatpush.msrb.mxu2 %v3990_v43  ;;  %4083 = vmatpush.msrb.mxu3 %v4080_v10  ;;  %v5557_v43 = vld [vmem:[%s7638_s14 + $0x70] sm:$0xff]  ;;  %v4163_v10 = vld [vmem:[#allocation10 + $0x238] sm:$0xff] }
0x2766   :  { %3994 = vmatpush.msrb.mxu2 %v3989_v5  ;;  %4084 = vmatpush.msrb.mxu3 %v4079_v23  ;;  %v4162_v5 = vld [vmem:[#allocation10 + $0x230] sm:$0xff]  ;;  %v4161_v23 = vld [vmem:[#allocation10 + $0x228] sm:$0xff] }
0x2768   :  { %3995 = vmatpush.msrb.mxu2 %v3988_v39  ;;  %4085 = vmatpush.msrb.mxu3 %v4078_v44  ;;  %v4160_v39 = vld [vmem:[#allocation10 + $0x220] sm:$0xff]  ;;  %v5550_v44 = vld [vmem:[%s7638_s14 + $0x58] sm:$0xff] }
0x2769   :  { %5540 = vmatmul.msk.f32.gmra.mxu2 %vm1624_vm8, %v5536_v42  ;;  %5544 = vmatmul.msk.f32.gmra.mxu3 %vm1624_vm8, %v3845_v4  ;;  %v5558_v42 = vld [vmem:[%s7638_s14 + $0x78] sm:$0xff]  ;;  %v4159_v4 = vld [vmem:[#allocation10 + $0x218] sm:$0xff] }
0x276a   :  { %3996 = vmatpush.msrb.mxu2 %v3987_v50  ;;  %4086 = vmatpush.msrb.mxu3 %v4077_v45  ;;  %v4158_v50 = vld [vmem:[#allocation10 + $0x210] sm:$0xff]  ;;  %v4157_v45 = vld [vmem:[#allocation10 + $0x208] sm:$0xff] }
0x276c   :  { %3997 = vmatpush.msrb.mxu2 %v3986_v46  ;;  %4087 = vmatpush.msrb.mxu3 %v4076_v47  ;;  %v4156_v46 = vld [vmem:[#allocation10 + $0x200] sm:$0xff] }
0x276e   :  { %3998 = vmatpush.msrb.mxu2 %v3985_v56  ;;  %4088 = vmatpush.msrb.mxu3 %v4075_v48 }
0x2770   :  { %3999 = vmatpush.msrb.mxu2 %v3984_v19  ;;  %4089 = vmatpush.msrb.mxu3 %v4074_v40 }
0x2771   :  { %5541 = vmatmul.msk.f32.gmra.mxu2 %vm1624_vm8, %v5537_v34  ;;  %5545 = vmatmul.msk.f32.gmra.mxu3 %vm1624_vm8, %v3846_v51 }
0x2772   :  { %4000 = vmatpush.msrb.mxu2 %v3983_v3  ;;  %4090 = vmatpush.msrb.mxu3 %v4073_v62  ;;  %v5563_v3 = vld [vmem:[%s7638_s14 + $0x80] sm:$0xff]  ;;  %v5564_v62 = vld [vmem:[%s7638_s14 + $0x88] sm:$0xff] }
0x2774   :  { %4001 = vmatpush.msrb.mxu2 %v3982_v8  ;;  %4091 = vmatpush.msrb.mxu3 %v4072_v52 }
0x2776   :  { %4002 = vmatpush.msrb.mxu2 %v3981_v53  ;;  %4092 = vmatpush.msrb.mxu3 %v4071_v54  ;;  %v6179_v54 = vmov 1.0  }
0x2778   :  { %4003 = vmatpush.msrb.mxu2 %v3980_v55  ;;  %4093 = vmatpush.msrb.mxu3 %v4070_v57 }
0x2779   :  { %5542 = vmatmul.msk.f32.gmra.mxu2 %vm1624_vm8, %v5538_v58  ;;  %5546 = vmatmul.msk.f32.gmra.mxu3 %vm1624_vm8, %v3847_v61 }
0x277a   :  { %4004 = vmatpush.msrb.mxu2 %v3979_v63  ;;  %4094 = vmatpush.msrb.mxu3 %v4069_v13 }
0x277c   :  { %4005 = vmatpush.msrb.mxu2 %v3978_v2  ;;  %4095 = vmatpush.msrb.mxu3 %v4068_v18 }
0x277e   :  { %4006 = vmatpush.msrb.mxu2 %v3977_v0  ;;  %4096 = vmatpush.msrb.mxu3 %v4067_v21 }
0x2780   :  { %4007 = vmatpush.msrb.mxu2 %v3976_v41  ;;  %4097 = vmatpush.msrb.mxu3 %v4066_v1 }
0x2781   :  { %4008 = vmatmul.f32.vlgmr.msrb.gmra.mxu2 %v7315_v30  ;;  %4098 = vmatmul.f32.vlgmr.msrb.gmra.mxu3 %v7315_v30 }
0x2789   :  { %4011 = vmatmul.f32.gmra.mxu2 %v7321_v31  ;;  %4101 = vmatmul.f32.gmra.mxu3 %v7321_v31 }
0x27e4   :  { %v7345_v14 = vpop.f32.mrf.mxu2  ;;  %v7347_v15 = vpop.f32.mrf.mxu3 }
0x27e5   :  { %v3964_v18 = vadd.f32 %v7347_v15, %v7345_v14 }
0x27ec   :  { %v7349_v16 = vpop.f32.mrf.mxu2  ;;  %v7351_v17 = vpop.f32.mrf.mxu3 }
0x27ed   :  { %v3967_v63 = vadd.f32 %v7351_v17, %v7349_v16 }
0x27f4   :  { %v7353_v60 = vpop.f32.mrf.mxu2  ;;  %v7355_v25 = vpop.f32.mrf.mxu3 }
0x27f5   :  { %v3970_v61 = vadd.f32 %v7355_v25, %v7353_v60 }
0x27fc   :  { %v3931_v26 = vpop.f32.mrf.mxu2  ;;  %v3972_v27 = vpop.f32.mrf.mxu3 }
0x27fd   :  { %v7357_v49 = vadd.f32 %v3972_v27, %v3931_v26  ;;  %v5679_v26 = vld [vmem:[%s7625_s4 + $0x6] ss:$0 sm:$0xff] }
0x2804   :  { %v4009_v29 = vpop.f32.mrf.mxu2  ;;  %v4099_v32 = vpop.f32.mrf.mxu3 }
0x280c   :  { %v4012_v36 = vpop.f32.mrf.mxu2  ;;  %v4102_v37 = vpop.f32.mrf.mxu3 }
0x280d   :  { %4046 = vmatpush.msrb.mxu0 %v4012_v36  ;;  %4136 = vmatpush.msra.mxu1 %v4102_v37  ;;  %v5741_v37 = vld [vmem:[%s7626_s1] sm:$0x3] }
0x280f   :  { %4047 = vmatpush.msrb.mxu0 %v4009_v29  ;;  %4137 = vmatpush.msra.mxu1 %v4099_v32 }
0x2810   :  { %5551 = vmatmul.msk.f32.vlgmr.msrb.gmra.mxu0 %vm1624_vm8, %v5547_v7  ;;  %5559 = vmatmul.msk.f32.vlgmr.msra.gmra.mxu1 %vm1624_vm8, %v5555_v35 }
0x2811   :  { %4172 = vmatpush.msra.mxu0 %v4171_v9  ;;  %4274 = vmatpush.msrb.mxu1 %v6179_v54  ;;  %v5742_v9 = vld [vmem:[%s6348_s17] sm:$0xff] }
0x2813   :  { %4173 = vmatpush.msra.mxu0 %v4170_v11  ;;  %4275 = vmatpush.msrb.mxu1 %v6179_v54  ;;  %v5743_v11 = vld [vmem:[%s6348_s17 + $0x8] sm:$0xff] }
0x2815   :  { %4174 = vmatpush.msra.mxu0 %v4169_v12  ;;  %4276 = vmatpush.msrb.mxu1 %v6179_v54  ;;  %v5744_v12 = vld [vmem:[%s6348_s17 + $0x10] sm:$0xff] }
0x2817   :  { %4175 = vmatpush.msra.mxu0 %v4168_v38  ;;  %4277 = vmatpush.msrb.mxu1 %v6179_v54  ;;  %v5745_v38 = vld [vmem:[%s6348_s17 + $0x18] sm:$0xff] }
0x2818   :  { %5552 = vmatmul.msk.f32.gmra.mxu0 %vm1624_vm8, %v5548_v33  ;;  %5560 = vmatmul.msk.f32.gmra.mxu1 %vm1624_vm8, %v5556_v20 }
0x2819   :  { %4176 = vmatpush.msra.mxu0 %v4167_v6  ;;  %4278 = vmatpush.msrb.mxu1 %v6179_v54 }
0x281b   :  { %4177 = vmatpush.msra.mxu0 %v4166_v24  ;;  %4279 = vmatpush.msrb.mxu1 %v6179_v54 }
0x281d   :  { %4178 = vmatpush.msra.mxu0 %v4165_v28  ;;  %4280 = vmatpush.msrb.mxu1 %v6179_v54 }
0x281f   :  { %4179 = vmatpush.msra.mxu0 %v4164_v59  ;;  %4281 = vmatpush.msrb.mxu1 %v6179_v54 }
0x2820   :  { %5553 = vmatmul.msk.f32.gmra.mxu0 %vm1624_vm8, %v5549_v22  ;;  %5561 = vmatmul.msk.f32.gmra.mxu1 %vm1624_vm8, %v5557_v43 }
0x2821   :  { %4180 = vmatpush.msra.mxu0 %v4163_v10  ;;  %4282 = vmatpush.msrb.mxu1 %v6179_v54 }
0x2823   :  { %4181 = vmatpush.msra.mxu0 %v4162_v5  ;;  %4283 = vmatpush.msrb.mxu1 %v6179_v54 }
0x2825   :  { %4182 = vmatpush.msra.mxu0 %v4161_v23  ;;  %4284 = vmatpush.msrb.mxu1 %v6179_v54 }
0x2827   :  { %4183 = vmatpush.msra.mxu0 %v4160_v39  ;;  %4285 = vmatpush.msrb.mxu1 %v6179_v54 }
0x2828   :  { %5554 = vmatmul.msk.f32.gmra.mxu0 %vm1624_vm8, %v5550_v44  ;;  %5562 = vmatmul.msk.f32.gmra.mxu1 %vm1624_vm8, %v5558_v42 }
0x2829   :  { %4184 = vmatpush.msra.mxu0 %v4159_v4  ;;  %4286 = vmatpush.msrb.mxu1 %v6179_v54 }
0x282b   :  { %4185 = vmatpush.msra.mxu0 %v4158_v50  ;;  %4287 = vmatpush.msrb.mxu1 %v6179_v54 }
0x282d   :  { %4186 = vmatpush.msra.mxu0 %v4157_v45  ;;  %4288 = vmatpush.msrb.mxu1 %v6179_v54 }
0x282f   :  { %4187 = vmatpush.msra.mxu0 %v4156_v46  ;;  %4289 = vmatpush.msrb.mxu1 %v6179_v54 }
0x2830   :  { %4188 = vmatmul.f32.vlgmr.msra.gmra.mxu0 %v7315_v30  ;;  %v5565_v30 = vld [vmem:[%s7638_s14 + $0x90] sm:$0xff] }
0x2838   :  { %4191 = vmatmul.f32.gmra.mxu0 %v7321_v31  ;;  %v5566_v31 = vld [vmem:[%s7638_s14 + $0x98] sm:$0xff] }
0x288d   :  { %v4049_v47 = vpop.f32.mrf.mxu0  ;;  %v4139_v8 = vpop.f32.mrf.mxu1 }
0x288e   :  { %v4061_v21 = vadd.f32 %v4049_v47, %v3964_v18  ;;  %v4561_v47 = vld [vmem:[#allocation12 + $0x78] sm:$0xff] }
0x2890   :  { %v4151_v27 = vadd.f32 %v4139_v8, %v4061_v21  ;;  %v4606_v8 = vld [vmem:[#allocation12 + $0xd0] sm:$0xff]  ;;  %v4601_v21 = vld [vmem:[#allocation12 + $0xa8] sm:$0xff] }
0x2895   :  { %v4052_v56 = vpop.f32.mrf.mxu0  ;;  %v4142_v52 = vpop.f32.mrf.mxu1 }
0x2896   :  { %v4062_v0 = vadd.f32 %v4052_v56, %v3967_v63  ;;  %v4611_v56 = vld [vmem:[#allocation12 + $0xf8] sm:$0xff] }
0x2897   :  { %v4603_v63 = vld [vmem:[#allocation12 + $0xb8] sm:$0xff] }
0x2898   :  { %v4152_v25 = vadd.f32 %v4142_v52, %v4062_v0  ;;  %v4551_v0 = vld [vmem:[#allocation12 + $0x28] sm:$0xff] }
0x289d   :  { %v4055_v48 = vpop.f32.mrf.mxu0  ;;  %v4145_v57 = vpop.f32.mrf.mxu1 }
0x289e   :  { %v4063_v13 = vadd.f32 %v4055_v48, %v3970_v61  ;;  %v4560_v48 = vld [vmem:[#allocation12 + $0x70] sm:$0xff]  ;;  %v4553_v61 = vld [vmem:[#allocation12 + $0x38] sm:$0xff] }
0x28a0   :  { %v4153_v41 = vadd.f32 %v4145_v57, %v4063_v13  ;;  %v4554_v57 = vld [vmem:[#allocation12 + $0x40] sm:$0xff]  ;;  %v4552_v13 = vld [vmem:[#allocation12 + $0x30] sm:$0xff] }
0x28a5   :  { %v4058_v19 = vpop.f32.mrf.mxu0  ;;  %v4148_v2 = vpop.f32.mrf.mxu1 }
0x28a6   :  { %v4064_v40 = vadd.f32 %v4058_v19, %v7357_v49  ;;  %v4610_v19 = vld [vmem:[#allocation12 + $0xf0] sm:$0xff] }
0x28a8   :  { %v4154_v1 = vadd.f32 %v4148_v2, %v4064_v40  ;;  %v4559_v40 = vld [vmem:[#allocation12 + $0x68] sm:$0xff]  ;;  %v4602_v2 = vld [vmem:[#allocation12 + $0xb0] sm:$0xff] }
0x28ad   :  { %v4189_v34 = vpop.f32.mrf.mxu0 }
0x28b5   :  { %v4192_v51 = vpop.f32.mrf.mxu0 }
0x28b6   :  { %4226 = vmatpush.msra.mxu2 %v4192_v51  ;;  %v4558_v51 = vld [vmem:[#allocation12 + $0x60] sm:$0xff] }
0x28b8   :  { %4227 = vmatpush.msra.mxu2 %v4189_v34  ;;  %v4609_v34 = vld [vmem:[#allocation12 + $0xe8] sm:$0xff] }
0x28b9   :  { %5567 = vmatmul.msk.f32.vlgmr.msra.gmra.mxu2 %vm1624_vm8, %v5563_v3  ;;  %v4608_v3 = vld [vmem:[#allocation12 + $0xe0] sm:$0xff] }
0x28ba   :  { %4358 = vmatpush.msrb.mxu2 %v6179_v54 }
0x28bc   :  { %4359 = vmatpush.msrb.mxu2 %v6179_v54 }
0x28be   :  { %4360 = vmatpush.msrb.mxu2 %v6179_v54 }
0x28c0   :  { %4361 = vmatpush.msrb.mxu2 %v6179_v54 }
0x28c1   :  { %5568 = vmatmul.msk.f32.gmra.mxu2 %vm1624_vm8, %v5564_v62  ;;  %v4557_v62 = vld [vmem:[#allocation12 + $0x58] sm:$0xff] }
0x28c2   :  { %4362 = vmatpush.msrb.mxu2 %v6179_v54 }
0x28c4   :  { %4363 = vmatpush.msrb.mxu2 %v6179_v54 }
0x28c6   :  { %4364 = vmatpush.msrb.mxu2 %v6179_v54 }
0x28c8   :  { %4365 = vmatpush.msrb.mxu2 %v6179_v54 }
0x28c9   :  { %5569 = vmatmul.msk.f32.gmra.mxu2 %vm1624_vm8, %v5565_v30  ;;  %v4607_v30 = vld [vmem:[#allocation12 + $0xd8] sm:$0xff] }
0x28ca   :  { %4366 = vmatpush.msrb.mxu2 %v6179_v54 }
0x28cc   :  { %4367 = vmatpush.msrb.mxu2 %v6179_v54 }
0x28ce   :  { %4368 = vmatpush.msrb.mxu2 %v6179_v54 }
0x28d0   :  { %4369 = vmatpush.msrb.mxu2 %v6179_v54 }
0x28d1   :  { %5570 = vmatmul.msk.f32.gmra.mxu2 %vm1624_vm8, %v5566_v31  ;;  %v4556_v31 = vld [vmem:[#allocation12 + $0x50] sm:$0xff] }
0x28d2   :  { %4370 = vmatpush.msrb.mxu2 %v6179_v54 }
0x28d4   :  { %4371 = vmatpush.msrb.mxu2 %v6179_v54 }
0x28d6   :  { %4372 = vmatpush.msrb.mxu2 %v6179_v54 }
0x28d8   :  { %4373 = vmatpush.msrb.mxu2 %v6179_v54  ;;  %v4605_v54 = vld [vmem:[#allocation12 + $0xc8] sm:$0xff] }
0x293c   :  { %v4229_v53 = vpop.f32.mrf.mxu2 }
0x293d   :  { %v4241_v14 = vadd.f32 %v4229_v53, %v4151_v27  ;;  %v4555_v53 = vld [vmem:[#allocation12 + $0x48] sm:$0xff]  ;;  %v4599_v27 = vld [vmem:[#allocation12 + $0x98] sm:$0xff] }
0x293f   :  { %v4248_v36 = vadd.f32 %v5679_v26, %v4241_v14  ;;  %v4598_v14 = vld [vmem:[#allocation12 + $0x90] sm:$0xff] }
0x2944   :  { %v4232_v55 = vpop.f32.mrf.mxu2 }
0x2945   :  { %v4242_v49 = vadd.f32 %v4232_v55, %v4152_v25  ;;  %v4550_v25 = vld [vmem:[#allocation12 + $0x20] sm:$0xff] }
0x2947   :  { %v4249_v32 = vadd.f32 %v5679_v26, %v4242_v49 }
0x294c   :  { %v4235_v58 = vpop.f32.mrf.mxu2 }
0x294d   :  { %v4243_v16 = vadd.f32 %v4235_v58, %v4153_v41  ;;  %v4604_v58 = vld [vmem:[#allocation12 + $0xc0] sm:$0xff] }
0x294f   :  { %v4250_v15 = vadd.f32 %v5679_v26, %v4243_v16 }
0x2954   :  { %v4238_v60 = vpop.f32.mrf.mxu2 }
0x2955   :  { %v4244_v17 = vadd.f32 %v4238_v60, %v4154_v1 }
0x2957   :  { %v4251_v29 = vadd.f32 %v5679_v26, %v4244_v17  ;;  %v4600_v26 = vld [vmem:[#allocation12 + $0xa0] sm:$0xff]  ;;  %v4549_v17 = vld [vmem:[#allocation12 + $0x18] sm:$0xff] }
0x2959   :  { %4266 = vmatpush.msra.mxu3 %v4251_v29 }
0x295b   :  { %4267 = vmatpush.msra.mxu3 %v4250_v15 }
0x295d   :  { %4268 = vmatpush.msra.mxu3 %v4249_v32 }
0x295f   :  { %4269 = vmatpush.msra.mxu3 %v4248_v36 }
0x2960   :  { %5571 = vmatmul.msk.f32.vlgmr.msra.gmra.mxu3 %vm510_vm1, %v5741_v37 }
0x29e3   :  { %v4271_v7 = vpop.f32.mrf.mxu3 }
0x29e4   :  { %4290 = vmatmul.f32.vlgmr.msrb.gmra.mxu1 %v4271_v7 }
0x2a61   :  { %v4291_v35 = vpop.f32.mrf.mxu1 }
0x2a62   :  { %5572 = vmatpush.msk.msrb.mxu3 %vm1087_vm2, %v4291_v35 }
0x2a63   :  { %5573 = vmatmul.msk.f32.vlgmr.msrb.gmra.mxu3 %vm1074_vm3, %v5742_v9 }
0x2a64   :  { %4562 = vmatpush.msra.mxu3 %v4561_v47  ;;  %v4837_v47 = vld [vmem:[#allocation12 + $0x1e0] sm:$0xff] }
0x2a66   :  { %4563 = vmatpush.msra.mxu3 %v4560_v48 }
0x2a68   :  { %4564 = vmatpush.msra.mxu3 %v4559_v40 }
0x2a6a   :  { %4565 = vmatpush.msra.mxu3 %v4558_v51 }
0x2a6b   :  { %5574 = vmatmul.msk.f32.gmra.mxu3 %vm1074_vm3, %v5743_v11 }
0x2a6c   :  { %4566 = vmatpush.msra.mxu3 %v4557_v62 }
0x2a6e   :  { %4567 = vmatpush.msra.mxu3 %v4556_v31 }
0x2a70   :  { %4568 = vmatpush.msra.mxu3 %v4555_v53 }
0x2a72   :  { %4569 = vmatpush.msra.mxu3 %v4554_v57 }
0x2a73   :  { %5575 = vmatmul.msk.f32.gmra.mxu3 %vm1074_vm3, %v5744_v12 }
0x2a74   :  { %4570 = vmatpush.msra.mxu3 %v4553_v61 }
0x2a76   :  { %4571 = vmatpush.msra.mxu3 %v4552_v13 }
0x2a78   :  { %4572 = vmatpush.msra.mxu3 %v4551_v0 }
0x2a7a   :  { %4573 = vmatpush.msra.mxu3 %v4550_v25  ;;  %v4831_v25 = vld [vmem:[#allocation12 + $0x1b0] sm:$0xff] }
0x2a7b   :  { %5576 = vmatmul.msk.f32.gmra.mxu3 %vm1074_vm3, %v5745_v38 }
0x2a7c   :  { %4574 = vmatpush.msra.mxu3 %v4549_v17 }
0x2ae6   :  { %v4314_v33 = vpop.f32.mrf.mxu3 }
0x2ae7   :  { %v4326_v43 = vmul.f32 0.00048828125, %v4314_v33 }
0x2ae9   :  { %v7412_v44 = vsub.f32 %v4248_v36, %v4326_v43  ;;  %v4547_v36 = vld [vmem:[#allocation12 + $0x8] sm:$0xff]  ;;  %v4839_v43 = vld [vmem:[#allocation12 + $0x1f0] sm:$0xff] }
0x2aeb   :  { %v4334_v50 = vmul.f32 %v7412_v44, %v7412_v44 }
0x2aee   :  { %v4317_v20 = vpop.f32.mrf.mxu3 }
0x2aef   :  { %v4327_v59 = vmul.f32 0.00048828125, %v4317_v20 }
0x2af1   :  { %v7408_v23 = vsub.f32 %v4249_v32, %v4327_v59 }
0x2af3   :  { %v4335_v4 = vmul.f32 %v7408_v23, %v7408_v23 }
0x2af6   :  { %v4320_v6 = vpop.f32.mrf.mxu3 }
0x2af7   :  { %v4328_v24 = vmul.f32 0.00048828125, %v4320_v6 }
0x2af9   :  { %v7404_v10 = vsub.f32 %v4250_v15, %v4328_v24  ;;  %v4840_v24 = vld [vmem:[#allocation12 + $0x1f8] sm:$0xff] }
0x2afb   :  { %v4336_v42 = vmul.f32 %v7404_v10, %v7404_v10 }
0x2afe   :  { %v4323_v28 = vpop.f32.mrf.mxu3 }
0x2aff   :  { %v4329_v22 = vmul.f32 0.00048828125, %v4323_v28 }
0x2b01   :  { %v7406_v5 = vsub.f32 %v4251_v29, %v4329_v22  ;;  %v4548_v29 = vld [vmem:[#allocation12 + $0x10] sm:$0xff] }
0x2b02   :  { %4575 = vmatpush.msra.mxu3 %v4548_v29 }
0x2b03   :  { %v4337_v39 = vmul.f32 %v7406_v5, %v7406_v5 }
0x2b04   :  { %4576 = vmatpush.msra.mxu3 %v4547_v36 }
0x2b05   :  { %4350 = vmatpush.msra.mxu1 %v4337_v39 }
0x2b07   :  { %4351 = vmatpush.msra.mxu1 %v4336_v42 }
0x2b09   :  { %4352 = vmatpush.msra.mxu1 %v4335_v4 }
0x2b0b   :  { %4353 = vmatpush.msra.mxu1 %v4334_v50 }
0x2b0c   :  { %5577 = vmatmul.msk.f32.vlgmr.msra.gmra.mxu1 %vm510_vm1, %v5741_v37  ;;  %v4597_v37 = vld [vmem:[#allocation12 + $0x88] sm:$0xff] }
0x2b0d   :  { %4612 = vmatpush.msrb.mxu1 %v4611_v56 }
0x2b0f   :  { %4613 = vmatpush.msrb.mxu1 %v4610_v19  ;;  %v4836_v19 = vld [vmem:[#allocation12 + $0x1d8] sm:$0xff] }
0x2b11   :  { %4614 = vmatpush.msrb.mxu1 %v4609_v34 }
0x2b13   :  { %4615 = vmatpush.msrb.mxu1 %v4608_v3  ;;  %v4835_v3 = vld [vmem:[#allocation12 + $0x1d0] sm:$0xff] }
0x2b15   :  { %4616 = vmatpush.msrb.mxu1 %v4607_v30 }
0x2b17   :  { %4617 = vmatpush.msrb.mxu1 %v4606_v8  ;;  %v4834_v8 = vld [vmem:[#allocation12 + $0x1c8] sm:$0xff] }
0x2b19   :  { %4618 = vmatpush.msrb.mxu1 %v4605_v54 }
0x2b1b   :  { %4619 = vmatpush.msrb.mxu1 %v4604_v58  ;;  %v4833_v58 = vld [vmem:[#allocation12 + $0x1c0] sm:$0xff] }
0x2b1d   :  { %4620 = vmatpush.msrb.mxu1 %v4603_v63 }
0x2b1f   :  { %4621 = vmatpush.msrb.mxu1 %v4602_v2  ;;  %v4832_v2 = vld [vmem:[#allocation12 + $0x1b8] sm:$0xff] }
0x2b21   :  { %4622 = vmatpush.msrb.mxu1 %v4601_v21 }
0x2b23   :  { %4623 = vmatpush.msrb.mxu1 %v4600_v26 }
0x2b25   :  { %4624 = vmatpush.msrb.mxu1 %v4599_v27 }
0x2b27   :  { %4625 = vmatpush.msrb.mxu1 %v4598_v14 }
0x2b29   :  { %4626 = vmatpush.msrb.mxu1 %v4597_v37 }
0x2b89   :  { %v4355_v45 = vpop.f32.mrf.mxu1 }
0x2b8a   :  { %4374 = vmatmul.f32.vlgmr.msrb.gmra.mxu2 %v4355_v45 }
0x2c0d   :  { %v4375_v46 = vpop.f32.mrf.mxu2 }
0x2c0e   :  { %5578 = vmatpush.msk.msrb.mxu0 %vm1087_vm2, %v4375_v46  ;;  %v4838_v46 = vld [vmem:[#allocation12 + $0x1e8] sm:$0xff] }
0x2c0f   :  { %5579 = vmatmul.msk.f32.vlgmr.msrb.gmra.mxu0 %vm1074_vm3, %v5742_v9 }
0x2c17   :  { %5580 = vmatmul.msk.f32.gmra.mxu0 %vm1074_vm3, %v5743_v11 }
0x2c1f   :  { %5581 = vmatmul.msk.f32.gmra.mxu0 %vm1074_vm3, %v5744_v12  ;;  %v4546_v12 = vld [vmem:[#allocation12] sm:$0xff] }
0x2c20   :  { %4577 = vmatpush.msra.mxu3 %v4546_v12 }
0x2c27   :  { %5582 = vmatmul.msk.f32.gmra.mxu0 %vm1074_vm3, %v5745_v38  ;;  %v4596_v38 = vld [vmem:[#allocation12 + $0x80] sm:$0xff] }
0x2c28   :  { %4627 = vmatpush.msrb.mxu1 %v4596_v38  ;;  %v7474_v38 = vld [vmem:[#allocation24] ss:$0 sm:$0xff] }
0x2c2a   :  { %4841 = vmatpush.msra.mxu1 %v4840_v24 }
0x2c2c   :  { %4842 = vmatpush.msra.mxu1 %v4839_v43 }
0x2c2e   :  { %4843 = vmatpush.msra.mxu1 %v4838_v46  ;;  %v4826_v46 = vld [vmem:[#allocation12 + $0x188] sm:$0xff] }
0x2c30   :  { %4844 = vmatpush.msra.mxu1 %v4837_v47 }
0x2c32   :  { %4845 = vmatpush.msra.mxu1 %v4836_v19 }
0x2c34   :  { %4846 = vmatpush.msra.mxu1 %v4835_v3 }
0x2c36   :  { %4847 = vmatpush.msra.mxu1 %v4834_v8  ;;  %v5031_v8 = vld [vmem:[#allocation12 + $0x2f0] sm:$0xff] }
0x2c38   :  { %4848 = vmatpush.msra.mxu1 %v4833_v58 }
0x2c3a   :  { %4849 = vmatpush.msra.mxu1 %v4832_v2 }
0x2c3c   :  { %4850 = vmatpush.msra.mxu1 %v4831_v25 }
0x2c8c   :  { %v4398_v52 = vpop.f32.mrf.mxu0 }
0x2c8d   :  { %v7426_v55 = vmul.f32 0.0004885198, %v4398_v52 }
0x2c8f   :  { %5695 = vrsqrt.f32 %v7426_v55  ;;  %vm4421_vm2 = vcmp.eq.f32.partialorder %v7426_v55, inf  ;;  %v4424_v6 = vand.u32 2147483648, %v7426_v55  ;;  %vm4423_vm3 = vcmp.eq.f32.partialorder %v7426_v55, 0.0 }
0x2c94   :  { %v4401_v18 = vpop.f32.mrf.mxu0 }
0x2c95   :  { %v5696_v41 = vpop.eup %5695  ;;  %v7429_v1 = vmul.f32 0.0004885198, %v4401_v18 }
0x2c96   :  { %v4415_v60 = vmul.f32 %v5696_v41, %v7426_v55 }
0x2c97   :  { %5697 = vrsqrt.f32 %v7429_v1  ;;  %vm4433_vm8 = vcmp.eq.f32.partialorder %v7429_v1, inf  ;;  %v4436_v51 = vand.u32 2147483648, %v7429_v1  ;;  %vm4435_vm12 = vcmp.eq.f32.partialorder %v7429_v1, 0.0 }
0x2c98   :  { %v4416_v16 = vmul.f32 %v5696_v41, %v4415_v60 }
0x2c9a   :  { %v4417_v49 = vmul.f32 0.5, %v4416_v16 }
0x2c9c   :  { %v4418_v15 = vsub.f32 1.5, %v4417_v49  ;;  %v4404_v32 = vpop.f32.mrf.mxu0  ;;  %v4830_v49 = vld [vmem:[#allocation12 + $0x1a8] sm:$0xff] }
0x2c9d   :  { %v5698_v7 = vpop.eup %5697  ;;  %v7433_v35 = vmul.f32 0.0004885198, %v4404_v32  ;;  %4851 = vmatpush.msra.mxu1 %v4830_v49 }
0x2c9e   :  { %v4419_v9 = vmul.f32 %v5696_v41, %v4418_v15  ;;  %v4427_v11 = vmul.f32 %v5698_v7, %v7429_v1 }
0x2c9f   :  { %5699 = vrsqrt.f32 %v7433_v35  ;;  %vm4445_vm13 = vcmp.eq.f32.partialorder %v7433_v35, inf  ;;  %v4448_v41 = vand.u32 2147483648, %v7433_v35  ;;  %vm4447_vm15 = vcmp.eq.f32.partialorder %v7433_v35, 0.0 }
0x2ca0   :  { %v4420_v33 = vmul.f32 %v4419_v9, %v7426_v55  ;;  %v4428_v20 = vmul.f32 %v5698_v7, %v4427_v11 }
0x2ca2   :  { %v4422_v28 = vsel %vm4421_vm2, %v7426_v55, %v4420_v33  ;;  %v4429_v59 = vmul.f32 0.5, %v4428_v20  ;;  %v4828_v20 = vld [vmem:[#allocation12 + $0x198] sm:$0xff] }
0x2ca3   :  { %v4425_v22 = vsel %vm4423_vm3, %v4424_v6, %v4422_v28 }
0x2ca4   :  { %v7442_v39 = vadd.f32 1e-05, %v4425_v22  ;;  %v4430_v42 = vsub.f32 1.5, %v4429_v59  ;;  %v4407_v4 = vpop.f32.mrf.mxu0 }
0x2ca5   :  { %v5700_v50 = vpop.eup %5699  ;;  %v7444_v45 = vmul.f32 0.0004885198, %v4407_v4 }
0x2ca6   :  { %5701 = vrcp.f32 %v7442_v39  ;;  %v4431_v56 = vmul.f32 %v5698_v7, %v4430_v42  ;;  %v4439_v48 = vmul.f32 %v5700_v50, %v7433_v35  ;;  %v4477_v21 = vand.u32 2147483648, %v7442_v39  ;;  %v7470_v7 = vld [vmem:[#allocation22] ss:$0 sm:$0xff] }
0x2ca7   :  { %5703 = vrsqrt.f32 %v7444_v45  ;;  %v4475_v60 = vand.u32 2147483647, %v7442_v39  ;;  %vm4471_vm0 = vweird.f32 %v7442_v39  ;;  %vm4457_vm6 = vcmp.eq.f32.partialorder %v7444_v45, inf }
0x2ca8   :  { %v4432_v40 = vmul.f32 %v4431_v56, %v7429_v1  ;;  %v4440_v34 = vmul.f32 %v5700_v50, %v4439_v48  ;;  %v4478_v32 = vor.u32 1.1754944e-38, %v4477_v21  ;;  %v4460_v24 = vand.u32 2147483648, %v7444_v45 }
0x2ca9   :  { %vm4476_vm4 = vcmp.eq.f32.partialorder %v4475_v60, 8.507059e+37  ;;  %vm4459_vm9 = vcmp.eq.f32.partialorder %v7444_v45, 0.0 }
0x2caa   :  { %v4434_v62 = vsel %vm4433_vm8, %v7429_v1, %v4432_v40  ;;  %v4441_v30 = vmul.f32 0.5, %v4440_v34 }
0x2cab   :  { %v4437_v31 = vsel %vm4435_vm12, %v4436_v51, %v4434_v62 }
0x2cac   :  { %v5702_v52 = vpop.eup %5701  ;;  %v7454_v53 = vadd.f32 1e-05, %v4437_v31  ;;  %v4442_v54 = vsub.f32 1.5, %v4441_v30  ;;  %v5032_v30 = vld [vmem:[#allocation12 + $0x2f8] sm:$0xff] }
0x2cad   :  { %v5704_v55 = vpop.eup %5703  ;;  %v4467_v57 = vmul.f32 %v5702_v52, %v7442_v39  ;;  %vm4472_vm14 = vweird.f32 %v5702_v52 }
0x2cae   :  { %5705 = vrcp.f32 %v7454_v53  ;;  %v4443_v61 = vmul.f32 %v5700_v50, %v4442_v54  ;;  %v4451_v63 = vmul.f32 %v5704_v55, %v7444_v45  ;;  %vm4473_vm5 = vmor %vm4471_vm0, %vm4472_vm14  ;;  %v4492_v28 = vand.u32 2147483648, %v7454_v53 }
0x2caf   :  { %v4468_v13 = vsub.f32 1.0, %v4467_v57  ;;  %v4490_v43 = vand.u32 2147483647, %v7454_v53  ;;  %vm4486_vm10 = vweird.f32 %v7454_v53 }
0x2cb0   :  { %v4444_v18 = vmul.f32 %v4443_v61, %v7433_v35  ;;  %v4452_v0 = vmul.f32 %v5704_v55, %v4451_v63  ;;  %v4493_v48 = vor.u32 1.1754944e-38, %v4492_v28  ;;  %v5018_v28 = vld [vmem:[#allocation12 + $0x288] sm:$0xff] }
0x2cb1   :  { %v4469_v1 = vmul.f32 %v5702_v52, %v4468_v13  ;;  %vm4491_vm2 = vcmp.eq.f32.partialorder %v4490_v43, 8.507059e+37 }
0x2cb2   :  { %v4446_v26 = vsel %vm4445_vm13, %v7433_v35, %v4444_v18  ;;  %v4453_v16 = vmul.f32 0.5, %v4452_v0  ;;  %v4829_v35 = vld [vmem:[#allocation12 + $0x1a0] sm:$0xff] }
0x2cb3   :  { %v4449_v17 = vsel %vm4447_vm15, %v4448_v41, %v4446_v26  ;;  %v4470_v27 = vadd.f32 %v5702_v52, %v4469_v1  ;;  %4852 = vmatpush.msra.mxu1 %v4829_v35  ;;  %v5029_v18 = vld [vmem:[#allocation12 + $0x2e0] sm:$0xff]  ;;  %v5028_v1 = vld [vmem:[#allocation12 + $0x2d8] sm:$0xff] }
0x2cb4   :  { %v5706_v29 = vpop.eup %5705  ;;  %v7467_v14 = vadd.f32 1e-05, %v4449_v17  ;;  %v4454_v15 = vsub.f32 1.5, %v4453_v16  ;;  %v5027_v17 = vld [vmem:[#allocation12 + $0x2d0] sm:$0xff]  ;;  %v5024_v35 = vld [vmem:[#allocation12 + $0x2b8] sm:$0xff] }
0x2cb5   :  { %v4482_v36 = vmul.f32 %v5706_v29, %v7454_v53  ;;  %v4474_v37 = vsel %vm4473_vm5, %v5702_v52, %v4470_v27  ;;  %vm4487_vm7 = vweird.f32 %v5706_v29  ;;  %4853 = vmatpush.msra.mxu1 %v4828_v20 }
0x2cb6   :  { %5707 = vrcp.f32 %v7467_v14  ;;  %v4455_v9 = vmul.f32 %v5704_v55, %v4454_v15  ;;  %v4479_v11 = vsel %vm4476_vm4, %v4478_v32, %v4474_v37  ;;  %vm4488_vm11 = vmor %vm4486_vm10, %vm4487_vm7  ;;  %v4507_v31 = vand.u32 2147483648, %v7467_v14  ;;  %v5030_v55 = vld [vmem:[#allocation12 + $0x2e8] sm:$0xff]  ;;  %v5025_v32 = vld [vmem:[#allocation12 + $0x2c0] sm:$0xff] }
0x2cb7   :  { %v4480_v12 = vmul.f32 %v4479_v11, %v7412_v44  ;;  %v4483_v33 = vsub.f32 1.0, %v4482_v36  ;;  %v4827_v44 = vld [vmem:[#allocation12 + $0x190] sm:$0xff]  ;;  %v4505_v54 = vand.u32 2147483647, %v7467_v14  ;;  %vm4501_vm8 = vweird.f32 %v7467_v14 }
0x2cb8   :  { %v4456_v6 = vmul.f32 %v4455_v9, %v7444_v45  ;;  %4854 = vmatpush.msra.mxu1 %v4827_v44  ;;  %v4508_v61 = vor.u32 1.1754944e-38, %v4507_v31  ;;  %v5023_v11 = vld [vmem:[#allocation12 + $0x2b0] sm:$0xff]  ;;  %v4592_v31 = vld [vmem:[#allocation13 + $0x8] sm:$0xff] }
0x2cb9   :  { %v4529_v59 = vmul.f32 %v7470_v7, %v4480_v12  ;;  %v4484_v22 = vmul.f32 %v5706_v29, %v4483_v33  ;;  %vm4506_vm13 = vcmp.eq.f32.partialorder %v4505_v54, 8.507059e+37  ;;  %v5022_v33 = vld [vmem:[#allocation12 + $0x2a8] sm:$0xff] }
0x2cba   :  { %v4458_v39 = vsel %vm4457_vm6, %v7444_v45, %v4456_v6  ;;  %v4825_v45 = vld [vmem:[#allocation12 + $0x180] sm:$0xff]  ;;  %4855 = vmatpush.msra.mxu1 %v4826_v46  ;;  %v4744_v46 = vld [vmem:[#allocation12 + $0x178] sm:$0xff] }
0x2cbb   :  { %v4461_v42 = vsel %vm4459_vm9, %v4460_v24, %v4458_v39  ;;  %v4536_v4 = vadd.f32 %v7474_v38, %v4529_v59  ;;  %v4485_v50 = vadd.f32 %v5706_v29, %v4484_v22  ;;  %v5021_v6 = vld [vmem:[#allocation12 + $0x2a0] sm:$0xff]  ;;  %v5020_v24 = vld [vmem:[#allocation12 + $0x298] sm:$0xff] }
0x2cbc   :  { %v5708_v47 = vpop.eup %5707  ;;  %v7486_v56 = vadd.f32 1e-05, %v4461_v42  ;;  %4856 = vmatpush.msra.mxu1 %v4825_v45  ;;  %v4643_v45 = vld [vmem:[#allocation13 + $0x28] sm:$0xff] }
0x2cbd   :  { %v4497_v19 = vmul.f32 %v5708_v47, %v7467_v14  ;;  %v7489_v40 = vmax.f32 %v4536_v4, 0.0  ;;  %v4489_v34 = vsel %vm4488_vm11, %v5706_v29, %v4485_v50  ;;  %vm4502_vm3 = vweird.f32 %v5708_v47  ;;  %v5026_v29 = vld [vmem:[#allocation12 + $0x2c8] sm:$0xff]  ;;  %v4642_v4 = vld [vmem:[#allocation13 + $0x20] sm:$0xff] }
0x2cbe   :  { %5709 = vrcp.f32 %v7486_v56  ;;  %v4494_v51 = vsel %vm4491_vm2, %v4493_v48, %v4489_v34  ;;  %vm4503_vm12 = vmor %vm4501_vm8, %vm4502_vm3  ;;  %v4522_v60 = vand.u32 2147483648, %v7486_v56  ;;  %v4520_v16 = vand.u32 2147483647, %v7486_v56  ;;  %v4742_v48 = vld [vmem:[#allocation12 + $0x168] sm:$0xff]  ;;  %v4741_v34 = vld [vmem:[#allocation12 + $0x160] sm:$0xff] }
0x2cbf   :  { %4578 = vmatmul.f32.vlgmr.msra.gmra.mxu3 %v7489_v40  ;;  %4628 = vmatmul.f32.vlgmr.msrb.gmra.mxu1 %v7489_v40  ;;  %v4495_v3 = vmul.f32 %v4494_v51, %v7408_v23  ;;  %v4498_v62 = vsub.f32 1.0, %v4497_v19  ;;  %vm4516_vm15 = vweird.f32 %v7486_v56  ;;  %v4591_v19 = vld [vmem:[#allocation13] sm:$0xff]  ;;  %v4740_v51 = vld [vmem:[#allocation12 + $0x158] sm:$0xff] }
0x2cc0   :  { %5033 = vmatpush.msrb.mxu1 %v5032_v30  ;;  %vm4521_vm5 = vcmp.eq.f32.partialorder %v4520_v16, 8.507059e+37  ;;  %v4738_v30 = vld [vmem:[#allocation12 + $0x148] sm:$0xff]  ;;  %v4933_v16 = vld [vmem:[#allocation12 + $0x260] sm:$0xff] }
0x2cc1   :  { %v4530_v52 = vmul.f32 %v7470_v7, %v4495_v3  ;;  %v4499_v53 = vmul.f32 %v5708_v47, %v4498_v62  ;;  %v4739_v62 = vld [vmem:[#allocation12 + $0x150] sm:$0xff] }
0x2cc2   :  { %5034 = vmatpush.msrb.mxu1 %v5031_v8  ;;  %v4737_v8 = vld [vmem:[#allocation12 + $0x140] sm:$0xff] }
0x2cc3   :  { %v4537_v57 = vadd.f32 %v7474_v38, %v4530_v52  ;;  %v4500_v58 = vadd.f32 %v5708_v47, %v4499_v53  ;;  %v4644_v52 = vld [vmem:[#allocation13 + $0x30] sm:$0xff]  ;;  %v4736_v53 = vld [vmem:[#allocation12 + $0x138] sm:$0xff] }
0x2cc4   :  { %v5710_v23 = vpop.eup %5709  ;;  %5035 = vmatpush.msrb.mxu1 %v5030_v55  ;;  %v4735_v55 = vld [vmem:[#allocation12 + $0x130] sm:$0xff] }
0x2cc5   :  { %v4512_v63 = vmul.f32 %v5710_v23, %v7486_v56  ;;  %v7501_v13 = vmax.f32 %v4537_v57, 0.0  ;;  %v4504_v2 = vsel %vm4503_vm12, %v5708_v47, %v4500_v58  ;;  %vm4517_vm14 = vweird.f32 %v5710_v23  ;;  %v4743_v56 = vld [vmem:[#allocation12 + $0x170] sm:$0xff]  ;;  %v4734_v57 = vld [vmem:[#allocation12 + $0x128] sm:$0xff] }
0x2cc6   :  { %v4509_v0 = vsel %vm4506_vm13, %v4508_v61, %v4504_v2  ;;  %5036 = vmatpush.msrb.mxu1 %v5029_v18  ;;  %vm4518_vm0 = vmor %vm4516_vm15, %vm4517_vm14  ;;  %v4593_v58 = vld [vmem:[#allocation13 + $0x10] sm:$0xff]  ;;  %v4645_v61 = vld [vmem:[#allocation13 + $0x38] sm:$0xff] }
0x2cc7   :  { %4581 = vmatmul.f32.gmra.mxu3 %v7501_v13  ;;  %4631 = vmatmul.f32.gmra.mxu1 %v7501_v13  ;;  %v4510_v21 = vmul.f32 %v4509_v0, %v7404_v10  ;;  %v4513_v41 = vsub.f32 1.0, %v4512_v63  ;;  %v4523_v10 = vor.u32 1.1754944e-38, %v4522_v60  ;;  %v4732_v63 = vld [vmem:[#allocation12 + $0x118] sm:$0xff]  ;;  %v4731_v18 = vld [vmem:[#allocation12 + $0x110] sm:$0xff]  ;;  %v4730_v0 = vld [vmem:[#allocation12 + $0x108] sm:$0xff] }
0x2cc8   :  { %5037 = vmatpush.msrb.mxu1 %v5028_v1  ;;  %v4936_v1 = vld [vmem:[#allocation12 + $0x278] sm:$0xff] }
0x2cc9   :  { %v4531_v25 = vmul.f32 %v7470_v7, %v4510_v21  ;;  %v4514_v26 = vmul.f32 %v5710_v23, %v4513_v41  ;;  %v4594_v21 = vld [vmem:[#allocation13 + $0x18] sm:$0xff]  ;;  %v4729_v41 = vld [vmem:[#allocation12 + $0x100] sm:$0xff] }
0x2cca   :  { %5038 = vmatpush.msrb.mxu1 %v5027_v17  ;;  %v4932_v17 = vld [vmem:[#allocation12 + $0x258] sm:$0xff] }
0x2ccb   :  { %v4538_v27 = vadd.f32 %v7474_v38, %v4531_v25  ;;  %v4515_v49 = vadd.f32 %v5710_v23, %v4514_v26  ;;  %v4935_v25 = vld [vmem:[#allocation12 + $0x270] sm:$0xff]  ;;  %v4934_v26 = vld [vmem:[#allocation12 + $0x268] sm:$0xff] }
0x2ccc   :  { %5039 = vmatpush.msrb.mxu1 %v5026_v29  ;;  %v4930_v29 = vld [vmem:[#allocation12 + $0x248] sm:$0xff] }
0x2ccd   :  { %v7511_v14 = vmax.f32 %v4538_v27, 0.0  ;;  %v4519_v15 = vsel %vm4518_vm0, %v5710_v23, %v4515_v49  ;;  %v4733_v23 = vld [vmem:[#allocation12 + $0x120] sm:$0xff]  ;;  %v4931_v49 = vld [vmem:[#allocation12 + $0x250] sm:$0xff] }
0x2cce   :  { %v4524_v36 = vsel %vm4521_vm5, %v4523_v10, %v4519_v15  ;;  %5040 = vmatpush.msrb.mxu1 %v5025_v32  ;;  %v4929_v10 = vld [vmem:[#allocation12 + $0x240] sm:$0xff]  ;;  %v4928_v15 = vld [vmem:[#allocation12 + $0x238] sm:$0xff] }
0x2ccf   :  { %4584 = vmatmul.f32.gmra.mxu3 %v7511_v14  ;;  %4634 = vmatmul.f32.gmra.mxu1 %v7511_v14  ;;  %v4525_v37 = vmul.f32 %v4524_v36, %v7406_v5  ;;  %v5019_v5 = vld [vmem:[#allocation12 + $0x290] sm:$0xff] }
0x2cd0   :  { %5041 = vmatpush.msrb.mxu1 %v5024_v35  ;;  %v4927_v36 = vld [vmem:[#allocation12 + $0x230] sm:$0xff]  ;;  %v4925_v35 = vld [vmem:[#allocation12 + $0x220] sm:$0xff] }
0x2cd1   :  { %v4532_v9 = vmul.f32 %v7470_v7, %v4525_v37  ;;  %v5017_v7 = vld [vmem:[#allocation12 + $0x280] sm:$0xff]  ;;  %v4926_v37 = vld [vmem:[#allocation12 + $0x228] sm:$0xff] }
0x2cd2   :  { %5042 = vmatpush.msrb.mxu1 %v5023_v11 }
0x2cd3   :  { %v4539_v12 = vadd.f32 %v7474_v38, %v4532_v9  ;;  %v4924_v9 = vld [vmem:[#allocation12 + $0x218] sm:$0xff] }
0x2cd4   :  { %5043 = vmatpush.msrb.mxu1 %v5022_v33  ;;  %v4922_v33 = vld [vmem:[#allocation12 + $0x208] sm:$0xff] }
0x2cd5   :  { %v7518_v20 = vmax.f32 %v4539_v12, 0.0  ;;  %v4923_v12 = vld [vmem:[#allocation12 + $0x210] sm:$0xff] }
0x2cd6   :  { %5044 = vmatpush.msrb.mxu1 %v5021_v6  ;;  %v4921_v6 = vld [vmem:[#allocation12 + $0x200] sm:$0xff] }
0x2cd7   :  { %4587 = vmatmul.f32.gmra.mxu3 %v7518_v20  ;;  %4637 = vmatmul.f32.gmra.mxu1 %v7518_v20 }
0x2cd8   :  { %5045 = vmatpush.msrb.mxu1 %v5020_v24  ;;  %v5128_v24 = vld [vmem:[#allocation12 + $0x378] sm:$0xff] }
0x2cda   :  { %5046 = vmatpush.msrb.mxu1 %v5019_v5  ;;  %v5127_v5 = vld [vmem:[#allocation12 + $0x370] sm:$0xff] }
0x2cdc   :  { %5047 = vmatpush.msrb.mxu1 %v5018_v28  ;;  %v5126_v28 = vld [vmem:[#allocation12 + $0x368] sm:$0xff] }
0x2cde   :  { %5048 = vmatpush.msrb.mxu1 %v5017_v7  ;;  %v5125_v7 = vld [vmem:[#allocation12 + $0x360] sm:$0xff] }
0x2cdf   :  { %4857 = vmatmul.f32.vlgmr.msra.gmra.mxu1 %v7489_v40 }
0x2ce7   :  { %4860 = vmatmul.f32.gmra.mxu1 %v7501_v13 }
0x2cef   :  { %4863 = vmatmul.f32.gmra.mxu1 %v7511_v14 }
0x2cf7   :  { %4866 = vmatmul.f32.gmra.mxu1 %v7518_v20 }
0x2cff   :  { %5049 = vmatmul.f32.vlgmr.msrb.gmra.mxu1 %v7489_v40 }
0x2d07   :  { %5052 = vmatmul.f32.gmra.mxu1 %v7501_v13 }
0x2d0f   :  { %5055 = vmatmul.f32.gmra.mxu1 %v7511_v14 }
0x2d17   :  { %5058 = vmatmul.f32.gmra.mxu1 %v7518_v20 }
0x2d3c   :  { %v4629_v38 = vpop.f32.mrf.mxu1 }
0x2d42   :  { %v4579_v59 = vpop.f32.mrf.mxu3 }
0x2d44   :  { %v4632_v22 = vpop.f32.mrf.mxu1 }
0x2d4a   :  { %v4582_v43 = vpop.f32.mrf.mxu3 }
0x2d4c   :  { %v4635_v44 = vpop.f32.mrf.mxu1 }
0x2d52   :  { %v4585_v39 = vpop.f32.mrf.mxu3 }
0x2d54   :  { %v4638_v42 = vpop.f32.mrf.mxu1 }
0x2d55   :  { %4670 = vmatpush.msra.mxu2 %v4638_v42  ;;  %v5118_v42 = vld [vmem:[#allocation12 + $0x328] sm:$0xff] }
0x2d57   :  { %4671 = vmatpush.msra.mxu2 %v4635_v44  ;;  %v5120_v44 = vld [vmem:[#allocation12 + $0x338] sm:$0xff] }
0x2d59   :  { %4672 = vmatpush.msra.mxu2 %v4632_v22  ;;  %v5122_v22 = vld [vmem:[#allocation12 + $0x348] sm:$0xff] }
0x2d5a   :  { %v4588_v50 = vpop.f32.mrf.mxu3 }
0x2d5b   :  { %4673 = vmatpush.msra.mxu2 %v4629_v38  ;;  %4711 = vmatpush.msra.mxu0 %v4588_v50  ;;  %v5124_v38 = vld [vmem:[#allocation12 + $0x358] sm:$0xff] }
0x2d5c   :  { %5584 = vmatmul.msk.f32.vlgmr.msra.gmra.mxu2 %vm510_vm1, %v4642_v4  ;;  %v4858_v47 = vpop.f32.mrf.mxu1  ;;  %v5117_v4 = vld [vmem:[#allocation12 + $0x320] sm:$0xff]  ;;  %v5116_v50 = vld [vmem:[#allocation12 + $0x318] sm:$0xff] }
0x2d5d   :  { %4712 = vmatpush.msra.mxu0 %v4585_v39  ;;  %4745 = vmatpush.msrb.mxu2 %v4744_v46  ;;  %v5119_v39 = vld [vmem:[#allocation12 + $0x330] sm:$0xff] }
0x2d5e   :  { %v5115_v46 = vld [vmem:[#allocation12 + $0x310] sm:$0xff] }
0x2d5f   :  { %4713 = vmatpush.msra.mxu0 %v4582_v43  ;;  %4746 = vmatpush.msrb.mxu2 %v4743_v56  ;;  %v5121_v43 = vld [vmem:[#allocation12 + $0x340] sm:$0xff] }
0x2d60   :  { %v5113_v56 = vld [vmem:[#allocation12 + $0x300] sm:$0xff] }
0x2d61   :  { %4714 = vmatpush.msra.mxu0 %v4579_v59  ;;  %4747 = vmatpush.msrb.mxu2 %v4742_v48  ;;  %v5123_v59 = vld [vmem:[#allocation12 + $0x350] sm:$0xff] }
0x2d62   :  { %5588 = vmatmul.msk.f32.vlgmr.msra.gmra.mxu0 %vm510_vm1, %v4591_v19 }
0x2d63   :  { %4748 = vmatpush.msrb.mxu2 %v4741_v34 }
0x2d64   :  { %5585 = vmatmul.msk.f32.gmra.mxu2 %vm510_vm1, %v4643_v45  ;;  %v4861_v3 = vpop.f32.mrf.mxu1 }
0x2d65   :  { %4749 = vmatpush.msrb.mxu2 %v4740_v51 }
0x2d67   :  { %4750 = vmatpush.msrb.mxu2 %v4739_v62  ;;  %v4871_v62 = vld [vmem:[#allocation13 + $0x60] sm:$0xff] }
0x2d69   :  { %4751 = vmatpush.msrb.mxu2 %v4738_v30  ;;  %v4872_v30 = vld [vmem:[#allocation13 + $0x68] sm:$0xff] }
0x2d6a   :  { %5589 = vmatmul.msk.f32.gmra.mxu0 %vm510_vm1, %v4592_v31  ;;  %v4874_v31 = vld [vmem:[#allocation13 + $0x78] sm:$0xff] }
0x2d6b   :  { %4752 = vmatpush.msrb.mxu2 %v4737_v8 }
0x2d6c   :  { %5586 = vmatmul.msk.f32.gmra.mxu2 %vm510_vm1, %v4644_v52  ;;  %v4864_v54 = vpop.f32.mrf.mxu1  ;;  %v4776_v52 = vld [vmem:[#allocation13 + $0x48] sm:$0xff] }
0x2d6d   :  { %4753 = vmatpush.msrb.mxu2 %v4736_v53 }
0x2d6f   :  { %4754 = vmatpush.msrb.mxu2 %v4735_v55  ;;  %v4777_v55 = vld [vmem:[#allocation13 + $0x50] sm:$0xff] }
0x2d71   :  { %4755 = vmatpush.msrb.mxu2 %v4734_v57 }
0x2d72   :  { %5590 = vmatmul.msk.f32.gmra.mxu0 %vm510_vm1, %v4593_v58  ;;  %v5064_v58 = vld [vmem:[#allocation13 + $0xa8] sm:$0xff] }
0x2d73   :  { %4756 = vmatpush.msrb.mxu2 %v4733_v23  ;;  %v4778_v23 = vld [vmem:[#allocation13 + $0x58] sm:$0xff] }
0x2d74   :  { %5587 = vmatmul.msk.f32.gmra.mxu2 %vm510_vm1, %v4645_v61  ;;  %v4867_v2 = vpop.f32.mrf.mxu1 }
0x2d75   :  { %4757 = vmatpush.msrb.mxu2 %v4732_v63  ;;  %4899 = vmatpush.msrb.mxu0 %v4867_v2  ;;  %v5065_v63 = vld [vmem:[#allocation13 + $0xb0] sm:$0xff]  ;;  %v4967_v2 = vld [vmem:[#allocation13 + $0x80] sm:$0xff] }
0x2d77   :  { %4758 = vmatpush.msrb.mxu2 %v4731_v18  ;;  %4900 = vmatpush.msrb.mxu0 %v4864_v54  ;;  %v5063_v54 = vld [vmem:[#allocation13 + $0xa0] sm:$0xff]  ;;  %v5066_v18 = vld [vmem:[#allocation13 + $0xb8] sm:$0xff] }
0x2d79   :  { %4759 = vmatpush.msrb.mxu2 %v4730_v0  ;;  %4901 = vmatpush.msrb.mxu0 %v4861_v3 }
0x2d7a   :  { %5591 = vmatmul.msk.f32.gmra.mxu0 %vm510_vm1, %v4594_v21  ;;  %v4968_v21 = vld [vmem:[#allocation13 + $0x88] sm:$0xff] }
0x2d7b   :  { %4760 = vmatpush.msrb.mxu2 %v4729_v41  ;;  %4902 = vmatpush.msrb.mxu0 %v4858_v47  ;;  %v5114_v47 = vld [vmem:[#allocation12 + $0x308] sm:$0xff] }
0x2d7c   :  { %4761 = vmatmul.f32.vlgmr.msrb.gmra.mxu2 %v7489_v40  ;;  %v5050_v60 = vpop.f32.mrf.mxu1 }
0x2d7d   :  { %4937 = vmatpush.msra.mxu2 %v4936_v1  ;;  %v4969_v1 = vld [vmem:[#allocation13 + $0x90] sm:$0xff] }
0x2d7f   :  { %4938 = vmatpush.msra.mxu2 %v4935_v25  ;;  %v4970_v25 = vld [vmem:[#allocation13 + $0x98] sm:$0xff] }
0x2d81   :  { %4939 = vmatpush.msra.mxu2 %v4934_v26 }
0x2d82   :  { %5596 = vmatmul.msk.f32.vlgmr.msrb.gmra.mxu0 %vm510_vm1, %v4871_v62 }
0x2d83   :  { %4940 = vmatpush.msra.mxu2 %v4933_v16  ;;  %v5159_v16 = vld [vmem:[#allocation13 + $0xc0] sm:$0xff] }
0x2d84   :  { %4764 = vmatmul.f32.gmra.mxu2 %v7501_v13  ;;  %v5053_v27 = vpop.f32.mrf.mxu1 }
0x2d85   :  { %4941 = vmatpush.msra.mxu2 %v4932_v17  ;;  %v5160_v17 = vld [vmem:[#allocation13 + $0xc8] sm:$0xff] }
0x2d87   :  { %4942 = vmatpush.msra.mxu2 %v4931_v49  ;;  %v5162_v49 = vld [vmem:[#allocation13 + $0xd8] sm:$0xff] }
0x2d89   :  { %4943 = vmatpush.msra.mxu2 %v4930_v29 }
0x2d8a   :  { %5597 = vmatmul.msk.f32.gmra.mxu0 %vm510_vm1, %v4872_v30 }
0x2d8b   :  { %4944 = vmatpush.msra.mxu2 %v4929_v10 }
0x2d8c   :  { %4767 = vmatmul.f32.gmra.mxu2 %v7511_v14  ;;  %v5056_v32 = vpop.f32.mrf.mxu1 }
0x2d8d   :  { %4945 = vmatpush.msra.mxu2 %v4928_v15 }
0x2d8f   :  { %4946 = vmatpush.msra.mxu2 %v4927_v36 }
0x2d91   :  { %4947 = vmatpush.msra.mxu2 %v4926_v37 }
0x2d93   :  { %4948 = vmatpush.msra.mxu2 %v4925_v35 }
0x2d94   :  { %4770 = vmatmul.f32.gmra.mxu2 %v7518_v20  ;;  %v5059_v11 = vpop.f32.mrf.mxu1 }
0x2d95   :  { %4949 = vmatpush.msra.mxu2 %v4924_v9  ;;  %5091 = vmatpush.msra.mxu0 %v5059_v11 }
0x2d97   :  { %4950 = vmatpush.msra.mxu2 %v4923_v12  ;;  %5092 = vmatpush.msra.mxu0 %v5056_v32 }
0x2d99   :  { %4951 = vmatpush.msra.mxu2 %v4922_v33  ;;  %5093 = vmatpush.msra.mxu0 %v5053_v27  ;;  %v5161_v27 = vld [vmem:[#allocation13 + $0xd0] sm:$0xff] }
0x2d9b   :  { %4952 = vmatpush.msra.mxu2 %v4921_v6  ;;  %5094 = vmatpush.msra.mxu0 %v5050_v60 }
0x2d9c   :  { %4953 = vmatmul.f32.vlgmr.msra.gmra.mxu2 %v7489_v40 }
0x2d9d   :  { %5129 = vmatpush.msrb.mxu2 %v5128_v24 }
0x2d9f   :  { %5130 = vmatpush.msrb.mxu2 %v5127_v5 }
0x2da1   :  { %5131 = vmatpush.msrb.mxu2 %v5126_v28 }
0x2da3   :  { %5132 = vmatpush.msrb.mxu2 %v5125_v7 }
0x2da4   :  { %4956 = vmatmul.f32.gmra.mxu2 %v7501_v13 }
0x2da5   :  { %5133 = vmatpush.msrb.mxu2 %v5124_v38 }
0x2da7   :  { %5134 = vmatpush.msrb.mxu2 %v5123_v59 }
0x2da9   :  { %5135 = vmatpush.msrb.mxu2 %v5122_v22 }
0x2dab   :  { %5136 = vmatpush.msrb.mxu2 %v5121_v43 }
0x2dac   :  { %4959 = vmatmul.f32.gmra.mxu2 %v7511_v14 }
0x2dad   :  { %5137 = vmatpush.msrb.mxu2 %v5120_v44 }
0x2daf   :  { %5138 = vmatpush.msrb.mxu2 %v5119_v39 }
0x2db1   :  { %5139 = vmatpush.msrb.mxu2 %v5118_v42 }
0x2db3   :  { %5140 = vmatpush.msrb.mxu2 %v5117_v4 }
0x2db4   :  { %4962 = vmatmul.f32.gmra.mxu2 %v7518_v20 }
0x2db5   :  { %5141 = vmatpush.msrb.mxu2 %v5116_v50  ;;  %v5682_v50 = vld [vmem:[%s7625_s4 + $0x7] ss:$0 sm:$0xff] }
0x2db7   :  { %5142 = vmatpush.msrb.mxu2 %v5115_v46 }
0x2db9   :  { %5143 = vmatpush.msrb.mxu2 %v5114_v47 }
0x2dbb   :  { %5144 = vmatpush.msrb.mxu2 %v5113_v56 }
0x2dbc   :  { %5145 = vmatmul.f32.vlgmr.msrb.gmra.mxu2 %v7489_v40 }
0x2dc4   :  { %5148 = vmatmul.f32.gmra.mxu2 %v7501_v13 }
0x2dcc   :  { %5151 = vmatmul.f32.gmra.mxu2 %v7511_v14  ;;  %v4873_v14 = vld [vmem:[#allocation13 + $0x70] sm:$0xff] }
0x2dcd   :  { %5598 = vmatmul.msk.f32.gmra.mxu0 %vm510_vm1, %v4873_v14 }
0x2dd4   :  { %5154 = vmatmul.f32.gmra.mxu2 %v7518_v20  ;;  %v4775_v20 = vld [vmem:[#allocation13 + $0x40] sm:$0xff] }
0x2dd5   :  { %5599 = vmatmul.msk.f32.gmra.mxu0 %vm510_vm1, %v4874_v31 }
0x2ddd   :  { %5604 = vmatmul.msk.f32.vlgmr.msra.gmra.mxu0 %vm510_vm1, %v5063_v54 }
0x2ddf   :  { %v7550_v48 = vpop.f32.mrf.mxu2  ;;  %v4716_v29 = vpop.f32.mrf.mxu0 }
0x2de0   :  { %v4717_v7 = vadd.f32 %v4716_v29, %v7550_v48 }
0x2de5   :  { %5605 = vmatmul.msk.f32.gmra.mxu0 %vm510_vm1, %v5064_v58 }
0x2de7   :  { %v7552_v19 = vpop.f32.mrf.mxu2  ;;  %v4719_v10 = vpop.f32.mrf.mxu0 }
0x2de8   :  { %v4720_v44 = vadd.f32 %v4719_v10, %v7552_v19 }
0x2ded   :  { %5606 = vmatmul.msk.f32.gmra.mxu0 %vm510_vm1, %v5065_v63 }
0x2def   :  { %v7554_v34 = vpop.f32.mrf.mxu2  ;;  %v4722_v15 = vpop.f32.mrf.mxu0 }
0x2df5   :  { %5607 = vmatmul.msk.f32.gmra.mxu0 %vm510_vm1, %v5066_v18 }
0x2df7   :  { %v7556_v45 = vpop.f32.mrf.mxu2  ;;  %v4725_v36 = vpop.f32.mrf.mxu0 }
0x2dff   :  { %v4762_v51 = vpop.f32.mrf.mxu2  ;;  %v4904_v35 = vpop.f32.mrf.mxu0 }
0x2e07   :  { %v4765_v3 = vpop.f32.mrf.mxu2  ;;  %v4907_v11 = vpop.f32.mrf.mxu0 }
0x2e0f   :  { %v4768_v40 = vpop.f32.mrf.mxu2 }
0x2e17   :  { %v4771_v13 = vpop.f32.mrf.mxu2 }
0x2e18   :  { %4803 = vmatpush.msrb.mxu3 %v4771_v13 }
0x2e1a   :  { %4804 = vmatpush.msrb.mxu3 %v4768_v40 }
0x2e1c   :  { %4805 = vmatpush.msrb.mxu3 %v4765_v3  ;;  %v4723_v3 = vadd.f32 %v4722_v15, %v7554_v34 }
0x2e1e   :  { %4806 = vmatpush.msrb.mxu3 %v4762_v51 }
0x2e1f   :  { %5592 = vmatmul.msk.f32.vlgmr.msrb.gmra.mxu3 %vm510_vm1, %v4775_v20  ;;  %v4954_v8 = vpop.f32.mrf.mxu2 }
0x2e27   :  { %5593 = vmatmul.msk.f32.gmra.mxu3 %vm510_vm1, %v4776_v52  ;;  %v4957_v53 = vpop.f32.mrf.mxu2 }
0x2e2f   :  { %5594 = vmatmul.msk.f32.gmra.mxu3 %vm510_vm1, %v4777_v55  ;;  %v4960_v57 = vpop.f32.mrf.mxu2 }
0x2e37   :  { %5595 = vmatmul.msk.f32.gmra.mxu3 %vm510_vm1, %v4778_v23  ;;  %v4963_v61 = vpop.f32.mrf.mxu2 }
0x2e38   :  { %4995 = vmatpush.msra.mxu3 %v4963_v61 }
0x2e3a   :  { %4996 = vmatpush.msra.mxu3 %v4960_v57 }
0x2e3c   :  { %4997 = vmatpush.msra.mxu3 %v4957_v53 }
0x2e3e   :  { %4998 = vmatpush.msra.mxu3 %v4954_v8  ;;  %v4726_v8 = vadd.f32 %v4725_v36, %v7556_v45 }
0x2e3f   :  { %5600 = vmatmul.msk.f32.vlgmr.msra.gmra.mxu3 %vm510_vm1, %v4967_v2  ;;  %v5146_v0 = vpop.f32.mrf.mxu2 }
0x2e47   :  { %5601 = vmatmul.msk.f32.gmra.mxu3 %vm510_vm1, %v4968_v21  ;;  %v5149_v41 = vpop.f32.mrf.mxu2 }
0x2e4a   :  { %v4910_v6 = vpop.f32.mrf.mxu0 }
0x2e4f   :  { %5602 = vmatmul.msk.f32.gmra.mxu3 %vm510_vm1, %v4969_v1  ;;  %v5152_v60 = vpop.f32.mrf.mxu2 }
0x2e52   :  { %v4913_v5 = vpop.f32.mrf.mxu0 }
0x2e57   :  { %5603 = vmatmul.msk.f32.gmra.mxu3 %vm510_vm1, %v4970_v25  ;;  %v5155_v26 = vpop.f32.mrf.mxu2 }
0x2e58   :  { %5187 = vmatpush.msrb.mxu3 %v5155_v26 }
0x2e5a   :  { %5188 = vmatpush.msrb.mxu3 %v5152_v60  ;;  %v5096_v59 = vpop.f32.mrf.mxu0 }
0x2e5c   :  { %5189 = vmatpush.msrb.mxu3 %v5149_v41 }
0x2e5e   :  { %5190 = vmatpush.msrb.mxu3 %v5146_v0 }
0x2e5f   :  { %5608 = vmatmul.msk.f32.vlgmr.msrb.gmra.mxu3 %vm510_vm1, %v5159_v16 }
0x2e62   :  { %v5099_v46 = vpop.f32.mrf.mxu0 }
0x2e67   :  { %5609 = vmatmul.msk.f32.gmra.mxu3 %vm510_vm1, %v5160_v17 }
0x2e6a   :  { %v5102_v19 = vpop.f32.mrf.mxu0 }
0x2e6f   :  { %5610 = vmatmul.msk.f32.gmra.mxu3 %vm510_vm1, %v5161_v27 }
0x2e72   :  { %v5105_v2 = vpop.f32.mrf.mxu0 }
0x2e77   :  { %5611 = vmatmul.msk.f32.gmra.mxu3 %vm510_vm1, %v5162_v49 }
0x2ea2   :  { %v4808_v32 = vpop.f32.mrf.mxu3 }
0x2ea3   :  { %v4820_v38 = vadd.f32 %v4808_v32, %v4717_v7 }
0x2ea5   :  { %v4916_v43 = vadd.f32 %v4904_v35, %v4820_v38 }
0x2eaa   :  { %v4811_v37 = vpop.f32.mrf.mxu3 }
0x2eab   :  { %v4821_v42 = vadd.f32 %v4811_v37, %v4720_v44 }
0x2ead   :  { %v4917_v56 = vadd.f32 %v4907_v11, %v4821_v42 }
0x2eb2   :  { %v4814_v9 = vpop.f32.mrf.mxu3 }
0x2eb3   :  { %v4822_v48 = vadd.f32 %v4814_v9, %v4723_v3 }
0x2eb5   :  { %v4918_v14 = vadd.f32 %v4910_v6, %v4822_v48 }
0x2eba   :  { %v4817_v12 = vpop.f32.mrf.mxu3 }
0x2ebb   :  { %v4823_v54 = vadd.f32 %v4817_v12, %v4726_v8 }
0x2ebd   :  { %v4919_v57 = vadd.f32 %v4913_v5, %v4823_v54 }
0x2ec2   :  { %v5000_v33 = vpop.f32.mrf.mxu3 }
0x2ec3   :  { %v5012_v39 = vadd.f32 %v5000_v33, %v4916_v43 }
0x2ec5   :  { %v5108_v4 = vadd.f32 %v5096_v59, %v5012_v39 }
0x2eca   :  { %v5003_v24 = vpop.f32.mrf.mxu3 }
0x2ecb   :  { %v5013_v62 = vadd.f32 %v5003_v24, %v4917_v56 }
0x2ecd   :  { %v5109_v30 = vadd.f32 %v5099_v46, %v5013_v62 }
0x2ed2   :  { %v5006_v28 = vpop.f32.mrf.mxu3 }
0x2ed3   :  { %v5014_v52 = vadd.f32 %v5006_v28, %v4918_v14 }
0x2ed5   :  { %v5110_v34 = vadd.f32 %v5102_v19, %v5014_v52 }
0x2eda   :  { %v5009_v22 = vpop.f32.mrf.mxu3 }
0x2edb   :  { %v5015_v61 = vadd.f32 %v5009_v22, %v4919_v57 }
0x2edd   :  { %v5111_v18 = vadd.f32 %v5105_v2, %v5015_v61 }
0x2ee2   :  { %v5192_v47 = vpop.f32.mrf.mxu3 }
0x2ee3   :  { %v5204_v51 = vadd.f32 %v5192_v47, %v5108_v4 }
0x2ee5   :  { %v5211_v40 = vadd.f32 %v5682_v50, %v5204_v51 }
0x2ee7   :  { %5711 = vtanh.f32 %v5211_v40 }
0x2eea   :  { %v5195_v13 = vpop.f32.mrf.mxu3 }
0x2eeb   :  { %v5205_v20 = vadd.f32 %v5195_v13, %v5109_v30 }
0x2eed   :  { %v5712_v31 = vpop.eup %5711  ;;  %v5212_v53 = vadd.f32 %v5682_v50, %v5205_v20 }
0x2eee   :  { %5219 = vst [vmem:[%s6363_s6] sm:$0xff] %v5712_v31 }
0x2eef   :  { %5713 = vtanh.f32 %v5212_v53 }
0x2ef2   :  { %v5198_v55 = vpop.f32.mrf.mxu3 }
0x2ef3   :  { %v5206_v58 = vadd.f32 %v5198_v55, %v5110_v34 }
0x2ef5   :  { %v5714_v23 = vpop.eup %5713  ;;  %v5213_v63 = vadd.f32 %v5682_v50, %v5206_v58 }
0x2ef6   :  { %5220 = vst [vmem:[%s6363_s6 + $0x8] sm:$0xff] %v5714_v23 }
0x2ef7   :  { %5715 = vtanh.f32 %v5213_v63 }
0x2efa   :  { %v5201_v0 = vpop.f32.mrf.mxu3 }
0x2efb   :  { %v5207_v45 = vadd.f32 %v5201_v0, %v5111_v18 }
0x2efd   :  { %v5716_v21 = vpop.eup %5715  ;;  %v5214_v41 = vadd.f32 %v5682_v50, %v5207_v45 }
0x2efe   :  { %5221 = vst [vmem:[%s6363_s6 + $0x10] sm:$0xff] %v5716_v21 }
0x2eff   :  { %5717 = vtanh.f32 %v5214_v41 }
0x2f05   :  { %v5718_v1 = vpop.eup %5717 }
0x2f06   :  { %5222 = vst [vmem:[%s6363_s6 + $0x18] sm:$0xff] %v5718_v1 }
0x2f07   :  { %5227 = vsyncpa [#allocation3], 1 }
0x2f08   :  { %5228 = vsyncpa [#allocation5], 1 }
0x2f09   :  { %5229 = vsyncpa [#allocation8], 1 }
0x2f0a   :  { %5230 = vsyncpa [#allocation11], 1 }
0x2f0b   :  { %5231 = vsyncpa [#allocation14], 1 }
0x2f0c   :  { %5232 = vsyncpa [#allocation17], 1 }
0x2f0d   :  { %5233 = vsyncpa [#allocation20], 1 }
0x2f0e   :  { %5234 = vsyncpa [#allocation23], 1 }

</bundles_post_ra>
